<compile_context>
chip_gen: v7x
topology: tpu7x:2x2x1
jax: 0.10.0
libtpu: 0.0.40
codegen_flags: <defaults>
</compile_context>

<pallas_src>
import functools

import jax
import jax.numpy as jnp
from jax import lax
from jax.experimental import pallas as pl
from jax.experimental.pallas import tpu as pltpu


# ---------------------------------------------------------------------------
# Fused forward kernel (no grid, no scratch: everything VMEM/vreg resident)
# ---------------------------------------------------------------------------
def _fused_forward_kernel(
    # ---- inputs -----------------------------------------------------------
    x1_ref,                                   # [T*B, 3*Din] f32  conv1 im2col (time-major)
    sel_ref,                                  # [B, T*B]     f32  batch-selection 0/1 matrix
    c1w_ref, c1s_ref, c1b_ref,                # conv1: [3*Din,Hh] bf16, [1,Hh] f32, [1,Hh] f32
    c2w_ref, c2s_ref, c2b_ref,                # conv2: [5*Hh,H]  bf16, [1,H]  f32, [1,H]  f32
    wih0_ref, whh0_ref, b0_ref,               # LSTM layer 0: [H,4H] bf16 x2, [1,4H] f32
    wih1_ref, whh1_ref, b1_ref,               # LSTM layer 1
    wqkv_ref, bqkv_ref, g_ref, gt_ref,        # attn: [H,3H] bf16, [1,3H] f32, [H,nh] bf16, [nh,H] bf16
    wo_ref, bo_ref,                           # attn out proj: [H,H] bf16, [1,H] f32
    featw_ref, featb_ref, lng_ref, lnb_ref,   # feature layer + LayerNorm
    vaw1_ref, vab1_ref, vaw2_ref, vab2_ref,   # fused value|advantage streams
    pw1_ref, pb1_ref, pw2_ref, pb2_ref,       # prediction head
    # ---- output -----------------------------------------------------------
    out_ref,                                  # [B, 128] f32: lanes [0:A]=q, [A:A+Din]=pred
    *, B, T, Din, H, num_heads, num_actions):

    f32 = jnp.float32
    bf16 = jnp.bfloat16
    Hh = H // 2
    M = T * B

    def bdot(a, w):   # bf16 MXU matmul, f32 accumulation
        return jnp.dot(a.astype(bf16), w, preferred_element_type=f32)

    # ---------------- conv1 (k=3, pad=1): ONE im2col matmul -----------------
    # im2col built wrapper-side (layout plumbing on the kernel input).
    h1 = jnp.maximum(
        bdot(x1_ref[...], c1w_ref[...]) * c1s_ref[...] + c1b_ref[...], 0.0)   # [M, Hh]

    # ---------------- conv2 (k=5, pad=2): in-kernel im2col, ONE matmul ------
    K2 = 5
    zpad = jnp.zeros((2 * B, Hh), f32)
    h1p = jnp.concatenate([zpad, h1, zpad], axis=0)                 # [(T+4)*B, Hh]
    x2 = jnp.concatenate(
        [h1p[k * B:k * B + M, :] for k in range(K2)], axis=1)       # [M, 5*Hh]
    feats = jnp.maximum(
        bdot(x2, c2w_ref[...]) * c2s_ref[...] + c2b_ref[...], 0.0)  # [M, H]

    # ---------------- 2-layer LSTM (time-major rows: t*B + b) ---------------
    def lstm_cell(pre_t, h, c, whh):
        g = pre_t + bdot(h, whh)                                     # [B, 4H] f32
        ig = jax.nn.sigmoid(g[:, 0 * H:1 * H])
        fg = jax.nn.sigmoid(g[:, 1 * H:2 * H])
        gg = jnp.tanh(g[:, 2 * H:3 * H])
        og = jax.nn.sigmoid(g[:, 3 * H:4 * H])
        c_new = fg * c + ig * gg
        h_new = og * jnp.tanh(c_new)
        return h_new, c_new

    # layer 0 — input projection hoisted out of the recurrence
    gates0 = bdot(feats, wih0_ref[...]) + b0_ref[...]                # [M, 4H]
    whh0 = whh0_ref[...]
    h = jnp.zeros((B, H), f32)
    c = jnp.zeros((B, H), f32)
    hs0 = []
    for t in range(T):                      # fully unrolled; h/c/hs stay in vregs
        h, c = lstm_cell(gates0[t * B:(t + 1) * B, :], h, c, whh0)
        hs0.append(h)
    seq0 = jnp.concatenate(hs0, axis=0)                              # [M, H]

    # layer 1 — inter-layer dropout is identity in eval mode
    gates1 = bdot(seq0, wih1_ref[...]) + b1_ref[...]
    whh1 = whh1_ref[...]
    h = jnp.zeros((B, H), f32)
    c = jnp.zeros((B, H), f32)
    hs1 = []
    for t in range(T):
        h, c = lstm_cell(gates1[t * B:(t + 1) * B, :], h, c, whh1)
        hs1.append(h)
    seq1 = jnp.concatenate(hs1, axis=0)                              # [M, H]

    # ------- MultiheadAttention, last query position only (as consumed) -----
    head_dim = H // num_heads
    scale = 1.0 / (head_dim ** 0.5)
    qkv = bdot(seq1, wqkv_ref[...]) + bqkv_ref[...]                  # [M, 3H]
    q_last = qkv[(T - 1) * B:M, 0:H] * scale                         # [B, H]
    k_all = qkv[:, H:2 * H]                                          # [M, H]
    v_all = qkv[:, 2 * H:3 * H]                                      # [M, H]

    qb = jnp.concatenate([q_last] * T, axis=0)                       # [M, H] row t*B+b = q[b]
    s = bdot(k_all * qb, g_ref[...])                                 # [M, nh] per-head scores
    # Global (per-head) max shift; per-batch normalization below makes the
    # softmax exact regardless of which per-column constant is subtracted.
    s = s - jnp.max(s, axis=0, keepdims=True)
    e = jnp.exp(s)                                                   # [M, nh]
    sel = sel_ref[...]                                               # [B, M] 0/1
    denom = jnp.dot(sel, e, preferred_element_type=f32)              # [B, nh]
    inv = 1.0 / denom
    p = e * jnp.concatenate([inv] * T, axis=0)                       # [M, nh] softmax weights
    pf = bdot(p, gt_ref[...])                                        # [M, H] weights -> dims
    ctx = jnp.dot(sel, pf * v_all, preferred_element_type=f32)       # [B, H]
    final_hidden = bdot(ctx, wo_ref[...]) + bo_ref[...]              # [B, H]

    # ------------- feature layer + LayerNorm + ReLU -------------------------
    f_lin = bdot(final_hidden, featw_ref[...]) + featb_ref[...]
    mu = jnp.mean(f_lin, axis=-1, keepdims=True)
    var = jnp.mean((f_lin - mu) ** 2, axis=-1, keepdims=True)
    f_n = (f_lin - mu) * lax.rsqrt(var + 1e-5)
    f_n = jnp.maximum(f_n * lng_ref[...] + lnb_ref[...], 0.0)        # [B, H]

    # ------------- fused value | advantage streams + dueling combine --------
    va_h = jnp.maximum(bdot(f_n, vaw1_ref[...]) + vab1_ref[...], 0.0)        # [B, 2*Hh]
    va = bdot(va_h, vaw2_ref[...]) + vab2_ref[...]                           # [B, 1+A]
    value = va[:, 0:1]
    adv = va[:, 1:1 + num_actions]
    q = value + adv - jnp.mean(adv, axis=-1, keepdims=True)                  # [B, A]

    # ------------- prediction head (consumes final_hidden, pre-LayerNorm) ---
    ph = jnp.maximum(bdot(final_hidden, pw1_ref[...]) + pb1_ref[...], 0.0)   # [B, Hh]
    pred = bdot(ph, pw2_ref[...]) + pb2_ref[...]                             # [B, Din]

    # ------------- lane-dense packed output: [ q | pred | zeros ] -----------
    pad_w = out_ref.shape[1] - num_actions - Din
    out_ref[...] = jnp.concatenate(
        [q, pred, jnp.zeros((B, pad_w), f32)], axis=1).astype(out_ref.dtype)


# ---------------------------------------------------------------------------
# Wrapper: one pallas_call, no grid, no scratch, lane-dense single output.
# ---------------------------------------------------------------------------
@jax.jit
def dueling_dqn_forward(x, p):
    B, T, Din = x.shape
    H = p["lstm_wih0"].shape[0]
    A = p["va_w2"].shape[1] - 1
    num_heads = p["attn_G"].shape[1]
    OUT_W = 128

    # conv1 im2col, time-major (row = t*B + b) — wrapper-side layout plumbing.
    xt = jnp.transpose(x, (1, 0, 2)).astype(jnp.float32)        # [T, B, Din]
    xp = jnp.pad(xt, ((1, 1), (0, 0), (0, 0)))                  # [T+2, B, Din]
    x1 = jnp.concatenate([xp[k:k + T] for k in range(3)],
                         axis=-1).reshape(T * B, 3 * Din)       # [T*B, 3*Din]

    # 0/1 batch-selection matrix: sel[b, t*B + b'] = (b == b')
    sel = (jnp.arange(T * B)[None, :] % B
           == jnp.arange(B)[:, None]).astype(jnp.float32)       # [B, T*B]

    kernel = functools.partial(_fused_forward_kernel, B=B, T=T, Din=Din, H=H,
                               num_heads=num_heads, num_actions=A)
    vmem = pltpu.MemorySpace.VMEM
    n_inputs = 32
    out = pl.pallas_call(
        kernel,
        out_shape=jax.ShapeDtypeStruct((B, OUT_W), jnp.float32),
        in_specs=[pl.BlockSpec(memory_space=vmem)] * n_inputs,
        out_specs=pl.BlockSpec(memory_space=vmem),
    )(x1, sel,
      p["conv1_w"], p["conv1_scale"], p["conv1_shift"],
      p["conv2_w"], p["conv2_scale"], p["conv2_shift"],
      p["lstm_wih0"], p["lstm_whh0"], p["lstm_b0"],
      p["lstm_wih1"], p["lstm_whh1"], p["lstm_b1"],
      p["attn_wqkv"], p["attn_bqkv"], p["attn_G"], p["attn_GT"],
      p["attn_wo"], p["attn_bo"],
      p["feat_w"], p["feat_b"], p["ln_gamma"], p["ln_beta"],
      p["va_w1"], p["va_b1"], p["va_w2"], p["va_b2"],
      p["pred_w1"], p["pred_b1"], p["pred_w2"], p["pred_b2"])

    q_values = out[:, :A]
    next_state_pred = out[:, A:A + Din]
    return q_values, next_state_pred


# ---------------------------------------------------------------------------
# Parameter init (deterministic, mirroring the module's shapes).  Matmul
# weights stored transposed/fused/im2col'd, in bfloat16 (halves weight DMA);
# biases / BN folds / LayerNorm params stay float32.
# ---------------------------------------------------------------------------
def init_params(key, input_dim=6, hidden_dim=128, num_actions=10, num_heads=8):
    H = hidden_dim
    Hh = H // 2
    f32, bf16 = jnp.float32, jnp.bfloat16
    ks = jax.random.split(key, 18)

    def xavier(k, shape, fan_in, fan_out, dtype=bf16):
        lim = (6.0 / (fan_in + fan_out)) ** 0.5
        return jax.random.uniform(k, shape, f32, -lim, lim).astype(dtype)

    def ortho_like(k, shape):   # deterministic stand-in for orthogonal init
        return (jax.random.normal(k, shape, f32)
                / jnp.sqrt(jnp.float32(shape[0]))).astype(bf16)

    # BN folded with running_mean=0, running_var=1, gamma=1, beta=0, conv bias=0.
    # TODO(synk): for trained weights re-derive scale/shift from actual running
    # stats and fold the conv biases into the shift.
    bn_scale = 1.0 / (1.0 + 1e-5) ** 0.5

    p = {}
    # conv1: torch [Hh, Din, 3] -> im2col-fused [3*Din, Hh] (row k*Din+d = w[:,d,k])
    p["conv1_w"] = xavier(ks[0], (3 * input_dim, Hh), input_dim * 3, Hh * 3)
    p["conv1_scale"] = jnp.full((1, Hh), bn_scale, f32)
    p["conv1_shift"] = jnp.zeros((1, Hh), f32)
    # conv2: torch [H, Hh, 5] -> im2col-fused [5*Hh, H]
    p["conv2_w"] = xavier(ks[1], (5 * Hh, H), Hh * 5, H * 5)
    p["conv2_scale"] = jnp.full((1, H), bn_scale, f32)
    p["conv2_shift"] = jnp.zeros((1, H), f32)
    # LSTM (2 layers): torch W_[ih|hh] [4H, H] -> transposed [H, 4H]; b_ih+b_hh = 0
    p["lstm_wih0"] = ortho_like(ks[2], (H, 4 * H))
    p["lstm_whh0"] = ortho_like(ks[3], (H, 4 * H))
    p["lstm_b0"] = jnp.zeros((1, 4 * H), f32)
    p["lstm_wih1"] = ortho_like(ks[4], (H, 4 * H))
    p["lstm_whh1"] = ortho_like(ks[5], (H, 4 * H))
    p["lstm_b1"] = jnp.zeros((1, 4 * H), f32)
    # MultiheadAttention: fused in_proj (q|k|v), stored transposed [H, 3H]
    wq = xavier(ks[6], (H, H), H, H)
    wk = xavier(ks[7], (H, H), H, H)
    wv = xavier(ks[8], (H, H), H, H)
    p["attn_wqkv"] = jnp.concatenate([wq, wk, wv], axis=1)
    p["attn_bqkv"] = jnp.zeros((1, 3 * H), f32)
    p["attn_wo"] = xavier(ks[9], (H, H), H, H)
    p["attn_bo"] = jnp.zeros((1, H), f32)
    head_dim = H // num_heads
    G = (jnp.arange(H)[:, None] // head_dim
         == jnp.arange(num_heads)[None, :]).astype(bf16)   # exact 0/1 in bf16
    p["attn_G"] = G
    p["attn_GT"] = G.T
    # feature layer + LayerNorm
    p["feat_w"] = xavier(ks[10], (H, H), H, H)
    p["feat_b"] = jnp.zeros((1, H), f32)
    p["ln_gamma"] = jnp.ones((1, H), f32)
    p["ln_beta"] = jnp.zeros((1, H), f32)
    # value / advantage streams fused: [val_w1 | adv_w1] and block-diag 2nd layer
    val_w1 = xavier(ks[11], (H, Hh), H, Hh, f32)
    val_w2 = xavier(ks[12], (Hh, 1), Hh, 1, f32)
    adv_w1 = xavier(ks[13], (H, Hh), H, Hh, f32)
    adv_w2 = xavier(ks[14], (Hh, num_actions), Hh, num_actions, f32)
    p["va_w1"] = jnp.concatenate([val_w1, adv_w1], axis=1).astype(bf16)   # [H, 2*Hh]
    p["va_b1"] = jnp.zeros((1, 2 * Hh), f32)
    va_w2 = jnp.zeros((2 * Hh, 1 + num_actions), f32)
    va_w2 = va_w2.at[:Hh, 0:1].set(val_w2)
    va_w2 = va_w2.at[Hh:, 1:].set(adv_w2)
    p["va_w2"] = va_w2.astype(bf16)                                       # [2*Hh, 1+A]
    p["va_b2"] = jnp.zeros((1, 1 + num_actions), f32)
    # prediction head (consumes final_hidden directly)
    p["pred_w1"] = xavier(ks[15], (H, Hh), H, Hh)
    p["pred_b1"] = jnp.zeros((1, Hh), f32)
    p["pred_w2"] = xavier(ks[16], (Hh, input_dim), Hh, input_dim)
    p["pred_b2"] = jnp.zeros((1, input_dim), f32)
    return p


if __name__ == "__main__":
    B, T, D = 2, 16, 6            # batch, seq_len, input_dim (small shapes)
    H, A = 128, 10                # hidden_dim, num_actions
    key = jax.random.PRNGKey(0)
    k_params, k_x = jax.random.split(key)
    params = init_params(k_params, input_dim=D, hidden_dim=H, num_actions=A)
    x = jax.random.normal(k_x, (B, T, D), jnp.float32)

    q_values, next_state_pred = dueling_dqn_forward(x, params)
    jax.block_until_ready((q_values, next_state_pred))
    assert q_values.shape == (B, A)
    assert next_state_pred.shape == (B, D)
    assert bool(jnp.all(jnp.isfinite(q_values)))
    assert bool(jnp.all(jnp.isfinite(next_state_pred)))
    print("KERNEL_OK")
</pallas_src>

<mosaic_0001>
module attributes {stable_mosaic.version = 11 : i64} {
  func.func @_fused_forward_kernel(%arg0: memref<32x18xf32, #tpu.memory_space<vmem>>, %arg1: memref<2x32xf32, #tpu.memory_space<vmem>>, %arg2: memref<18x64xbf16, #tpu.memory_space<vmem>>, %arg3: memref<1x64xf32, #tpu.memory_space<vmem>>, %arg4: memref<1x64xf32, #tpu.memory_space<vmem>>, %arg5: memref<320x128xbf16, #tpu.memory_space<vmem>>, %arg6: memref<1x128xf32, #tpu.memory_space<vmem>>, %arg7: memref<1x128xf32, #tpu.memory_space<vmem>>, %arg8: memref<128x512xbf16, #tpu.memory_space<vmem>>, %arg9: memref<128x512xbf16, #tpu.memory_space<vmem>>, %arg10: memref<1x512xf32, #tpu.memory_space<vmem>>, %arg11: memref<128x512xbf16, #tpu.memory_space<vmem>>, %arg12: memref<128x512xbf16, #tpu.memory_space<vmem>>, %arg13: memref<1x512xf32, #tpu.memory_space<vmem>>, %arg14: memref<128x384xbf16, #tpu.memory_space<vmem>>, %arg15: memref<1x384xf32, #tpu.memory_space<vmem>>, %arg16: memref<128x8xbf16, #tpu.memory_space<vmem>>, %arg17: memref<8x128xbf16, #tpu.memory_space<vmem>>, %arg18: memref<128x128xbf16, #tpu.memory_space<vmem>>, %arg19: memref<1x128xf32, #tpu.memory_space<vmem>>, %arg20: memref<128x128xbf16, #tpu.memory_space<vmem>>, %arg21: memref<1x128xf32, #tpu.memory_space<vmem>>, %arg22: memref<1x128xf32, #tpu.memory_space<vmem>>, %arg23: memref<1x128xf32, #tpu.memory_space<vmem>>, %arg24: memref<128x128xbf16, #tpu.memory_space<vmem>>, %arg25: memref<1x128xf32, #tpu.memory_space<vmem>>, %arg26: memref<128x11xbf16, #tpu.memory_space<vmem>>, %arg27: memref<1x11xf32, #tpu.memory_space<vmem>>, %arg28: memref<128x64xbf16, #tpu.memory_space<vmem>>, %arg29: memref<1x64xf32, #tpu.memory_space<vmem>>, %arg30: memref<64x6xbf16, #tpu.memory_space<vmem>>, %arg31: memref<1x6xf32, #tpu.memory_space<vmem>>, %arg32: memref<2x128xf32, #tpu.memory_space<vmem>>) attributes {dimension_semantics = [], scalar_prefetch = 0 : i64, scratch_operands = 0 : i64, tpu.core_type = #tpu.core_type<tc>} {
    %c0 = arith.constant 0 : index
    %c0_0 = arith.constant 0 : index
    %0 = vector.load %arg0[%c0, %c0_0] : memref<32x18xf32, #tpu.memory_space<vmem>>, vector<32x18xf32>
    %c0_1 = arith.constant 0 : index
    %c0_2 = arith.constant 0 : index
    %1 = vector.load %arg2[%c0_1, %c0_2] : memref<18x64xbf16, #tpu.memory_space<vmem>>, vector<18x64xbf16>
    %2 = arith.truncf %0 : vector<32x18xf32> to vector<32x18xbf16>
    %cst = arith.constant dense<0.000000e+00> : vector<32x64xf32>
    %3 = tpu.matmul %2, %1, %cst {dimension_numbers = #tpu.dot_dimension_numbers<[1], [0], [0], [1], [0, 0, 1, 1], [], []>} : vector<32x18xbf16>, vector<18x64xbf16>, vector<32x64xf32> -> vector<32x64xf32>
    %c0_3 = arith.constant 0 : index
    %c0_4 = arith.constant 0 : index
    %4 = vector.load %arg3[%c0_3, %c0_4] : memref<1x64xf32, #tpu.memory_space<vmem>>, vector<1x64xf32>
    %5 = vector.broadcast %4 : vector<1x64xf32> to vector<32x64xf32>
    %6 = arith.mulf %3, %5 : vector<32x64xf32>
    %c0_5 = arith.constant 0 : index
    %c0_6 = arith.constant 0 : index
    %7 = vector.load %arg4[%c0_5, %c0_6] : memref<1x64xf32, #tpu.memory_space<vmem>>, vector<1x64xf32>
    %8 = vector.broadcast %7 : vector<1x64xf32> to vector<32x64xf32>
    %9 = arith.addf %6, %8 : vector<32x64xf32>
    %cst_7 = arith.constant 0.000000e+00 : f32
    %10 = vector.broadcast %cst_7 : f32 to vector<32x64xf32>
    %11 = arith.maximumf %9, %10 : vector<32x64xf32>
    %cst_8 = arith.constant 0.000000e+00 : f32
    %12 = vector.broadcast %cst_8 : f32 to vector<4x64xf32>
    %13 = tpu.concatenate %12, %11, %12 in 0 : vector<4x64xf32>, vector<32x64xf32>, vector<4x64xf32> -> vector<40x64xf32>
    %14 = vector.extract_strided_slice %13 {offsets = [0, 0], sizes = [32, 64], strides = [1, 1]} : vector<40x64xf32> to vector<32x64xf32>
    %15 = vector.extract_strided_slice %13 {offsets = [2, 0], sizes = [32, 64], strides = [1, 1]} : vector<40x64xf32> to vector<32x64xf32>
    %16 = vector.extract_strided_slice %13 {offsets = [4, 0], sizes = [32, 64], strides = [1, 1]} : vector<40x64xf32> to vector<32x64xf32>
    %17 = vector.extract_strided_slice %13 {offsets = [6, 0], sizes = [32, 64], strides = [1, 1]} : vector<40x64xf32> to vector<32x64xf32>
    %18 = vector.extract_strided_slice %13 {offsets = [8, 0], sizes = [32, 64], strides = [1, 1]} : vector<40x64xf32> to vector<32x64xf32>
    %19 = tpu.concatenate %14, %15, %16, %17, %18 in 1 : vector<32x64xf32>, vector<32x64xf32>, vector<32x64xf32>, vector<32x64xf32>, vector<32x64xf32> -> vector<32x320xf32>
    %c0_9 = arith.constant 0 : index
    %c0_10 = arith.constant 0 : index
    %20 = vector.load %arg5[%c0_9, %c0_10] : memref<320x128xbf16, #tpu.memory_space<vmem>>, vector<320x128xbf16>
    %21 = arith.truncf %19 : vector<32x320xf32> to vector<32x320xbf16>
    %cst_11 = arith.constant dense<0.000000e+00> : vector<32x128xf32>
    %22 = tpu.matmul %21, %20, %cst_11 {dimension_numbers = #tpu.dot_dimension_numbers<[1], [0], [0], [1], [0, 0, 1, 1], [], []>} : vector<32x320xbf16>, vector<320x128xbf16>, vector<32x128xf32> -> vector<32x128xf32>
    %c0_12 = arith.constant 0 : index
    %c0_13 = arith.constant 0 : index
    %23 = vector.load %arg6[%c0_12, %c0_13] : memref<1x128xf32, #tpu.memory_space<vmem>>, vector<1x128xf32>
    %24 = vector.broadcast %23 : vector<1x128xf32> to vector<32x128xf32>
    %25 = arith.mulf %22, %24 : vector<32x128xf32>
    %c0_14 = arith.constant 0 : index
    %c0_15 = arith.constant 0 : index
    %26 = vector.load %arg7[%c0_14, %c0_15] : memref<1x128xf32, #tpu.memory_space<vmem>>, vector<1x128xf32>
    %27 = vector.broadcast %26 : vector<1x128xf32> to vector<32x128xf32>
    %28 = arith.addf %25, %27 : vector<32x128xf32>
    %cst_16 = arith.constant 0.000000e+00 : f32
    %29 = vector.broadcast %cst_16 : f32 to vector<32x128xf32>
    %30 = arith.maximumf %28, %29 : vector<32x128xf32>
    %c0_17 = arith.constant 0 : index
    %c0_18 = arith.constant 0 : index
    %31 = vector.load %arg8[%c0_17, %c0_18] : memref<128x512xbf16, #tpu.memory_space<vmem>>, vector<128x512xbf16>
    %32 = arith.truncf %30 : vector<32x128xf32> to vector<32x128xbf16>
    %cst_19 = arith.constant dense<0.000000e+00> : vector<32x512xf32>
    %33 = tpu.matmul %32, %31, %cst_19 {dimension_numbers = #tpu.dot_dimension_numbers<[1], [0], [0], [1], [0, 0, 1, 1], [], []>} : vector<32x128xbf16>, vector<128x512xbf16>, vector<32x512xf32> -> vector<32x512xf32>
    %c0_20 = arith.constant 0 : index
    %c0_21 = arith.constant 0 : index
    %34 = vector.load %arg10[%c0_20, %c0_21] : memref<1x512xf32, #tpu.memory_space<vmem>>, vector<1x512xf32>
    %35 = vector.broadcast %34 : vector<1x512xf32> to vector<32x512xf32>
    %36 = arith.addf %33, %35 : vector<32x512xf32>
    %c0_22 = arith.constant 0 : index
    %c0_23 = arith.constant 0 : index
    %37 = vector.load %arg9[%c0_22, %c0_23] : memref<128x512xbf16, #tpu.memory_space<vmem>>, vector<128x512xbf16>
    %cst_24 = arith.constant 0.000000e+00 : f32
    %38 = vector.broadcast %cst_24 : f32 to vector<2x128xf32>
    %cst_25 = arith.constant 0.000000e+00 : f32
    %39 = vector.broadcast %cst_25 : f32 to vector<2x128xf32>
    %40 = vector.extract_strided_slice %36 {offsets = [0, 0], sizes = [2, 512], strides = [1, 1]} : vector<32x512xf32> to vector<2x512xf32>
    %41 = arith.truncf %38 : vector<2x128xf32> to vector<2x128xbf16>
    %cst_26 = arith.constant dense<0.000000e+00> : vector<2x512xf32>
    %42 = tpu.matmul %41, %37, %cst_26 {dimension_numbers = #tpu.dot_dimension_numbers<[1], [0], [0], [1], [0, 0, 1, 1], [], []>} : vector<2x128xbf16>, vector<128x512xbf16>, vector<2x512xf32> -> vector<2x512xf32>
    %43 = arith.addf %40, %42 : vector<2x512xf32>
    %44 = vector.extract_strided_slice %43 {offsets = [0, 0], sizes = [2, 128], strides = [1, 1]} : vector<2x512xf32> to vector<2x128xf32>
    %45 = arith.negf %44 : vector<2x128xf32>
    %46 = math.exp %45 : vector<2x128xf32>
    %cst_27 = arith.constant 1.000000e+00 : f32
    %47 = vector.broadcast %cst_27 : f32 to vector<2x128xf32>
    %48 = arith.addf %47, %46 : vector<2x128xf32>
    %49 = arith.divf %47, %48 : vector<2x128xf32>
    %50 = vector.extract_strided_slice %43 {offsets = [0, 128], sizes = [2, 128], strides = [1, 1]} : vector<2x512xf32> to vector<2x128xf32>
    %51 = arith.negf %50 : vector<2x128xf32>
    %52 = math.exp %51 : vector<2x128xf32>
    %cst_28 = arith.constant 1.000000e+00 : f32
    %53 = vector.broadcast %cst_28 : f32 to vector<2x128xf32>
    %54 = arith.addf %53, %52 : vector<2x128xf32>
    %55 = arith.divf %53, %54 : vector<2x128xf32>
    %56 = vector.extract_strided_slice %43 {offsets = [0, 256], sizes = [2, 128], strides = [1, 1]} : vector<2x512xf32> to vector<2x128xf32>
    %57 = math.tanh %56 : vector<2x128xf32>
    %58 = vector.extract_strided_slice %43 {offsets = [0, 384], sizes = [2, 128], strides = [1, 1]} : vector<2x512xf32> to vector<2x128xf32>
    %59 = arith.negf %58 : vector<2x128xf32>
    %60 = math.exp %59 : vector<2x128xf32>
    %cst_29 = arith.constant 1.000000e+00 : f32
    %61 = vector.broadcast %cst_29 : f32 to vector<2x128xf32>
    %62 = arith.addf %61, %60 : vector<2x128xf32>
    %63 = arith.divf %61, %62 : vector<2x128xf32>
    %64 = arith.mulf %55, %39 : vector<2x128xf32>
    %65 = arith.mulf %49, %57 : vector<2x128xf32>
    %66 = arith.addf %64, %65 : vector<2x128xf32>
    %67 = math.tanh %66 : vector<2x128xf32>
    %68 = arith.mulf %63, %67 : vector<2x128xf32>
    %69 = vector.extract_strided_slice %36 {offsets = [2, 0], sizes = [2, 512], strides = [1, 1]} : vector<32x512xf32> to vector<2x512xf32>
    %70 = arith.truncf %68 : vector<2x128xf32> to vector<2x128xbf16>
    %cst_30 = arith.constant dense<0.000000e+00> : vector<2x512xf32>
    %71 = tpu.matmul %70, %37, %cst_30 {dimension_numbers = #tpu.dot_dimension_numbers<[1], [0], [0], [1], [0, 0, 1, 1], [], []>} : vector<2x128xbf16>, vector<128x512xbf16>, vector<2x512xf32> -> vector<2x512xf32>
    %72 = arith.addf %69, %71 : vector<2x512xf32>
    %73 = vector.extract_strided_slice %72 {offsets = [0, 0], sizes = [2, 128], strides = [1, 1]} : vector<2x512xf32> to vector<2x128xf32>
    %74 = arith.negf %73 : vector<2x128xf32>
    %75 = math.exp %74 : vector<2x128xf32>
    %cst_31 = arith.constant 1.000000e+00 : f32
    %76 = vector.broadcast %cst_31 : f32 to vector<2x128xf32>
    %77 = arith.addf %76, %75 : vector<2x128xf32>
    %78 = arith.divf %76, %77 : vector<2x128xf32>
    %79 = vector.extract_strided_slice %72 {offsets = [0, 128], sizes = [2, 128], strides = [1, 1]} : vector<2x512xf32> to vector<2x128xf32>
    %80 = arith.negf %79 : vector<2x128xf32>
    %81 = math.exp %80 : vector<2x128xf32>
    %cst_32 = arith.constant 1.000000e+00 : f32
    %82 = vector.broadcast %cst_32 : f32 to vector<2x128xf32>
    %83 = arith.addf %82, %81 : vector<2x128xf32>
    %84 = arith.divf %82, %83 : vector<2x128xf32>
    %85 = vector.extract_strided_slice %72 {offsets = [0, 256], sizes = [2, 128], strides = [1, 1]} : vector<2x512xf32> to vector<2x128xf32>
    %86 = math.tanh %85 : vector<2x128xf32>
    %87 = vector.extract_strided_slice %72 {offsets = [0, 384], sizes = [2, 128], strides = [1, 1]} : vector<2x512xf32> to vector<2x128xf32>
    %88 = arith.negf %87 : vector<2x128xf32>
    %89 = math.exp %88 : vector<2x128xf32>
    %cst_33 = arith.constant 1.000000e+00 : f32
    %90 = vector.broadcast %cst_33 : f32 to vector<2x128xf32>
    %91 = arith.addf %90, %89 : vector<2x128xf32>
    %92 = arith.divf %90, %91 : vector<2x128xf32>
    %93 = arith.mulf %84, %66 : vector<2x128xf32>
    %94 = arith.mulf %78, %86 : vector<2x128xf32>
    %95 = arith.addf %93, %94 : vector<2x128xf32>
    %96 = math.tanh %95 : vector<2x128xf32>
    %97 = arith.mulf %92, %96 : vector<2x128xf32>
    %98 = vector.extract_strided_slice %36 {offsets = [4, 0], sizes = [2, 512], strides = [1, 1]} : vector<32x512xf32> to vector<2x512xf32>
    %99 = arith.truncf %97 : vector<2x128xf32> to vector<2x128xbf16>
    %cst_34 = arith.constant dense<0.000000e+00> : vector<2x512xf32>
    %100 = tpu.matmul %99, %37, %cst_34 {dimension_numbers = #tpu.dot_dimension_numbers<[1], [0], [0], [1], [0, 0, 1, 1], [], []>} : vector<2x128xbf16>, vector<128x512xbf16>, vector<2x512xf32> -> vector<2x512xf32>
    %101 = arith.addf %98, %100 : vector<2x512xf32>
    %102 = vector.extract_strided_slice %101 {offsets = [0, 0], sizes = [2, 128], strides = [1, 1]} : vector<2x512xf32> to vector<2x128xf32>
    %103 = arith.negf %102 : vector<2x128xf32>
    %104 = math.exp %103 : vector<2x128xf32>
    %cst_35 = arith.constant 1.000000e+00 : f32
    %105 = vector.broadcast %cst_35 : f32 to vector<2x128xf32>
    %106 = arith.addf %105, %104 : vector<2x128xf32>
    %107 = arith.divf %105, %106 : vector<2x128xf32>
    %108 = vector.extract_strided_slice %101 {offsets = [0, 128], sizes = [2, 128], strides = [1, 1]} : vector<2x512xf32> to vector<2x128xf32>
    %109 = arith.negf %108 : vector<2x128xf32>
    %110 = math.exp %109 : vector<2x128xf32>
    %cst_36 = arith.constant 1.000000e+00 : f32
    %111 = vector.broadcast %cst_36 : f32 to vector<2x128xf32>
    %112 = arith.addf %111, %110 : vector<2x128xf32>
    %113 = arith.divf %111, %112 : vector<2x128xf32>
    %114 = vector.extract_strided_slice %101 {offsets = [0, 256], sizes = [2, 128], strides = [1, 1]} : vector<2x512xf32> to vector<2x128xf32>
    %115 = math.tanh %114 : vector<2x128xf32>
    %116 = vector.extract_strided_slice %101 {offsets = [0, 384], sizes = [2, 128], strides = [1, 1]} : vector<2x512xf32> to vector<2x128xf32>
    %117 = arith.negf %116 : vector<2x128xf32>
    %118 = math.exp %117 : vector<2x128xf32>
    %cst_37 = arith.constant 1.000000e+00 : f32
    %119 = vector.broadcast %cst_37 : f32 to vector<2x128xf32>
    %120 = arith.addf %119, %118 : vector<2x128xf32>
    %121 = arith.divf %119, %120 : vector<2x128xf32>
    %122 = arith.mulf %113, %95 : vector<2x128xf32>
    %123 = arith.mulf %107, %115 : vector<2x128xf32>
    %124 = arith.addf %122, %123 : vector<2x128xf32>
    %125 = math.tanh %124 : vector<2x128xf32>
    %126 = arith.mulf %121, %125 : vector<2x128xf32>
    %127 = vector.extract_strided_slice %36 {offsets = [6, 0], sizes = [2, 512], strides = [1, 1]} : vector<32x512xf32> to vector<2x512xf32>
    %128 = arith.truncf %126 : vector<2x128xf32> to vector<2x128xbf16>
    %cst_38 = arith.constant dense<0.000000e+00> : vector<2x512xf32>
    %129 = tpu.matmul %128, %37, %cst_38 {dimension_numbers = #tpu.dot_dimension_numbers<[1], [0], [0], [1], [0, 0, 1, 1], [], []>} : vector<2x128xbf16>, vector<128x512xbf16>, vector<2x512xf32> -> vector<2x512xf32>
    %130 = arith.addf %127, %129 : vector<2x512xf32>
    %131 = vector.extract_strided_slice %130 {offsets = [0, 0], sizes = [2, 128], strides = [1, 1]} : vector<2x512xf32> to vector<2x128xf32>
    %132 = arith.negf %131 : vector<2x128xf32>
    %133 = math.exp %132 : vector<2x128xf32>
    %cst_39 = arith.constant 1.000000e+00 : f32
    %134 = vector.broadcast %cst_39 : f32 to vector<2x128xf32>
    %135 = arith.addf %134, %133 : vector<2x128xf32>
    %136 = arith.divf %134, %135 : vector<2x128xf32>
    %137 = vector.extract_strided_slice %130 {offsets = [0, 128], sizes = [2, 128], strides = [1, 1]} : vector<2x512xf32> to vector<2x128xf32>
    %138 = arith.negf %137 : vector<2x128xf32>
    %139 = math.exp %138 : vector<2x128xf32>
    %cst_40 = arith.constant 1.000000e+00 : f32
    %140 = vector.broadcast %cst_40 : f32 to vector<2x128xf32>
    %141 = arith.addf %140, %139 : vector<2x128xf32>
    %142 = arith.divf %140, %141 : vector<2x128xf32>
    %143 = vector.extract_strided_slice %130 {offsets = [0, 256], sizes = [2, 128], strides = [1, 1]} : vector<2x512xf32> to vector<2x128xf32>
    %144 = math.tanh %143 : vector<2x128xf32>
    %145 = vector.extract_strided_slice %130 {offsets = [0, 384], sizes = [2, 128], strides = [1, 1]} : vector<2x512xf32> to vector<2x128xf32>
    %146 = arith.negf %145 : vector<2x128xf32>
    %147 = math.exp %146 : vector<2x128xf32>
    %cst_41 = arith.constant 1.000000e+00 : f32
    %148 = vector.broadcast %cst_41 : f32 to vector<2x128xf32>
    %149 = arith.addf %148, %147 : vector<2x128xf32>
    %150 = arith.divf %148, %149 : vector<2x128xf32>
    %151 = arith.mulf %142, %124 : vector<2x128xf32>
    %152 = arith.mulf %136, %144 : vector<2x128xf32>
    %153 = arith.addf %151, %152 : vector<2x128xf32>
    %154 = math.tanh %153 : vector<2x128xf32>
    %155 = arith.mulf %150, %154 : vector<2x128xf32>
    %156 = vector.extract_strided_slice %36 {offsets = [8, 0], sizes = [2, 512], strides = [1, 1]} : vector<32x512xf32> to vector<2x512xf32>
    %157 = arith.truncf %155 : vector<2x128xf32> to vector<2x128xbf16>
    %cst_42 = arith.constant dense<0.000000e+00> : vector<2x512xf32>
    %158 = tpu.matmul %157, %37, %cst_42 {dimension_numbers = #tpu.dot_dimension_numbers<[1], [0], [0], [1], [0, 0, 1, 1], [], []>} : vector<2x128xbf16>, vector<128x512xbf16>, vector<2x512xf32> -> vector<2x512xf32>
    %159 = arith.addf %156, %158 : vector<2x512xf32>
    %160 = vector.extract_strided_slice %159 {offsets = [0, 0], sizes = [2, 128], strides = [1, 1]} : vector<2x512xf32> to vector<2x128xf32>
    %161 = arith.negf %160 : vector<2x128xf32>
    %162 = math.exp %161 : vector<2x128xf32>
    %cst_43 = arith.constant 1.000000e+00 : f32
    %163 = vector.broadcast %cst_43 : f32 to vector<2x128xf32>
    %164 = arith.addf %163, %162 : vector<2x128xf32>
    %165 = arith.divf %163, %164 : vector<2x128xf32>
    %166 = vector.extract_strided_slice %159 {offsets = [0, 128], sizes = [2, 128], strides = [1, 1]} : vector<2x512xf32> to vector<2x128xf32>
    %167 = arith.negf %166 : vector<2x128xf32>
    %168 = math.exp %167 : vector<2x128xf32>
    %cst_44 = arith.constant 1.000000e+00 : f32
    %169 = vector.broadcast %cst_44 : f32 to vector<2x128xf32>
    %170 = arith.addf %169, %168 : vector<2x128xf32>
    %171 = arith.divf %169, %170 : vector<2x128xf32>
    %172 = vector.extract_strided_slice %159 {offsets = [0, 256], sizes = [2, 128], strides = [1, 1]} : vector<2x512xf32> to vector<2x128xf32>
    %173 = math.tanh %172 : vector<2x128xf32>
    %174 = vector.extract_strided_slice %159 {offsets = [0, 384], sizes = [2, 128], strides = [1, 1]} : vector<2x512xf32> to vector<2x128xf32>
    %175 = arith.negf %174 : vector<2x128xf32>
    %176 = math.exp %175 : vector<2x128xf32>
    %cst_45 = arith.constant 1.000000e+00 : f32
    %177 = vector.broadcast %cst_45 : f32 to vector<2x128xf32>
    %178 = arith.addf %177, %176 : vector<2x128xf32>
    %179 = arith.divf %177, %178 : vector<2x128xf32>
    %180 = arith.mulf %171, %153 : vector<2x128xf32>
    %181 = arith.mulf %165, %173 : vector<2x128xf32>
    %182 = arith.addf %180, %181 : vector<2x128xf32>
    %183 = math.tanh %182 : vector<2x128xf32>
    %184 = arith.mulf %179, %183 : vector<2x128xf32>
    %185 = vector.extract_strided_slice %36 {offsets = [10, 0], sizes = [2, 512], strides = [1, 1]} : vector<32x512xf32> to vector<2x512xf32>
    %186 = arith.truncf %184 : vector<2x128xf32> to vector<2x128xbf16>
    %cst_46 = arith.constant dense<0.000000e+00> : vector<2x512xf32>
    %187 = tpu.matmul %186, %37, %cst_46 {dimension_numbers = #tpu.dot_dimension_numbers<[1], [0], [0], [1], [0, 0, 1, 1], [], []>} : vector<2x128xbf16>, vector<128x512xbf16>, vector<2x512xf32> -> vector<2x512xf32>
    %188 = arith.addf %185, %187 : vector<2x512xf32>
    %189 = vector.extract_strided_slice %188 {offsets = [0, 0], sizes = [2, 128], strides = [1, 1]} : vector<2x512xf32> to vector<2x128xf32>
    %190 = arith.negf %189 : vector<2x128xf32>
    %191 = math.exp %190 : vector<2x128xf32>
    %cst_47 = arith.constant 1.000000e+00 : f32
    %192 = vector.broadcast %cst_47 : f32 to vector<2x128xf32>
    %193 = arith.addf %192, %191 : vector<2x128xf32>
    %194 = arith.divf %192, %193 : vector<2x128xf32>
    %195 = vector.extract_strided_slice %188 {offsets = [0, 128], sizes = [2, 128], strides = [1, 1]} : vector<2x512xf32> to vector<2x128xf32>
    %196 = arith.negf %195 : vector<2x128xf32>
    %197 = math.exp %196 : vector<2x128xf32>
    %cst_48 = arith.constant 1.000000e+00 : f32
    %198 = vector.broadcast %cst_48 : f32 to vector<2x128xf32>
    %199 = arith.addf %198, %197 : vector<2x128xf32>
    %200 = arith.divf %198, %199 : vector<2x128xf32>
    %201 = vector.extract_strided_slice %188 {offsets = [0, 256], sizes = [2, 128], strides = [1, 1]} : vector<2x512xf32> to vector<2x128xf32>
    %202 = math.tanh %201 : vector<2x128xf32>
    %203 = vector.extract_strided_slice %188 {offsets = [0, 384], sizes = [2, 128], strides = [1, 1]} : vector<2x512xf32> to vector<2x128xf32>
    %204 = arith.negf %203 : vector<2x128xf32>
    %205 = math.exp %204 : vector<2x128xf32>
    %cst_49 = arith.constant 1.000000e+00 : f32
    %206 = vector.broadcast %cst_49 : f32 to vector<2x128xf32>
    %207 = arith.addf %206, %205 : vector<2x128xf32>
    %208 = arith.divf %206, %207 : vector<2x128xf32>
    %209 = arith.mulf %200, %182 : vector<2x128xf32>
    %210 = arith.mulf %194, %202 : vector<2x128xf32>
    %211 = arith.addf %209, %210 : vector<2x128xf32>
    %212 = math.tanh %211 : vector<2x128xf32>
    %213 = arith.mulf %208, %212 : vector<2x128xf32>
    %214 = vector.extract_strided_slice %36 {offsets = [12, 0], sizes = [2, 512], strides = [1, 1]} : vector<32x512xf32> to vector<2x512xf32>
    %215 = arith.truncf %213 : vector<2x128xf32> to vector<2x128xbf16>
    %cst_50 = arith.constant dense<0.000000e+00> : vector<2x512xf32>
    %216 = tpu.matmul %215, %37, %cst_50 {dimension_numbers = #tpu.dot_dimension_numbers<[1], [0], [0], [1], [0, 0, 1, 1], [], []>} : vector<2x128xbf16>, vector<128x512xbf16>, vector<2x512xf32> -> vector<2x512xf32>
    %217 = arith.addf %214, %216 : vector<2x512xf32>
    %218 = vector.extract_strided_slice %217 {offsets = [0, 0], sizes = [2, 128], strides = [1, 1]} : vector<2x512xf32> to vector<2x128xf32>
    %219 = arith.negf %218 : vector<2x128xf32>
    %220 = math.exp %219 : vector<2x128xf32>
    %cst_51 = arith.constant 1.000000e+00 : f32
    %221 = vector.broadcast %cst_51 : f32 to vector<2x128xf32>
    %222 = arith.addf %221, %220 : vector<2x128xf32>
    %223 = arith.divf %221, %222 : vector<2x128xf32>
    %224 = vector.extract_strided_slice %217 {offsets = [0, 128], sizes = [2, 128], strides = [1, 1]} : vector<2x512xf32> to vector<2x128xf32>
    %225 = arith.negf %224 : vector<2x128xf32>
    %226 = math.exp %225 : vector<2x128xf32>
    %cst_52 = arith.constant 1.000000e+00 : f32
    %227 = vector.broadcast %cst_52 : f32 to vector<2x128xf32>
    %228 = arith.addf %227, %226 : vector<2x128xf32>
    %229 = arith.divf %227, %228 : vector<2x128xf32>
    %230 = vector.extract_strided_slice %217 {offsets = [0, 256], sizes = [2, 128], strides = [1, 1]} : vector<2x512xf32> to vector<2x128xf32>
    %231 = math.tanh %230 : vector<2x128xf32>
    %232 = vector.extract_strided_slice %217 {offsets = [0, 384], sizes = [2, 128], strides = [1, 1]} : vector<2x512xf32> to vector<2x128xf32>
    %233 = arith.negf %232 : vector<2x128xf32>
    %234 = math.exp %233 : vector<2x128xf32>
    %cst_53 = arith.constant 1.000000e+00 : f32
    %235 = vector.broadcast %cst_53 : f32 to vector<2x128xf32>
    %236 = arith.addf %235, %234 : vector<2x128xf32>
    %237 = arith.divf %235, %236 : vector<2x128xf32>
    %238 = arith.mulf %229, %211 : vector<2x128xf32>
    %239 = arith.mulf %223, %231 : vector<2x128xf32>
    %240 = arith.addf %238, %239 : vector<2x128xf32>
    %241 = math.tanh %240 : vector<2x128xf32>
    %242 = arith.mulf %237, %241 : vector<2x128xf32>
    %243 = vector.extract_strided_slice %36 {offsets = [14, 0], sizes = [2, 512], strides = [1, 1]} : vector<32x512xf32> to vector<2x512xf32>
    %244 = arith.truncf %242 : vector<2x128xf32> to vector<2x128xbf16>
    %cst_54 = arith.constant dense<0.000000e+00> : vector<2x512xf32>
    %245 = tpu.matmul %244, %37, %cst_54 {dimension_numbers = #tpu.dot_dimension_numbers<[1], [0], [0], [1], [0, 0, 1, 1], [], []>} : vector<2x128xbf16>, vector<128x512xbf16>, vector<2x512xf32> -> vector<2x512xf32>
    %246 = arith.addf %243, %245 : vector<2x512xf32>
    %247 = vector.extract_strided_slice %246 {offsets = [0, 0], sizes = [2, 128], strides = [1, 1]} : vector<2x512xf32> to vector<2x128xf32>
    %248 = arith.negf %247 : vector<2x128xf32>
    %249 = math.exp %248 : vector<2x128xf32>
    %cst_55 = arith.constant 1.000000e+00 : f32
    %250 = vector.broadcast %cst_55 : f32 to vector<2x128xf32>
    %251 = arith.addf %250, %249 : vector<2x128xf32>
    %252 = arith.divf %250, %251 : vector<2x128xf32>
    %253 = vector.extract_strided_slice %246 {offsets = [0, 128], sizes = [2, 128], strides = [1, 1]} : vector<2x512xf32> to vector<2x128xf32>
    %254 = arith.negf %253 : vector<2x128xf32>
    %255 = math.exp %254 : vector<2x128xf32>
    %cst_56 = arith.constant 1.000000e+00 : f32
    %256 = vector.broadcast %cst_56 : f32 to vector<2x128xf32>
    %257 = arith.addf %256, %255 : vector<2x128xf32>
    %258 = arith.divf %256, %257 : vector<2x128xf32>
    %259 = vector.extract_strided_slice %246 {offsets = [0, 256], sizes = [2, 128], strides = [1, 1]} : vector<2x512xf32> to vector<2x128xf32>
    %260 = math.tanh %259 : vector<2x128xf32>
    %261 = vector.extract_strided_slice %246 {offsets = [0, 384], sizes = [2, 128], strides = [1, 1]} : vector<2x512xf32> to vector<2x128xf32>
    %262 = arith.negf %261 : vector<2x128xf32>
    %263 = math.exp %262 : vector<2x128xf32>
    %cst_57 = arith.constant 1.000000e+00 : f32
    %264 = vector.broadcast %cst_57 : f32 to vector<2x128xf32>
    %265 = arith.addf %264, %263 : vector<2x128xf32>
    %266 = arith.divf %264, %265 : vector<2x128xf32>
    %267 = arith.mulf %258, %240 : vector<2x128xf32>
    %268 = arith.mulf %252, %260 : vector<2x128xf32>
    %269 = arith.addf %267, %268 : vector<2x128xf32>
    %270 = math.tanh %269 : vector<2x128xf32>
    %271 = arith.mulf %266, %270 : vector<2x128xf32>
    %272 = vector.extract_strided_slice %36 {offsets = [16, 0], sizes = [2, 512], strides = [1, 1]} : vector<32x512xf32> to vector<2x512xf32>
    %273 = arith.truncf %271 : vector<2x128xf32> to vector<2x128xbf16>
    %cst_58 = arith.constant dense<0.000000e+00> : vector<2x512xf32>
    %274 = tpu.matmul %273, %37, %cst_58 {dimension_numbers = #tpu.dot_dimension_numbers<[1], [0], [0], [1], [0, 0, 1, 1], [], []>} : vector<2x128xbf16>, vector<128x512xbf16>, vector<2x512xf32> -> vector<2x512xf32>
    %275 = arith.addf %272, %274 : vector<2x512xf32>
    %276 = vector.extract_strided_slice %275 {offsets = [0, 0], sizes = [2, 128], strides = [1, 1]} : vector<2x512xf32> to vector<2x128xf32>
    %277 = arith.negf %276 : vector<2x128xf32>
    %278 = math.exp %277 : vector<2x128xf32>
    %cst_59 = arith.constant 1.000000e+00 : f32
    %279 = vector.broadcast %cst_59 : f32 to vector<2x128xf32>
    %280 = arith.addf %279, %278 : vector<2x128xf32>
    %281 = arith.divf %279, %280 : vector<2x128xf32>
    %282 = vector.extract_strided_slice %275 {offsets = [0, 128], sizes = [2, 128], strides = [1, 1]} : vector<2x512xf32> to vector<2x128xf32>
    %283 = arith.negf %282 : vector<2x128xf32>
    %284 = math.exp %283 : vector<2x128xf32>
    %cst_60 = arith.constant 1.000000e+00 : f32
    %285 = vector.broadcast %cst_60 : f32 to vector<2x128xf32>
    %286 = arith.addf %285, %284 : vector<2x128xf32>
    %287 = arith.divf %285, %286 : vector<2x128xf32>
    %288 = vector.extract_strided_slice %275 {offsets = [0, 256], sizes = [2, 128], strides = [1, 1]} : vector<2x512xf32> to vector<2x128xf32>
    %289 = math.tanh %288 : vector<2x128xf32>
    %290 = vector.extract_strided_slice %275 {offsets = [0, 384], sizes = [2, 128], strides = [1, 1]} : vector<2x512xf32> to vector<2x128xf32>
    %291 = arith.negf %290 : vector<2x128xf32>
    %292 = math.exp %291 : vector<2x128xf32>
    %cst_61 = arith.constant 1.000000e+00 : f32
    %293 = vector.broadcast %cst_61 : f32 to vector<2x128xf32>
    %294 = arith.addf %293, %292 : vector<2x128xf32>
    %295 = arith.divf %293, %294 : vector<2x128xf32>
    %296 = arith.mulf %287, %269 : vector<2x128xf32>
    %297 = arith.mulf %281, %289 : vector<2x128xf32>
    %298 = arith.addf %296, %297 : vector<2x128xf32>
    %299 = math.tanh %298 : vector<2x128xf32>
    %300 = arith.mulf %295, %299 : vector<2x128xf32>
    %301 = vector.extract_strided_slice %36 {offsets = [18, 0], sizes = [2, 512], strides = [1, 1]} : vector<32x512xf32> to vector<2x512xf32>
    %302 = arith.truncf %300 : vector<2x128xf32> to vector<2x128xbf16>
    %cst_62 = arith.constant dense<0.000000e+00> : vector<2x512xf32>
    %303 = tpu.matmul %302, %37, %cst_62 {dimension_numbers = #tpu.dot_dimension_numbers<[1], [0], [0], [1], [0, 0, 1, 1], [], []>} : vector<2x128xbf16>, vector<128x512xbf16>, vector<2x512xf32> -> vector<2x512xf32>
    %304 = arith.addf %301, %303 : vector<2x512xf32>
    %305 = vector.extract_strided_slice %304 {offsets = [0, 0], sizes = [2, 128], strides = [1, 1]} : vector<2x512xf32> to vector<2x128xf32>
    %306 = arith.negf %305 : vector<2x128xf32>
    %307 = math.exp %306 : vector<2x128xf32>
    %cst_63 = arith.constant 1.000000e+00 : f32
    %308 = vector.broadcast %cst_63 : f32 to vector<2x128xf32>
    %309 = arith.addf %308, %307 : vector<2x128xf32>
    %310 = arith.divf %308, %309 : vector<2x128xf32>
    %311 = vector.extract_strided_slice %304 {offsets = [0, 128], sizes = [2, 128], strides = [1, 1]} : vector<2x512xf32> to vector<2x128xf32>
    %312 = arith.negf %311 : vector<2x128xf32>
    %313 = math.exp %312 : vector<2x128xf32>
    %cst_64 = arith.constant 1.000000e+00 : f32
    %314 = vector.broadcast %cst_64 : f32 to vector<2x128xf32>
    %315 = arith.addf %314, %313 : vector<2x128xf32>
    %316 = arith.divf %314, %315 : vector<2x128xf32>
    %317 = vector.extract_strided_slice %304 {offsets = [0, 256], sizes = [2, 128], strides = [1, 1]} : vector<2x512xf32> to vector<2x128xf32>
    %318 = math.tanh %317 : vector<2x128xf32>
    %319 = vector.extract_strided_slice %304 {offsets = [0, 384], sizes = [2, 128], strides = [1, 1]} : vector<2x512xf32> to vector<2x128xf32>
    %320 = arith.negf %319 : vector<2x128xf32>
    %321 = math.exp %320 : vector<2x128xf32>
    %cst_65 = arith.constant 1.000000e+00 : f32
    %322 = vector.broadcast %cst_65 : f32 to vector<2x128xf32>
    %323 = arith.addf %322, %321 : vector<2x128xf32>
    %324 = arith.divf %322, %323 : vector<2x128xf32>
    %325 = arith.mulf %316, %298 : vector<2x128xf32>
    %326 = arith.mulf %310, %318 : vector<2x128xf32>
    %327 = arith.addf %325, %326 : vector<2x128xf32>
    %328 = math.tanh %327 : vector<2x128xf32>
    %329 = arith.mulf %324, %328 : vector<2x128xf32>
    %330 = vector.extract_strided_slice %36 {offsets = [20, 0], sizes = [2, 512], strides = [1, 1]} : vector<32x512xf32> to vector<2x512xf32>
    %331 = arith.truncf %329 : vector<2x128xf32> to vector<2x128xbf16>
    %cst_66 = arith.constant dense<0.000000e+00> : vector<2x512xf32>
    %332 = tpu.matmul %331, %37, %cst_66 {dimension_numbers = #tpu.dot_dimension_numbers<[1], [0], [0], [1], [0, 0, 1, 1], [], []>} : vector<2x128xbf16>, vector<128x512xbf16>, vector<2x512xf32> -> vector<2x512xf32>
    %333 = arith.addf %330, %332 : vector<2x512xf32>
    %334 = vector.extract_strided_slice %333 {offsets = [0, 0], sizes = [2, 128], strides = [1, 1]} : vector<2x512xf32> to vector<2x128xf32>
    %335 = arith.negf %334 : vector<2x128xf32>
    %336 = math.exp %335 : vector<2x128xf32>
    %cst_67 = arith.constant 1.000000e+00 : f32
    %337 = vector.broadcast %cst_67 : f32 to vector<2x128xf32>
    %338 = arith.addf %337, %336 : vector<2x128xf32>
    %339 = arith.divf %337, %338 : vector<2x128xf32>
    %340 = vector.extract_strided_slice %333 {offsets = [0, 128], sizes = [2, 128], strides = [1, 1]} : vector<2x512xf32> to vector<2x128xf32>
    %341 = arith.negf %340 : vector<2x128xf32>
    %342 = math.exp %341 : vector<2x128xf32>
    %cst_68 = arith.constant 1.000000e+00 : f32
    %343 = vector.broadcast %cst_68 : f32 to vector<2x128xf32>
    %344 = arith.addf %343, %342 : vector<2x128xf32>
    %345 = arith.divf %343, %344 : vector<2x128xf32>
    %346 = vector.extract_strided_slice %333 {offsets = [0, 256], sizes = [2, 128], strides = [1, 1]} : vector<2x512xf32> to vector<2x128xf32>
    %347 = math.tanh %346 : vector<2x128xf32>
    %348 = vector.extract_strided_slice %333 {offsets = [0, 384], sizes = [2, 128], strides = [1, 1]} : vector<2x512xf32> to vector<2x128xf32>
    %349 = arith.negf %348 : vector<2x128xf32>
    %350 = math.exp %349 : vector<2x128xf32>
    %cst_69 = arith.constant 1.000000e+00 : f32
    %351 = vector.broadcast %cst_69 : f32 to vector<2x128xf32>
    %352 = arith.addf %351, %350 : vector<2x128xf32>
    %353 = arith.divf %351, %352 : vector<2x128xf32>
    %354 = arith.mulf %345, %327 : vector<2x128xf32>
    %355 = arith.mulf %339, %347 : vector<2x128xf32>
    %356 = arith.addf %354, %355 : vector<2x128xf32>
    %357 = math.tanh %356 : vector<2x128xf32>
    %358 = arith.mulf %353, %357 : vector<2x128xf32>
    %359 = vector.extract_strided_slice %36 {offsets = [22, 0], sizes = [2, 512], strides = [1, 1]} : vector<32x512xf32> to vector<2x512xf32>
    %360 = arith.truncf %358 : vector<2x128xf32> to vector<2x128xbf16>
    %cst_70 = arith.constant dense<0.000000e+00> : vector<2x512xf32>
    %361 = tpu.matmul %360, %37, %cst_70 {dimension_numbers = #tpu.dot_dimension_numbers<[1], [0], [0], [1], [0, 0, 1, 1], [], []>} : vector<2x128xbf16>, vector<128x512xbf16>, vector<2x512xf32> -> vector<2x512xf32>
    %362 = arith.addf %359, %361 : vector<2x512xf32>
    %363 = vector.extract_strided_slice %362 {offsets = [0, 0], sizes = [2, 128], strides = [1, 1]} : vector<2x512xf32> to vector<2x128xf32>
    %364 = arith.negf %363 : vector<2x128xf32>
    %365 = math.exp %364 : vector<2x128xf32>
    %cst_71 = arith.constant 1.000000e+00 : f32
    %366 = vector.broadcast %cst_71 : f32 to vector<2x128xf32>
    %367 = arith.addf %366, %365 : vector<2x128xf32>
    %368 = arith.divf %366, %367 : vector<2x128xf32>
    %369 = vector.extract_strided_slice %362 {offsets = [0, 128], sizes = [2, 128], strides = [1, 1]} : vector<2x512xf32> to vector<2x128xf32>
    %370 = arith.negf %369 : vector<2x128xf32>
    %371 = math.exp %370 : vector<2x128xf32>
    %cst_72 = arith.constant 1.000000e+00 : f32
    %372 = vector.broadcast %cst_72 : f32 to vector<2x128xf32>
    %373 = arith.addf %372, %371 : vector<2x128xf32>
    %374 = arith.divf %372, %373 : vector<2x128xf32>
    %375 = vector.extract_strided_slice %362 {offsets = [0, 256], sizes = [2, 128], strides = [1, 1]} : vector<2x512xf32> to vector<2x128xf32>
    %376 = math.tanh %375 : vector<2x128xf32>
    %377 = vector.extract_strided_slice %362 {offsets = [0, 384], sizes = [2, 128], strides = [1, 1]} : vector<2x512xf32> to vector<2x128xf32>
    %378 = arith.negf %377 : vector<2x128xf32>
    %379 = math.exp %378 : vector<2x128xf32>
    %cst_73 = arith.constant 1.000000e+00 : f32
    %380 = vector.broadcast %cst_73 : f32 to vector<2x128xf32>
    %381 = arith.addf %380, %379 : vector<2x128xf32>
    %382 = arith.divf %380, %381 : vector<2x128xf32>
    %383 = arith.mulf %374, %356 : vector<2x128xf32>
    %384 = arith.mulf %368, %376 : vector<2x128xf32>
    %385 = arith.addf %383, %384 : vector<2x128xf32>
    %386 = math.tanh %385 : vector<2x128xf32>
    %387 = arith.mulf %382, %386 : vector<2x128xf32>
    %388 = vector.extract_strided_slice %36 {offsets = [24, 0], sizes = [2, 512], strides = [1, 1]} : vector<32x512xf32> to vector<2x512xf32>
    %389 = arith.truncf %387 : vector<2x128xf32> to vector<2x128xbf16>
    %cst_74 = arith.constant dense<0.000000e+00> : vector<2x512xf32>
    %390 = tpu.matmul %389, %37, %cst_74 {dimension_numbers = #tpu.dot_dimension_numbers<[1], [0], [0], [1], [0, 0, 1, 1], [], []>} : vector<2x128xbf16>, vector<128x512xbf16>, vector<2x512xf32> -> vector<2x512xf32>
    %391 = arith.addf %388, %390 : vector<2x512xf32>
    %392 = vector.extract_strided_slice %391 {offsets = [0, 0], sizes = [2, 128], strides = [1, 1]} : vector<2x512xf32> to vector<2x128xf32>
    %393 = arith.negf %392 : vector<2x128xf32>
    %394 = math.exp %393 : vector<2x128xf32>
    %cst_75 = arith.constant 1.000000e+00 : f32
    %395 = vector.broadcast %cst_75 : f32 to vector<2x128xf32>
    %396 = arith.addf %395, %394 : vector<2x128xf32>
    %397 = arith.divf %395, %396 : vector<2x128xf32>
    %398 = vector.extract_strided_slice %391 {offsets = [0, 128], sizes = [2, 128], strides = [1, 1]} : vector<2x512xf32> to vector<2x128xf32>
    %399 = arith.negf %398 : vector<2x128xf32>
    %400 = math.exp %399 : vector<2x128xf32>
    %cst_76 = arith.constant 1.000000e+00 : f32
    %401 = vector.broadcast %cst_76 : f32 to vector<2x128xf32>
    %402 = arith.addf %401, %400 : vector<2x128xf32>
    %403 = arith.divf %401, %402 : vector<2x128xf32>
    %404 = vector.extract_strided_slice %391 {offsets = [0, 256], sizes = [2, 128], strides = [1, 1]} : vector<2x512xf32> to vector<2x128xf32>
    %405 = math.tanh %404 : vector<2x128xf32>
    %406 = vector.extract_strided_slice %391 {offsets = [0, 384], sizes = [2, 128], strides = [1, 1]} : vector<2x512xf32> to vector<2x128xf32>
    %407 = arith.negf %406 : vector<2x128xf32>
    %408 = math.exp %407 : vector<2x128xf32>
    %cst_77 = arith.constant 1.000000e+00 : f32
    %409 = vector.broadcast %cst_77 : f32 to vector<2x128xf32>
    %410 = arith.addf %409, %408 : vector<2x128xf32>
    %411 = arith.divf %409, %410 : vector<2x128xf32>
    %412 = arith.mulf %403, %385 : vector<2x128xf32>
    %413 = arith.mulf %397, %405 : vector<2x128xf32>
    %414 = arith.addf %412, %413 : vector<2x128xf32>
    %415 = math.tanh %414 : vector<2x128xf32>
    %416 = arith.mulf %411, %415 : vector<2x128xf32>
    %417 = vector.extract_strided_slice %36 {offsets = [26, 0], sizes = [2, 512], strides = [1, 1]} : vector<32x512xf32> to vector<2x512xf32>
    %418 = arith.truncf %416 : vector<2x128xf32> to vector<2x128xbf16>
    %cst_78 = arith.constant dense<0.000000e+00> : vector<2x512xf32>
    %419 = tpu.matmul %418, %37, %cst_78 {dimension_numbers = #tpu.dot_dimension_numbers<[1], [0], [0], [1], [0, 0, 1, 1], [], []>} : vector<2x128xbf16>, vector<128x512xbf16>, vector<2x512xf32> -> vector<2x512xf32>
    %420 = arith.addf %417, %419 : vector<2x512xf32>
    %421 = vector.extract_strided_slice %420 {offsets = [0, 0], sizes = [2, 128], strides = [1, 1]} : vector<2x512xf32> to vector<2x128xf32>
    %422 = arith.negf %421 : vector<2x128xf32>
    %423 = math.exp %422 : vector<2x128xf32>
    %cst_79 = arith.constant 1.000000e+00 : f32
    %424 = vector.broadcast %cst_79 : f32 to vector<2x128xf32>
    %425 = arith.addf %424, %423 : vector<2x128xf32>
    %426 = arith.divf %424, %425 : vector<2x128xf32>
    %427 = vector.extract_strided_slice %420 {offsets = [0, 128], sizes = [2, 128], strides = [1, 1]} : vector<2x512xf32> to vector<2x128xf32>
    %428 = arith.negf %427 : vector<2x128xf32>
    %429 = math.exp %428 : vector<2x128xf32>
    %cst_80 = arith.constant 1.000000e+00 : f32
    %430 = vector.broadcast %cst_80 : f32 to vector<2x128xf32>
    %431 = arith.addf %430, %429 : vector<2x128xf32>
    %432 = arith.divf %430, %431 : vector<2x128xf32>
    %433 = vector.extract_strided_slice %420 {offsets = [0, 256], sizes = [2, 128], strides = [1, 1]} : vector<2x512xf32> to vector<2x128xf32>
    %434 = math.tanh %433 : vector<2x128xf32>
    %435 = vector.extract_strided_slice %420 {offsets = [0, 384], sizes = [2, 128], strides = [1, 1]} : vector<2x512xf32> to vector<2x128xf32>
    %436 = arith.negf %435 : vector<2x128xf32>
    %437 = math.exp %436 : vector<2x128xf32>
    %cst_81 = arith.constant 1.000000e+00 : f32
    %438 = vector.broadcast %cst_81 : f32 to vector<2x128xf32>
    %439 = arith.addf %438, %437 : vector<2x128xf32>
    %440 = arith.divf %438, %439 : vector<2x128xf32>
    %441 = arith.mulf %432, %414 : vector<2x128xf32>
    %442 = arith.mulf %426, %434 : vector<2x128xf32>
    %443 = arith.addf %441, %442 : vector<2x128xf32>
    %444 = math.tanh %443 : vector<2x128xf32>
    %445 = arith.mulf %440, %444 : vector<2x128xf32>
    %446 = vector.extract_strided_slice %36 {offsets = [28, 0], sizes = [2, 512], strides = [1, 1]} : vector<32x512xf32> to vector<2x512xf32>
    %447 = arith.truncf %445 : vector<2x128xf32> to vector<2x128xbf16>
    %cst_82 = arith.constant dense<0.000000e+00> : vector<2x512xf32>
    %448 = tpu.matmul %447, %37, %cst_82 {dimension_numbers = #tpu.dot_dimension_numbers<[1], [0], [0], [1], [0, 0, 1, 1], [], []>} : vector<2x128xbf16>, vector<128x512xbf16>, vector<2x512xf32> -> vector<2x512xf32>
    %449 = arith.addf %446, %448 : vector<2x512xf32>
    %450 = vector.extract_strided_slice %449 {offsets = [0, 0], sizes = [2, 128], strides = [1, 1]} : vector<2x512xf32> to vector<2x128xf32>
    %451 = arith.negf %450 : vector<2x128xf32>
    %452 = math.exp %451 : vector<2x128xf32>
    %cst_83 = arith.constant 1.000000e+00 : f32
    %453 = vector.broadcast %cst_83 : f32 to vector<2x128xf32>
    %454 = arith.addf %453, %452 : vector<2x128xf32>
    %455 = arith.divf %453, %454 : vector<2x128xf32>
    %456 = vector.extract_strided_slice %449 {offsets = [0, 128], sizes = [2, 128], strides = [1, 1]} : vector<2x512xf32> to vector<2x128xf32>
    %457 = arith.negf %456 : vector<2x128xf32>
    %458 = math.exp %457 : vector<2x128xf32>
    %cst_84 = arith.constant 1.000000e+00 : f32
    %459 = vector.broadcast %cst_84 : f32 to vector<2x128xf32>
    %460 = arith.addf %459, %458 : vector<2x128xf32>
    %461 = arith.divf %459, %460 : vector<2x128xf32>
    %462 = vector.extract_strided_slice %449 {offsets = [0, 256], sizes = [2, 128], strides = [1, 1]} : vector<2x512xf32> to vector<2x128xf32>
    %463 = math.tanh %462 : vector<2x128xf32>
    %464 = vector.extract_strided_slice %449 {offsets = [0, 384], sizes = [2, 128], strides = [1, 1]} : vector<2x512xf32> to vector<2x128xf32>
    %465 = arith.negf %464 : vector<2x128xf32>
    %466 = math.exp %465 : vector<2x128xf32>
    %cst_85 = arith.constant 1.000000e+00 : f32
    %467 = vector.broadcast %cst_85 : f32 to vector<2x128xf32>
    %468 = arith.addf %467, %466 : vector<2x128xf32>
    %469 = arith.divf %467, %468 : vector<2x128xf32>
    %470 = arith.mulf %461, %443 : vector<2x128xf32>
    %471 = arith.mulf %455, %463 : vector<2x128xf32>
    %472 = arith.addf %470, %471 : vector<2x128xf32>
    %473 = math.tanh %472 : vector<2x128xf32>
    %474 = arith.mulf %469, %473 : vector<2x128xf32>
    %475 = vector.extract_strided_slice %36 {offsets = [30, 0], sizes = [2, 512], strides = [1, 1]} : vector<32x512xf32> to vector<2x512xf32>
    %476 = arith.truncf %474 : vector<2x128xf32> to vector<2x128xbf16>
    %cst_86 = arith.constant dense<0.000000e+00> : vector<2x512xf32>
    %477 = tpu.matmul %476, %37, %cst_86 {dimension_numbers = #tpu.dot_dimension_numbers<[1], [0], [0], [1], [0, 0, 1, 1], [], []>} : vector<2x128xbf16>, vector<128x512xbf16>, vector<2x512xf32> -> vector<2x512xf32>
    %478 = arith.addf %475, %477 : vector<2x512xf32>
    %479 = vector.extract_strided_slice %478 {offsets = [0, 0], sizes = [2, 128], strides = [1, 1]} : vector<2x512xf32> to vector<2x128xf32>
    %480 = arith.negf %479 : vector<2x128xf32>
    %481 = math.exp %480 : vector<2x128xf32>
    %cst_87 = arith.constant 1.000000e+00 : f32
    %482 = vector.broadcast %cst_87 : f32 to vector<2x128xf32>
    %483 = arith.addf %482, %481 : vector<2x128xf32>
    %484 = arith.divf %482, %483 : vector<2x128xf32>
    %485 = vector.extract_strided_slice %478 {offsets = [0, 128], sizes = [2, 128], strides = [1, 1]} : vector<2x512xf32> to vector<2x128xf32>
    %486 = arith.negf %485 : vector<2x128xf32>
    %487 = math.exp %486 : vector<2x128xf32>
    %cst_88 = arith.constant 1.000000e+00 : f32
    %488 = vector.broadcast %cst_88 : f32 to vector<2x128xf32>
    %489 = arith.addf %488, %487 : vector<2x128xf32>
    %490 = arith.divf %488, %489 : vector<2x128xf32>
    %491 = vector.extract_strided_slice %478 {offsets = [0, 256], sizes = [2, 128], strides = [1, 1]} : vector<2x512xf32> to vector<2x128xf32>
    %492 = math.tanh %491 : vector<2x128xf32>
    %493 = vector.extract_strided_slice %478 {offsets = [0, 384], sizes = [2, 128], strides = [1, 1]} : vector<2x512xf32> to vector<2x128xf32>
    %494 = arith.negf %493 : vector<2x128xf32>
    %495 = math.exp %494 : vector<2x128xf32>
    %cst_89 = arith.constant 1.000000e+00 : f32
    %496 = vector.broadcast %cst_89 : f32 to vector<2x128xf32>
    %497 = arith.addf %496, %495 : vector<2x128xf32>
    %498 = arith.divf %496, %497 : vector<2x128xf32>
    %499 = arith.mulf %490, %472 : vector<2x128xf32>
    %500 = arith.mulf %484, %492 : vector<2x128xf32>
    %501 = arith.addf %499, %500 : vector<2x128xf32>
    %502 = math.tanh %501 : vector<2x128xf32>
    %503 = arith.mulf %498, %502 : vector<2x128xf32>
    %504 = tpu.concatenate %68, %97, %126, %155, %184, %213, %242, %271, %300, %329, %358, %387, %416, %445, %474, %503 in 0 : vector<2x128xf32>, vector<2x128xf32>, vector<2x128xf32>, vector<2x128xf32>, vector<2x128xf32>, vector<2x128xf32>, vector<2x128xf32>, vector<2x128xf32>, vector<2x128xf32>, vector<2x128xf32>, vector<2x128xf32>, vector<2x128xf32>, vector<2x128xf32>, vector<2x128xf32>, vector<2x128xf32>, vector<2x128xf32> -> vector<32x128xf32>
    %c0_90 = arith.constant 0 : index
    %c0_91 = arith.constant 0 : index
    %505 = vector.load %arg11[%c0_90, %c0_91] : memref<128x512xbf16, #tpu.memory_space<vmem>>, vector<128x512xbf16>
    %506 = arith.truncf %504 : vector<32x128xf32> to vector<32x128xbf16>
    %cst_92 = arith.constant dense<0.000000e+00> : vector<32x512xf32>
    %507 = tpu.matmul %506, %505, %cst_92 {dimension_numbers = #tpu.dot_dimension_numbers<[1], [0], [0], [1], [0, 0, 1, 1], [], []>} : vector<32x128xbf16>, vector<128x512xbf16>, vector<32x512xf32> -> vector<32x512xf32>
    %c0_93 = arith.constant 0 : index
    %c0_94 = arith.constant 0 : index
    %508 = vector.load %arg13[%c0_93, %c0_94] : memref<1x512xf32, #tpu.memory_space<vmem>>, vector<1x512xf32>
    %509 = vector.broadcast %508 : vector<1x512xf32> to vector<32x512xf32>
    %510 = arith.addf %507, %509 : vector<32x512xf32>
    %c0_95 = arith.constant 0 : index
    %c0_96 = arith.constant 0 : index
    %511 = vector.load %arg12[%c0_95, %c0_96] : memref<128x512xbf16, #tpu.memory_space<vmem>>, vector<128x512xbf16>
    %cst_97 = arith.constant 0.000000e+00 : f32
    %512 = vector.broadcast %cst_97 : f32 to vector<2x128xf32>
    %cst_98 = arith.constant 0.000000e+00 : f32
    %513 = vector.broadcast %cst_98 : f32 to vector<2x128xf32>
    %514 = vector.extract_strided_slice %510 {offsets = [0, 0], sizes = [2, 512], strides = [1, 1]} : vector<32x512xf32> to vector<2x512xf32>
    %515 = arith.truncf %512 : vector<2x128xf32> to vector<2x128xbf16>
    %cst_99 = arith.constant dense<0.000000e+00> : vector<2x512xf32>
    %516 = tpu.matmul %515, %511, %cst_99 {dimension_numbers = #tpu.dot_dimension_numbers<[1], [0], [0], [1], [0, 0, 1, 1], [], []>} : vector<2x128xbf16>, vector<128x512xbf16>, vector<2x512xf32> -> vector<2x512xf32>
    %517 = arith.addf %514, %516 : vector<2x512xf32>
    %518 = vector.extract_strided_slice %517 {offsets = [0, 0], sizes = [2, 128], strides = [1, 1]} : vector<2x512xf32> to vector<2x128xf32>
    %519 = arith.negf %518 : vector<2x128xf32>
    %520 = math.exp %519 : vector<2x128xf32>
    %cst_100 = arith.constant 1.000000e+00 : f32
    %521 = vector.broadcast %cst_100 : f32 to vector<2x128xf32>
    %522 = arith.addf %521, %520 : vector<2x128xf32>
    %523 = arith.divf %521, %522 : vector<2x128xf32>
    %524 = vector.extract_strided_slice %517 {offsets = [0, 128], sizes = [2, 128], strides = [1, 1]} : vector<2x512xf32> to vector<2x128xf32>
    %525 = arith.negf %524 : vector<2x128xf32>
    %526 = math.exp %525 : vector<2x128xf32>
    %cst_101 = arith.constant 1.000000e+00 : f32
    %527 = vector.broadcast %cst_101 : f32 to vector<2x128xf32>
    %528 = arith.addf %527, %526 : vector<2x128xf32>
    %529 = arith.divf %527, %528 : vector<2x128xf32>
    %530 = vector.extract_strided_slice %517 {offsets = [0, 256], sizes = [2, 128], strides = [1, 1]} : vector<2x512xf32> to vector<2x128xf32>
    %531 = math.tanh %530 : vector<2x128xf32>
    %532 = vector.extract_strided_slice %517 {offsets = [0, 384], sizes = [2, 128], strides = [1, 1]} : vector<2x512xf32> to vector<2x128xf32>
    %533 = arith.negf %532 : vector<2x128xf32>
    %534 = math.exp %533 : vector<2x128xf32>
    %cst_102 = arith.constant 1.000000e+00 : f32
    %535 = vector.broadcast %cst_102 : f32 to vector<2x128xf32>
    %536 = arith.addf %535, %534 : vector<2x128xf32>
    %537 = arith.divf %535, %536 : vector<2x128xf32>
    %538 = arith.mulf %529, %513 : vector<2x128xf32>
    %539 = arith.mulf %523, %531 : vector<2x128xf32>
    %540 = arith.addf %538, %539 : vector<2x128xf32>
    %541 = math.tanh %540 : vector<2x128xf32>
    %542 = arith.mulf %537, %541 : vector<2x128xf32>
    %543 = vector.extract_strided_slice %510 {offsets = [2, 0], sizes = [2, 512], strides = [1, 1]} : vector<32x512xf32> to vector<2x512xf32>
    %544 = arith.truncf %542 : vector<2x128xf32> to vector<2x128xbf16>
    %cst_103 = arith.constant dense<0.000000e+00> : vector<2x512xf32>
    %545 = tpu.matmul %544, %511, %cst_103 {dimension_numbers = #tpu.dot_dimension_numbers<[1], [0], [0], [1], [0, 0, 1, 1], [], []>} : vector<2x128xbf16>, vector<128x512xbf16>, vector<2x512xf32> -> vector<2x512xf32>
    %546 = arith.addf %543, %545 : vector<2x512xf32>
    %547 = vector.extract_strided_slice %546 {offsets = [0, 0], sizes = [2, 128], strides = [1, 1]} : vector<2x512xf32> to vector<2x128xf32>
    %548 = arith.negf %547 : vector<2x128xf32>
    %549 = math.exp %548 : vector<2x128xf32>
    %cst_104 = arith.constant 1.000000e+00 : f32
    %550 = vector.broadcast %cst_104 : f32 to vector<2x128xf32>
    %551 = arith.addf %550, %549 : vector<2x128xf32>
    %552 = arith.divf %550, %551 : vector<2x128xf32>
    %553 = vector.extract_strided_slice %546 {offsets = [0, 128], sizes = [2, 128], strides = [1, 1]} : vector<2x512xf32> to vector<2x128xf32>
    %554 = arith.negf %553 : vector<2x128xf32>
    %555 = math.exp %554 : vector<2x128xf32>
    %cst_105 = arith.constant 1.000000e+00 : f32
    %556 = vector.broadcast %cst_105 : f32 to vector<2x128xf32>
    %557 = arith.addf %556, %555 : vector<2x128xf32>
    %558 = arith.divf %556, %557 : vector<2x128xf32>
    %559 = vector.extract_strided_slice %546 {offsets = [0, 256], sizes = [2, 128], strides = [1, 1]} : vector<2x512xf32> to vector<2x128xf32>
    %560 = math.tanh %559 : vector<2x128xf32>
    %561 = vector.extract_strided_slice %546 {offsets = [0, 384], sizes = [2, 128], strides = [1, 1]} : vector<2x512xf32> to vector<2x128xf32>
    %562 = arith.negf %561 : vector<2x128xf32>
    %563 = math.exp %562 : vector<2x128xf32>
    %cst_106 = arith.constant 1.000000e+00 : f32
    %564 = vector.broadcast %cst_106 : f32 to vector<2x128xf32>
    %565 = arith.addf %564, %563 : vector<2x128xf32>
    %566 = arith.divf %564, %565 : vector<2x128xf32>
    %567 = arith.mulf %558, %540 : vector<2x128xf32>
    %568 = arith.mulf %552, %560 : vector<2x128xf32>
    %569 = arith.addf %567, %568 : vector<2x128xf32>
    %570 = math.tanh %569 : vector<2x128xf32>
    %571 = arith.mulf %566, %570 : vector<2x128xf32>
    %572 = vector.extract_strided_slice %510 {offsets = [4, 0], sizes = [2, 512], strides = [1, 1]} : vector<32x512xf32> to vector<2x512xf32>
    %573 = arith.truncf %571 : vector<2x128xf32> to vector<2x128xbf16>
    %cst_107 = arith.constant dense<0.000000e+00> : vector<2x512xf32>
    %574 = tpu.matmul %573, %511, %cst_107 {dimension_numbers = #tpu.dot_dimension_numbers<[1], [0], [0], [1], [0, 0, 1, 1], [], []>} : vector<2x128xbf16>, vector<128x512xbf16>, vector<2x512xf32> -> vector<2x512xf32>
    %575 = arith.addf %572, %574 : vector<2x512xf32>
    %576 = vector.extract_strided_slice %575 {offsets = [0, 0], sizes = [2, 128], strides = [1, 1]} : vector<2x512xf32> to vector<2x128xf32>
    %577 = arith.negf %576 : vector<2x128xf32>
    %578 = math.exp %577 : vector<2x128xf32>
    %cst_108 = arith.constant 1.000000e+00 : f32
    %579 = vector.broadcast %cst_108 : f32 to vector<2x128xf32>
    %580 = arith.addf %579, %578 : vector<2x128xf32>
    %581 = arith.divf %579, %580 : vector<2x128xf32>
    %582 = vector.extract_strided_slice %575 {offsets = [0, 128], sizes = [2, 128], strides = [1, 1]} : vector<2x512xf32> to vector<2x128xf32>
    %583 = arith.negf %582 : vector<2x128xf32>
    %584 = math.exp %583 : vector<2x128xf32>
    %cst_109 = arith.constant 1.000000e+00 : f32
    %585 = vector.broadcast %cst_109 : f32 to vector<2x128xf32>
    %586 = arith.addf %585, %584 : vector<2x128xf32>
    %587 = arith.divf %585, %586 : vector<2x128xf32>
    %588 = vector.extract_strided_slice %575 {offsets = [0, 256], sizes = [2, 128], strides = [1, 1]} : vector<2x512xf32> to vector<2x128xf32>
    %589 = math.tanh %588 : vector<2x128xf32>
    %590 = vector.extract_strided_slice %575 {offsets = [0, 384], sizes = [2, 128], strides = [1, 1]} : vector<2x512xf32> to vector<2x128xf32>
    %591 = arith.negf %590 : vector<2x128xf32>
    %592 = math.exp %591 : vector<2x128xf32>
    %cst_110 = arith.constant 1.000000e+00 : f32
    %593 = vector.broadcast %cst_110 : f32 to vector<2x128xf32>
    %594 = arith.addf %593, %592 : vector<2x128xf32>
    %595 = arith.divf %593, %594 : vector<2x128xf32>
    %596 = arith.mulf %587, %569 : vector<2x128xf32>
    %597 = arith.mulf %581, %589 : vector<2x128xf32>
    %598 = arith.addf %596, %597 : vector<2x128xf32>
    %599 = math.tanh %598 : vector<2x128xf32>
    %600 = arith.mulf %595, %599 : vector<2x128xf32>
    %601 = vector.extract_strided_slice %510 {offsets = [6, 0], sizes = [2, 512], strides = [1, 1]} : vector<32x512xf32> to vector<2x512xf32>
    %602 = arith.truncf %600 : vector<2x128xf32> to vector<2x128xbf16>
    %cst_111 = arith.constant dense<0.000000e+00> : vector<2x512xf32>
    %603 = tpu.matmul %602, %511, %cst_111 {dimension_numbers = #tpu.dot_dimension_numbers<[1], [0], [0], [1], [0, 0, 1, 1], [], []>} : vector<2x128xbf16>, vector<128x512xbf16>, vector<2x512xf32> -> vector<2x512xf32>
    %604 = arith.addf %601, %603 : vector<2x512xf32>
    %605 = vector.extract_strided_slice %604 {offsets = [0, 0], sizes = [2, 128], strides = [1, 1]} : vector<2x512xf32> to vector<2x128xf32>
    %606 = arith.negf %605 : vector<2x128xf32>
    %607 = math.exp %606 : vector<2x128xf32>
    %cst_112 = arith.constant 1.000000e+00 : f32
    %608 = vector.broadcast %cst_112 : f32 to vector<2x128xf32>
    %609 = arith.addf %608, %607 : vector<2x128xf32>
    %610 = arith.divf %608, %609 : vector<2x128xf32>
    %611 = vector.extract_strided_slice %604 {offsets = [0, 128], sizes = [2, 128], strides = [1, 1]} : vector<2x512xf32> to vector<2x128xf32>
    %612 = arith.negf %611 : vector<2x128xf32>
    %613 = math.exp %612 : vector<2x128xf32>
    %cst_113 = arith.constant 1.000000e+00 : f32
    %614 = vector.broadcast %cst_113 : f32 to vector<2x128xf32>
    %615 = arith.addf %614, %613 : vector<2x128xf32>
    %616 = arith.divf %614, %615 : vector<2x128xf32>
    %617 = vector.extract_strided_slice %604 {offsets = [0, 256], sizes = [2, 128], strides = [1, 1]} : vector<2x512xf32> to vector<2x128xf32>
    %618 = math.tanh %617 : vector<2x128xf32>
    %619 = vector.extract_strided_slice %604 {offsets = [0, 384], sizes = [2, 128], strides = [1, 1]} : vector<2x512xf32> to vector<2x128xf32>
    %620 = arith.negf %619 : vector<2x128xf32>
    %621 = math.exp %620 : vector<2x128xf32>
    %cst_114 = arith.constant 1.000000e+00 : f32
    %622 = vector.broadcast %cst_114 : f32 to vector<2x128xf32>
    %623 = arith.addf %622, %621 : vector<2x128xf32>
    %624 = arith.divf %622, %623 : vector<2x128xf32>
    %625 = arith.mulf %616, %598 : vector<2x128xf32>
    %626 = arith.mulf %610, %618 : vector<2x128xf32>
    %627 = arith.addf %625, %626 : vector<2x128xf32>
    %628 = math.tanh %627 : vector<2x128xf32>
    %629 = arith.mulf %624, %628 : vector<2x128xf32>
    %630 = vector.extract_strided_slice %510 {offsets = [8, 0], sizes = [2, 512], strides = [1, 1]} : vector<32x512xf32> to vector<2x512xf32>
    %631 = arith.truncf %629 : vector<2x128xf32> to vector<2x128xbf16>
    %cst_115 = arith.constant dense<0.000000e+00> : vector<2x512xf32>
    %632 = tpu.matmul %631, %511, %cst_115 {dimension_numbers = #tpu.dot_dimension_numbers<[1], [0], [0], [1], [0, 0, 1, 1], [], []>} : vector<2x128xbf16>, vector<128x512xbf16>, vector<2x512xf32> -> vector<2x512xf32>
    %633 = arith.addf %630, %632 : vector<2x512xf32>
    %634 = vector.extract_strided_slice %633 {offsets = [0, 0], sizes = [2, 128], strides = [1, 1]} : vector<2x512xf32> to vector<2x128xf32>
    %635 = arith.negf %634 : vector<2x128xf32>
    %636 = math.exp %635 : vector<2x128xf32>
    %cst_116 = arith.constant 1.000000e+00 : f32
    %637 = vector.broadcast %cst_116 : f32 to vector<2x128xf32>
    %638 = arith.addf %637, %636 : vector<2x128xf32>
    %639 = arith.divf %637, %638 : vector<2x128xf32>
    %640 = vector.extract_strided_slice %633 {offsets = [0, 128], sizes = [2, 128], strides = [1, 1]} : vector<2x512xf32> to vector<2x128xf32>
    %641 = arith.negf %640 : vector<2x128xf32>
    %642 = math.exp %641 : vector<2x128xf32>
    %cst_117 = arith.constant 1.000000e+00 : f32
    %643 = vector.broadcast %cst_117 : f32 to vector<2x128xf32>
    %644 = arith.addf %643, %642 : vector<2x128xf32>
    %645 = arith.divf %643, %644 : vector<2x128xf32>
    %646 = vector.extract_strided_slice %633 {offsets = [0, 256], sizes = [2, 128], strides = [1, 1]} : vector<2x512xf32> to vector<2x128xf32>
    %647 = math.tanh %646 : vector<2x128xf32>
    %648 = vector.extract_strided_slice %633 {offsets = [0, 384], sizes = [2, 128], strides = [1, 1]} : vector<2x512xf32> to vector<2x128xf32>
    %649 = arith.negf %648 : vector<2x128xf32>
    %650 = math.exp %649 : vector<2x128xf32>
    %cst_118 = arith.constant 1.000000e+00 : f32
    %651 = vector.broadcast %cst_118 : f32 to vector<2x128xf32>
    %652 = arith.addf %651, %650 : vector<2x128xf32>
    %653 = arith.divf %651, %652 : vector<2x128xf32>
    %654 = arith.mulf %645, %627 : vector<2x128xf32>
    %655 = arith.mulf %639, %647 : vector<2x128xf32>
    %656 = arith.addf %654, %655 : vector<2x128xf32>
    %657 = math.tanh %656 : vector<2x128xf32>
    %658 = arith.mulf %653, %657 : vector<2x128xf32>
    %659 = vector.extract_strided_slice %510 {offsets = [10, 0], sizes = [2, 512], strides = [1, 1]} : vector<32x512xf32> to vector<2x512xf32>
    %660 = arith.truncf %658 : vector<2x128xf32> to vector<2x128xbf16>
    %cst_119 = arith.constant dense<0.000000e+00> : vector<2x512xf32>
    %661 = tpu.matmul %660, %511, %cst_119 {dimension_numbers = #tpu.dot_dimension_numbers<[1], [0], [0], [1], [0, 0, 1, 1], [], []>} : vector<2x128xbf16>, vector<128x512xbf16>, vector<2x512xf32> -> vector<2x512xf32>
    %662 = arith.addf %659, %661 : vector<2x512xf32>
    %663 = vector.extract_strided_slice %662 {offsets = [0, 0], sizes = [2, 128], strides = [1, 1]} : vector<2x512xf32> to vector<2x128xf32>
    %664 = arith.negf %663 : vector<2x128xf32>
    %665 = math.exp %664 : vector<2x128xf32>
    %cst_120 = arith.constant 1.000000e+00 : f32
    %666 = vector.broadcast %cst_120 : f32 to vector<2x128xf32>
    %667 = arith.addf %666, %665 : vector<2x128xf32>
    %668 = arith.divf %666, %667 : vector<2x128xf32>
    %669 = vector.extract_strided_slice %662 {offsets = [0, 128], sizes = [2, 128], strides = [1, 1]} : vector<2x512xf32> to vector<2x128xf32>
    %670 = arith.negf %669 : vector<2x128xf32>
    %671 = math.exp %670 : vector<2x128xf32>
    %cst_121 = arith.constant 1.000000e+00 : f32
    %672 = vector.broadcast %cst_121 : f32 to vector<2x128xf32>
    %673 = arith.addf %672, %671 : vector<2x128xf32>
    %674 = arith.divf %672, %673 : vector<2x128xf32>
    %675 = vector.extract_strided_slice %662 {offsets = [0, 256], sizes = [2, 128], strides = [1, 1]} : vector<2x512xf32> to vector<2x128xf32>
    %676 = math.tanh %675 : vector<2x128xf32>
    %677 = vector.extract_strided_slice %662 {offsets = [0, 384], sizes = [2, 128], strides = [1, 1]} : vector<2x512xf32> to vector<2x128xf32>
    %678 = arith.negf %677 : vector<2x128xf32>
    %679 = math.exp %678 : vector<2x128xf32>
    %cst_122 = arith.constant 1.000000e+00 : f32
    %680 = vector.broadcast %cst_122 : f32 to vector<2x128xf32>
    %681 = arith.addf %680, %679 : vector<2x128xf32>
    %682 = arith.divf %680, %681 : vector<2x128xf32>
    %683 = arith.mulf %674, %656 : vector<2x128xf32>
    %684 = arith.mulf %668, %676 : vector<2x128xf32>
    %685 = arith.addf %683, %684 : vector<2x128xf32>
    %686 = math.tanh %685 : vector<2x128xf32>
    %687 = arith.mulf %682, %686 : vector<2x128xf32>
    %688 = vector.extract_strided_slice %510 {offsets = [12, 0], sizes = [2, 512], strides = [1, 1]} : vector<32x512xf32> to vector<2x512xf32>
    %689 = arith.truncf %687 : vector<2x128xf32> to vector<2x128xbf16>
    %cst_123 = arith.constant dense<0.000000e+00> : vector<2x512xf32>
    %690 = tpu.matmul %689, %511, %cst_123 {dimension_numbers = #tpu.dot_dimension_numbers<[1], [0], [0], [1], [0, 0, 1, 1], [], []>} : vector<2x128xbf16>, vector<128x512xbf16>, vector<2x512xf32> -> vector<2x512xf32>
    %691 = arith.addf %688, %690 : vector<2x512xf32>
    %692 = vector.extract_strided_slice %691 {offsets = [0, 0], sizes = [2, 128], strides = [1, 1]} : vector<2x512xf32> to vector<2x128xf32>
    %693 = arith.negf %692 : vector<2x128xf32>
    %694 = math.exp %693 : vector<2x128xf32>
    %cst_124 = arith.constant 1.000000e+00 : f32
    %695 = vector.broadcast %cst_124 : f32 to vector<2x128xf32>
    %696 = arith.addf %695, %694 : vector<2x128xf32>
    %697 = arith.divf %695, %696 : vector<2x128xf32>
    %698 = vector.extract_strided_slice %691 {offsets = [0, 128], sizes = [2, 128], strides = [1, 1]} : vector<2x512xf32> to vector<2x128xf32>
    %699 = arith.negf %698 : vector<2x128xf32>
    %700 = math.exp %699 : vector<2x128xf32>
    %cst_125 = arith.constant 1.000000e+00 : f32
    %701 = vector.broadcast %cst_125 : f32 to vector<2x128xf32>
    %702 = arith.addf %701, %700 : vector<2x128xf32>
    %703 = arith.divf %701, %702 : vector<2x128xf32>
    %704 = vector.extract_strided_slice %691 {offsets = [0, 256], sizes = [2, 128], strides = [1, 1]} : vector<2x512xf32> to vector<2x128xf32>
    %705 = math.tanh %704 : vector<2x128xf32>
    %706 = vector.extract_strided_slice %691 {offsets = [0, 384], sizes = [2, 128], strides = [1, 1]} : vector<2x512xf32> to vector<2x128xf32>
    %707 = arith.negf %706 : vector<2x128xf32>
    %708 = math.exp %707 : vector<2x128xf32>
    %cst_126 = arith.constant 1.000000e+00 : f32
    %709 = vector.broadcast %cst_126 : f32 to vector<2x128xf32>
    %710 = arith.addf %709, %708 : vector<2x128xf32>
    %711 = arith.divf %709, %710 : vector<2x128xf32>
    %712 = arith.mulf %703, %685 : vector<2x128xf32>
    %713 = arith.mulf %697, %705 : vector<2x128xf32>
    %714 = arith.addf %712, %713 : vector<2x128xf32>
    %715 = math.tanh %714 : vector<2x128xf32>
    %716 = arith.mulf %711, %715 : vector<2x128xf32>
    %717 = vector.extract_strided_slice %510 {offsets = [14, 0], sizes = [2, 512], strides = [1, 1]} : vector<32x512xf32> to vector<2x512xf32>
    %718 = arith.truncf %716 : vector<2x128xf32> to vector<2x128xbf16>
    %cst_127 = arith.constant dense<0.000000e+00> : vector<2x512xf32>
    %719 = tpu.matmul %718, %511, %cst_127 {dimension_numbers = #tpu.dot_dimension_numbers<[1], [0], [0], [1], [0, 0, 1, 1], [], []>} : vector<2x128xbf16>, vector<128x512xbf16>, vector<2x512xf32> -> vector<2x512xf32>
    %720 = arith.addf %717, %719 : vector<2x512xf32>
    %721 = vector.extract_strided_slice %720 {offsets = [0, 0], sizes = [2, 128], strides = [1, 1]} : vector<2x512xf32> to vector<2x128xf32>
    %722 = arith.negf %721 : vector<2x128xf32>
    %723 = math.exp %722 : vector<2x128xf32>
    %cst_128 = arith.constant 1.000000e+00 : f32
    %724 = vector.broadcast %cst_128 : f32 to vector<2x128xf32>
    %725 = arith.addf %724, %723 : vector<2x128xf32>
    %726 = arith.divf %724, %725 : vector<2x128xf32>
    %727 = vector.extract_strided_slice %720 {offsets = [0, 128], sizes = [2, 128], strides = [1, 1]} : vector<2x512xf32> to vector<2x128xf32>
    %728 = arith.negf %727 : vector<2x128xf32>
    %729 = math.exp %728 : vector<2x128xf32>
    %cst_129 = arith.constant 1.000000e+00 : f32
    %730 = vector.broadcast %cst_129 : f32 to vector<2x128xf32>
    %731 = arith.addf %730, %729 : vector<2x128xf32>
    %732 = arith.divf %730, %731 : vector<2x128xf32>
    %733 = vector.extract_strided_slice %720 {offsets = [0, 256], sizes = [2, 128], strides = [1, 1]} : vector<2x512xf32> to vector<2x128xf32>
    %734 = math.tanh %733 : vector<2x128xf32>
    %735 = vector.extract_strided_slice %720 {offsets = [0, 384], sizes = [2, 128], strides = [1, 1]} : vector<2x512xf32> to vector<2x128xf32>
    %736 = arith.negf %735 : vector<2x128xf32>
    %737 = math.exp %736 : vector<2x128xf32>
    %cst_130 = arith.constant 1.000000e+00 : f32
    %738 = vector.broadcast %cst_130 : f32 to vector<2x128xf32>
    %739 = arith.addf %738, %737 : vector<2x128xf32>
    %740 = arith.divf %738, %739 : vector<2x128xf32>
    %741 = arith.mulf %732, %714 : vector<2x128xf32>
    %742 = arith.mulf %726, %734 : vector<2x128xf32>
    %743 = arith.addf %741, %742 : vector<2x128xf32>
    %744 = math.tanh %743 : vector<2x128xf32>
    %745 = arith.mulf %740, %744 : vector<2x128xf32>
    %746 = vector.extract_strided_slice %510 {offsets = [16, 0], sizes = [2, 512], strides = [1, 1]} : vector<32x512xf32> to vector<2x512xf32>
    %747 = arith.truncf %745 : vector<2x128xf32> to vector<2x128xbf16>
    %cst_131 = arith.constant dense<0.000000e+00> : vector<2x512xf32>
    %748 = tpu.matmul %747, %511, %cst_131 {dimension_numbers = #tpu.dot_dimension_numbers<[1], [0], [0], [1], [0, 0, 1, 1], [], []>} : vector<2x128xbf16>, vector<128x512xbf16>, vector<2x512xf32> -> vector<2x512xf32>
    %749 = arith.addf %746, %748 : vector<2x512xf32>
    %750 = vector.extract_strided_slice %749 {offsets = [0, 0], sizes = [2, 128], strides = [1, 1]} : vector<2x512xf32> to vector<2x128xf32>
    %751 = arith.negf %750 : vector<2x128xf32>
    %752 = math.exp %751 : vector<2x128xf32>
    %cst_132 = arith.constant 1.000000e+00 : f32
    %753 = vector.broadcast %cst_132 : f32 to vector<2x128xf32>
    %754 = arith.addf %753, %752 : vector<2x128xf32>
    %755 = arith.divf %753, %754 : vector<2x128xf32>
    %756 = vector.extract_strided_slice %749 {offsets = [0, 128], sizes = [2, 128], strides = [1, 1]} : vector<2x512xf32> to vector<2x128xf32>
    %757 = arith.negf %756 : vector<2x128xf32>
    %758 = math.exp %757 : vector<2x128xf32>
    %cst_133 = arith.constant 1.000000e+00 : f32
    %759 = vector.broadcast %cst_133 : f32 to vector<2x128xf32>
    %760 = arith.addf %759, %758 : vector<2x128xf32>
    %761 = arith.divf %759, %760 : vector<2x128xf32>
    %762 = vector.extract_strided_slice %749 {offsets = [0, 256], sizes = [2, 128], strides = [1, 1]} : vector<2x512xf32> to vector<2x128xf32>
    %763 = math.tanh %762 : vector<2x128xf32>
    %764 = vector.extract_strided_slice %749 {offsets = [0, 384], sizes = [2, 128], strides = [1, 1]} : vector<2x512xf32> to vector<2x128xf32>
    %765 = arith.negf %764 : vector<2x128xf32>
    %766 = math.exp %765 : vector<2x128xf32>
    %cst_134 = arith.constant 1.000000e+00 : f32
    %767 = vector.broadcast %cst_134 : f32 to vector<2x128xf32>
    %768 = arith.addf %767, %766 : vector<2x128xf32>
    %769 = arith.divf %767, %768 : vector<2x128xf32>
    %770 = arith.mulf %761, %743 : vector<2x128xf32>
    %771 = arith.mulf %755, %763 : vector<2x128xf32>
    %772 = arith.addf %770, %771 : vector<2x128xf32>
    %773 = math.tanh %772 : vector<2x128xf32>
    %774 = arith.mulf %769, %773 : vector<2x128xf32>
    %775 = vector.extract_strided_slice %510 {offsets = [18, 0], sizes = [2, 512], strides = [1, 1]} : vector<32x512xf32> to vector<2x512xf32>
    %776 = arith.truncf %774 : vector<2x128xf32> to vector<2x128xbf16>
    %cst_135 = arith.constant dense<0.000000e+00> : vector<2x512xf32>
    %777 = tpu.matmul %776, %511, %cst_135 {dimension_numbers = #tpu.dot_dimension_numbers<[1], [0], [0], [1], [0, 0, 1, 1], [], []>} : vector<2x128xbf16>, vector<128x512xbf16>, vector<2x512xf32> -> vector<2x512xf32>
    %778 = arith.addf %775, %777 : vector<2x512xf32>
    %779 = vector.extract_strided_slice %778 {offsets = [0, 0], sizes = [2, 128], strides = [1, 1]} : vector<2x512xf32> to vector<2x128xf32>
    %780 = arith.negf %779 : vector<2x128xf32>
    %781 = math.exp %780 : vector<2x128xf32>
    %cst_136 = arith.constant 1.000000e+00 : f32
    %782 = vector.broadcast %cst_136 : f32 to vector<2x128xf32>
    %783 = arith.addf %782, %781 : vector<2x128xf32>
    %784 = arith.divf %782, %783 : vector<2x128xf32>
    %785 = vector.extract_strided_slice %778 {offsets = [0, 128], sizes = [2, 128], strides = [1, 1]} : vector<2x512xf32> to vector<2x128xf32>
    %786 = arith.negf %785 : vector<2x128xf32>
    %787 = math.exp %786 : vector<2x128xf32>
    %cst_137 = arith.constant 1.000000e+00 : f32
    %788 = vector.broadcast %cst_137 : f32 to vector<2x128xf32>
    %789 = arith.addf %788, %787 : vector<2x128xf32>
    %790 = arith.divf %788, %789 : vector<2x128xf32>
    %791 = vector.extract_strided_slice %778 {offsets = [0, 256], sizes = [2, 128], strides = [1, 1]} : vector<2x512xf32> to vector<2x128xf32>
    %792 = math.tanh %791 : vector<2x128xf32>
    %793 = vector.extract_strided_slice %778 {offsets = [0, 384], sizes = [2, 128], strides = [1, 1]} : vector<2x512xf32> to vector<2x128xf32>
    %794 = arith.negf %793 : vector<2x128xf32>
    %795 = math.exp %794 : vector<2x128xf32>
    %cst_138 = arith.constant 1.000000e+00 : f32
    %796 = vector.broadcast %cst_138 : f32 to vector<2x128xf32>
    %797 = arith.addf %796, %795 : vector<2x128xf32>
    %798 = arith.divf %796, %797 : vector<2x128xf32>
    %799 = arith.mulf %790, %772 : vector<2x128xf32>
    %800 = arith.mulf %784, %792 : vector<2x128xf32>
    %801 = arith.addf %799, %800 : vector<2x128xf32>
    %802 = math.tanh %801 : vector<2x128xf32>
    %803 = arith.mulf %798, %802 : vector<2x128xf32>
    %804 = vector.extract_strided_slice %510 {offsets = [20, 0], sizes = [2, 512], strides = [1, 1]} : vector<32x512xf32> to vector<2x512xf32>
    %805 = arith.truncf %803 : vector<2x128xf32> to vector<2x128xbf16>
    %cst_139 = arith.constant dense<0.000000e+00> : vector<2x512xf32>
    %806 = tpu.matmul %805, %511, %cst_139 {dimension_numbers = #tpu.dot_dimension_numbers<[1], [0], [0], [1], [0, 0, 1, 1], [], []>} : vector<2x128xbf16>, vector<128x512xbf16>, vector<2x512xf32> -> vector<2x512xf32>
    %807 = arith.addf %804, %806 : vector<2x512xf32>
    %808 = vector.extract_strided_slice %807 {offsets = [0, 0], sizes = [2, 128], strides = [1, 1]} : vector<2x512xf32> to vector<2x128xf32>
    %809 = arith.negf %808 : vector<2x128xf32>
    %810 = math.exp %809 : vector<2x128xf32>
    %cst_140 = arith.constant 1.000000e+00 : f32
    %811 = vector.broadcast %cst_140 : f32 to vector<2x128xf32>
    %812 = arith.addf %811, %810 : vector<2x128xf32>
    %813 = arith.divf %811, %812 : vector<2x128xf32>
    %814 = vector.extract_strided_slice %807 {offsets = [0, 128], sizes = [2, 128], strides = [1, 1]} : vector<2x512xf32> to vector<2x128xf32>
    %815 = arith.negf %814 : vector<2x128xf32>
    %816 = math.exp %815 : vector<2x128xf32>
    %cst_141 = arith.constant 1.000000e+00 : f32
    %817 = vector.broadcast %cst_141 : f32 to vector<2x128xf32>
    %818 = arith.addf %817, %816 : vector<2x128xf32>
    %819 = arith.divf %817, %818 : vector<2x128xf32>
    %820 = vector.extract_strided_slice %807 {offsets = [0, 256], sizes = [2, 128], strides = [1, 1]} : vector<2x512xf32> to vector<2x128xf32>
    %821 = math.tanh %820 : vector<2x128xf32>
    %822 = vector.extract_strided_slice %807 {offsets = [0, 384], sizes = [2, 128], strides = [1, 1]} : vector<2x512xf32> to vector<2x128xf32>
    %823 = arith.negf %822 : vector<2x128xf32>
    %824 = math.exp %823 : vector<2x128xf32>
    %cst_142 = arith.constant 1.000000e+00 : f32
    %825 = vector.broadcast %cst_142 : f32 to vector<2x128xf32>
    %826 = arith.addf %825, %824 : vector<2x128xf32>
    %827 = arith.divf %825, %826 : vector<2x128xf32>
    %828 = arith.mulf %819, %801 : vector<2x128xf32>
    %829 = arith.mulf %813, %821 : vector<2x128xf32>
    %830 = arith.addf %828, %829 : vector<2x128xf32>
    %831 = math.tanh %830 : vector<2x128xf32>
    %832 = arith.mulf %827, %831 : vector<2x128xf32>
    %833 = vector.extract_strided_slice %510 {offsets = [22, 0], sizes = [2, 512], strides = [1, 1]} : vector<32x512xf32> to vector<2x512xf32>
    %834 = arith.truncf %832 : vector<2x128xf32> to vector<2x128xbf16>
    %cst_143 = arith.constant dense<0.000000e+00> : vector<2x512xf32>
    %835 = tpu.matmul %834, %511, %cst_143 {dimension_numbers = #tpu.dot_dimension_numbers<[1], [0], [0], [1], [0, 0, 1, 1], [], []>} : vector<2x128xbf16>, vector<128x512xbf16>, vector<2x512xf32> -> vector<2x512xf32>
    %836 = arith.addf %833, %835 : vector<2x512xf32>
    %837 = vector.extract_strided_slice %836 {offsets = [0, 0], sizes = [2, 128], strides = [1, 1]} : vector<2x512xf32> to vector<2x128xf32>
    %838 = arith.negf %837 : vector<2x128xf32>
    %839 = math.exp %838 : vector<2x128xf32>
    %cst_144 = arith.constant 1.000000e+00 : f32
    %840 = vector.broadcast %cst_144 : f32 to vector<2x128xf32>
    %841 = arith.addf %840, %839 : vector<2x128xf32>
    %842 = arith.divf %840, %841 : vector<2x128xf32>
    %843 = vector.extract_strided_slice %836 {offsets = [0, 128], sizes = [2, 128], strides = [1, 1]} : vector<2x512xf32> to vector<2x128xf32>
    %844 = arith.negf %843 : vector<2x128xf32>
    %845 = math.exp %844 : vector<2x128xf32>
    %cst_145 = arith.constant 1.000000e+00 : f32
    %846 = vector.broadcast %cst_145 : f32 to vector<2x128xf32>
    %847 = arith.addf %846, %845 : vector<2x128xf32>
    %848 = arith.divf %846, %847 : vector<2x128xf32>
    %849 = vector.extract_strided_slice %836 {offsets = [0, 256], sizes = [2, 128], strides = [1, 1]} : vector<2x512xf32> to vector<2x128xf32>
    %850 = math.tanh %849 : vector<2x128xf32>
    %851 = vector.extract_strided_slice %836 {offsets = [0, 384], sizes = [2, 128], strides = [1, 1]} : vector<2x512xf32> to vector<2x128xf32>
    %852 = arith.negf %851 : vector<2x128xf32>
    %853 = math.exp %852 : vector<2x128xf32>
    %cst_146 = arith.constant 1.000000e+00 : f32
    %854 = vector.broadcast %cst_146 : f32 to vector<2x128xf32>
    %855 = arith.addf %854, %853 : vector<2x128xf32>
    %856 = arith.divf %854, %855 : vector<2x128xf32>
    %857 = arith.mulf %848, %830 : vector<2x128xf32>
    %858 = arith.mulf %842, %850 : vector<2x128xf32>
    %859 = arith.addf %857, %858 : vector<2x128xf32>
    %860 = math.tanh %859 : vector<2x128xf32>
    %861 = arith.mulf %856, %860 : vector<2x128xf32>
    %862 = vector.extract_strided_slice %510 {offsets = [24, 0], sizes = [2, 512], strides = [1, 1]} : vector<32x512xf32> to vector<2x512xf32>
    %863 = arith.truncf %861 : vector<2x128xf32> to vector<2x128xbf16>
    %cst_147 = arith.constant dense<0.000000e+00> : vector<2x512xf32>
    %864 = tpu.matmul %863, %511, %cst_147 {dimension_numbers = #tpu.dot_dimension_numbers<[1], [0], [0], [1], [0, 0, 1, 1], [], []>} : vector<2x128xbf16>, vector<128x512xbf16>, vector<2x512xf32> -> vector<2x512xf32>
    %865 = arith.addf %862, %864 : vector<2x512xf32>
    %866 = vector.extract_strided_slice %865 {offsets = [0, 0], sizes = [2, 128], strides = [1, 1]} : vector<2x512xf32> to vector<2x128xf32>
    %867 = arith.negf %866 : vector<2x128xf32>
    %868 = math.exp %867 : vector<2x128xf32>
    %cst_148 = arith.constant 1.000000e+00 : f32
    %869 = vector.broadcast %cst_148 : f32 to vector<2x128xf32>
    %870 = arith.addf %869, %868 : vector<2x128xf32>
    %871 = arith.divf %869, %870 : vector<2x128xf32>
    %872 = vector.extract_strided_slice %865 {offsets = [0, 128], sizes = [2, 128], strides = [1, 1]} : vector<2x512xf32> to vector<2x128xf32>
    %873 = arith.negf %872 : vector<2x128xf32>
    %874 = math.exp %873 : vector<2x128xf32>
    %cst_149 = arith.constant 1.000000e+00 : f32
    %875 = vector.broadcast %cst_149 : f32 to vector<2x128xf32>
    %876 = arith.addf %875, %874 : vector<2x128xf32>
    %877 = arith.divf %875, %876 : vector<2x128xf32>
    %878 = vector.extract_strided_slice %865 {offsets = [0, 256], sizes = [2, 128], strides = [1, 1]} : vector<2x512xf32> to vector<2x128xf32>
    %879 = math.tanh %878 : vector<2x128xf32>
    %880 = vector.extract_strided_slice %865 {offsets = [0, 384], sizes = [2, 128], strides = [1, 1]} : vector<2x512xf32> to vector<2x128xf32>
    %881 = arith.negf %880 : vector<2x128xf32>
    %882 = math.exp %881 : vector<2x128xf32>
    %cst_150 = arith.constant 1.000000e+00 : f32
    %883 = vector.broadcast %cst_150 : f32 to vector<2x128xf32>
    %884 = arith.addf %883, %882 : vector<2x128xf32>
    %885 = arith.divf %883, %884 : vector<2x128xf32>
    %886 = arith.mulf %877, %859 : vector<2x128xf32>
    %887 = arith.mulf %871, %879 : vector<2x128xf32>
    %888 = arith.addf %886, %887 : vector<2x128xf32>
    %889 = math.tanh %888 : vector<2x128xf32>
    %890 = arith.mulf %885, %889 : vector<2x128xf32>
    %891 = vector.extract_strided_slice %510 {offsets = [26, 0], sizes = [2, 512], strides = [1, 1]} : vector<32x512xf32> to vector<2x512xf32>
    %892 = arith.truncf %890 : vector<2x128xf32> to vector<2x128xbf16>
    %cst_151 = arith.constant dense<0.000000e+00> : vector<2x512xf32>
    %893 = tpu.matmul %892, %511, %cst_151 {dimension_numbers = #tpu.dot_dimension_numbers<[1], [0], [0], [1], [0, 0, 1, 1], [], []>} : vector<2x128xbf16>, vector<128x512xbf16>, vector<2x512xf32> -> vector<2x512xf32>
    %894 = arith.addf %891, %893 : vector<2x512xf32>
    %895 = vector.extract_strided_slice %894 {offsets = [0, 0], sizes = [2, 128], strides = [1, 1]} : vector<2x512xf32> to vector<2x128xf32>
    %896 = arith.negf %895 : vector<2x128xf32>
    %897 = math.exp %896 : vector<2x128xf32>
    %cst_152 = arith.constant 1.000000e+00 : f32
    %898 = vector.broadcast %cst_152 : f32 to vector<2x128xf32>
    %899 = arith.addf %898, %897 : vector<2x128xf32>
    %900 = arith.divf %898, %899 : vector<2x128xf32>
    %901 = vector.extract_strided_slice %894 {offsets = [0, 128], sizes = [2, 128], strides = [1, 1]} : vector<2x512xf32> to vector<2x128xf32>
    %902 = arith.negf %901 : vector<2x128xf32>
    %903 = math.exp %902 : vector<2x128xf32>
    %cst_153 = arith.constant 1.000000e+00 : f32
    %904 = vector.broadcast %cst_153 : f32 to vector<2x128xf32>
    %905 = arith.addf %904, %903 : vector<2x128xf32>
    %906 = arith.divf %904, %905 : vector<2x128xf32>
    %907 = vector.extract_strided_slice %894 {offsets = [0, 256], sizes = [2, 128], strides = [1, 1]} : vector<2x512xf32> to vector<2x128xf32>
    %908 = math.tanh %907 : vector<2x128xf32>
    %909 = vector.extract_strided_slice %894 {offsets = [0, 384], sizes = [2, 128], strides = [1, 1]} : vector<2x512xf32> to vector<2x128xf32>
    %910 = arith.negf %909 : vector<2x128xf32>
    %911 = math.exp %910 : vector<2x128xf32>
    %cst_154 = arith.constant 1.000000e+00 : f32
    %912 = vector.broadcast %cst_154 : f32 to vector<2x128xf32>
    %913 = arith.addf %912, %911 : vector<2x128xf32>
    %914 = arith.divf %912, %913 : vector<2x128xf32>
    %915 = arith.mulf %906, %888 : vector<2x128xf32>
    %916 = arith.mulf %900, %908 : vector<2x128xf32>
    %917 = arith.addf %915, %916 : vector<2x128xf32>
    %918 = math.tanh %917 : vector<2x128xf32>
    %919 = arith.mulf %914, %918 : vector<2x128xf32>
    %920 = vector.extract_strided_slice %510 {offsets = [28, 0], sizes = [2, 512], strides = [1, 1]} : vector<32x512xf32> to vector<2x512xf32>
    %921 = arith.truncf %919 : vector<2x128xf32> to vector<2x128xbf16>
    %cst_155 = arith.constant dense<0.000000e+00> : vector<2x512xf32>
    %922 = tpu.matmul %921, %511, %cst_155 {dimension_numbers = #tpu.dot_dimension_numbers<[1], [0], [0], [1], [0, 0, 1, 1], [], []>} : vector<2x128xbf16>, vector<128x512xbf16>, vector<2x512xf32> -> vector<2x512xf32>
    %923 = arith.addf %920, %922 : vector<2x512xf32>
    %924 = vector.extract_strided_slice %923 {offsets = [0, 0], sizes = [2, 128], strides = [1, 1]} : vector<2x512xf32> to vector<2x128xf32>
    %925 = arith.negf %924 : vector<2x128xf32>
    %926 = math.exp %925 : vector<2x128xf32>
    %cst_156 = arith.constant 1.000000e+00 : f32
    %927 = vector.broadcast %cst_156 : f32 to vector<2x128xf32>
    %928 = arith.addf %927, %926 : vector<2x128xf32>
    %929 = arith.divf %927, %928 : vector<2x128xf32>
    %930 = vector.extract_strided_slice %923 {offsets = [0, 128], sizes = [2, 128], strides = [1, 1]} : vector<2x512xf32> to vector<2x128xf32>
    %931 = arith.negf %930 : vector<2x128xf32>
    %932 = math.exp %931 : vector<2x128xf32>
    %cst_157 = arith.constant 1.000000e+00 : f32
    %933 = vector.broadcast %cst_157 : f32 to vector<2x128xf32>
    %934 = arith.addf %933, %932 : vector<2x128xf32>
    %935 = arith.divf %933, %934 : vector<2x128xf32>
    %936 = vector.extract_strided_slice %923 {offsets = [0, 256], sizes = [2, 128], strides = [1, 1]} : vector<2x512xf32> to vector<2x128xf32>
    %937 = math.tanh %936 : vector<2x128xf32>
    %938 = vector.extract_strided_slice %923 {offsets = [0, 384], sizes = [2, 128], strides = [1, 1]} : vector<2x512xf32> to vector<2x128xf32>
    %939 = arith.negf %938 : vector<2x128xf32>
    %940 = math.exp %939 : vector<2x128xf32>
    %cst_158 = arith.constant 1.000000e+00 : f32
    %941 = vector.broadcast %cst_158 : f32 to vector<2x128xf32>
    %942 = arith.addf %941, %940 : vector<2x128xf32>
    %943 = arith.divf %941, %942 : vector<2x128xf32>
    %944 = arith.mulf %935, %917 : vector<2x128xf32>
    %945 = arith.mulf %929, %937 : vector<2x128xf32>
    %946 = arith.addf %944, %945 : vector<2x128xf32>
    %947 = math.tanh %946 : vector<2x128xf32>
    %948 = arith.mulf %943, %947 : vector<2x128xf32>
    %949 = vector.extract_strided_slice %510 {offsets = [30, 0], sizes = [2, 512], strides = [1, 1]} : vector<32x512xf32> to vector<2x512xf32>
    %950 = arith.truncf %948 : vector<2x128xf32> to vector<2x128xbf16>
    %cst_159 = arith.constant dense<0.000000e+00> : vector<2x512xf32>
    %951 = tpu.matmul %950, %511, %cst_159 {dimension_numbers = #tpu.dot_dimension_numbers<[1], [0], [0], [1], [0, 0, 1, 1], [], []>} : vector<2x128xbf16>, vector<128x512xbf16>, vector<2x512xf32> -> vector<2x512xf32>
    %952 = arith.addf %949, %951 : vector<2x512xf32>
    %953 = vector.extract_strided_slice %952 {offsets = [0, 0], sizes = [2, 128], strides = [1, 1]} : vector<2x512xf32> to vector<2x128xf32>
    %954 = arith.negf %953 : vector<2x128xf32>
    %955 = math.exp %954 : vector<2x128xf32>
    %cst_160 = arith.constant 1.000000e+00 : f32
    %956 = vector.broadcast %cst_160 : f32 to vector<2x128xf32>
    %957 = arith.addf %956, %955 : vector<2x128xf32>
    %958 = arith.divf %956, %957 : vector<2x128xf32>
    %959 = vector.extract_strided_slice %952 {offsets = [0, 128], sizes = [2, 128], strides = [1, 1]} : vector<2x512xf32> to vector<2x128xf32>
    %960 = arith.negf %959 : vector<2x128xf32>
    %961 = math.exp %960 : vector<2x128xf32>
    %cst_161 = arith.constant 1.000000e+00 : f32
    %962 = vector.broadcast %cst_161 : f32 to vector<2x128xf32>
    %963 = arith.addf %962, %961 : vector<2x128xf32>
    %964 = arith.divf %962, %963 : vector<2x128xf32>
    %965 = vector.extract_strided_slice %952 {offsets = [0, 256], sizes = [2, 128], strides = [1, 1]} : vector<2x512xf32> to vector<2x128xf32>
    %966 = math.tanh %965 : vector<2x128xf32>
    %967 = vector.extract_strided_slice %952 {offsets = [0, 384], sizes = [2, 128], strides = [1, 1]} : vector<2x512xf32> to vector<2x128xf32>
    %968 = arith.negf %967 : vector<2x128xf32>
    %969 = math.exp %968 : vector<2x128xf32>
    %cst_162 = arith.constant 1.000000e+00 : f32
    %970 = vector.broadcast %cst_162 : f32 to vector<2x128xf32>
    %971 = arith.addf %970, %969 : vector<2x128xf32>
    %972 = arith.divf %970, %971 : vector<2x128xf32>
    %973 = arith.mulf %964, %946 : vector<2x128xf32>
    %974 = arith.mulf %958, %966 : vector<2x128xf32>
    %975 = arith.addf %973, %974 : vector<2x128xf32>
    %976 = math.tanh %975 : vector<2x128xf32>
    %977 = arith.mulf %972, %976 : vector<2x128xf32>
    %978 = tpu.concatenate %542, %571, %600, %629, %658, %687, %716, %745, %774, %803, %832, %861, %890, %919, %948, %977 in 0 : vector<2x128xf32>, vector<2x128xf32>, vector<2x128xf32>, vector<2x128xf32>, vector<2x128xf32>, vector<2x128xf32>, vector<2x128xf32>, vector<2x128xf32>, vector<2x128xf32>, vector<2x128xf32>, vector<2x128xf32>, vector<2x128xf32>, vector<2x128xf32>, vector<2x128xf32>, vector<2x128xf32>, vector<2x128xf32> -> vector<32x128xf32>
    %c0_163 = arith.constant 0 : index
    %c0_164 = arith.constant 0 : index
    %979 = vector.load %arg14[%c0_163, %c0_164] : memref<128x384xbf16, #tpu.memory_space<vmem>>, vector<128x384xbf16>
    %980 = arith.truncf %978 : vector<32x128xf32> to vector<32x128xbf16>
    %cst_165 = arith.constant dense<0.000000e+00> : vector<32x384xf32>
    %981 = tpu.matmul %980, %979, %cst_165 {dimension_numbers = #tpu.dot_dimension_numbers<[1], [0], [0], [1], [0, 0, 1, 1], [], []>} : vector<32x128xbf16>, vector<128x384xbf16>, vector<32x384xf32> -> vector<32x384xf32>
    %c0_166 = arith.constant 0 : index
    %c0_167 = arith.constant 0 : index
    %982 = vector.load %arg15[%c0_166, %c0_167] : memref<1x384xf32, #tpu.memory_space<vmem>>, vector<1x384xf32>
    %983 = vector.broadcast %982 : vector<1x384xf32> to vector<32x384xf32>
    %984 = arith.addf %981, %983 : vector<32x384xf32>
    %985 = vector.extract_strided_slice %984 {offsets = [30, 0], sizes = [2, 128], strides = [1, 1]} : vector<32x384xf32> to vector<2x128xf32>
    %cst_168 = arith.constant 2.500000e-01 : f32
    %986 = vector.broadcast %cst_168 : f32 to vector<2x128xf32>
    %987 = arith.mulf %985, %986 : vector<2x128xf32>
    %988 = vector.extract_strided_slice %984 {offsets = [0, 128], sizes = [32, 128], strides = [1, 1]} : vector<32x384xf32> to vector<32x128xf32>
    %989 = vector.extract_strided_slice %984 {offsets = [0, 256], sizes = [32, 128], strides = [1, 1]} : vector<32x384xf32> to vector<32x128xf32>
    %990 = tpu.concatenate %987, %987, %987, %987, %987, %987, %987, %987, %987, %987, %987, %987, %987, %987, %987, %987 in 0 : vector<2x128xf32>, vector<2x128xf32>, vector<2x128xf32>, vector<2x128xf32>, vector<2x128xf32>, vector<2x128xf32>, vector<2x128xf32>, vector<2x128xf32>, vector<2x128xf32>, vector<2x128xf32>, vector<2x128xf32>, vector<2x128xf32>, vector<2x128xf32>, vector<2x128xf32>, vector<2x128xf32>, vector<2x128xf32> -> vector<32x128xf32>
    %991 = arith.mulf %988, %990 : vector<32x128xf32>
    %c0_169 = arith.constant 0 : index
    %c0_170 = arith.constant 0 : index
    %992 = vector.load %arg16[%c0_169, %c0_170] : memref<128x8xbf16, #tpu.memory_space<vmem>>, vector<128x8xbf16>
    %993 = arith.truncf %991 : vector<32x128xf32> to vector<32x128xbf16>
    %cst_171 = arith.constant dense<0.000000e+00> : vector<32x8xf32>
    %994 = tpu.matmul %993, %992, %cst_171 {dimension_numbers = #tpu.dot_dimension_numbers<[1], [0], [0], [1], [0, 0, 1, 1], [], []>} : vector<32x128xbf16>, vector<128x8xbf16>, vector<32x8xf32> -> vector<32x8xf32>
    %cst_172 = arith.constant dense<0xFF800000> : vector<8xf32>
    %995 = vector.multi_reduction <maximumf>, %994, %cst_172 [0] : vector<32x8xf32> to vector<8xf32>
    %996 = vector.shape_cast %995 : vector<8xf32> to vector<1x8xf32>
    %997 = vector.broadcast %996 : vector<1x8xf32> to vector<32x8xf32>
    %998 = arith.subf %994, %997 : vector<32x8xf32>
    %999 = math.exp %998 : vector<32x8xf32>
    %c0_173 = arith.constant 0 : index
    %c0_174 = arith.constant 0 : index
    %1000 = vector.load %arg1[%c0_173, %c0_174] : memref<2x32xf32, #tpu.memory_space<vmem>>, vector<2x32xf32>
    %cst_175 = arith.constant dense<0.000000e+00> : vector<2x8xf32>
    %1001 = tpu.matmul %1000, %999, %cst_175 {dimension_numbers = #tpu.dot_dimension_numbers<[1], [0], [0], [1], [0, 0, 1, 1], [], []>} : vector<2x32xf32>, vector<32x8xf32>, vector<2x8xf32> -> vector<2x8xf32>
    %cst_176 = arith.constant 1.000000e+00 : f32
    %1002 = vector.broadcast %cst_176 : f32 to vector<2x8xf32>
    %1003 = arith.divf %1002, %1001 : vector<2x8xf32>
    %1004 = tpu.concatenate %1003, %1003, %1003, %1003, %1003, %1003, %1003, %1003, %1003, %1003, %1003, %1003, %1003, %1003, %1003, %1003 in 0 : vector<2x8xf32>, vector<2x8xf32>, vector<2x8xf32>, vector<2x8xf32>, vector<2x8xf32>, vector<2x8xf32>, vector<2x8xf32>, vector<2x8xf32>, vector<2x8xf32>, vector<2x8xf32>, vector<2x8xf32>, vector<2x8xf32>, vector<2x8xf32>, vector<2x8xf32>, vector<2x8xf32>, vector<2x8xf32> -> vector<32x8xf32>
    %1005 = arith.mulf %999, %1004 : vector<32x8xf32>
    %c0_177 = arith.constant 0 : index
    %c0_178 = arith.constant 0 : index
    %1006 = vector.load %arg17[%c0_177, %c0_178] : memref<8x128xbf16, #tpu.memory_space<vmem>>, vector<8x128xbf16>
    %1007 = arith.truncf %1005 : vector<32x8xf32> to vector<32x8xbf16>
    %cst_179 = arith.constant dense<0.000000e+00> : vector<32x128xf32>
    %1008 = tpu.matmul %1007, %1006, %cst_179 {dimension_numbers = #tpu.dot_dimension_numbers<[1], [0], [0], [1], [0, 0, 1, 1], [], []>} : vector<32x8xbf16>, vector<8x128xbf16>, vector<32x128xf32> -> vector<32x128xf32>
    %1009 = arith.mulf %1008, %989 : vector<32x128xf32>
    %cst_180 = arith.constant dense<0.000000e+00> : vector<2x128xf32>
    %1010 = tpu.matmul %1000, %1009, %cst_180 {dimension_numbers = #tpu.dot_dimension_numbers<[1], [0], [0], [1], [0, 0, 1, 1], [], []>} : vector<2x32xf32>, vector<32x128xf32>, vector<2x128xf32> -> vector<2x128xf32>
    %c0_181 = arith.constant 0 : index
    %c0_182 = arith.constant 0 : index
    %1011 = vector.load %arg18[%c0_181, %c0_182] : memref<128x128xbf16, #tpu.memory_space<vmem>>, vector<128x128xbf16>
    %1012 = arith.truncf %1010 : vector<2x128xf32> to vector<2x128xbf16>
    %cst_183 = arith.constant dense<0.000000e+00> : vector<2x128xf32>
    %1013 = tpu.matmul %1012, %1011, %cst_183 {dimension_numbers = #tpu.dot_dimension_numbers<[1], [0], [0], [1], [0, 0, 1, 1], [], []>} : vector<2x128xbf16>, vector<128x128xbf16>, vector<2x128xf32> -> vector<2x128xf32>
    %c0_184 = arith.constant 0 : index
    %c0_185 = arith.constant 0 : index
    %1014 = vector.load %arg19[%c0_184, %c0_185] : memref<1x128xf32, #tpu.memory_space<vmem>>, vector<1x128xf32>
    %1015 = vector.broadcast %1014 : vector<1x128xf32> to vector<2x128xf32>
    %1016 = arith.addf %1013, %1015 : vector<2x128xf32>
    %c0_186 = arith.constant 0 : index
    %c0_187 = arith.constant 0 : index
    %1017 = vector.load %arg20[%c0_186, %c0_187] : memref<128x128xbf16, #tpu.memory_space<vmem>>, vector<128x128xbf16>
    %1018 = arith.truncf %1016 : vector<2x128xf32> to vector<2x128xbf16>
    %cst_188 = arith.constant dense<0.000000e+00> : vector<2x128xf32>
    %1019 = tpu.matmul %1018, %1017, %cst_188 {dimension_numbers = #tpu.dot_dimension_numbers<[1], [0], [0], [1], [0, 0, 1, 1], [], []>} : vector<2x128xbf16>, vector<128x128xbf16>, vector<2x128xf32> -> vector<2x128xf32>
    %c0_189 = arith.constant 0 : index
    %c0_190 = arith.constant 0 : index
    %1020 = vector.load %arg21[%c0_189, %c0_190] : memref<1x128xf32, #tpu.memory_space<vmem>>, vector<1x128xf32>
    %1021 = vector.broadcast %1020 : vector<1x128xf32> to vector<2x128xf32>
    %1022 = arith.addf %1019, %1021 : vector<2x128xf32>
    %cst_191 = arith.constant dense<0.000000e+00> : vector<2xf32>
    %1023 = vector.multi_reduction <add>, %1022, %cst_191 [1] : vector<2x128xf32> to vector<2xf32>
    %1024 = vector.shape_cast %1023 : vector<2xf32> to vector<2x1xf32>
    %cst_192 = arith.constant 1.280000e+02 : f32
    %1025 = vector.broadcast %cst_192 : f32 to vector<2x1xf32>
    %1026 = arith.divf %1024, %1025 : vector<2x1xf32>
    %1027 = vector.broadcast %1026 : vector<2x1xf32> to vector<2x128xf32>
    %1028 = arith.subf %1022, %1027 : vector<2x128xf32>
    %1029 = arith.mulf %1028, %1028 : vector<2x128xf32>
    %cst_193 = arith.constant dense<0.000000e+00> : vector<2xf32>
    %1030 = vector.multi_reduction <add>, %1029, %cst_193 [1] : vector<2x128xf32> to vector<2xf32>
    %1031 = vector.shape_cast %1030 : vector<2xf32> to vector<2x1xf32>
    %cst_194 = arith.constant 1.280000e+02 : f32
    %1032 = vector.broadcast %cst_194 : f32 to vector<2x1xf32>
    %1033 = arith.divf %1031, %1032 : vector<2x1xf32>
    %1034 = vector.broadcast %1026 : vector<2x1xf32> to vector<2x128xf32>
    %1035 = arith.subf %1022, %1034 : vector<2x128xf32>
    %cst_195 = arith.constant 9.99999974E-6 : f32
    %1036 = vector.broadcast %cst_195 : f32 to vector<2x1xf32>
    %1037 = arith.addf %1033, %1036 : vector<2x1xf32>
    %1038 = math.rsqrt %1037 : vector<2x1xf32>
    %1039 = vector.broadcast %1038 : vector<2x1xf32> to vector<2x128xf32>
    %1040 = arith.mulf %1035, %1039 : vector<2x128xf32>
    %c0_196 = arith.constant 0 : index
    %c0_197 = arith.constant 0 : index
    %1041 = vector.load %arg22[%c0_196, %c0_197] : memref<1x128xf32, #tpu.memory_space<vmem>>, vector<1x128xf32>
    %1042 = vector.broadcast %1041 : vector<1x128xf32> to vector<2x128xf32>
    %1043 = arith.mulf %1040, %1042 : vector<2x128xf32>
    %c0_198 = arith.constant 0 : index
    %c0_199 = arith.constant 0 : index
    %1044 = vector.load %arg23[%c0_198, %c0_199] : memref<1x128xf32, #tpu.memory_space<vmem>>, vector<1x128xf32>
    %1045 = vector.broadcast %1044 : vector<1x128xf32> to vector<2x128xf32>
    %1046 = arith.addf %1043, %1045 : vector<2x128xf32>
    %cst_200 = arith.constant 0.000000e+00 : f32
    %1047 = vector.broadcast %cst_200 : f32 to vector<2x128xf32>
    %1048 = arith.maximumf %1046, %1047 : vector<2x128xf32>
    %c0_201 = arith.constant 0 : index
    %c0_202 = arith.constant 0 : index
    %1049 = vector.load %arg24[%c0_201, %c0_202] : memref<128x128xbf16, #tpu.memory_space<vmem>>, vector<128x128xbf16>
    %1050 = arith.truncf %1048 : vector<2x128xf32> to vector<2x128xbf16>
    %cst_203 = arith.constant dense<0.000000e+00> : vector<2x128xf32>
    %1051 = tpu.matmul %1050, %1049, %cst_203 {dimension_numbers = #tpu.dot_dimension_numbers<[1], [0], [0], [1], [0, 0, 1, 1], [], []>} : vector<2x128xbf16>, vector<128x128xbf16>, vector<2x128xf32> -> vector<2x128xf32>
    %c0_204 = arith.constant 0 : index
    %c0_205 = arith.constant 0 : index
    %1052 = vector.load %arg25[%c0_204, %c0_205] : memref<1x128xf32, #tpu.memory_space<vmem>>, vector<1x128xf32>
    %1053 = vector.broadcast %1052 : vector<1x128xf32> to vector<2x128xf32>
    %1054 = arith.addf %1051, %1053 : vector<2x128xf32>
    %cst_206 = arith.constant 0.000000e+00 : f32
    %1055 = vector.broadcast %cst_206 : f32 to vector<2x128xf32>
    %1056 = arith.maximumf %1054, %1055 : vector<2x128xf32>
    %c0_207 = arith.constant 0 : index
    %c0_208 = arith.constant 0 : index
    %1057 = vector.load %arg26[%c0_207, %c0_208] : memref<128x11xbf16, #tpu.memory_space<vmem>>, vector<128x11xbf16>
    %1058 = arith.truncf %1056 : vector<2x128xf32> to vector<2x128xbf16>
    %cst_209 = arith.constant dense<0.000000e+00> : vector<2x11xf32>
    %1059 = tpu.matmul %1058, %1057, %cst_209 {dimension_numbers = #tpu.dot_dimension_numbers<[1], [0], [0], [1], [0, 0, 1, 1], [], []>} : vector<2x128xbf16>, vector<128x11xbf16>, vector<2x11xf32> -> vector<2x11xf32>
    %c0_210 = arith.constant 0 : index
    %c0_211 = arith.constant 0 : index
    %1060 = vector.load %arg27[%c0_210, %c0_211] : memref<1x11xf32, #tpu.memory_space<vmem>>, vector<1x11xf32>
    %1061 = vector.broadcast %1060 : vector<1x11xf32> to vector<2x11xf32>
    %1062 = arith.addf %1059, %1061 : vector<2x11xf32>
    %1063 = vector.extract_strided_slice %1062 {offsets = [0, 0], sizes = [2, 1], strides = [1, 1]} : vector<2x11xf32> to vector<2x1xf32>
    %1064 = vector.extract_strided_slice %1062 {offsets = [0, 1], sizes = [2, 10], strides = [1, 1]} : vector<2x11xf32> to vector<2x10xf32>
    %1065 = vector.broadcast %1063 : vector<2x1xf32> to vector<2x10xf32>
    %1066 = arith.addf %1065, %1064 : vector<2x10xf32>
    %cst_212 = arith.constant dense<0.000000e+00> : vector<2xf32>
    %1067 = vector.multi_reduction <add>, %1064, %cst_212 [1] : vector<2x10xf32> to vector<2xf32>
    %1068 = vector.shape_cast %1067 : vector<2xf32> to vector<2x1xf32>
    %cst_213 = arith.constant 1.000000e+01 : f32
    %1069 = vector.broadcast %cst_213 : f32 to vector<2x1xf32>
    %1070 = arith.divf %1068, %1069 : vector<2x1xf32>
    %1071 = vector.broadcast %1070 : vector<2x1xf32> to vector<2x10xf32>
    %1072 = arith.subf %1066, %1071 : vector<2x10xf32>
    %c0_214 = arith.constant 0 : index
    %c0_215 = arith.constant 0 : index
    %1073 = vector.load %arg28[%c0_214, %c0_215] : memref<128x64xbf16, #tpu.memory_space<vmem>>, vector<128x64xbf16>
    %1074 = arith.truncf %1016 : vector<2x128xf32> to vector<2x128xbf16>
    %cst_216 = arith.constant dense<0.000000e+00> : vector<2x64xf32>
    %1075 = tpu.matmul %1074, %1073, %cst_216 {dimension_numbers = #tpu.dot_dimension_numbers<[1], [0], [0], [1], [0, 0, 1, 1], [], []>} : vector<2x128xbf16>, vector<128x64xbf16>, vector<2x64xf32> -> vector<2x64xf32>
    %c0_217 = arith.constant 0 : index
    %c0_218 = arith.constant 0 : index
    %1076 = vector.load %arg29[%c0_217, %c0_218] : memref<1x64xf32, #tpu.memory_space<vmem>>, vector<1x64xf32>
    %1077 = vector.broadcast %1076 : vector<1x64xf32> to vector<2x64xf32>
    %1078 = arith.addf %1075, %1077 : vector<2x64xf32>
    %cst_219 = arith.constant 0.000000e+00 : f32
    %1079 = vector.broadcast %cst_219 : f32 to vector<2x64xf32>
    %1080 = arith.maximumf %1078, %1079 : vector<2x64xf32>
    %c0_220 = arith.constant 0 : index
    %c0_221 = arith.constant 0 : index
    %1081 = vector.load %arg30[%c0_220, %c0_221] : memref<64x6xbf16, #tpu.memory_space<vmem>>, vector<64x6xbf16>
    %1082 = arith.truncf %1080 : vector<2x64xf32> to vector<2x64xbf16>
    %cst_222 = arith.constant dense<0.000000e+00> : vector<2x6xf32>
    %1083 = tpu.matmul %1082, %1081, %cst_222 {dimension_numbers = #tpu.dot_dimension_numbers<[1], [0], [0], [1], [0, 0, 1, 1], [], []>} : vector<2x64xbf16>, vector<64x6xbf16>, vector<2x6xf32> -> vector<2x6xf32>
    %c0_223 = arith.constant 0 : index
    %c0_224 = arith.constant 0 : index
    %1084 = vector.load %arg31[%c0_223, %c0_224] : memref<1x6xf32, #tpu.memory_space<vmem>>, vector<1x6xf32>
    %1085 = vector.broadcast %1084 : vector<1x6xf32> to vector<2x6xf32>
    %1086 = arith.addf %1083, %1085 : vector<2x6xf32>
    %cst_225 = arith.constant 0.000000e+00 : f32
    %1087 = vector.broadcast %cst_225 : f32 to vector<2x112xf32>
    %1088 = tpu.concatenate %1072, %1086, %1087 in 1 : vector<2x10xf32>, vector<2x6xf32>, vector<2x112xf32> -> vector<2x128xf32>
    %c0_226 = arith.constant 0 : index
    %c0_227 = arith.constant 0 : index
    %1089 = vector.load %arg32[%c0_226, %c0_227] : memref<2x128xf32, #tpu.memory_space<vmem>>, vector<2x128xf32>
    tpu.vector_store %arg32[%c0_226, %c0_227], %1088 {strides = array<i32>} : memref<2x128xf32, #tpu.memory_space<vmem>>, vector<2x128xf32>,
    return
  }
}

</mosaic_0001>

<bundles_post_ra>
// kernel: dueling_dqn_forward.1
= control target key start
LH: loop header
LB: loop body
LE: loop exit
PB: predicated region body
PF: predicated region fallthrough
CT: control target
= control target key end

     0   :  { %s9572_s6 = smov 1   ;;  %s9573_s10 = smov 2   ;;  %s12298_s0 = inlined_call_operand.smem [shape: u32[33], index: -1, kind: input, shape index: {}] }
   0x1   :  { %s9646_s5 = sld [smem:[%s12298_s0]]   ;;  %s9574_s14 = smov 3  }
   0x2   :  { %s9651_s9 = sld [smem:[%s12298_s0 + %s9572_s6]]   ;;  %s9575_s18 = smov 4  }
   0x3   :  { %s9656_s13 = sld [smem:[%s12298_s0 + %s9573_s10]]   ;;  %s9576_s22 = smov 5  }
   0x4   :  { %s9661_s17 = sld [smem:[%s12298_s0 + %s9574_s14]]   ;;  %s9577_s26 = smov 6  }
   0x5   :  { %s9666_s21 = sld [smem:[%s12298_s0 + %s9575_s18]]   ;;  %s9578_s30 = smov 7  }
   0x6   :  { %s9671_s25 = sld [smem:[%s12298_s0 + %s9576_s22]]   ;;  %s9579_s4 = smov 8  }
   0x7   :  { %12330 = sst [smem:[#allocation48_spill]] %s9646_s5  ;;  %s9580_s10 = smov 9  }
   0x8   :  { %12331 = sst [smem:[#allocation49_spill]] %s9651_s9  ;;  %s9581_s15 = smov 10  }
   0x9   :  { %s9676_s29 = sld [smem:[%s12298_s0 + %s9577_s26]]   ;;  %s9582_s20 = smov 11  }
   0xa   :  { %s9681_s3 = sld [smem:[%s12298_s0 + %s9578_s30]]   ;;  %s9583_s26 = smov 12  }
   0xb   :  { %s9686_s8 = sld [smem:[%s12298_s0 + %s9579_s4]]   ;;  %s9584_s1 = smov 13  }
   0xc   :  { %s9691_s14 = sld [smem:[%s12298_s0 + %s9580_s10]]   ;;  %s9585_s7 = smov 14  }
   0xd   :  { %s9696_s19 = sld [smem:[%s12298_s0 + %s9581_s15]]   ;;  %s9586_s15 = smov 15  }
   0xe   :  { %s9701_s24 = sld [smem:[%s12298_s0 + %s9582_s20]]   ;;  %s9587_s22 = smov 16  }
   0xf   :  { %s9706_s30 = sld [smem:[%s12298_s0 + %s9583_s26]]   ;;  %s9588_s28 = smov 17  }
  0x10   :  { %s9711_s6 = sld [smem:[%s12298_s0 + %s9584_s1]]  }
  0x11   :  { %12332 = sst [smem:[#allocation50_spill]] %s9686_s8 }
  0x12   :  { %12333 = sst [smem:[#allocation51_spill]] %s9691_s14 }
  0x13   :  { %12334 = sst [smem:[#allocation52_spill]] %s9696_s19 }
  0x14   :  { %s9716_s12 = sld [smem:[%s12298_s0 + %s9585_s7]]   ;;  %s9589_s7 = smov 18  }
  0x15   :  { %s9721_s20 = sld [smem:[%s12298_s0 + %s9586_s15]]   ;;  %s9590_s15 = smov 19  }
  0x16   :  { %12335 = sst [smem:[#allocation53_spill]] %s9711_s6 }
  0x17   :  { %s9726_s27 = sld [smem:[%s12298_s0 + %s9587_s22]]   ;;  %s9591_s22 = smov 20  }
  0x18   :  { %s9731_s4 = sld [smem:[%s12298_s0 + %s9588_s28]]   ;;  %s9592_s28 = smov 21  }
  0x19   :  { %s9736_s9 = sld [smem:[%s12298_s0 + %s9589_s7]]   ;;  %s9593_s7 = smov 22  }
  0x1a   :  { %s9741_s19 = sld [smem:[%s12298_s0 + %s9590_s15]]   ;;  %s9594_s15 = smov 23  }
  0x1b   :  { %12336 = sst [smem:[#allocation54_spill]] %s9721_s20 }
  0x1c   :  { %s9751_s14 = sld [smem:[%s12298_s0 + %s9592_s28]]   ;;  %s9596_s28 = smov 25  }
  0x1d   :  { %12337 = sst [smem:[#allocation55_spill]] %s9726_s27 }
  0x1e   :  { %s9746_s27 = sld [smem:[%s12298_s0 + %s9591_s22]]   ;;  %s9595_s22 = smov 24  }
  0x1f   :  { %12338 = sst [smem:[#allocation56_spill]] %s9736_s9 }
  0x20   :  { %s9756_s8 = sld [smem:[%s12298_s0 + %s9593_s7]]   ;;  %s9597_s7 = smov 26  }
  0x21   :  { %s9761_s5 = sld [smem:[%s12298_s0 + %s9594_s15]]   ;;  %s9598_s15 = smov 27  }
  0x22   :  { %s9771_s9 = sld [smem:[%s12298_s0 + %s9596_s28]]   ;;  %s9600_s28 = smov 29  }
  0x23   :  { %s9781_s20 = sld [smem:[%s12298_s0 + %s9598_s15]]   ;;  %s9602_s15 = smov 31  }
  0x24   :  { %12339 = sst [smem:[#allocation57_spill]] %s9746_s27 }
  0x25   :  { %s9766_s27 = sld [smem:[%s12298_s0 + %s9595_s22]]   ;;  %s9599_s22 = smov 28  }
  0x26   :  { %12340 = sst [smem:[#allocation58_spill]] %s9756_s8 }
  0x27   :  { %s9776_s8 = sld [smem:[%s12298_s0 + %s9597_s7]]   ;;  %s9601_s7 = smov 30  }
  0x28   :  { %12342 = sst [smem:[#allocation60_spill]] %s9771_s9 }
  0x29   :  { %s9791_s9 = sld [smem:[%s12298_s0 + %s9600_s28]]  }
  0x2a   :  { %s9801_s6 = sld [smem:[%s12298_s0 + %s9602_s15]]  }
  0x2b   :  { %12341 = sst [smem:[#allocation59_spill]] %s9766_s27 }
  0x2c   :  { %s9786_s27 = sld [smem:[%s12298_s0 + %s9599_s22]]   ;;  %s9603_s22 = smov 32  }
  0x2d   :  { %12343 = sst [smem:[#allocation61_spill]] %s9776_s8 }
  0x2e   :  { %s9796_s8 = sld [smem:[%s12298_s0 + %s9601_s7]]  }
  0x32   :  { %12344 = sst [smem:[#allocation62_spill]] %s9786_s27 }
  0x33   :  { %s9806_s27 = sld [smem:[%s12298_s0 + %s9603_s22]]  }
  0x34   :  { %70 = vsyncpa [#allocation3], 0 }
  0x35   :  { %71 = vsyncpa [#allocation5], 0 }
  0x36   :  { %72 = vsyncpa [#allocation8], 0 }
  0x37   :  { %73 = vsyncpa [#allocation11], 0 }
  0x38   :  { %74 = vsyncpa [#allocation14], 0 }
  0x39   :  { %75 = vsyncpa [#allocation17], 0 }
  0x3a   :  { %76 = vsyncpa [#allocation20], 0 }
  0x3b   :  { %77 = vsyncpa [#allocation23], 0 }
  0x3c   :  { %78 = vsyncpa [#allocation26], 0 }
  0x3d   :  { %79 = vsyncpa [#allocation29], 0 }
  0x3e   :  { %80 = vsyncpa [#allocation32], 0 }
  0x3f   :  { %81 = vsyncpa [#allocation35], 0  ;;  %s9604_s28 = smov [#allocation4]   ;;  %s9064_s0 = scalar_lea.hbm %s9661_s17, 16 }
  0x40   :  { %s104_s1 = sshll.u32 %s9604_s28, 4  ;;  %p9065_p0 = scmp.ne.s32.totalorder %s9661_s17, %s9064_s0  ;;  %s105_s1 = int_to_ptr.vmem [resolvable:$true] %s104_s1 }
  0x41   :  { %p9068_p1 = scmp.lt.u32.totalorder %s9064_s0, %s9661_s17 }
  0x43   :  { %p9070_p2 = pnand %p9068_p1, %p9065_p0 }
  0x45   :  { %9073 = shalt.err (!%p9070_p2)
}
  0x46   :  { %s9074_s2 = scalar_lea.vmem %s105_s1, 16  ;;  %s9078_s7 = scalar_lea.vmem %s105_s1, 32 }
  0x47   :  { %p9075_p3 = scmp.ne.s32.totalorder %s105_s1, %s9074_s2  ;;  %p9079_p4 = scmp.lt.s32.totalorder %s105_s1, %s105_s1 }
  0x48   :  { %p9080_p5 = scmp.lt.s32.totalorder %s9078_s7, %s9074_s2 }
  0x4a   :  { %p9081_p6 = por %p9080_p5, %p9079_p4 }
  0x4c   :  { %p9082_p7 = pnand %p9081_p6, %p9075_p3 }
  0x4e   :  { %9085 = shalt.err (!%p9082_p7)
}
  0x4f   :  { %107 = dma.hbm_to_vmem [thread:$0]  %s9661_s17, 16, %s105_s1, [#allocation5]  }
  0x50   :  { %s9605_s10 = smov [#allocation7]   ;;  %s9606_s15 = smov [#allocation10]  }
  0x51   :  { %s123_s11 = sshll.u32 %s9605_s10, 4  ;;  %s146_s16 = sshll.u32 %s9606_s15, 4  ;;  %s124_s11 = int_to_ptr.vmem [resolvable:$true] %s123_s11  ;;  %s147_s16 = int_to_ptr.vmem [resolvable:$true] %s146_s16 }
  0x52   :  { %s9086_s18 = scalar_lea.hbm %s9671_s25, 2560 }
  0x53   :  { %p9087_p8 = scmp.ne.s32.totalorder %s9671_s25, %s9086_s18  ;;  %p9090_p9 = scmp.lt.u32.totalorder %s9086_s18, %s9671_s25 }
  0x55   :  { %p9092_p10 = pnand %p9090_p9, %p9087_p8 }
  0x57   :  { %9095 = shalt.err (!%p9092_p10)
}
  0x58   :  { %s9096_s22 = scalar_lea.vmem %s124_s11, 2560  ;;  %p9101_p12 = scmp.lt.s32.totalorder %s124_s11, %s124_s11 }
  0x59   :  { %p9097_p11 = scmp.ne.s32.totalorder %s124_s11, %s9096_s22  ;;  %p9102_p13 = scmp.lt.s32.totalorder %s9096_s22, %s9096_s22 }
  0x5b   :  { %p9103_p0 = por %p9102_p13, %p9101_p12 }
  0x5d   :  { %p9104_p1 = pnand %p9103_p0, %p9097_p11 }
  0x5f   :  { %9107 = shalt.err (!%p9104_p1)
}
  0x60   :  { %s9607_s23 = smov 64   ;;  %s9608_s17 = smov 4  }
  0x61   :  { %129 = dma.hbm_to_vmem [thread:$0]  %s9671_s25, 2560, %s124_s11, [#allocation8], %s9607_s23, %s9607_s23, %s9608_s17  }
  0x62   :  { %s9108_s26 = scalar_lea.hbm %s9681_s3, 16 }
  0x63   :  { %p9109_p2 = scmp.ne.s32.totalorder %s9681_s3, %s9108_s26  ;;  %p9112_p3 = scmp.lt.u32.totalorder %s9108_s26, %s9681_s3 }
  0x65   :  { %p9114_p4 = pnand %p9112_p3, %p9109_p2 }
  0x67   :  { %9117 = shalt.err (!%p9114_p4)
}
  0x68   :  { %s9118_s28 = scalar_lea.vmem %s147_s16, 16  ;;  %s9122_s1 = scalar_lea.vmem %s147_s16, 32 }
  0x69   :  { %p9119_p5 = scmp.ne.s32.totalorder %s147_s16, %s9118_s28  ;;  %p9123_p6 = scmp.lt.s32.totalorder %s147_s16, %s147_s16 }
  0x6a   :  { %p9124_p7 = scmp.lt.s32.totalorder %s9122_s1, %s9118_s28 }
  0x6c   :  { %p9125_p8 = por %p9124_p7, %p9123_p6 }
  0x6e   :  { %p9126_p9 = pnand %p9125_p8, %p9119_p5 }
  0x70   :  { %9129 = shalt.err (!%p9126_p9)
}
  0x71   :  { %149 = dma.hbm_to_vmem [thread:$0]  %s9681_s3, 16, %s147_s16, [#allocation11]  }
  0x72   :  { %s9609_s25 = smov [#allocation13]   ;;  %s9610_s2 = smov [#allocation16]  }
  0x73   :  { %s173_s0 = sshll.u32 %s9609_s25, 4  ;;  %s195_s7 = sshll.u32 %s9610_s2, 4  ;;  %s174_s0 = int_to_ptr.vmem [resolvable:$true] %s173_s0  ;;  %s196_s7 = int_to_ptr.vmem [resolvable:$true] %s195_s7 }
  0x74   :  { %s9130_s10 = scalar_lea.hbm %s9706_s30, 4096 }
  0x75   :  { %p9131_p10 = scmp.ne.s32.totalorder %s9706_s30, %s9130_s10  ;;  %p9134_p11 = scmp.lt.u32.totalorder %s9130_s10, %s9706_s30 }
  0x77   :  { %p9136_p12 = pnand %p9134_p11, %p9131_p10 }
  0x79   :  { %9139 = shalt.err (!%p9136_p12)
}
  0x7a   :  { %s9140_s11 = scalar_lea.vmem %s174_s0, 4096  ;;  %p9145_p0 = scmp.lt.s32.totalorder %s174_s0, %s174_s0 }
  0x7b   :  { %p9141_p13 = scmp.ne.s32.totalorder %s174_s0, %s9140_s11  ;;  %p9146_p1 = scmp.lt.s32.totalorder %s9140_s11, %s9140_s11 }
  0x7d   :  { %p9147_p2 = por %p9146_p1, %p9145_p0 }
  0x7f   :  { %p9148_p3 = pnand %p9147_p2, %p9141_p13 }
  0x81   :  { %9151 = shalt.err (!%p9148_p3)
}
  0x82   :  { %s9611_s15 = smov 256   ;;  %s9612_s3 = smov 16  }
  0x83   :  { %179 = dma.hbm_to_vmem [thread:$0]  %s9706_s30, 4096, %s174_s0, [#allocation14], %s9611_s15, %s9611_s15, %s9612_s3  }
  0x84   :  { %s9152_s16 = scalar_lea.hbm %s9716_s12, 3072 }
  0x85   :  { %p9153_p4 = scmp.ne.s32.totalorder %s9716_s12, %s9152_s16  ;;  %p9156_p5 = scmp.lt.u32.totalorder %s9152_s16, %s9716_s12 }
  0x87   :  { %p9158_p6 = pnand %p9156_p5, %p9153_p4 }
  0x89   :  { %9161 = shalt.err (!%p9158_p6)
}
  0x8a   :  { %s9162_s18 = scalar_lea.vmem %s196_s7, 3072  ;;  %p9167_p8 = scmp.lt.s32.totalorder %s196_s7, %s196_s7 }
  0x8b   :  { %p9163_p7 = scmp.ne.s32.totalorder %s196_s7, %s9162_s18  ;;  %p9168_p9 = scmp.lt.s32.totalorder %s9162_s18, %s9162_s18 }
  0x8d   :  { %p9169_p10 = por %p9168_p9, %p9167_p8 }
  0x8f   :  { %p9170_p11 = pnand %p9169_p10, %p9163_p7 }
  0x91   :  { %9173 = shalt.err (!%p9170_p11)
}
  0x92   :  { %s9613_s22 = smov 192   ;;  %s9614_s26 = smov 12  }
  0x93   :  { %201 = dma.hbm_to_vmem [thread:$0]  %s9716_s12, 3072, %s196_s7, [#allocation17], %s9613_s22, %s9613_s22, %s9614_s26  }
  0x94   :  { %s9615_s30 = smov [#allocation19]   ;;  %s9616_s1 = smov [#allocation22]  }
  0x95   :  { %s220_s28 = sshll.u32 %s9615_s30, 4  ;;  %s242_s25 = sshll.u32 %s9616_s1, 4  ;;  %s221_s28 = int_to_ptr.vmem [resolvable:$true] %s220_s28  ;;  %s243_s25 = int_to_ptr.vmem [resolvable:$true] %s242_s25 }
  0x96   :  { %s9174_s0 = scalar_lea.hbm %s9731_s4, 64 }
  0x97   :  { %p9175_p12 = scmp.ne.s32.totalorder %s9731_s4, %s9174_s0  ;;  %p9178_p13 = scmp.lt.u32.totalorder %s9174_s0, %s9731_s4 }
  0x99   :  { %p9180_p0 = pnand %p9178_p13, %p9175_p12 }
  0x9b   :  { %9183 = shalt.err (!%p9180_p0)
}
  0x9c   :  { %s9184_s2 = scalar_lea.vmem %s221_s28, 64  ;;  %p9189_p2 = scmp.lt.s32.totalorder %s221_s28, %s221_s28 }
  0x9d   :  { %p9185_p1 = scmp.ne.s32.totalorder %s221_s28, %s9184_s2  ;;  %p9190_p3 = scmp.lt.s32.totalorder %s9184_s2, %s9184_s2 }
  0x9f   :  { %p9191_p4 = por %p9190_p3, %p9189_p2 }
  0xa1   :  { %p9192_p5 = pnand %p9191_p4, %p9185_p1 }
  0xa3   :  { %9195 = shalt.err (!%p9192_p5)
}
  0xa4   :  { %223 = dma.hbm_to_vmem [thread:$0]  %s9731_s4, 64, %s221_s28, [#allocation20]  }
  0xa5   :  { %s9196_s12 = scalar_lea.hbm %s9741_s19, 16 }
  0xa6   :  { %p9197_p6 = scmp.ne.s32.totalorder %s9741_s19, %s9196_s12  ;;  %p9200_p7 = scmp.lt.u32.totalorder %s9196_s12, %s9741_s19 }
  0xa8   :  { %p9202_p8 = pnand %p9200_p7, %p9197_p6 }
  0xaa   :  { %9205 = shalt.err (!%p9202_p8)
}
  0xab   :  { %s9206_s7 = scalar_lea.vmem %s243_s25, 16  ;;  %s9210_s10 = scalar_lea.vmem %s243_s25, 32 }
  0xac   :  { %p9207_p9 = scmp.ne.s32.totalorder %s243_s25, %s9206_s7  ;;  %p9211_p10 = scmp.lt.s32.totalorder %s243_s25, %s243_s25 }
  0xad   :  { %p9212_p11 = scmp.lt.s32.totalorder %s9210_s10, %s9206_s7 }
  0xaf   :  { %p9213_p12 = por %p9212_p11, %p9211_p10 }
  0xb1   :  { %p9214_p13 = pnand %p9213_p12, %p9207_p9 }
  0xb3   :  { %9217 = shalt.err (!%p9214_p13)
}
  0xb4   :  { %245 = dma.hbm_to_vmem [thread:$0]  %s9741_s19, 16, %s243_s25, [#allocation23]  }
  0xb5   :  { %s9617_s4 = smov [#allocation25]   ;;  %s9618_s16 = smov [#allocation28]  }
  0xb6   :  { %s264_s11 = sshll.u32 %s9617_s4, 4  ;;  %s284_s18 = sshll.u32 %s9618_s16, 4  ;;  %s265_s11 = int_to_ptr.vmem [resolvable:$true] %s264_s11  ;;  %s285_s18 = int_to_ptr.vmem [resolvable:$true] %s284_s18 }
  0xb7   :  { %s9218_s22 = scalar_lea.hbm %s9751_s14, 16 }
  0xb8   :  { %p9219_p0 = scmp.ne.s32.totalorder %s9751_s14, %s9218_s22  ;;  %p9222_p1 = scmp.lt.u32.totalorder %s9218_s22, %s9751_s14 }
  0xba   :  { %p9224_p2 = pnand %p9222_p1, %p9219_p0 }
  0xbc   :  { %9227 = shalt.err (!%p9224_p2)
}
  0xbd   :  { %s9228_s26 = scalar_lea.vmem %s265_s11, 16  ;;  %s9232_s30 = scalar_lea.vmem %s265_s11, 32 }
  0xbe   :  { %p9229_p3 = scmp.ne.s32.totalorder %s265_s11, %s9228_s26  ;;  %p9233_p4 = scmp.lt.s32.totalorder %s265_s11, %s265_s11 }
  0xbf   :  { %p9234_p5 = scmp.lt.s32.totalorder %s9232_s30, %s9228_s26 }
  0xc1   :  { %p9235_p6 = por %p9234_p5, %p9233_p4 }
  0xc3   :  { %p9236_p7 = pnand %p9235_p6, %p9229_p3 }
  0xc5   :  { %9239 = shalt.err (!%p9236_p7)
}
  0xc6   :  { %267 = dma.hbm_to_vmem [thread:$0]  %s9751_s14, 16, %s265_s11, [#allocation26]  }
  0xc7   :  { %s9240_s19 = scalar_lea.hbm %s9761_s5, 16 }
  0xc8   :  { %p9241_p8 = scmp.ne.s32.totalorder %s9761_s5, %s9240_s19  ;;  %p9244_p9 = scmp.lt.u32.totalorder %s9240_s19, %s9761_s5 }
  0xca   :  { %p9246_p10 = pnand %p9244_p9, %p9241_p8 }
  0xcc   :  { %9249 = shalt.err (!%p9246_p10)
}
  0xcd   :  { %s9250_s28 = scalar_lea.vmem %s285_s18, 16  ;;  %s9254_s1 = scalar_lea.vmem %s285_s18, 32 }
  0xce   :  { %p9251_p11 = scmp.ne.s32.totalorder %s285_s18, %s9250_s28  ;;  %p9255_p12 = scmp.lt.s32.totalorder %s285_s18, %s285_s18 }
  0xcf   :  { %p9256_p13 = scmp.lt.s32.totalorder %s9254_s1, %s9250_s28 }
  0xd1   :  { %p9257_p0 = por %p9256_p13, %p9255_p12 }
  0xd3   :  { %p9258_p1 = pnand %p9257_p0, %p9251_p11 }
  0xd5   :  { %9261 = shalt.err (!%p9258_p1)
}
  0xd6   :  { %287 = dma.hbm_to_vmem [thread:$0]  %s9761_s5, 16, %s285_s18, [#allocation29]  }
  0xd7   :  { %s9619_s14 = smov [#allocation31]   ;;  %s9620_s0 = smov [#allocation2]  }
  0xd8   :  { %s308_s25 = sshll.u32 %s9619_s14, 4  ;;  %s91_s2 = sshll.u32 %s9620_s0, 4  ;;  %s309_s25 = int_to_ptr.vmem [resolvable:$true] %s308_s25  ;;  %s92_s2 = int_to_ptr.vmem [resolvable:$true] %s91_s2 }
  0xd9   :  { %s9262_s12 = scalar_lea.hbm %s9781_s20, 16 }
  0xda   :  { %p9263_p2 = scmp.ne.s32.totalorder %s9781_s20, %s9262_s12  ;;  %p9266_p3 = scmp.lt.u32.totalorder %s9262_s12, %s9781_s20 }
  0xdc   :  { %p9268_p4 = pnand %p9266_p3, %p9263_p2 }
  0xde   :  { %9271 = shalt.err (!%p9268_p4)
}
  0xdf   :  { %s9272_s7 = scalar_lea.vmem %s309_s25, 16  ;;  %s9276_s10 = scalar_lea.vmem %s309_s25, 32 }
  0xe0   :  { %p9273_p5 = scmp.ne.s32.totalorder %s309_s25, %s9272_s7  ;;  %p9277_p6 = scmp.lt.s32.totalorder %s309_s25, %s309_s25 }
  0xe1   :  { %p9278_p7 = scmp.lt.s32.totalorder %s9276_s10, %s9272_s7 }
  0xe3   :  { %p9279_p8 = por %p9278_p7, %p9277_p6 }
  0xe5   :  { %p9280_p9 = pnand %p9279_p8, %p9273_p5 }
  0xe7   :  { %9283 = shalt.err (!%p9280_p9)
}
  0xe8   :  { %311 = dma.hbm_to_vmem [thread:$0]  %s9781_s20, 16, %s309_s25, [#allocation32]  }
  0xe9   :  { %s9284_s5 = scalar_lea.hbm %s9656_s13, 192 }
  0xea   :  { %p9285_p10 = scmp.ne.s32.totalorder %s9656_s13, %s9284_s5  ;;  %p9288_p11 = scmp.lt.u32.totalorder %s9284_s5, %s9656_s13 }
  0xec   :  { %p9290_p12 = pnand %p9288_p11, %p9285_p10 }
  0xee   :  { %9293 = shalt.err (!%p9290_p12)
}
  0xef   :  { %s9294_s4 = scalar_lea.vmem %s92_s2, 192  ;;  %p9299_p0 = scmp.lt.s32.totalorder %s92_s2, %s92_s2 }
  0xf0   :  { %p9295_p13 = scmp.ne.s32.totalorder %s92_s2, %s9294_s4  ;;  %p9300_p1 = scmp.lt.s32.totalorder %s9294_s4, %s9294_s4 }
  0xf2   :  { %p9301_p2 = por %p9300_p1, %p9299_p0 }
  0xf4   :  { %p9302_p3 = pnand %p9301_p2, %p9295_p13 }
  0xf6   :  { %9305 = shalt.err (!%p9302_p3)
}
  0xf7   :  { %97 = dma.hbm_to_vmem [thread:$0]  %s9656_s13, 192, %s92_s2, [#allocation3], %s9607_s23, %s9607_s23, %s9608_s17  }
  0xf8   :  { %s9621_s20 = smov [#allocation6]   ;;  %s9622_s16 = smov [#allocation9]  }
  0xf9   :  { %s114_s11 = sshll.u32 %s9621_s20, 4  ;;  %s136_s18 = sshll.u32 %s9622_s16, 4  ;;  %s115_s11 = int_to_ptr.vmem [resolvable:$true] %s114_s11  ;;  %s137_s18 = int_to_ptr.vmem [resolvable:$true] %s136_s18 }
  0xfa   :  { %s9306_s22 = scalar_lea.hbm %s9666_s21, 16 }
  0xfb   :  { %p9307_p4 = scmp.ne.s32.totalorder %s9666_s21, %s9306_s22  ;;  %p9310_p5 = scmp.lt.u32.totalorder %s9306_s22, %s9666_s21 }
  0xfd   :  { %p9312_p6 = pnand %p9310_p5, %p9307_p4 }
  0xff   :  { %9315 = shalt.err (!%p9312_p6)
}
 0x100   :  { %s9316_s26 = scalar_lea.vmem %s115_s11, 16  ;;  %s9320_s30 = scalar_lea.vmem %s115_s11, 32 }
 0x101   :  { %p9317_p7 = scmp.ne.s32.totalorder %s115_s11, %s9316_s26  ;;  %p9321_p8 = scmp.lt.s32.totalorder %s115_s11, %s115_s11 }
 0x102   :  { %p9322_p9 = scmp.lt.s32.totalorder %s9320_s30, %s9316_s26 }
 0x104   :  { %p9323_p10 = por %p9322_p9, %p9321_p8 }
 0x106   :  { %p9324_p11 = pnand %p9323_p10, %p9317_p7 }
 0x108   :  { %9327 = shalt.err (!%p9324_p11)
}
 0x109   :  { %117 = dma.hbm_to_vmem [thread:$0]  %s9666_s21, 16, %s115_s11, [#allocation5]  }
 0x10a   :  { %s9328_s13 = scalar_lea.hbm %s9676_s29, 16 }
 0x10b   :  { %p9329_p12 = scmp.ne.s32.totalorder %s9676_s29, %s9328_s13  ;;  %p9332_p13 = scmp.lt.u32.totalorder %s9328_s13, %s9676_s29 }
 0x10d   :  { %p9334_p0 = pnand %p9332_p13, %p9329_p12 }
 0x10f   :  { %9337 = shalt.err (!%p9334_p0)
}
 0x110   :  { %s9338_s19 = scalar_lea.vmem %s137_s18, 16  ;;  %s9342_s28 = scalar_lea.vmem %s137_s18, 32 }
 0x111   :  { %p9339_p1 = scmp.ne.s32.totalorder %s137_s18, %s9338_s19  ;;  %p9343_p2 = scmp.lt.s32.totalorder %s137_s18, %s137_s18 }
 0x112   :  { %p9344_p3 = scmp.lt.s32.totalorder %s9342_s28, %s9338_s19 }
 0x114   :  { %p9345_p4 = por %p9344_p3, %p9343_p2 }
 0x116   :  { %p9346_p5 = pnand %p9345_p4, %p9339_p1 }
 0x118   :  { %9349 = shalt.err (!%p9346_p5)
}
 0x119   :  { %139 = dma.hbm_to_vmem [thread:$0]  %s9676_s29, 16, %s137_s18, [#allocation8]  }
 0x11a   :  { %s9623_s21 = smov [#allocation12]   ;;  %s9624_s14 = smov [#allocation15]  }
 0x11b   :  { %s161_s1 = sshll.u32 %s9623_s21, 4  ;;  %s186_s25 = sshll.u32 %s9624_s14, 4  ;;  %s162_s1 = int_to_ptr.vmem [resolvable:$true] %s161_s1  ;;  %s187_s25 = int_to_ptr.vmem [resolvable:$true] %s186_s25 }
 0x11c   :  { %s9350_s0 = scalar_lea.hbm %s9701_s24, 4096 }
 0x11d   :  { %p9351_p6 = scmp.ne.s32.totalorder %s9701_s24, %s9350_s0  ;;  %p9354_p7 = scmp.lt.u32.totalorder %s9350_s0, %s9701_s24 }
 0x11f   :  { %p9356_p8 = pnand %p9354_p7, %p9351_p6 }
 0x121   :  { %9359 = shalt.err (!%p9356_p8)
}
 0x122   :  { %s9360_s2 = scalar_lea.vmem %s162_s1, 4096  ;;  %p9365_p10 = scmp.lt.s32.totalorder %s162_s1, %s162_s1 }
 0x123   :  { %p9361_p9 = scmp.ne.s32.totalorder %s162_s1, %s9360_s2  ;;  %p9366_p11 = scmp.lt.s32.totalorder %s9360_s2, %s9360_s2 }
 0x125   :  { %p9367_p12 = por %p9366_p11, %p9365_p10 }
 0x127   :  { %p9368_p13 = pnand %p9367_p12, %p9361_p9 }
 0x129   :  { %9371 = shalt.err (!%p9368_p13)
}
 0x12a   :  { %s12345_s29 = sld [smem:[#allocation53_spill]] }
 0x12b   :  { %167 = dma.hbm_to_vmem [thread:$0]  %s9701_s24, 4096, %s162_s1, [#allocation11], %s9611_s15, %s9611_s15, %s9612_s3  }
 0x130   :  { %s9372_s12 = scalar_lea.hbm %s12345_s29, 64 }
 0x131   :  { %p9373_p0 = scmp.ne.s32.totalorder %s12345_s29, %s9372_s12  ;;  %p9376_p1 = scmp.lt.u32.totalorder %s9372_s12, %s12345_s29 }
 0x133   :  { %p9378_p2 = pnand %p9376_p1, %p9373_p0 }
 0x135   :  { %9381 = shalt.err (!%p9378_p2)
}
 0x136   :  { %s9382_s7 = scalar_lea.vmem %s187_s25, 64  ;;  %p9387_p4 = scmp.lt.s32.totalorder %s187_s25, %s187_s25 }
 0x137   :  { %p9383_p3 = scmp.ne.s32.totalorder %s187_s25, %s9382_s7  ;;  %p9388_p5 = scmp.lt.s32.totalorder %s9382_s7, %s9382_s7 }
 0x139   :  { %p9389_p6 = por %p9388_p5, %p9387_p4 }
 0x13b   :  { %p9390_p7 = pnand %p9389_p6, %p9383_p3 }
 0x13d   :  { %9393 = shalt.err (!%p9390_p7)
}
 0x13e   :  { %s12346_s10 = sld [smem:[#allocation54_spill]]  ;;  %s9625_s5 = smov [#allocation18]  }
 0x13f   :  { %189 = dma.hbm_to_vmem [thread:$0]  %s12345_s29, 64, %s187_s25, [#allocation14]  }
 0x140   :  { %s208_s24 = sshll.u32 %s9625_s5, 4  ;;  %s9626_s15 = smov [#allocation21]   ;;  %s209_s24 = int_to_ptr.vmem [resolvable:$true] %s208_s24 }
 0x141   :  { %s229_s3 = sshll.u32 %s9626_s15, 4  ;;  %s230_s3 = int_to_ptr.vmem [resolvable:$true] %s229_s3 }
 0x144   :  { %s9394_s4 = scalar_lea.hbm %s12346_s10, 48 }
 0x145   :  { %p9395_p8 = scmp.ne.s32.totalorder %s12346_s10, %s9394_s4  ;;  %p9398_p9 = scmp.lt.u32.totalorder %s9394_s4, %s12346_s10 }
 0x147   :  { %p9400_p10 = pnand %p9398_p9, %p9395_p8 }
 0x149   :  { %9403 = shalt.err (!%p9400_p10)
}
 0x14a   :  { %s9404_s20 = scalar_lea.vmem %s209_s24, 48  ;;  %s9408_s11 = scalar_lea.vmem %s209_s24, 64 }
 0x14b   :  { %p9405_p11 = scmp.ne.s32.totalorder %s209_s24, %s9404_s20  ;;  %p9409_p12 = scmp.lt.s32.totalorder %s209_s24, %s209_s24 }
 0x14c   :  { %p9410_p13 = scmp.lt.s32.totalorder %s9408_s11, %s9404_s20 }
 0x14e   :  { %p9411_p0 = por %p9410_p13, %p9409_p12 }
 0x150   :  { %p9412_p1 = pnand %p9411_p0, %p9405_p11 }
 0x152   :  { %9415 = shalt.err (!%p9412_p1)
}
 0x153   :  { %s12347_s16 = sld [smem:[#allocation56_spill]] }
 0x154   :  { %211 = dma.hbm_to_vmem [thread:$0]  %s12346_s10, 48, %s209_s24, [#allocation17]  }
 0x159   :  { %s9416_s18 = scalar_lea.hbm %s12347_s16, 1024 }
 0x15a   :  { %p9417_p2 = scmp.ne.s32.totalorder %s12347_s16, %s9416_s18  ;;  %p9420_p3 = scmp.lt.u32.totalorder %s9416_s18, %s12347_s16 }
 0x15c   :  { %p9422_p4 = pnand %p9420_p3, %p9417_p2 }
 0x15e   :  { %9425 = shalt.err (!%p9422_p4)
}
 0x15f   :  { %s9426_s22 = scalar_lea.vmem %s230_s3, 1024  ;;  %p9431_p6 = scmp.lt.s32.totalorder %s230_s3, %s230_s3 }
 0x160   :  { %p9427_p5 = scmp.ne.s32.totalorder %s230_s3, %s9426_s22  ;;  %p9432_p7 = scmp.lt.s32.totalorder %s9426_s22, %s9426_s22 }
 0x162   :  { %p9433_p8 = por %p9432_p7, %p9431_p6 }
 0x164   :  { %p9434_p9 = pnand %p9433_p8, %p9427_p5 }
 0x166   :  { %9437 = shalt.err (!%p9434_p9)
}
 0x167   :  { %s12348_s26 = sld [smem:[#allocation57_spill]]  ;;  %s9627_s30 = smov [#allocation24]  }
 0x168   :  { %235 = dma.hbm_to_vmem [thread:$0]  %s12347_s16, 1024, %s230_s3, [#allocation20], %s9607_s23, %s9607_s23, %s9608_s17  }
 0x169   :  { %s251_s13 = sshll.u32 %s9627_s30, 4  ;;  %s9628_s19 = smov [#allocation27]   ;;  %s252_s13 = int_to_ptr.vmem [resolvable:$true] %s251_s13 }
 0x16a   :  { %s274_s28 = sshll.u32 %s9628_s19, 4  ;;  %s275_s28 = int_to_ptr.vmem [resolvable:$true] %s274_s28 }
 0x16d   :  { %s9438_s21 = scalar_lea.hbm %s12348_s26, 1024 }
 0x16e   :  { %p9439_p10 = scmp.ne.s32.totalorder %s12348_s26, %s9438_s21  ;;  %p9442_p11 = scmp.lt.u32.totalorder %s9438_s21, %s12348_s26 }
 0x170   :  { %p9444_p12 = pnand %p9442_p11, %p9439_p10 }
 0x172   :  { %9447 = shalt.err (!%p9444_p12)
}
 0x173   :  { %s9448_s1 = scalar_lea.vmem %s252_s13, 1024  ;;  %p9453_p0 = scmp.lt.s32.totalorder %s252_s13, %s252_s13 }
 0x174   :  { %p9449_p13 = scmp.ne.s32.totalorder %s252_s13, %s9448_s1  ;;  %p9454_p1 = scmp.lt.s32.totalorder %s9448_s1, %s9448_s1 }
 0x176   :  { %p9455_p2 = por %p9454_p1, %p9453_p0 }
 0x178   :  { %p9456_p3 = pnand %p9455_p2, %p9449_p13 }
 0x17a   :  { %9459 = shalt.err (!%p9456_p3)
}
 0x17b   :  { %s12349_s14 = sld [smem:[#allocation58_spill]] }
 0x17c   :  { %257 = dma.hbm_to_vmem [thread:$0]  %s12348_s26, 1024, %s252_s13, [#allocation23], %s9607_s23, %s9607_s23, %s9608_s17  }
 0x181   :  { %s9460_s25 = scalar_lea.hbm %s12349_s14, 16 }
 0x182   :  { %p9461_p4 = scmp.ne.s32.totalorder %s12349_s14, %s9460_s25  ;;  %p9464_p5 = scmp.lt.u32.totalorder %s9460_s25, %s12349_s14 }
 0x184   :  { %p9466_p6 = pnand %p9464_p5, %p9461_p4 }
 0x186   :  { %9469 = shalt.err (!%p9466_p6)
}
 0x187   :  { %s9470_s0 = scalar_lea.vmem %s275_s28, 16  ;;  %s9474_s2 = scalar_lea.vmem %s275_s28, 32 }
 0x188   :  { %p9471_p7 = scmp.ne.s32.totalorder %s275_s28, %s9470_s0  ;;  %p9475_p8 = scmp.lt.s32.totalorder %s275_s28, %s275_s28 }
 0x189   :  { %p9476_p9 = scmp.lt.s32.totalorder %s9474_s2, %s9470_s0 }
 0x18b   :  { %p9477_p10 = por %p9476_p9, %p9475_p8 }
 0x18d   :  { %p9478_p11 = pnand %p9477_p10, %p9471_p7 }
 0x18f   :  { %9481 = shalt.err (!%p9478_p11)
}
 0x190   :  { %s12350_s29 = sld [smem:[#allocation60_spill]]  ;;  %s9629_s17 = smov [#allocation30]  }
 0x191   :  { %277 = dma.hbm_to_vmem [thread:$0]  %s12349_s14, 16, %s275_s28, [#allocation26]  }
 0x192   :  { %s296_s12 = sshll.u32 %s9629_s17, 4  ;;  %s9630_s7 = smov [#allocation33]   ;;  %s297_s12 = int_to_ptr.vmem [resolvable:$true] %s296_s12 }
 0x193   :  { %s320_s10 = sshll.u32 %s9630_s7, 4  ;;  %s321_s10 = int_to_ptr.vmem [resolvable:$true] %s320_s10 }
 0x196   :  { %s9482_s5 = scalar_lea.hbm %s12350_s29, 16 }
 0x197   :  { %p9483_p12 = scmp.ne.s32.totalorder %s12350_s29, %s9482_s5  ;;  %p9486_p13 = scmp.lt.u32.totalorder %s9482_s5, %s12350_s29 }
 0x199   :  { %p9488_p0 = pnand %p9486_p13, %p9483_p12 }
 0x19b   :  { %9491 = shalt.err (!%p9488_p0)
}
 0x19c   :  { %s9492_s24 = scalar_lea.vmem %s297_s12, 16  ;;  %s9496_s15 = scalar_lea.vmem %s297_s12, 32 }
 0x19d   :  { %p9493_p1 = scmp.ne.s32.totalorder %s297_s12, %s9492_s24  ;;  %p9497_p2 = scmp.lt.s32.totalorder %s297_s12, %s297_s12 }
 0x19e   :  { %p9498_p3 = scmp.lt.s32.totalorder %s9496_s15, %s9492_s24 }
 0x1a0   :  { %p9499_p4 = por %p9498_p3, %p9497_p2 }
 0x1a2   :  { %p9500_p5 = pnand %p9499_p4, %p9493_p1 }
 0x1a4   :  { %9503 = shalt.err (!%p9500_p5)
}
 0x1a5   :  { %299 = dma.hbm_to_vmem [thread:$0]  %s12350_s29, 16, %s297_s12, [#allocation29]  }
 0x1a6   :  { %s9504_s3 = scalar_lea.hbm %s9791_s9, 16 }
 0x1a7   :  { %p9505_p6 = scmp.ne.s32.totalorder %s9791_s9, %s9504_s3  ;;  %p9508_p7 = scmp.lt.u32.totalorder %s9504_s3, %s9791_s9 }
 0x1a9   :  { %p9510_p8 = pnand %p9508_p7, %p9505_p6 }
 0x1ab   :  { %9513 = shalt.err (!%p9510_p8)
}
 0x1ac   :  { %s9514_s4 = scalar_lea.vmem %s321_s10, 16  ;;  %s9518_s20 = scalar_lea.vmem %s321_s10, 32 }
 0x1ad   :  { %p9515_p9 = scmp.ne.s32.totalorder %s321_s10, %s9514_s4  ;;  %p9519_p10 = scmp.lt.s32.totalorder %s321_s10, %s321_s10 }
 0x1ae   :  { %p9520_p11 = scmp.lt.s32.totalorder %s9518_s20, %s9514_s4 }
 0x1b0   :  { %p9521_p12 = por %p9520_p11, %p9519_p10 }
 0x1b2   :  { %p9522_p13 = pnand %p9521_p12, %p9515_p9 }
 0x1b4   :  { %9525 = shalt.err (!%p9522_p13)
}
 0x1b5   :  { %323 = dma.hbm_to_vmem [thread:$0]  %s9791_s9, 16, %s321_s10, [#allocation32]  }
 0x1b6   :  { %s9631_s11 = smov [#allocation34]   ;;  %s9526_s18 = scalar_lea.hbm %s9801_s6, 16 }
 0x1b7   :  { %s332_s16 = sshll.u32 %s9631_s11, 4  ;;  %p9527_p0 = scmp.ne.s32.totalorder %s9801_s6, %s9526_s18  ;;  %s333_s16 = int_to_ptr.vmem [resolvable:$true] %s332_s16 }
 0x1b8   :  { %p9530_p1 = scmp.lt.u32.totalorder %s9526_s18, %s9801_s6 }
 0x1ba   :  { %p9532_p2 = pnand %p9530_p1, %p9527_p0 }
 0x1bc   :  { %9535 = shalt.err (!%p9532_p2)
}
 0x1bd   :  { %s9536_s22 = scalar_lea.vmem %s333_s16, 16  ;;  %s9540_s26 = scalar_lea.vmem %s333_s16, 32 }
 0x1be   :  { %p9537_p3 = scmp.ne.s32.totalorder %s333_s16, %s9536_s22  ;;  %p9541_p4 = scmp.lt.s32.totalorder %s333_s16, %s333_s16 }
 0x1bf   :  { %p9542_p5 = scmp.lt.s32.totalorder %s9540_s26, %s9536_s22 }
 0x1c1   :  { %p9543_p6 = por %p9542_p5, %p9541_p4 }
 0x1c3   :  { %p9544_p7 = pnand %p9543_p6, %p9537_p3 }
 0x1c5   :  { %9547 = shalt.err (!%p9544_p7)
}
 0x1c6   :  { %335 = dma.hbm_to_vmem [thread:$0]  %s9801_s6, 16, %s333_s16, [#allocation35]  }
 0x1c7   :  { %9548 = dma.done.wait [#allocation3], 192  }
 0x1c8   :  { %9549 = vsyncadd [#allocation3], 4294967104 }
 0x1c9   :  { %9550 = dma.done.wait [#allocation5], 32  }
 0x1ca   :  { %9551 = vsyncadd [#allocation5], 4294967264 }
 0x1cb   :  { %9552 = dma.done.wait [#allocation8], 2576  }
 0x1cc   :  { %9553 = vsyncadd [#allocation8], 4294964720 }
 0x1cd   :  { %9554 = dma.done.wait [#allocation11], 4112  }
 0x1ce   :  { %9555 = vsyncadd [#allocation11], 4294963184 }
 0x1cf   :  { %9556 = dma.done.wait [#allocation14], 4160  }
 0x1d0   :  { %9557 = vsyncadd [#allocation14], 4294963136 }
 0x1d1   :  { %9558 = dma.done.wait [#allocation17], 3120  }
 0x1d2   :  { %9559 = vsyncadd [#allocation17], 4294964176 }
 0x1d3   :  { %9560 = dma.done.wait [#allocation20], 1088  }
 0x1d4   :  { %9561 = vsyncadd [#allocation20], 4294966208 }
 0x1d5   :  { %9562 = dma.done.wait [#allocation23], 1040  }
 0x1d6   :  { %9563 = vsyncadd [#allocation23], 4294966256 }
 0x1d7   :  { %9564 = dma.done.wait [#allocation26], 32  }
 0x1d8   :  { %9565 = vsyncadd [#allocation26], 4294967264 }
 0x1d9   :  { %9566 = dma.done.wait [#allocation29], 32  }
 0x1da   :  { %9567 = vsyncadd [#allocation29], 4294967264 }
 0x1db   :  { %9568 = dma.done.wait [#allocation32], 32  }
 0x1dc   :  { %9569 = vsyncadd [#allocation32], 4294967264 }
 0x1dd   :  { %9570 = dma.done.wait [#allocation35], 16  }
 0x1de   :  { %9571 = vsyncadd [#allocation35], 4294967280  ;;  %s12351_s9 = sld [smem:[#allocation48_spill]]  ;;  %v8114_v0 = vld [vmem:[#allocation2] sm:$0xff]   ;;  %vm428_vm0 = vcmask 1040384   ;;  %vm421_vm1 = vcmask 146432  }
 0x1df   :  { %v8115_v1 = vld [vmem:[#allocation2 + $0x8] ss:$0 sps:$4 sm:$0x11]   ;;  %7812 = vmatprep.subr.bf16.mxu0 %v8114_v0  ;;  %v8116_v9 = vld [vmem:[#allocation7 + $0x80] sm:$0xff]   ;;  %v8117_v10 = vld [vmem:[#allocation7 + $0x88] sm:$0xff]   ;;  %vm511_vm2 = vcmask 1043456  }
 0x1e0   :  { %7813 = vmatpush3.bf16.msra.mxu0 %v8114_v0  ;;  %v430_v6 = vsel %vm428_vm0, %v8115_v1, 0  ;;  %v8118_v11 = vld [vmem:[#allocation7 + $0x90] sm:$0xff]   ;;  %v8119_v12 = vld [vmem:[#allocation7 + $0x98] sm:$0xff]   ;;  %v8120_v13 = vld [vmem:[#allocation7 + $0x40] sm:$0xff]   ;;  %vm585_vm3 = vcmask 523264   ;;  %vm563_vm4 = vcmask 1041408  }
 0x1e1   :  { %8024 = vmatprep.subr.msk.bf16.mxu0 %vm428_vm0, %v8115_v1  ;;  %v8121_v14 = vld [vmem:[#allocation7] sm:$0xff]   ;;  %v8122_v15 = vld [vmem:[#allocation7 + $0x48] sm:$0xff]   ;;  %7695 = vmatprep.subr.bf16.mxu1 %v8120_v13  ;;  %v8124_v17 = vld [vmem:[#allocation7 + $0x50] sm:$0xff]   ;;  %vm528_vm5 = vcmask 1045504   ;;  %s12352_s6 = sld [smem:[#allocation50_spill]]  ;;  %s12354_s30 = sld [smem:[#allocation52_spill]] }
 0x1e2   :  { %7696 = vmatpush3.bf16.msra.mxu1 %v8121_v14  ;;  %v8123_v16 = vld [vmem:[#allocation7 + $0x8] sm:$0xff]   ;;  %v8125_v18 = vld [vmem:[#allocation7 + $0x10] sm:$0xff]   ;;  %v8126_v19 = vld [vmem:[#allocation7 + $0x58] sm:$0xff]   ;;  %s12397_s13 = sld [smem:[#allocation55_spill]]  ;;  %vm9634_vm6 = vmmov 0   ;;  %vm6344_vm7 = vcmask 64512  }
 0x1e3   :  { %7697 = vmatprep.subr.bf16.mxu1 %v8122_v15  ;;  %v8127_v20 = vld [vmem:[#allocation7 + $0x18] sm:$0xff]   ;;  %v8128_v21 = vld [vmem:[#allocation7 + $0x60] sm:$0xff]   ;;  %v8130_v23 = vld [vmem:[#allocation7 + $0x68] sm:$0xff]   ;;  %s12400_s19 = sld [smem:[#allocation49_spill]]  ;;  %vm6371_vm8 = vcmask 261120   ;;  %s12402_s28 = sld [smem:[#allocation59_spill]] }
 0x1e4   :  { %v403_v2 = vld [vmem:[%s12351_s9] sm:$0xff]  ;;  %v404_v3 = vld [vmem:[%s12351_s9 + $0x8] sm:$0xff]  ;;  %v405_v4 = vld [vmem:[%s12351_s9 + $0x10] sm:$0xff]  ;;  %7815 = vmatpush3.bf16.msra.mxu0 %v430_v6  ;;  %s12403_s21 = sld [smem:[#allocation61_spill]]  ;;  %s12404_s1 = sld [smem:[#allocation62_spill]]  ;;  %vm7085_vm9 = vcmask 74752  }
 0x1e5   :  { %v406_v5 = vld [vmem:[%s12351_s9 + $0x18] sm:$0xff]  ;;  %v410_v7 = vpack.c.bf16 %v404_v3, %v403_v2  ;;  %7820 = vmatprep.subr.bf16.mxu0 %v8116_v9  ;;  %v8129_v22 = vld [vmem:[#allocation7 + $0x20] sm:$0xff]   ;;  %v7352_v25 = vld [vmem:[#allocation4] ss:$0 sm:$0xff]  ;;  %s9636_s14 = smov 127   ;;  %vm7295_vm10 = vcmask 80896  }
 0x1e6   :  { %v411_v8 = vpack.c.bf16 %v406_v5, %v405_v4  ;;  %7698 = vmatpush3.bf16.msra.mxu1 %v8123_v16  ;;  %v8131_v24 = vld [vmem:[#allocation7 + $0x28] sm:$0xff]   ;;  %v7353_v27 = vld [vmem:[#allocation6] ss:$0 sm:$0xff]  ;;  %v8132_v41 = vld [vmem:[#allocation7 + $0x70] sm:$0xff]   ;;  %vm7297_vm11 = vcmask 130048  }
 0x1e7   :  { %7816 = vmatprep.mubr.msk.bf16.mxu0 %vm421_vm1, %v410_v7  ;;  %7699 = vmatprep.subr.bf16.mxu1 %v8124_v17  ;;  %v8133_v42 = vld [vmem:[#allocation7 + $0x30] sm:$0xff]   ;;  %v8134_v50 = vld [vmem:[#allocation7 + $0x78] sm:$0xff]  }
 0x1e8   :  { %7817 = vmatmul.mubr.msk.bf16.vlgmr.msra.gmra.mrb[0].mxu0 %vm421_vm1, %v411_v8  ;;  %v8135_v53 = vld [vmem:[#allocation7 + $0x38] sm:$0xff]   ;;  %v8136_v16 = vld [vmem:[%s12352_s6] ss:$16 sps:$4 sm:$0xff]   ;;  %v8138_v17 = vld [vmem:[%s12352_s6 + $0x4] ss:$16 sps:$4 sm:$0xff]  }
 0x1e9   :  { %7821 = vmatpush3.bf16.msra.mxu0 %v8116_v9 }
 0x1ea   :  { %7822 = vmatprep.subr.bf16.mxu0 %v8117_v10  ;;  %7700 = vmatpush3.bf16.msra.mxu1 %v8125_v18  ;;  %v8141_v18 = vld [vmem:[%s12352_s6 + $0xc] ss:$16 sps:$4 sm:$0xff]  }
 0x1eb   :  { %7701 = vmatprep.subr.bf16.mxu1 %v8126_v19  ;;  %v8144_v19 = vld [vmem:[%s12352_s6 + $0x24] ss:$16 sps:$4 sm:$0xff]  }
 0x1ed   :  { %7823 = vmatpush3.bf16.msra.mxu0 %v8117_v10 }
 0x1ee   :  { %7824 = vmatprep.subr.bf16.mxu0 %v8118_v11  ;;  %7702 = vmatpush3.bf16.msra.mxu1 %v8127_v20  ;;  %v8142_v20 = vld [vmem:[%s12352_s6 + $0x20] ss:$16 sps:$4 sm:$0xff]  }
 0x1ef   :  { %7703 = vmatprep.subr.bf16.mxu1 %v8128_v21  ;;  %v8150_v21 = vld [vmem:[%s12352_s6 + $0x44] ss:$16 sps:$4 sm:$0xff]  }
 0x1f1   :  { %7825 = vmatpush3.bf16.msra.mxu0 %v8118_v11 }
 0x1f2   :  { %7826 = vmatprep.subr.bf16.mxu0 %v8119_v12  ;;  %7704 = vmatpush3.bf16.msra.mxu1 %v8129_v22  ;;  %v8148_v22 = vld [vmem:[%s12352_s6 + $0x40] ss:$16 sps:$4 sm:$0xff]  }
 0x1f3   :  { %7705 = vmatprep.subr.bf16.mxu1 %v8130_v23  ;;  %v8156_v23 = vld [vmem:[%s12352_s6 + $0x64] ss:$16 sps:$4 sm:$0xff]  }
 0x1f5   :  { %7827 = vmatpush3.bf16.msra.mxu0 %v8119_v12 }
 0x1f6   :  { %7706 = vmatpush3.bf16.msra.mxu1 %v8131_v24  ;;  %1106 = vmatprep.subr.bf16.mxu0 %v8138_v17  ;;  %v8154_v24 = vld [vmem:[%s12352_s6 + $0x60] ss:$16 sps:$4 sm:$0xff]   ;;  %v8180_v17 = vld [vmem:[%s12352_s6 + $0xe4] ss:$16 sps:$4 sm:$0xff]  }
 0x1f7   :  { %7707 = vmatprep.subr.bf16.mxu1 %v8132_v41 }
 0x1fa   :  { %7708 = vmatpush3.bf16.msra.mxu1 %v8133_v42 }
 0x1fb   :  { %7709 = vmatprep.subr.bf16.mxu1 %v8134_v50 }
 0x1fe   :  { %7710 = vmatpush3.bf16.msra.mxu1 %v8135_v53 }
 0x1ff   :  { %1159 = vmatprep.subr.bf16.mxu1 %v8141_v18  ;;  %v8183_v18 = vld [vmem:[%s12352_s6 + $0xec] ss:$16 sps:$4 sm:$0xff]  }
 0x2bb   :  { %v7818_v26 = vpop.f32.mrb[0].mxu0 }
 0x2bc   :  { %v490_v28 = vmul.f32 %v7818_v26, %v7352_v25  ;;  %v466_v29 = vpop.f32.mrb[1].mxu0  ;;  %v8160_v26 = vld [vmem:[%s12352_s6 + $0x80] ss:$16 sps:$4 sm:$0xff]  }
 0x2bd   :  { %v488_v30 = vmul.f32 %v7352_v25, %v466_v29  ;;  %v7819_v31 = vpop.f32.mrb[2].mxu0 }
 0x2be   :  { %v501_v32 = vadd.f32 %v7353_v27, %v490_v28  ;;  %v491_v33 = vmul.f32 %v7819_v31, %v7352_v25  ;;  %v469_v34 = vpop.f32.mrb[3].mxu0 }
 0x2bf   :  { %v499_v35 = vadd.f32 %v7353_v27, %v488_v30  ;;  %v489_v36 = vmul.f32 %v7352_v25, %v469_v34  ;;  %v8162_v25 = vld [vmem:[%s12352_s6 + $0x84] ss:$16 sps:$4 sm:$0xff]  }
 0x2c0   :  { %v505_v37 = vmax.f32 %v501_v32, 0.0  ;;  %v502_v38 = vadd.f32 %v7353_v27, %v491_v33 }
 0x2c1   :  { %v503_v39 = vmax.f32 %v499_v35, 0.0  ;;  %v500_v40 = vadd.f32 %v7353_v27, %v489_v36 }
 0x2c2   :  { %v506_v43 = vmax.f32 %v502_v38, 0.0  ;;  %v515_v46 = vrot.slane %v505_v37, 4 }
 0x2c3   :  { %v512_v44 = vrot.slane %v503_v39, 4  ;;  %v504_v45 = vmax.f32 %v500_v40, 0.0 }
 0x2c4   :  { %v517_v47 = vrot.slane %v506_v43, 4 }
 0x2c5   :  { %v9919_v48 = vsel %vm511_vm2, 0.0, %v512_v44  ;;  %v513_v49 = vrot.slane %v504_v45, 4 }
 0x2c6   :  { %v9922_v51 = vsel %vm511_vm2, %v515_v46, %v517_v47  ;;  %v9925_v52 = vsel %vm511_vm2, %v517_v47, 0.0  ;;  %v564_v57 = vrot.slane %v9919_v48, 6  ;;  %v529_v8 = vrot.slane %v9919_v48, 2 }
 0x2c7   :  { %v639_v54 = vpack.c.bf16 %v9925_v52, %v9922_v51  ;;  %v9930_v55 = vsel %vm511_vm2, %v512_v44, %v513_v49  ;;  %v9933_v56 = vsel %vm511_vm2, %v513_v49, %v515_v46  ;;  %v569_v60 = vrot.slane %v9922_v51, 6 }
 0x2c8   :  { %v636_v58 = vpack.c.bf16 %v9933_v56, %v9930_v55  ;;  %v567_v59 = vrot.slane %v9933_v56, 6  ;;  %v571_v61 = vrot.slane %v9925_v52, 6  ;;  %v565_v62 = vrot.slane %v9930_v55, 6 }
 0x2c9   :  { %v532_v63 = vrot.slane %v9933_v56, 2  ;;  %v534_v0 = vrot.slane %v9922_v51, 2  ;;  %v536_v1 = vrot.slane %v9925_v52, 2  ;;  %v530_v4 = vrot.slane %v9930_v55, 2 }
 0x2ca   :  { %7828 = vmatprep.mubr.msk.bf16.mxu0 %vm585_vm3, %v636_v58  ;;  %v570_v2 = vsel %vm563_vm4, %v567_v59, %v569_v60  ;;  %v572_v3 = vsel %vm563_vm4, %v569_v60, %v571_v61  ;;  %v566_v6 = vsel %vm563_vm4, %v564_v57, %v565_v62  ;;  %v568_v7 = vsel %vm563_vm4, %v565_v62, %v567_v59  ;;  %v8139_v57 = vld [vmem:[%s12352_s6 + $0x8] ss:$16 sps:$4 sm:$0xff]   ;;  %v8147_v59 = vld [vmem:[%s12352_s6 + $0x2c] ss:$16 sps:$4 sm:$0xff]  }
 0x2cb   :  { %7829 = vmatmul.mubr.msk.bf16.vlgmr.msra.gmra.mrb[4].mxu0 %vm585_vm3, %v639_v54  ;;  %v8102_v5 = vpack.i.bf16 %v572_v3, %v570_v2  ;;  %v8092_v9 = vpack.i.bf16 %v568_v7, %v566_v6  ;;  %v535_v10 = vsel %vm528_vm5, %v532_v63, %v534_v0  ;;  %v537_v11 = vsel %vm528_vm5, %v534_v0, %v536_v1  ;;  %v8151_v1 = vld [vmem:[%s12352_s6 + $0x48] ss:$16 sps:$4 sm:$0xff]   ;;  %v8159_v3 = vld [vmem:[%s12352_s6 + $0x6c] ss:$16 sps:$4 sm:$0xff]  }
 0x2cc   :  { %v531_v12 = vsel %vm528_vm5, %v529_v8, %v530_v4  ;;  %v533_v13 = vsel %vm528_vm5, %v530_v4, %v532_v63  ;;  %v8107_v14 = vpack.i.bf16 %v537_v11, %v535_v10  ;;  %1107 = vmatpush1.bf16.msra.mxu0 %v8136_v16  ;;  %v551_v27 = vrot.slane %v9930_v55, 4  ;;  %v8145_v63 = vld [vmem:[%s12352_s6 + $0x28] ss:$16 sps:$4 sm:$0xff]   ;;  %v8171_v10 = vld [vmem:[%s12352_s6 + $0xac] ss:$16 sps:$4 sm:$0xff]  }
 0x2cd   :  { %8103 = vrot.lane.b32.xlu1 %v8102_v5, %s9607_s23  ;;  %8093 = vrot.lane.b32.xlu0 %v8092_v9, %s9607_s23  ;;  %v8097_v15 = vpack.i.bf16 %v533_v13, %v531_v12  ;;  %v553_v28 = vrot.slane %v9933_v56, 4  ;;  %v550_v31 = vrot.slane %v9919_v48, 4  ;;  %v557_v32 = vrot.slane %v9925_v52, 4  ;;  %v8157_v4 = vld [vmem:[%s12352_s6 + $0x68] ss:$16 sps:$4 sm:$0xff]  }
 0x2ce   :  { %1108 = vmatprep.subr.bf16.mxu0 %v8144_v19  ;;  %v555_v35 = vrot.slane %v9922_v51, 4  ;;  %v8165_v5 = vld [vmem:[%s12352_s6 + $0x8c] ss:$16 sps:$4 sm:$0xff]   ;;  %v8168_v9 = vld [vmem:[%s12352_s6 + $0xa4] ss:$16 sps:$4 sm:$0xff]  }
 0x2cf   :  { %v552_v38 = vsel %vm511_vm2, %v550_v31, %v551_v27  ;;  %v554_v39 = vsel %vm511_vm2, %v551_v27, %v553_v28  ;;  %v8166_v11 = vld [vmem:[%s12352_s6 + $0xa0] ss:$16 sps:$4 sm:$0xff]   ;;  %v8169_v12 = vld [vmem:[%s12352_s6 + $0xa8] ss:$16 sps:$4 sm:$0xff]   ;;  %v8174_v13 = vld [vmem:[%s12352_s6 + $0xc4] ss:$16 sps:$4 sm:$0xff]  }
 0x2d0   :  { %1109 = vmatpush1.bf16.msra.mxu0 %v8142_v20  ;;  %v556_v46 = vsel %vm511_vm2, %v553_v28, %v555_v35  ;;  %v558_v47 = vsel %vm511_vm2, %v555_v35, %v557_v32  ;;  %v8175_v16 = vld [vmem:[%s12352_s6 + $0xc8] ss:$16 sps:$4 sm:$0xff]   ;;  %v8178_v19 = vld [vmem:[%s12352_s6 + $0xe0] ss:$16 sps:$4 sm:$0xff]  }
 0x2d1   :  { %8108 = vrot.lane.b32.xlu1 %v8107_v14, %s9607_s23  ;;  %8098 = vrot.lane.b32.xlu0 %v8097_v15, %s9607_s23  ;;  %s12353_s23 = sld [smem:[#allocation51_spill]]  ;;  %v8177_v14 = vld [vmem:[%s12352_s6 + $0xcc] ss:$16 sps:$4 sm:$0xff]   ;;  %v8172_v15 = vld [vmem:[%s12352_s6 + $0xc0] ss:$16 sps:$4 sm:$0xff]  }
 0x2d2   :  { %1110 = vmatprep.subr.bf16.mxu0 %v8150_v21  ;;  %v8181_v20 = vld [vmem:[%s12352_s6 + $0xe8] ss:$16 sps:$4 sm:$0xff]   ;;  %v7376_v28 = vld [vmem:[#allocation9] ss:$0 sm:$0xff]  ;;  %v7377_v32 = vld [vmem:[#allocation10] ss:$0 sm:$0xff] }
 0x2d4   :  { %1111 = vmatpush1.bf16.msra.mxu0 %v8148_v22 }
 0x2d5   :  { %1112 = vmatprep.subr.bf16.mxu0 %v8156_v23  ;;  %v12313_v23 = vmov 0  }
 0x2d6   :  { %1138 = vmatprep.mubr.bf16.mxu0 %v12313_v23  ;;  %8112 = vset.pattern.permute.xlu1 %v12313_v23 }
 0x2d7   :  { %v10015_v21 = vld [vmem:[%s12353_s23 + $0x4] ss:$16 sps:$4 sm:$0xff]   ;;  %v10018_v22 = vld [vmem:[%s12353_s23 + $0xc] ss:$16 sps:$4 sm:$0xff]   ;;  %8113 = vset.pattern.permute.xlu0 %v12313_v23 }
 0x2d8   :  { %1113 = vmatpush1.bf16.msra.mxu0 %v8154_v24 }
 0x2d9   :  { %1114 = vmatprep.subr.bf16.mxu0 %v8162_v25 }
 0x2dc   :  { %1115 = vmatpush1.bf16.msra.mxu0 %v8160_v26 }
 0x2dd   :  { %1116 = vmatprep.subr.bf16.mxu0 %v8168_v9  ;;  %v10096_v9 = vld [vmem:[%s12353_s23 + $0x88] ss:$16 sps:$4 sm:$0xff]  }
 0x2e0   :  { %1117 = vmatpush1.bf16.msra.mxu0 %v8166_v11  ;;  %v10104_v11 = vld [vmem:[%s12353_s23 + $0xac] ss:$16 sps:$4 sm:$0xff]  }
 0x2e1   :  { %1118 = vmatprep.subr.bf16.mxu0 %v8174_v13  ;;  %v10112_v13 = vld [vmem:[%s12353_s23 + $0xa8] ss:$16 sps:$4 sm:$0xff]  }
 0x2e4   :  { %1119 = vmatpush1.bf16.msra.mxu0 %v8172_v15  ;;  %v10120_v15 = vld [vmem:[%s12353_s23 + $0xcc] ss:$16 sps:$4 sm:$0xff]  }
 0x2e5   :  { %1120 = vmatprep.subr.bf16.mxu0 %v8180_v17  ;;  %v10128_v17 = vld [vmem:[%s12353_s23 + $0xc8] ss:$16 sps:$4 sm:$0xff]  }
 0x2e8   :  { %1121 = vmatpush1.bf16.msra.mxu0 %v8178_v19  ;;  %v10136_v19 = vld [vmem:[%s12353_s23 + $0xec] ss:$16 sps:$4 sm:$0xff]  }
 0x2e9   :  { %1404 = vmatprep.subr.bf16.mxu0 %v10015_v21 }
 0x33f   :  { %v8104_v29 = vpop.permute.xlu1 %8103  ;;  %v8094_v30 = vpop.permute.xlu0 %8093 }
 0x340   :  { %v8096_v33 = vunpack.i.h.bf16 %v8094_v30  ;;  %v8095_v34 = vunpack.i.l.bf16 %v8094_v30  ;;  %v8106_v36 = vunpack.i.h.bf16 %v8104_v29  ;;  %v8105_v37 = vunpack.i.l.bf16 %v8104_v29 }
 0x342   :  { %v590_v40 = vsel %vm585_vm3, %v552_v38, %v8095_v34  ;;  %v591_v41 = vsel %vm585_vm3, %v554_v39, %v8096_v33  ;;  %v592_v50 = vsel %vm585_vm3, %v556_v46, %v8105_v37  ;;  %v593_v52 = vsel %vm585_vm3, %v558_v47, %v8106_v36  ;;  %v10027_v47 = vld [vmem:[%s12353_s23] ss:$16 sps:$4 sm:$0xff]  }
 0x343   :  { %v8099_v42 = vpop.permute.xlu0 %8098  ;;  %v635_v43 = vpack.c.bf16 %v591_v41, %v590_v40  ;;  %v8109_v49 = vpop.permute.xlu1 %8108  ;;  %v638_v62 = vpack.c.bf16 %v593_v52, %v592_v50 }
 0x344   :  { %v8101_v44 = vunpack.i.h.bf16 %v8099_v42  ;;  %v8100_v45 = vunpack.i.l.bf16 %v8099_v42  ;;  %v8111_v60 = vunpack.i.h.bf16 %v8109_v49  ;;  %v8110_v61 = vunpack.i.l.bf16 %v8109_v49  ;;  %v10030_v49 = vld [vmem:[%s12353_s23 + $0x8] ss:$16 sps:$4 sm:$0xff]  }
 0x345   :  { %798 = vmatprep.mubr.bf16.mxu1 %v635_v43 }
 0x346   :  { %v586_v53 = vsel %vm585_vm3, %v9919_v48, %v8100_v45  ;;  %v587_v54 = vsel %vm585_vm3, %v9930_v55, %v8101_v44  ;;  %v8153_v48 = vld [vmem:[%s12352_s6 + $0x4c] ss:$16 sps:$4 sm:$0xff]   ;;  %v588_v55 = vsel %vm585_vm3, %v9933_v56, %v8110_v61  ;;  %v589_v0 = vsel %vm585_vm3, %v9922_v51, %v8111_v60  ;;  %v8163_v56 = vld [vmem:[%s12352_s6 + $0x88] ss:$16 sps:$4 sm:$0xff]   ;;  %v10041_v60 = vld [vmem:[%s12353_s23 + $0x20] ss:$16 sps:$4 sm:$0xff]  }
 0x347   :  { %v634_v58 = vpack.c.bf16 %v587_v54, %v586_v53  ;;  %v637_v2 = vpack.c.bf16 %v589_v0, %v588_v55  ;;  %v10033_v54 = vld [vmem:[%s12353_s23 + $0x24] ss:$16 sps:$4 sm:$0xff]   ;;  %v10044_v61 = vld [vmem:[%s12353_s23 + $0x28] ss:$16 sps:$4 sm:$0xff]  }
 0x349   :  { %799 = vmatmul.mubr.bf16.vlgmr.msra.gmra.mrb[0].mxu1 %v634_v58 }
 0x34a   :  { %806 = vmatprep.mubr.bf16.mxu1 %v638_v62  ;;  %1160 = vmatpush1.bf16.msra.mxu1 %v8139_v57  ;;  %v10036_v57 = vld [vmem:[%s12353_s23 + $0x2c] ss:$16 sps:$4 sm:$0xff]   ;;  %v10049_v62 = vld [vmem:[%s12353_s23 + $0x44] ss:$16 sps:$4 sm:$0xff]  }
 0x34b   :  { %1161 = vmatprep.subr.bf16.mxu1 %v8147_v59 }
 0x34e   :  { %1162 = vmatpush1.bf16.msra.mxu1 %v8145_v63  ;;  %v10052_v63 = vld [vmem:[%s12353_s23 + $0x4c] ss:$16 sps:$4 sm:$0xff]  }
 0x34f   :  { %1163 = vmatprep.subr.bf16.mxu1 %v8153_v48 }
 0x351   :  { %807 = vmatmul.mubr.bf16.gmra.mrb[4].mxu1 %v637_v2  ;;  %v10062_v2 = vld [vmem:[%s12353_s23 + $0x48] ss:$16 sps:$4 sm:$0xff]  }
 0x352   :  { %1164 = vmatpush1.bf16.msra.mxu1 %v8151_v1  ;;  %1191 = vmatprep.mubr.bf16.mxu1 %v12313_v23  ;;  %v10059_v1 = vld [vmem:[%s12353_s23 + $0x40] ss:$16 sps:$4 sm:$0xff]  }
 0x353   :  { %1165 = vmatprep.subr.bf16.mxu1 %v8159_v3 }
 0x356   :  { %1166 = vmatpush1.bf16.msra.mxu1 %v8157_v4  ;;  %v10067_v4 = vld [vmem:[%s12353_s23 + $0x64] ss:$16 sps:$4 sm:$0xff]  }
 0x357   :  { %1167 = vmatprep.subr.bf16.mxu1 %v8165_v5  ;;  %v10070_v5 = vld [vmem:[%s12353_s23 + $0x6c] ss:$16 sps:$4 sm:$0xff]  }
 0x35a   :  { %1168 = vmatpush1.bf16.msra.mxu1 %v8163_v56  ;;  %v10075_v56 = vld [vmem:[%s12353_s23 + $0x60] ss:$16 sps:$4 sm:$0xff]  }
 0x35b   :  { %1169 = vmatprep.subr.bf16.mxu1 %v8171_v10  ;;  %v10101_v10 = vld [vmem:[%s12353_s23 + $0xa4] ss:$16 sps:$4 sm:$0xff]  }
 0x35e   :  { %1170 = vmatpush1.bf16.msra.mxu1 %v8169_v12  ;;  %v10109_v12 = vld [vmem:[%s12353_s23 + $0xa0] ss:$16 sps:$4 sm:$0xff]  }
 0x35f   :  { %1171 = vmatprep.subr.bf16.mxu1 %v8177_v14  ;;  %v10117_v14 = vld [vmem:[%s12353_s23 + $0xc4] ss:$16 sps:$4 sm:$0xff]  }
 0x362   :  { %1172 = vmatpush1.bf16.msra.mxu1 %v8175_v16  ;;  %v10125_v16 = vld [vmem:[%s12353_s23 + $0xc0] ss:$16 sps:$4 sm:$0xff]  }
 0x363   :  { %1173 = vmatprep.subr.bf16.mxu1 %v8183_v18  ;;  %v10133_v18 = vld [vmem:[%s12353_s23 + $0xe4] ss:$16 sps:$4 sm:$0xff]  }
 0x366   :  { %1174 = vmatpush1.bf16.msra.mxu1 %v8181_v20  ;;  %v10141_v20 = vld [vmem:[%s12353_s23 + $0xe0] ss:$16 sps:$4 sm:$0xff]  }
 0x367   :  { %1445 = vmatprep.subr.bf16.mxu1 %v10018_v22 }
 0x39e   :  { %v7830_v51 = vpop.f32.mrb[4].mxu0 }
 0x39f   :  { %v849_v6 = vpop.f32.mrb[5].mxu0 }
 0x3a0   :  { %v7831_v7 = vpop.f32.mrb[6].mxu0 }
 0x3a1   :  { %v852_v8 = vpop.f32.mrb[7].mxu0 }
 0x41c   :  { %v7711_v24 = vpop.f32.mrb[0].mxu1 }
 0x41d   :  { %v7712_v25 = vpop.f32.mrb[1].mxu1 }
 0x41e   :  { %v7713_v26 = vadd.f32 %v7712_v25, %v7711_v24  ;;  %v7714_v27 = vpop.f32.mrb[2].mxu1  ;;  %v10144_v24 = vld [vmem:[%s12353_s23 + $0xe8] ss:$16 sps:$4 sm:$0xff]   ;;  %v926_v25 = vlaneseq }
 0x41f   :  { %v7715_v29 = vpop.f32.mrb[3].mxu1 }
 0x420   :  { %v850_v30 = vadd.f32 %v7713_v26, %v849_v6  ;;  %v7716_v31 = vadd.f32 %v7715_v29, %v7714_v27  ;;  %v10083_v6 = vld [vmem:[%s12353_s23 + $0x84] ss:$16 sps:$4 sm:$0xff]   ;;  %v10188_v26 = vshrl.u32 %v926_v25, 7  ;;  %v924_v29 = vld [vmem:[%s12354_s30] sm:$0xf] }
 0x422   :  { %v871_v33 = vmul.f32 %v7376_v28, %v850_v30  ;;  %v853_v34 = vadd.f32 %v7716_v31, %v852_v8  ;;  %v10093_v8 = vld [vmem:[%s12353_s23 + $0x80] ss:$16 sps:$4 sm:$0xff]   ;;  %12355 = vst [vmem:[#allocation63_spill] sm:$0xff] %v10188_v26  ;;  %v10191_v27 = vsub.s32 0, %v10188_v26  ;;  %v10198_v30 = vsub.s32 1, %v10188_v26 }
 0x423   :  { %v12312_v31 = vsub.s32 3, %v10188_v26 }
 0x424   :  { %v882_v35 = vadd.f32 %v7377_v32, %v871_v33  ;;  %v872_v36 = vmul.f32 %v7376_v28, %v853_v34  ;;  %v7717_v37 = vpop.f32.mrb[4].mxu1  ;;  %12356 = vst [vmem:[#allocation64_spill] sm:$0xff] %v10191_v27  ;;  %12358 = vst [vmem:[#allocation66_spill] sm:$0xff] %v10198_v30  ;;  %v929_v34 = vrot.slane %v924_v29, %v10191_v27 }
 0x425   :  { %v7718_v38 = vpop.f32.mrb[5].mxu1 }
 0x426   :  { %v883_v39 = vadd.f32 %v7377_v32, %v872_v36  ;;  %v7719_v40 = vadd.f32 %v7718_v38, %v7717_v37  ;;  %v7720_v41 = vpop.f32.mrb[6].mxu1  ;;  %v886_v43 = vmax.f32 %v882_v35, 0.0  ;;  %v933_v38 = vrot.slane %v924_v29, %v10198_v30 }
 0x427   :  { %v7721_v42 = vpop.f32.mrb[7].mxu1 }
 0x428   :  { %v887_v44 = vmax.f32 %v883_v39, 0.0  ;;  %v858_v45 = vadd.f32 %v7830_v51, %v7719_v40  ;;  %v7722_v46 = vadd.f32 %v7721_v42, %v7720_v41  ;;  %v10078_v51 = vld [vmem:[%s12353_s23 + $0x68] ss:$16 sps:$4 sm:$0xff]   ;;  %v941_v39 = vrot.slane %v924_v29, %v12312_v31 }
 0x42a   :  { %v873_v50 = vmul.f32 %v7376_v28, %v858_v45  ;;  %v861_v52 = vadd.f32 %v7831_v7, %v7722_v46  ;;  %v922_v53 = vpack.c.bf16 %v887_v44, %v886_v43  ;;  %v10086_v7 = vld [vmem:[%s12353_s23 + $0x8c] ss:$16 sps:$4 sm:$0xff]  }
 0x42c   :  { %v874_v58 = vmul.f32 %v7376_v28, %v861_v52  ;;  %1139 = vmatmul.mubr.bf16.vlgmr.msra.gmra.mrb[8].mxu0 %v922_v53  ;;  %1192 = vmatmul.mubr.bf16.vlgmr.msra.gmra.mrb[8].mxu1 %v922_v53  ;;  %v884_v59 = vadd.f32 %v7377_v32, %v873_v50  ;;  %v10194_v28 = vsub.s32 2, %v10188_v26 }
 0x42d   :  { %1405 = vmatpush1.bf16.msra.mxu0 %v10027_v47  ;;  %1446 = vmatpush1.bf16.msra.mxu1 %v10030_v49 }
 0x42e   :  { %1406 = vmatprep.subr.bf16.mxu0 %v10033_v54  ;;  %1447 = vmatprep.subr.bf16.mxu1 %v10036_v57  ;;  %v885_v48 = vadd.f32 %v7377_v32, %v874_v58  ;;  %v888_v55 = vmax.f32 %v884_v59, 0.0  ;;  %12357 = vst [vmem:[#allocation65_spill] sm:$0xff] %v10194_v28  ;;  %v937_v35 = vrot.slane %v924_v29, %v10194_v28 }
 0x42f   :  { %1148 = vmatprep.mubr.bf16.mxu0 %v12313_v23  ;;  %1201 = vmatprep.mubr.bf16.mxu1 %v12313_v23 }
 0x430   :  { %v889_v0 = vmax.f32 %v885_v48, 0.0 }
 0x431   :  { %1407 = vmatpush1.bf16.msra.mxu0 %v10041_v60  ;;  %1448 = vmatpush1.bf16.msra.mxu1 %v10044_v61 }
 0x432   :  { %1408 = vmatprep.subr.bf16.mxu0 %v10049_v62  ;;  %1449 = vmatprep.subr.bf16.mxu1 %v10052_v63  ;;  %v923_v3 = vpack.c.bf16 %v889_v0, %v888_v55 }
 0x434   :  { %1149 = vmatmul.mubr.bf16.gmra.mrb[12].mxu0 %v923_v3  ;;  %1202 = vmatmul.mubr.bf16.gmra.mrb[12].mxu1 %v923_v3 }
 0x435   :  { %1409 = vmatpush1.bf16.msra.mxu0 %v10059_v1  ;;  %1450 = vmatpush1.bf16.msra.mxu1 %v10062_v2 }
 0x436   :  { %1410 = vmatprep.subr.bf16.mxu0 %v10067_v4  ;;  %1451 = vmatprep.subr.bf16.mxu1 %v10070_v5 }
 0x437   :  { %1436 = vmatprep.mubr.bf16.mxu0 %v12313_v23  ;;  %1477 = vmatprep.mubr.bf16.mxu1 %v12313_v23 }
 0x439   :  { %1411 = vmatpush1.bf16.msra.mxu0 %v10075_v56  ;;  %1452 = vmatpush1.bf16.msra.mxu1 %v10078_v51 }
 0x43a   :  { %1412 = vmatprep.subr.bf16.mxu0 %v10083_v6  ;;  %1453 = vmatprep.subr.bf16.mxu1 %v10086_v7 }
 0x43d   :  { %1413 = vmatpush1.bf16.msra.mxu0 %v10093_v8  ;;  %1454 = vmatpush1.bf16.msra.mxu1 %v10096_v9 }
 0x43e   :  { %1414 = vmatprep.subr.bf16.mxu0 %v10101_v10  ;;  %1455 = vmatprep.subr.bf16.mxu1 %v10104_v11 }
 0x441   :  { %1415 = vmatpush1.bf16.msra.mxu0 %v10109_v12  ;;  %1456 = vmatpush1.bf16.msra.mxu1 %v10112_v13 }
 0x442   :  { %1416 = vmatprep.subr.bf16.mxu0 %v10117_v14  ;;  %1457 = vmatprep.subr.bf16.mxu1 %v10120_v15 }
 0x445   :  { %1417 = vmatpush1.bf16.msra.mxu0 %v10125_v16  ;;  %1458 = vmatpush1.bf16.msra.mxu1 %v10128_v17 }
 0x446   :  { %1418 = vmatprep.subr.bf16.mxu0 %v10133_v18  ;;  %1459 = vmatprep.subr.bf16.mxu1 %v10136_v19 }
 0x449   :  { %1419 = vmatpush1.bf16.msra.mxu0 %v10141_v20  ;;  %1460 = vmatpush1.bf16.msra.mxu1 %v10144_v24 }
 0x44a   :  { %1515 = vmatprep.subr.bf16.mxu0 %v10015_v21  ;;  %1556 = vmatprep.subr.bf16.mxu1 %v10018_v22 }
 0x44c   :  { %1437 = vmatmul.mubr.bf16.vlgmr.msra.gmra.mrb[16].mxu0 %v12313_v23  ;;  %1478 = vmatmul.mubr.bf16.vlgmr.msra.gmra.mrb[16].mxu1 %v12313_v23 }
 0x44d   :  { %1516 = vmatpush1.bf16.msra.mxu0 %v10027_v47  ;;  %1557 = vmatpush1.bf16.msra.mxu1 %v10030_v49 }
 0x44e   :  { %1517 = vmatprep.subr.bf16.mxu0 %v10033_v54  ;;  %1558 = vmatprep.subr.bf16.mxu1 %v10036_v57 }
 0x44f   :  { %1547 = vmatprep.mubr.bf16.mxu0 %v12313_v23  ;;  %1588 = vmatprep.mubr.bf16.mxu1 %v12313_v23 }
 0x451   :  { %1518 = vmatpush1.bf16.msra.mxu0 %v10041_v60  ;;  %1559 = vmatpush1.bf16.msra.mxu1 %v10044_v61 }
 0x452   :  { %1519 = vmatprep.subr.bf16.mxu0 %v10049_v62  ;;  %1560 = vmatprep.subr.bf16.mxu1 %v10052_v63 }
 0x455   :  { %1520 = vmatpush1.bf16.msra.mxu0 %v10059_v1  ;;  %1561 = vmatpush1.bf16.msra.mxu1 %v10062_v2 }
 0x456   :  { %1521 = vmatprep.subr.bf16.mxu0 %v10067_v4  ;;  %1562 = vmatprep.subr.bf16.mxu1 %v10070_v5 }
 0x459   :  { %1522 = vmatpush1.bf16.msra.mxu0 %v10075_v56  ;;  %1563 = vmatpush1.bf16.msra.mxu1 %v10078_v51 }
 0x45a   :  { %1523 = vmatprep.subr.bf16.mxu0 %v10083_v6  ;;  %1564 = vmatprep.subr.bf16.mxu1 %v10086_v7 }
 0x45d   :  { %1524 = vmatpush1.bf16.msra.mxu0 %v10093_v8  ;;  %1565 = vmatpush1.bf16.msra.mxu1 %v10096_v9 }
 0x45e   :  { %1525 = vmatprep.subr.bf16.mxu0 %v10101_v10  ;;  %1566 = vmatprep.subr.bf16.mxu1 %v10104_v11 }
 0x461   :  { %1526 = vmatpush1.bf16.msra.mxu0 %v10109_v12  ;;  %1567 = vmatpush1.bf16.msra.mxu1 %v10112_v13 }
 0x462   :  { %1527 = vmatprep.subr.bf16.mxu0 %v10117_v14  ;;  %1568 = vmatprep.subr.bf16.mxu1 %v10120_v15 }
 0x465   :  { %1528 = vmatpush1.bf16.msra.mxu0 %v10125_v16  ;;  %1569 = vmatpush1.bf16.msra.mxu1 %v10128_v17 }
 0x466   :  { %1529 = vmatprep.subr.bf16.mxu0 %v10133_v18  ;;  %1570 = vmatprep.subr.bf16.mxu1 %v10136_v19 }
 0x469   :  { %1530 = vmatpush1.bf16.msra.mxu0 %v10141_v20  ;;  %1571 = vmatpush1.bf16.msra.mxu1 %v10144_v24 }
 0x46a   :  { %1644 = vmatprep.subr.bf16.mxu0 %v10015_v21  ;;  %1685 = vmatprep.subr.bf16.mxu1 %v10018_v22 }
 0x4ff   :  { %v1140_v32 = vpop.f32.mrb[8].mxu0  ;;  %v1193_v33 = vpop.f32.mrb[8].mxu1 }
 0x500   :  { %v1142_v36 = vpop.f32.mrb[9].mxu0  ;;  %v1195_v37 = vpop.f32.mrb[9].mxu1 }
 0x501   :  { %v1144_v40 = vpop.f32.mrb[10].mxu0  ;;  %v1197_v41 = vpop.f32.mrb[10].mxu1  ;;  %v10232_v23 = vadd.f32 %v1142_v36, %v933_v38 }
 0x502   :  { %v10206_v42 = vadd.f32 %v1144_v40, %v929_v34  ;;  %v10208_v43 = vadd.f32 %v1197_v41, %v937_v35  ;;  %v1146_v44 = vpop.f32.mrb[11].mxu0  ;;  %v1199_v45 = vpop.f32.mrb[11].mxu1 }
 0x503   :  { %v10210_v46 = vadd.f32 %v1146_v44, %v933_v38  ;;  %v10212_v50 = vadd.f32 %v1199_v45, %v941_v39 }
 0x507   :  { %v1150_v52 = vpop.f32.mrb[12].mxu0  ;;  %v1203_v53 = vpop.f32.mrb[12].mxu1 }
 0x508   :  { %v10214_v58 = vadd.f32 %v1150_v52, %v929_v34  ;;  %v10216_v59 = vadd.f32 %v1203_v53, %v937_v35  ;;  %v1152_v48 = vpop.f32.mrb[13].mxu0  ;;  %v1205_v55 = vpop.f32.mrb[13].mxu1  ;;  %v10230_v53 = vadd.f32 %v1140_v32, %v929_v34 }
 0x509   :  { %v10218_v0 = vadd.f32 %v1152_v48, %v933_v38  ;;  %v10220_v3 = vadd.f32 %v1205_v55, %v941_v39  ;;  %v1154_v25 = vpop.f32.mrb[14].mxu0  ;;  %v1207_v29 = vpop.f32.mrb[14].mxu1 }
 0x50a   :  { %12359 = vst [vmem:[#allocation67_spill] sm:$0xff] %v10216_v59  ;;  %v10222_v40 = vadd.f32 %v1154_v25, %v929_v34  ;;  %v10224_v41 = vadd.f32 %v1207_v29, %v937_v35  ;;  %v1156_v44 = vpop.f32.mrb[15].mxu0  ;;  %v1209_v45 = vpop.f32.mrb[15].mxu1  ;;  %v10239_v34 = vadd.f32 %v1193_v33, %v937_v35 }
 0x50b   :  { %12360 = vst [vmem:[#allocation68_spill] sm:$0xff] %v10220_v3  ;;  %v10226_v31 = vadd.f32 %v1156_v44, %v933_v38  ;;  %v10228_v52 = vadd.f32 %v1209_v45, %v941_v39  ;;  %v10236_v45 = vadd.f32 %v1195_v37, %v941_v39 }
 0x50c   :  { %12361 = vst [vmem:[#allocation69_spill] sm:$0xff] %v10222_v40  ;;  %12362 = vst [vmem:[#allocation70_spill] sm:$0xff] %v10224_v41 }
 0x50d   :  { %12363 = vst [vmem:[#allocation71_spill] sm:$0xff] %v10226_v31  ;;  %12364 = vst [vmem:[#allocation72_spill] sm:$0xff] %v10228_v52 }
 0x51f   :  { %v1438_v48 = vpop.f32.mrb[16].mxu0  ;;  %v1479_v28 = vpop.f32.mrb[16].mxu1 }
 0x520   :  { %v1486_v55 = vadd.f32 %v1438_v48, %v10230_v53  ;;  %v1440_v26 = vpop.f32.mrb[17].mxu0  ;;  %v1481_v30 = vpop.f32.mrb[17].mxu1  ;;  %v1488_v38 = vadd.f32 %v1479_v28, %v10239_v34 }
 0x521   :  { %v1487_v25 = vadd.f32 %v1440_v26, %v10232_v23  ;;  %v1442_v29 = vpop.f32.mrb[18].mxu0  ;;  %v1483_v27 = vpop.f32.mrb[18].mxu1  ;;  %v1489_v32 = vadd.f32 %v1481_v30, %v10236_v45 }
 0x522   :  { %v7442_v41 = vmul.f32 -1.442695, %v1486_v55  ;;  %v1443_v40 = vpop.f32.mrb[19].mxu0  ;;  %v1484_v44 = vpop.f32.mrb[19].mxu1  ;;  %v12365_v29 = vmov 0  }
 0x523   :  { %v7443_v31 = vmul.f32 -1.442695, %v1487_v25  ;;  %v7444_v36 = vmul.f32 -1.442695, %v1489_v32 }
 0x524   :  { %8412 = vpow2.f32 %v7442_v41 }
 0x525   :  { %8414 = vpow2.f32 %v7443_v31 }
 0x526   :  { %8416 = vpow2.f32 %v7444_v36 }
 0x527   :  { %8418 = vtanh.f32 %v1488_v38 }
 0x52e   :  { %v8413_v48 = vpop.eup %8412 }
 0x52f   :  { %v8415_v52 = vpop.eup %8414  ;;  %v1493_v26 = vadd.f32 1.0, %v8413_v48 }
 0x530   :  { %v1499_v27 = vadd.f32 1.0, %v8415_v52  ;;  %v8417_v40 = vpop.eup %8416 }
 0x531   :  { %8420 = vrcp.f32 %v1493_v26  ;;  %v8419_v41 = vpop.eup %8418  ;;  %v1506_v55 = vadd.f32 1.0, %v8417_v40 }
 0x532   :  { %8422 = vrcp.f32 %v1499_v27 }
 0x533   :  { %8424 = vrcp.f32 %v1506_v55 }
 0x53b   :  { %v8421_v37 = vpop.eup %8420 }
 0x53c   :  { %v8423_v39 = vpop.eup %8422  ;;  %v1510_v31 = vmul.f32 %v8421_v37, %v8419_v41 }
 0x53d   :  { %v1509_v30 = vmul.f32 0.0, %v8423_v39  ;;  %v8425_v28 = vpop.eup %8424 }
 0x53f   :  { %v10242_v33 = vadd.f32 %v1510_v31, %v1509_v30 }
 0x541   :  { %8426 = vtanh.f32 %v10242_v33 }
 0x54b   :  { %v8427_v35 = vpop.eup %8426 }
 0x54c   :  { %v10245_v25 = vmul.f32 %v8427_v35, %v8425_v28 }
 0x54e   :  { %v1514_v52 = vpack.c.bf16 %v10245_v25, %v10245_v25 }
 0x550   :  { %1548 = vmatmul.mubr.bf16.vlgmr.msra.gmra.mrb[20].mxu0 %v1514_v52  ;;  %1589 = vmatmul.mubr.bf16.vlgmr.msra.gmra.mrb[20].mxu1 %v1514_v52 }
 0x551   :  { %1645 = vmatpush1.bf16.msra.mxu0 %v10027_v47  ;;  %1686 = vmatpush1.bf16.msra.mxu1 %v10030_v49 }
 0x552   :  { %1646 = vmatprep.subr.bf16.mxu0 %v10033_v54  ;;  %1687 = vmatprep.subr.bf16.mxu1 %v10036_v57 }
 0x553   :  { %1676 = vmatprep.mubr.bf16.mxu0 %v12365_v29  ;;  %1717 = vmatprep.mubr.bf16.mxu1 %v12365_v29 }
 0x555   :  { %1647 = vmatpush1.bf16.msra.mxu0 %v10041_v60  ;;  %1688 = vmatpush1.bf16.msra.mxu1 %v10044_v61 }
 0x556   :  { %1648 = vmatprep.subr.bf16.mxu0 %v10049_v62  ;;  %1689 = vmatprep.subr.bf16.mxu1 %v10052_v63 }
 0x559   :  { %1649 = vmatpush1.bf16.msra.mxu0 %v10059_v1  ;;  %1690 = vmatpush1.bf16.msra.mxu1 %v10062_v2 }
 0x55a   :  { %1650 = vmatprep.subr.bf16.mxu0 %v10067_v4  ;;  %1691 = vmatprep.subr.bf16.mxu1 %v10070_v5 }
 0x55d   :  { %1651 = vmatpush1.bf16.msra.mxu0 %v10075_v56  ;;  %1692 = vmatpush1.bf16.msra.mxu1 %v10078_v51 }
 0x55e   :  { %1652 = vmatprep.subr.bf16.mxu0 %v10083_v6  ;;  %1693 = vmatprep.subr.bf16.mxu1 %v10086_v7 }
 0x561   :  { %1653 = vmatpush1.bf16.msra.mxu0 %v10093_v8  ;;  %1694 = vmatpush1.bf16.msra.mxu1 %v10096_v9 }
 0x562   :  { %1654 = vmatprep.subr.bf16.mxu0 %v10101_v10  ;;  %1695 = vmatprep.subr.bf16.mxu1 %v10104_v11 }
 0x565   :  { %1655 = vmatpush1.bf16.msra.mxu0 %v10109_v12  ;;  %1696 = vmatpush1.bf16.msra.mxu1 %v10112_v13 }
 0x566   :  { %1656 = vmatprep.subr.bf16.mxu0 %v10117_v14  ;;  %1697 = vmatprep.subr.bf16.mxu1 %v10120_v15 }
 0x569   :  { %1657 = vmatpush1.bf16.msra.mxu0 %v10125_v16  ;;  %1698 = vmatpush1.bf16.msra.mxu1 %v10128_v17 }
 0x56a   :  { %1658 = vmatprep.subr.bf16.mxu0 %v10133_v18  ;;  %1699 = vmatprep.subr.bf16.mxu1 %v10136_v19 }
 0x56d   :  { %1659 = vmatpush1.bf16.msra.mxu0 %v10141_v20  ;;  %1700 = vmatpush1.bf16.msra.mxu1 %v10144_v24 }
 0x56e   :  { %1773 = vmatprep.subr.bf16.mxu0 %v10015_v21  ;;  %1814 = vmatprep.subr.bf16.mxu1 %v10018_v22 }
 0x623   :  { %v1549_v44 = vpop.f32.mrb[20].mxu0  ;;  %v1590_v32 = vpop.f32.mrb[20].mxu1 }
 0x624   :  { %v1601_v36 = vrot.slane %v1549_v44, 6  ;;  %v1551_v38 = vpop.f32.mrb[21].mxu0  ;;  %v1592_v48 = vpop.f32.mrb[21].mxu1  ;;  %v1603_v52 = vrot.slane %v1590_v32, 6 }
 0x625   :  { %v1602_v26 = vrot.slane %v1551_v38, 6  ;;  %v1553_v27 = vpop.f32.mrb[22].mxu0  ;;  %v1594_v40 = vpop.f32.mrb[22].mxu1  ;;  %v1604_v28 = vrot.slane %v1592_v48, 6  ;;  %v1633_v48 = vrot.slane %v10242_v33, 6 }
 0x626   :  { %v1609_v41 = vadd.f32 %v1601_v36, %v10230_v53  ;;  %v1554_v37 = vpop.f32.mrb[23].mxu0  ;;  %v1595_v39 = vpop.f32.mrb[23].mxu1  ;;  %v1611_v59 = vadd.f32 %v1603_v52, %v10239_v34 }
 0x627   :  { %v1610_v31 = vadd.f32 %v1602_v26, %v10232_v23  ;;  %v1612_v35 = vadd.f32 %v1604_v28, %v10236_v45 }
 0x628   :  { %v7445_v55 = vmul.f32 -1.442695, %v1609_v41 }
 0x629   :  { %v7446_v30 = vmul.f32 -1.442695, %v1610_v31  ;;  %v7447_v44 = vmul.f32 -1.442695, %v1612_v35 }
 0x62a   :  { %8428 = vpow2.f32 %v7445_v55 }
 0x62b   :  { %8430 = vpow2.f32 %v7446_v30 }
 0x62c   :  { %8432 = vpow2.f32 %v7447_v44 }
 0x62d   :  { %8434 = vtanh.f32 %v1611_v59 }
 0x634   :  { %v8429_v38 = vpop.eup %8428 }
 0x635   :  { %v8431_v27 = vpop.eup %8430  ;;  %v1616_v40 = vadd.f32 1.0, %v8429_v38 }
 0x636   :  { %v1622_v36 = vadd.f32 1.0, %v8431_v27  ;;  %v8433_v26 = vpop.eup %8432 }
 0x637   :  { %8436 = vrcp.f32 %v1616_v40  ;;  %v8435_v41 = vpop.eup %8434  ;;  %v1629_v55 = vadd.f32 1.0, %v8433_v26 }
 0x638   :  { %8438 = vrcp.f32 %v1622_v36 }
 0x639   :  { %8440 = vrcp.f32 %v1629_v55 }
 0x641   :  { %v8437_v37 = vpop.eup %8436 }
 0x642   :  { %v8439_v39 = vpop.eup %8438  ;;  %v1636_v31 = vmul.f32 %v8437_v37, %v8435_v41 }
 0x643   :  { %v1635_v32 = vmul.f32 %v8439_v39, %v1633_v48  ;;  %v8441_v28 = vpop.eup %8440 }
 0x645   :  { %v10288_v30 = vadd.f32 %v1636_v31, %v1635_v32 }
 0x647   :  { %8442 = vtanh.f32 %v10288_v30 }
 0x651   :  { %v8443_v35 = vpop.eup %8442 }
 0x652   :  { %v10291_v59 = vmul.f32 %v8443_v35, %v8441_v28 }
 0x654   :  { %v1640_v52 = vpack.c.bf16 %v10291_v59, %v10291_v59 }
 0x656   :  { %v1642_v44 = vrot.slane %v1640_v52, 1 }
 0x658   :  { %1677 = vmatmul.mubr.bf16.vlgmr.msra.gmra.mrb[24].mxu0 %v1642_v44  ;;  %1718 = vmatmul.mubr.bf16.vlgmr.msra.gmra.mrb[24].mxu1 %v1642_v44 }
 0x659   :  { %1774 = vmatpush1.bf16.msra.mxu0 %v10027_v47  ;;  %1815 = vmatpush1.bf16.msra.mxu1 %v10030_v49 }
 0x65a   :  { %1775 = vmatprep.subr.bf16.mxu0 %v10033_v54  ;;  %1816 = vmatprep.subr.bf16.mxu1 %v10036_v57 }
 0x65b   :  { %1805 = vmatprep.mubr.bf16.mxu0 %v12365_v29  ;;  %1846 = vmatprep.mubr.bf16.mxu1 %v12365_v29 }
 0x65d   :  { %1776 = vmatpush1.bf16.msra.mxu0 %v10041_v60  ;;  %1817 = vmatpush1.bf16.msra.mxu1 %v10044_v61 }
 0x65e   :  { %1777 = vmatprep.subr.bf16.mxu0 %v10049_v62  ;;  %1818 = vmatprep.subr.bf16.mxu1 %v10052_v63 }
 0x661   :  { %1778 = vmatpush1.bf16.msra.mxu0 %v10059_v1  ;;  %1819 = vmatpush1.bf16.msra.mxu1 %v10062_v2 }
 0x662   :  { %1779 = vmatprep.subr.bf16.mxu0 %v10067_v4  ;;  %1820 = vmatprep.subr.bf16.mxu1 %v10070_v5 }
 0x665   :  { %1780 = vmatpush1.bf16.msra.mxu0 %v10075_v56  ;;  %1821 = vmatpush1.bf16.msra.mxu1 %v10078_v51 }
 0x666   :  { %1781 = vmatprep.subr.bf16.mxu0 %v10083_v6  ;;  %1822 = vmatprep.subr.bf16.mxu1 %v10086_v7 }
 0x669   :  { %1782 = vmatpush1.bf16.msra.mxu0 %v10093_v8  ;;  %1823 = vmatpush1.bf16.msra.mxu1 %v10096_v9 }
 0x66a   :  { %1783 = vmatprep.subr.bf16.mxu0 %v10101_v10  ;;  %1824 = vmatprep.subr.bf16.mxu1 %v10104_v11 }
 0x66d   :  { %1784 = vmatpush1.bf16.msra.mxu0 %v10109_v12  ;;  %1825 = vmatpush1.bf16.msra.mxu1 %v10112_v13 }
 0x66e   :  { %1785 = vmatprep.subr.bf16.mxu0 %v10117_v14  ;;  %1826 = vmatprep.subr.bf16.mxu1 %v10120_v15 }
 0x671   :  { %1786 = vmatpush1.bf16.msra.mxu0 %v10125_v16  ;;  %1827 = vmatpush1.bf16.msra.mxu1 %v10128_v17 }
 0x672   :  { %1787 = vmatprep.subr.bf16.mxu0 %v10133_v18  ;;  %1828 = vmatprep.subr.bf16.mxu1 %v10136_v19 }
 0x675   :  { %1788 = vmatpush1.bf16.msra.mxu0 %v10141_v20  ;;  %1829 = vmatpush1.bf16.msra.mxu1 %v10144_v24 }
 0x676   :  { %1902 = vmatprep.subr.bf16.mxu0 %v10015_v21  ;;  %1943 = vmatprep.subr.bf16.mxu1 %v10018_v22 }
 0x72b   :  { %v1678_v33 = vpop.f32.mrb[24].mxu0  ;;  %v1719_v38 = vpop.f32.mrb[24].mxu1 }
 0x72c   :  { %v1730_v27 = vrot.slane %v1678_v33, 4  ;;  %v1680_v40 = vpop.f32.mrb[25].mxu0  ;;  %v1721_v36 = vpop.f32.mrb[25].mxu1  ;;  %v1732_v44 = vrot.slane %v1719_v38, 4 }
 0x72d   :  { %v1731_v26 = vrot.slane %v1680_v40, 4  ;;  %v1682_v41 = vpop.f32.mrb[26].mxu0  ;;  %v1723_v37 = vpop.f32.mrb[26].mxu1  ;;  %v1733_v35 = vrot.slane %v1721_v36, 4  ;;  %v1762_v36 = vrot.slane %v10288_v30, 6 }
 0x72e   :  { %v1738_v48 = vadd.f32 %v1730_v27, %v10230_v53  ;;  %v1683_v39 = vpop.f32.mrb[27].mxu0  ;;  %v1724_v31 = vpop.f32.mrb[27].mxu1  ;;  %v1740_v3 = vadd.f32 %v1732_v44, %v10239_v34  ;;  %v3401_v44 = vsel %vm563_vm4, %v10245_v25, %v10291_v59 }
 0x72f   :  { %v1739_v55 = vadd.f32 %v1731_v26, %v10232_v23  ;;  %v1741_v52 = vadd.f32 %v1733_v35, %v10236_v45 }
 0x730   :  { %v7448_v32 = vmul.f32 -1.442695, %v1738_v48 }
 0x731   :  { %v7449_v28 = vmul.f32 -1.442695, %v1739_v55  ;;  %v7450_v33 = vmul.f32 -1.442695, %v1741_v52 }
 0x732   :  { %8444 = vpow2.f32 %v7448_v32 }
 0x733   :  { %8446 = vpow2.f32 %v7449_v28 }
 0x734   :  { %8448 = vpow2.f32 %v7450_v33 }
 0x735   :  { %8450 = vtanh.f32 %v1740_v3 }
 0x73c   :  { %v8445_v40 = vpop.eup %8444 }
 0x73d   :  { %v8447_v41 = vpop.eup %8446  ;;  %v1745_v37 = vadd.f32 1.0, %v8445_v40 }
 0x73e   :  { %v1751_v27 = vadd.f32 1.0, %v8447_v41  ;;  %v8449_v26 = vpop.eup %8448 }
 0x73f   :  { %8452 = vrcp.f32 %v1745_v37  ;;  %v8451_v48 = vpop.eup %8450  ;;  %v1758_v32 = vadd.f32 1.0, %v8449_v26 }
 0x740   :  { %8454 = vrcp.f32 %v1751_v27 }
 0x741   :  { %8456 = vrcp.f32 %v1758_v32 }
 0x749   :  { %v8453_v39 = vpop.eup %8452 }
 0x74a   :  { %v8455_v31 = vpop.eup %8454  ;;  %v1765_v55 = vmul.f32 %v8453_v39, %v8451_v48 }
 0x74b   :  { %v1764_v38 = vmul.f32 %v8455_v31, %v1762_v36  ;;  %v8457_v35 = vpop.eup %8456 }
 0x74d   :  { %v10334_v28 = vadd.f32 %v1765_v55, %v1764_v38 }
 0x74f   :  { %8458 = vtanh.f32 %v10334_v28 }
 0x759   :  { %v8459_v52 = vpop.eup %8458 }
 0x75a   :  { %v1768_v3 = vmul.f32 %v8459_v52, %v8457_v35 }
 0x75c   :  { %v1769_v33 = vpack.c.bf16 %v1768_v3, %v1768_v3  ;;  %v10341_v40 = vsel %vm511_vm2, %v3401_v44, %v1768_v3 }
 0x75e   :  { %v1771_v30 = vrot.slane %v1769_v33, 2 }
 0x760   :  { %1806 = vmatmul.mubr.bf16.vlgmr.msra.gmra.mrb[28].mxu0 %v1771_v30  ;;  %1847 = vmatmul.mubr.bf16.vlgmr.msra.gmra.mrb[28].mxu1 %v1771_v30 }
 0x761   :  { %1903 = vmatpush1.bf16.msra.mxu0 %v10027_v47  ;;  %1944 = vmatpush1.bf16.msra.mxu1 %v10030_v49 }
 0x762   :  { %1904 = vmatprep.subr.bf16.mxu0 %v10033_v54  ;;  %1945 = vmatprep.subr.bf16.mxu1 %v10036_v57 }
 0x763   :  { %1934 = vmatprep.mubr.bf16.mxu0 %v12365_v29  ;;  %1975 = vmatprep.mubr.bf16.mxu1 %v12365_v29 }
 0x765   :  { %1905 = vmatpush1.bf16.msra.mxu0 %v10041_v60  ;;  %1946 = vmatpush1.bf16.msra.mxu1 %v10044_v61 }
 0x766   :  { %1906 = vmatprep.subr.bf16.mxu0 %v10049_v62  ;;  %1947 = vmatprep.subr.bf16.mxu1 %v10052_v63 }
 0x769   :  { %1907 = vmatpush1.bf16.msra.mxu0 %v10059_v1  ;;  %1948 = vmatpush1.bf16.msra.mxu1 %v10062_v2 }
 0x76a   :  { %1908 = vmatprep.subr.bf16.mxu0 %v10067_v4  ;;  %1949 = vmatprep.subr.bf16.mxu1 %v10070_v5 }
 0x76d   :  { %1909 = vmatpush1.bf16.msra.mxu0 %v10075_v56  ;;  %1950 = vmatpush1.bf16.msra.mxu1 %v10078_v51 }
 0x76e   :  { %1910 = vmatprep.subr.bf16.mxu0 %v10083_v6  ;;  %1951 = vmatprep.subr.bf16.mxu1 %v10086_v7 }
 0x771   :  { %1911 = vmatpush1.bf16.msra.mxu0 %v10093_v8  ;;  %1952 = vmatpush1.bf16.msra.mxu1 %v10096_v9 }
 0x772   :  { %1912 = vmatprep.subr.bf16.mxu0 %v10101_v10  ;;  %1953 = vmatprep.subr.bf16.mxu1 %v10104_v11 }
 0x775   :  { %1913 = vmatpush1.bf16.msra.mxu0 %v10109_v12  ;;  %1954 = vmatpush1.bf16.msra.mxu1 %v10112_v13 }
 0x776   :  { %1914 = vmatprep.subr.bf16.mxu0 %v10117_v14  ;;  %1955 = vmatprep.subr.bf16.mxu1 %v10120_v15 }
 0x779   :  { %1915 = vmatpush1.bf16.msra.mxu0 %v10125_v16  ;;  %1956 = vmatpush1.bf16.msra.mxu1 %v10128_v17 }
 0x77a   :  { %1916 = vmatprep.subr.bf16.mxu0 %v10133_v18  ;;  %1957 = vmatprep.subr.bf16.mxu1 %v10136_v19 }
 0x77d   :  { %1917 = vmatpush1.bf16.msra.mxu0 %v10141_v20  ;;  %1958 = vmatpush1.bf16.msra.mxu1 %v10144_v24 }
 0x77e   :  { %2016 = vmatprep.subr.bf16.mxu0 %v10015_v21  ;;  %2057 = vmatprep.subr.bf16.mxu1 %v10018_v22 }
 0x833   :  { %v1807_v25 = vpop.f32.mrb[28].mxu0  ;;  %v1848_v59 = vpop.f32.mrb[28].mxu1 }
 0x834   :  { %v1859_v41 = vrot.slane %v1807_v25, 2  ;;  %v1809_v37 = vpop.f32.mrb[29].mxu0  ;;  %v1850_v27 = vpop.f32.mrb[29].mxu1  ;;  %v1861_v44 = vrot.slane %v1848_v59, 2 }
 0x835   :  { %v1860_v26 = vrot.slane %v1809_v37, 2  ;;  %v1811_v48 = vpop.f32.mrb[30].mxu0  ;;  %v1852_v39 = vpop.f32.mrb[30].mxu1  ;;  %v1862_v52 = vrot.slane %v1850_v27, 2  ;;  %v1891_v27 = vrot.slane %v10334_v28, 6 }
 0x836   :  { %v1867_v36 = vadd.f32 %v1859_v41, %v10230_v53  ;;  %v1812_v31 = vpop.f32.mrb[31].mxu0  ;;  %v1853_v55 = vpop.f32.mrb[31].mxu1  ;;  %v1869_v30 = vadd.f32 %v1861_v44, %v10239_v34 }
 0x837   :  { %v1868_v32 = vadd.f32 %v1860_v26, %v10232_v23  ;;  %v1870_v3 = vadd.f32 %v1862_v52, %v10236_v45 }
 0x838   :  { %v7451_v38 = vmul.f32 -1.442695, %v1867_v36 }
 0x839   :  { %v7452_v35 = vmul.f32 -1.442695, %v1868_v32  ;;  %v7453_v33 = vmul.f32 -1.442695, %v1870_v3 }
 0x83a   :  { %8460 = vpow2.f32 %v7451_v38 }
 0x83b   :  { %8462 = vpow2.f32 %v7452_v35 }
 0x83c   :  { %8464 = vpow2.f32 %v7453_v33 }
 0x83d   :  { %8466 = vtanh.f32 %v1869_v30 }
 0x844   :  { %v8461_v25 = vpop.eup %8460 }
 0x845   :  { %v8463_v37 = vpop.eup %8462  ;;  %v1874_v48 = vadd.f32 1.0, %v8461_v25 }
 0x846   :  { %v1880_v53 = vadd.f32 1.0, %v8463_v37  ;;  %v8465_v23 = vpop.eup %8464 }
 0x847   :  { %8468 = vrcp.f32 %v1874_v48  ;;  %v8467_v41 = vpop.eup %8466  ;;  %v1887_v45 = vadd.f32 1.0, %v8465_v23 }
 0x848   :  { %8470 = vrcp.f32 %v1880_v53 }
 0x849   :  { %8472 = vrcp.f32 %v1887_v45 }
 0x851   :  { %v8469_v26 = vpop.eup %8468 }
 0x852   :  { %v8471_v39 = vpop.eup %8470  ;;  %v1894_v36 = vmul.f32 %v8469_v26, %v8467_v41 }
 0x853   :  { %v1893_v59 = vmul.f32 %v8471_v39, %v1891_v27  ;;  %v8473_v34 = vpop.eup %8472 }
 0x855   :  { %v10382_v31 = vadd.f32 %v1894_v36, %v1893_v59 }
 0x857   :  { %8474 = vtanh.f32 %v10382_v31  ;;  %v2008_v26 = vrot.slane %v10382_v31, 6 }
 0x861   :  { %v8475_v55 = vpop.eup %8474 }
 0x862   :  { %v1897_v32 = vmul.f32 %v8475_v55, %v8473_v34 }
 0x864   :  { %v1898_v38 = vpack.c.bf16 %v1897_v32, %v1897_v32  ;;  %v10387_v35 = vsel %vm528_vm5, %v10341_v40, %v1897_v32 }
 0x866   :  { %v1900_v52 = vrot.slane %v1898_v38, 3  ;;  %v10436_v38 = vld [vmem:[%s12353_s23] ss:$16 sps:$4 sm:$0xff]  }
 0x868   :  { %1935 = vmatmul.mubr.bf16.vlgmr.msra.gmra.mrb[32].mxu0 %v1900_v52  ;;  %1976 = vmatmul.mubr.bf16.vlgmr.msra.gmra.mrb[32].mxu1 %v1900_v52  ;;  %v10440_v52 = vld [vmem:[%s12353_s23 + $0x8] ss:$16 sps:$4 sm:$0xff]  }
 0x869   :  { %2017 = vmatpush1.bf16.msra.mxu0 %v10027_v47  ;;  %2058 = vmatpush1.bf16.msra.mxu1 %v10030_v49 }
 0x86a   :  { %2018 = vmatprep.subr.bf16.mxu0 %v10033_v54  ;;  %2059 = vmatprep.subr.bf16.mxu1 %v10036_v57 }
 0x86b   :  { %2048 = vmatprep.mubr.bf16.mxu0 %v12365_v29  ;;  %2089 = vmatprep.mubr.bf16.mxu1 %v12365_v29 }
 0x86d   :  { %2019 = vmatpush1.bf16.msra.mxu0 %v10041_v60  ;;  %2060 = vmatpush1.bf16.msra.mxu1 %v10044_v61 }
 0x86e   :  { %2020 = vmatprep.subr.bf16.mxu0 %v10049_v62  ;;  %2061 = vmatprep.subr.bf16.mxu1 %v10052_v63 }
 0x871   :  { %2021 = vmatpush1.bf16.msra.mxu0 %v10059_v1  ;;  %2062 = vmatpush1.bf16.msra.mxu1 %v10062_v2 }
 0x872   :  { %2022 = vmatprep.subr.bf16.mxu0 %v10067_v4  ;;  %2063 = vmatprep.subr.bf16.mxu1 %v10070_v5 }
 0x875   :  { %2023 = vmatpush1.bf16.msra.mxu0 %v10075_v56  ;;  %2064 = vmatpush1.bf16.msra.mxu1 %v10078_v51 }
 0x876   :  { %2024 = vmatprep.subr.bf16.mxu0 %v10083_v6  ;;  %2065 = vmatprep.subr.bf16.mxu1 %v10086_v7 }
 0x879   :  { %2025 = vmatpush1.bf16.msra.mxu0 %v10093_v8  ;;  %2066 = vmatpush1.bf16.msra.mxu1 %v10096_v9 }
 0x87a   :  { %2026 = vmatprep.subr.bf16.mxu0 %v10101_v10  ;;  %2067 = vmatprep.subr.bf16.mxu1 %v10104_v11 }
 0x87d   :  { %2027 = vmatpush1.bf16.msra.mxu0 %v10109_v12  ;;  %2068 = vmatpush1.bf16.msra.mxu1 %v10112_v13 }
 0x87e   :  { %2028 = vmatprep.subr.bf16.mxu0 %v10117_v14  ;;  %2069 = vmatprep.subr.bf16.mxu1 %v10120_v15 }
 0x881   :  { %2029 = vmatpush1.bf16.msra.mxu0 %v10125_v16  ;;  %2070 = vmatpush1.bf16.msra.mxu1 %v10128_v17 }
 0x882   :  { %2030 = vmatprep.subr.bf16.mxu0 %v10133_v18  ;;  %2071 = vmatprep.subr.bf16.mxu1 %v10136_v19 }
 0x885   :  { %2031 = vmatpush1.bf16.msra.mxu0 %v10141_v20  ;;  %2072 = vmatpush1.bf16.msra.mxu1 %v10144_v24 }
 0x886   :  { %2145 = vmatprep.subr.bf16.mxu0 %v10015_v21  ;;  %2186 = vmatprep.subr.bf16.mxu1 %v10018_v22 }
 0x93b   :  { %v1936_v47 = vpop.f32.mrb[32].mxu0  ;;  %v1977_v49 = vpop.f32.mrb[32].mxu1 }
 0x93c   :  { %v1984_v54 = vadd.f32 %v1936_v47, %v10206_v42  ;;  %v1938_v57 = vpop.f32.mrb[33].mxu0  ;;  %v1979_v60 = vpop.f32.mrb[33].mxu1  ;;  %v1986_v22 = vadd.f32 %v1977_v49, %v10208_v43  ;;  %v10444_v47 = vld [vmem:[%s12353_s23 + $0x24] ss:$16 sps:$4 sm:$0xff]   ;;  %v10448_v49 = vld [vmem:[%s12353_s23 + $0x2c] ss:$16 sps:$4 sm:$0xff]  }
 0x93d   :  { %v1985_v61 = vadd.f32 %v1938_v57, %v10210_v46  ;;  %v1940_v62 = vpop.f32.mrb[34].mxu0  ;;  %v1981_v63 = vpop.f32.mrb[34].mxu1  ;;  %v1987_v21 = vadd.f32 %v1979_v60, %v10212_v50  ;;  %v10458_v57 = vld [vmem:[%s12353_s23 + $0x28] ss:$16 sps:$4 sm:$0xff]   ;;  %v10462_v60 = vld [vmem:[%s12353_s23 + $0x44] ss:$16 sps:$4 sm:$0xff]  }
 0x93e   :  { %v7454_v28 = vmul.f32 -1.442695, %v1984_v54  ;;  %v1941_v40 = vpop.f32.mrb[35].mxu0  ;;  %v1982_v3 = vpop.f32.mrb[35].mxu1  ;;  %v10454_v54 = vld [vmem:[%s12353_s23 + $0x20] ss:$16 sps:$4 sm:$0xff]  }
 0x93f   :  { %v7455_v44 = vmul.f32 -1.442695, %v1985_v61  ;;  %v7456_v33 = vmul.f32 -1.442695, %v1987_v21  ;;  %v10466_v61 = vld [vmem:[%s12353_s23 + $0x4c] ss:$16 sps:$4 sm:$0xff]  }
 0x940   :  { %8476 = vpow2.f32 %v7454_v28 }
 0x941   :  { %8478 = vpow2.f32 %v7455_v44 }
 0x942   :  { %8480 = vpow2.f32 %v7456_v33 }
 0x943   :  { %8482 = vtanh.f32 %v1986_v22 }
 0x94a   :  { %v8477_v30 = vpop.eup %8476 }
 0x94b   :  { %v8479_v25 = vpop.eup %8478  ;;  %v1991_v37 = vadd.f32 1.0, %v8477_v30 }
 0x94c   :  { %v1997_v48 = vadd.f32 1.0, %v8479_v25  ;;  %v8481_v53 = vpop.eup %8480 }
 0x94d   :  { %8484 = vrcp.f32 %v1991_v37  ;;  %v8483_v23 = vpop.eup %8482  ;;  %v2004_v36 = vadd.f32 1.0, %v8481_v53 }
 0x94e   :  { %8486 = vrcp.f32 %v1997_v48 }
 0x94f   :  { %8488 = vrcp.f32 %v2004_v36  ;;  %v10530_v36 = vld [vmem:[%s12353_s23 + $0x64] ss:$16 sps:$4 sm:$0xff]  }
 0x957   :  { %v8485_v41 = vpop.eup %8484 }
 0x958   :  { %v8487_v27 = vpop.eup %8486  ;;  %v2011_v39 = vmul.f32 %v8485_v41, %v8483_v23 }
 0x959   :  { %v2010_v45 = vmul.f32 %v8487_v27, %v2008_v26  ;;  %v8489_v34 = vpop.eup %8488  ;;  %v10522_v27 = vld [vmem:[%s12353_s23 + $0x40] ss:$16 sps:$4 sm:$0xff]  }
 0x95b   :  { %v10428_v59 = vadd.f32 %v2011_v39, %v2010_v45  ;;  %v10526_v39 = vld [vmem:[%s12353_s23 + $0x48] ss:$16 sps:$4 sm:$0xff]   ;;  %v10534_v45 = vld [vmem:[%s12353_s23 + $0x6c] ss:$16 sps:$4 sm:$0xff]  }
 0x95d   :  { %8490 = vtanh.f32 %v10428_v59  ;;  %v2134_v21 = vrot.slane %v10428_v59, 6  ;;  %v10538_v59 = vld [vmem:[%s12353_s23 + $0x60] ss:$16 sps:$4 sm:$0xff]  }
 0x967   :  { %v8491_v55 = vpop.eup %8490 }
 0x968   :  { %v10431_v32 = vmul.f32 %v8491_v55, %v8489_v34  ;;  %v10542_v34 = vld [vmem:[%s12353_s23 + $0x68] ss:$16 sps:$4 sm:$0xff]   ;;  %v10546_v55 = vld [vmem:[%s12353_s23 + $0x84] ss:$16 sps:$4 sm:$0xff]  }
 0x96a   :  { %v2015_v31 = vpack.c.bf16 %v10431_v32, %v10431_v32 }
 0x96c   :  { %2049 = vmatmul.mubr.bf16.vlgmr.msra.gmra.mrb[36].mxu0 %v2015_v31  ;;  %2090 = vmatmul.mubr.bf16.vlgmr.msra.gmra.mrb[36].mxu1 %v2015_v31  ;;  %v10550_v31 = vld [vmem:[%s12353_s23 + $0x8c] ss:$16 sps:$4 sm:$0xff]  }
 0x96d   :  { %2146 = vmatpush1.bf16.msra.mxu0 %v10436_v38  ;;  %2187 = vmatpush1.bf16.msra.mxu1 %v10440_v52 }
 0x96e   :  { %2147 = vmatprep.subr.bf16.mxu0 %v10444_v47  ;;  %2188 = vmatprep.subr.bf16.mxu1 %v10448_v49 }
 0x96f   :  { %2177 = vmatprep.mubr.bf16.mxu0 %v12365_v29  ;;  %2218 = vmatprep.mubr.bf16.mxu1 %v12365_v29 }
 0x971   :  { %2148 = vmatpush1.bf16.msra.mxu0 %v10454_v54  ;;  %2189 = vmatpush1.bf16.msra.mxu1 %v10458_v57 }
 0x972   :  { %2149 = vmatprep.subr.bf16.mxu0 %v10462_v60  ;;  %2190 = vmatprep.subr.bf16.mxu1 %v10466_v61 }
 0x975   :  { %2150 = vmatpush1.bf16.msra.mxu0 %v10059_v1  ;;  %2191 = vmatpush1.bf16.msra.mxu1 %v10062_v2  ;;  %v10492_v1 = vld [vmem:[%s12353_s23 + $0x4] ss:$16 sps:$4 sm:$0xff]   ;;  %v10496_v2 = vld [vmem:[%s12353_s23 + $0xc] ss:$16 sps:$4 sm:$0xff]  }
 0x976   :  { %2151 = vmatprep.subr.bf16.mxu0 %v10067_v4  ;;  %2192 = vmatprep.subr.bf16.mxu1 %v10070_v5 }
 0x979   :  { %2152 = vmatpush1.bf16.msra.mxu0 %v10075_v56  ;;  %2193 = vmatpush1.bf16.msra.mxu1 %v10078_v51 }
 0x97a   :  { %2153 = vmatprep.subr.bf16.mxu0 %v10083_v6  ;;  %2194 = vmatprep.subr.bf16.mxu1 %v10086_v7 }
 0x97d   :  { %2154 = vmatpush1.bf16.msra.mxu0 %v10093_v8  ;;  %2195 = vmatpush1.bf16.msra.mxu1 %v10096_v9 }
 0x97e   :  { %2155 = vmatprep.subr.bf16.mxu0 %v10101_v10  ;;  %2196 = vmatprep.subr.bf16.mxu1 %v10104_v11 }
 0x981   :  { %2156 = vmatpush1.bf16.msra.mxu0 %v10109_v12  ;;  %2197 = vmatpush1.bf16.msra.mxu1 %v10112_v13 }
 0x982   :  { %2157 = vmatprep.subr.bf16.mxu0 %v10117_v14  ;;  %2198 = vmatprep.subr.bf16.mxu1 %v10120_v15 }
 0x985   :  { %2158 = vmatpush1.bf16.msra.mxu0 %v10125_v16  ;;  %2199 = vmatpush1.bf16.msra.mxu1 %v10128_v17 }
 0x986   :  { %2159 = vmatprep.subr.bf16.mxu0 %v10133_v18  ;;  %2200 = vmatprep.subr.bf16.mxu1 %v10136_v19 }
 0x989   :  { %2160 = vmatpush1.bf16.msra.mxu0 %v10141_v20  ;;  %2201 = vmatpush1.bf16.msra.mxu1 %v10144_v24 }
 0x98a   :  { %2274 = vmatprep.subr.bf16.mxu0 %v10492_v1  ;;  %2315 = vmatprep.subr.bf16.mxu1 %v10496_v2 }
 0xa3f   :  { %v2050_v4 = vpop.f32.mrb[36].mxu0  ;;  %v2091_v5 = vpop.f32.mrb[36].mxu1 }
 0xa40   :  { %v2102_v56 = vrot.slane %v2050_v4, 6  ;;  %v2052_v51 = vpop.f32.mrb[37].mxu0  ;;  %v2093_v6 = vpop.f32.mrb[37].mxu1  ;;  %v2104_v18 = vrot.slane %v2091_v5, 6  ;;  %v10554_v4 = vld [vmem:[%s12353_s23 + $0x80] ss:$16 sps:$4 sm:$0xff]  }
 0xa41   :  { %v2103_v7 = vrot.slane %v2052_v51, 6  ;;  %v2054_v8 = vpop.f32.mrb[38].mxu0  ;;  %v2095_v9 = vpop.f32.mrb[38].mxu1  ;;  %v2105_v16 = vrot.slane %v2093_v6, 6  ;;  %v10558_v5 = vld [vmem:[%s12353_s23 + $0x88] ss:$16 sps:$4 sm:$0xff]  }
 0xa42   :  { %v2110_v10 = vadd.f32 %v2102_v56, %v10206_v42  ;;  %v2055_v11 = vpop.f32.mrb[39].mxu0  ;;  %v2096_v12 = vpop.f32.mrb[39].mxu1  ;;  %v2112_v20 = vadd.f32 %v2104_v18, %v10208_v43  ;;  %v10562_v56 = vld [vmem:[%s12353_s23 + $0xa4] ss:$16 sps:$4 sm:$0xff]   ;;  %v10566_v51 = vld [vmem:[%s12353_s23 + $0xac] ss:$16 sps:$4 sm:$0xff]  }
 0xa43   :  { %v2111_v13 = vadd.f32 %v2103_v7, %v10210_v46  ;;  %v2113_v17 = vadd.f32 %v2105_v16, %v10212_v50  ;;  %v10570_v6 = vld [vmem:[%s12353_s23 + $0xa0] ss:$16 sps:$4 sm:$0xff]   ;;  %v10574_v7 = vld [vmem:[%s12353_s23 + $0xa8] ss:$16 sps:$4 sm:$0xff]   ;;  %v10578_v8 = vld [vmem:[%s12353_s23 + $0xc4] ss:$16 sps:$4 sm:$0xff]  }
 0xa44   :  { %v7457_v14 = vmul.f32 -1.442695, %v2110_v10  ;;  %v10582_v9 = vld [vmem:[%s12353_s23 + $0xcc] ss:$16 sps:$4 sm:$0xff]   ;;  %v10586_v10 = vld [vmem:[%s12353_s23 + $0xc0] ss:$16 sps:$4 sm:$0xff]  }
 0xa45   :  { %v7458_v15 = vmul.f32 -1.442695, %v2111_v13  ;;  %v7459_v19 = vmul.f32 -1.442695, %v2113_v17  ;;  %v10590_v11 = vld [vmem:[%s12353_s23 + $0xc8] ss:$16 sps:$4 sm:$0xff]  }
 0xa46   :  { %8492 = vpow2.f32 %v7457_v14  ;;  %v10594_v12 = vld [vmem:[%s12353_s23 + $0xe4] ss:$16 sps:$4 sm:$0xff]   ;;  %v10598_v13 = vld [vmem:[%s12353_s23 + $0xec] ss:$16 sps:$4 sm:$0xff]   ;;  %v10602_v14 = vld [vmem:[%s12353_s23 + $0xe0] ss:$16 sps:$4 sm:$0xff]  }
 0xa47   :  { %8494 = vpow2.f32 %v7458_v15  ;;  %v10606_v15 = vld [vmem:[%s12353_s23 + $0xe8] ss:$16 sps:$4 sm:$0xff]  }
 0xa48   :  { %8496 = vpow2.f32 %v7459_v19 }
 0xa49   :  { %8498 = vtanh.f32 %v2112_v20 }
 0xa50   :  { %v8493_v24 = vpop.eup %8492 }
 0xa51   :  { %v8495_v62 = vpop.eup %8494  ;;  %v2117_v63 = vadd.f32 1.0, %v8493_v24 }
 0xa52   :  { %v2123_v28 = vadd.f32 1.0, %v8495_v62  ;;  %v8497_v40 = vpop.eup %8496 }
 0xa53   :  { %8500 = vrcp.f32 %v2117_v63  ;;  %v8499_v3 = vpop.eup %8498  ;;  %v2130_v30 = vadd.f32 1.0, %v8497_v40 }
 0xa54   :  { %8502 = vrcp.f32 %v2123_v28 }
 0xa55   :  { %8504 = vrcp.f32 %v2130_v30 }
 0xa5d   :  { %v8501_v44 = vpop.eup %8500 }
 0xa5e   :  { %v8503_v33 = vpop.eup %8502  ;;  %v2137_v22 = vmul.f32 %v8501_v44, %v8499_v3 }
 0xa5f   :  { %v2136_v25 = vmul.f32 %v8503_v33, %v2134_v21  ;;  %v8505_v48 = vpop.eup %8504 }
 0xa61   :  { %v10504_v37 = vadd.f32 %v2137_v22, %v2136_v25 }
 0xa63   :  { %8506 = vtanh.f32 %v10504_v37 }
 0xa6d   :  { %v8507_v53 = vpop.eup %8506 }
 0xa6e   :  { %v10507_v23 = vmul.f32 %v8507_v53, %v8505_v48 }
 0xa70   :  { %v2141_v41 = vpack.c.bf16 %v10507_v23, %v10507_v23 }
 0xa72   :  { %v2143_v26 = vrot.slane %v2141_v41, 1 }
 0xa74   :  { %2178 = vmatmul.mubr.bf16.vlgmr.msra.gmra.mrb[40].mxu0 %v2143_v26  ;;  %2219 = vmatmul.mubr.bf16.vlgmr.msra.gmra.mrb[40].mxu1 %v2143_v26 }
 0xa75   :  { %2275 = vmatpush1.bf16.msra.mxu0 %v10436_v38  ;;  %2316 = vmatpush1.bf16.msra.mxu1 %v10440_v52 }
 0xa76   :  { %2276 = vmatprep.subr.bf16.mxu0 %v10444_v47  ;;  %2317 = vmatprep.subr.bf16.mxu1 %v10448_v49 }
 0xa77   :  { %2306 = vmatprep.mubr.bf16.mxu0 %v12365_v29  ;;  %2347 = vmatprep.mubr.bf16.mxu1 %v12365_v29 }
 0xa79   :  { %2277 = vmatpush1.bf16.msra.mxu0 %v10454_v54  ;;  %2318 = vmatpush1.bf16.msra.mxu1 %v10458_v57 }
 0xa7a   :  { %2278 = vmatprep.subr.bf16.mxu0 %v10462_v60  ;;  %2319 = vmatprep.subr.bf16.mxu1 %v10466_v61 }
 0xa7d   :  { %2279 = vmatpush1.bf16.msra.mxu0 %v10522_v27  ;;  %2320 = vmatpush1.bf16.msra.mxu1 %v10526_v39 }
 0xa7e   :  { %2280 = vmatprep.subr.bf16.mxu0 %v10530_v36  ;;  %2321 = vmatprep.subr.bf16.mxu1 %v10534_v45 }
 0xa81   :  { %2281 = vmatpush1.bf16.msra.mxu0 %v10538_v59  ;;  %2322 = vmatpush1.bf16.msra.mxu1 %v10542_v34 }
 0xa82   :  { %2282 = vmatprep.subr.bf16.mxu0 %v10546_v55  ;;  %2323 = vmatprep.subr.bf16.mxu1 %v10550_v31 }
 0xa85   :  { %2283 = vmatpush1.bf16.msra.mxu0 %v10554_v4  ;;  %2324 = vmatpush1.bf16.msra.mxu1 %v10558_v5 }
 0xa86   :  { %2284 = vmatprep.subr.bf16.mxu0 %v10562_v56  ;;  %2325 = vmatprep.subr.bf16.mxu1 %v10566_v51 }
 0xa89   :  { %2285 = vmatpush1.bf16.msra.mxu0 %v10570_v6  ;;  %2326 = vmatpush1.bf16.msra.mxu1 %v10574_v7 }
 0xa8a   :  { %2286 = vmatprep.subr.bf16.mxu0 %v10578_v8  ;;  %2327 = vmatprep.subr.bf16.mxu1 %v10582_v9 }
 0xa8d   :  { %2287 = vmatpush1.bf16.msra.mxu0 %v10586_v10  ;;  %2328 = vmatpush1.bf16.msra.mxu1 %v10590_v11 }
 0xa8e   :  { %2288 = vmatprep.subr.bf16.mxu0 %v10594_v12  ;;  %2329 = vmatprep.subr.bf16.mxu1 %v10598_v13 }
 0xa91   :  { %2289 = vmatpush1.bf16.msra.mxu0 %v10602_v14  ;;  %2330 = vmatpush1.bf16.msra.mxu1 %v10606_v15 }
 0xa92   :  { %2403 = vmatprep.subr.bf16.mxu0 %v10492_v1  ;;  %2444 = vmatprep.subr.bf16.mxu1 %v10496_v2 }
 0xb47   :  { %v2179_v16 = vpop.f32.mrb[40].mxu0  ;;  %v2220_v17 = vpop.f32.mrb[40].mxu1 }
 0xb48   :  { %v2231_v18 = vrot.slane %v2179_v16, 4  ;;  %v2181_v19 = vpop.f32.mrb[41].mxu0  ;;  %v2222_v20 = vpop.f32.mrb[41].mxu1  ;;  %v2233_v25 = vrot.slane %v2220_v17, 4 }
 0xb49   :  { %v2232_v24 = vrot.slane %v2181_v19, 4  ;;  %v2183_v62 = vpop.f32.mrb[42].mxu0  ;;  %v2224_v63 = vpop.f32.mrb[42].mxu1  ;;  %v2234_v22 = vrot.slane %v2222_v20, 4  ;;  %v2263_v20 = vrot.slane %v10504_v37, 6 }
 0xb4a   :  { %v2239_v28 = vadd.f32 %v2231_v18, %v10206_v42  ;;  %v2184_v40 = vpop.f32.mrb[43].mxu0  ;;  %v2225_v3 = vpop.f32.mrb[43].mxu1  ;;  %v2241_v53 = vadd.f32 %v2233_v25, %v10208_v43 }
 0xb4b   :  { %v2240_v44 = vadd.f32 %v2232_v24, %v10210_v46  ;;  %v2242_v30 = vadd.f32 %v2234_v22, %v10212_v50  ;;  %v3404_v22 = vsel %vm563_vm4, %v10431_v32, %v10507_v23 }
 0xb4c   :  { %v7460_v21 = vmul.f32 -1.442695, %v2239_v28 }
 0xb4d   :  { %v7461_v33 = vmul.f32 -1.442695, %v2240_v44  ;;  %v7462_v48 = vmul.f32 -1.442695, %v2242_v30 }
 0xb4e   :  { %8508 = vpow2.f32 %v7460_v21 }
 0xb4f   :  { %8510 = vpow2.f32 %v7461_v33 }
 0xb50   :  { %8512 = vpow2.f32 %v7462_v48 }
 0xb51   :  { %8514 = vtanh.f32 %v2241_v53 }
 0xb58   :  { %v8509_v41 = vpop.eup %8508 }
 0xb59   :  { %v8511_v26 = vpop.eup %8510  ;;  %v2246_v16 = vadd.f32 1.0, %v8509_v41 }
 0xb5a   :  { %v2252_v18 = vadd.f32 1.0, %v8511_v26  ;;  %v8513_v19 = vpop.eup %8512 }
 0xb5b   :  { %8516 = vrcp.f32 %v2246_v16  ;;  %v8515_v24 = vpop.eup %8514  ;;  %v2259_v40 = vadd.f32 1.0, %v8513_v19 }
 0xb5c   :  { %8518 = vrcp.f32 %v2252_v18 }
 0xb5d   :  { %8520 = vrcp.f32 %v2259_v40 }
 0xb65   :  { %v8517_v62 = vpop.eup %8516 }
 0xb66   :  { %v8519_v63 = vpop.eup %8518  ;;  %v2266_v28 = vmul.f32 %v8517_v62, %v8515_v24 }
 0xb67   :  { %v2265_v17 = vmul.f32 %v8519_v63, %v2263_v20  ;;  %v8521_v44 = vpop.eup %8520 }
 0xb69   :  { %v10616_v3 = vadd.f32 %v2266_v28, %v2265_v17 }
 0xb6b   :  { %8522 = vtanh.f32 %v10616_v3 }
 0xb75   :  { %v8523_v21 = vpop.eup %8522 }
 0xb76   :  { %v2269_v33 = vmul.f32 %v8523_v21, %v8521_v44 }
 0xb78   :  { %v2270_v30 = vpack.c.bf16 %v2269_v33, %v2269_v33  ;;  %v10623_v25 = vsel %vm511_vm2, %v3404_v22, %v2269_v33 }
 0xb7a   :  { %v2272_v37 = vrot.slane %v2270_v30, 2 }
 0xb7c   :  { %2307 = vmatmul.mubr.bf16.vlgmr.msra.gmra.mrb[44].mxu0 %v2272_v37  ;;  %2348 = vmatmul.mubr.bf16.vlgmr.msra.gmra.mrb[44].mxu1 %v2272_v37 }
 0xb7d   :  { %2404 = vmatpush1.bf16.msra.mxu0 %v10436_v38  ;;  %2445 = vmatpush1.bf16.msra.mxu1 %v10440_v52 }
 0xb7e   :  { %2405 = vmatprep.subr.bf16.mxu0 %v10444_v47  ;;  %2446 = vmatprep.subr.bf16.mxu1 %v10448_v49 }
 0xb7f   :  { %2435 = vmatprep.mubr.bf16.mxu0 %v12365_v29  ;;  %2476 = vmatprep.mubr.bf16.mxu1 %v12365_v29 }
 0xb81   :  { %2406 = vmatpush1.bf16.msra.mxu0 %v10454_v54  ;;  %2447 = vmatpush1.bf16.msra.mxu1 %v10458_v57 }
 0xb82   :  { %2407 = vmatprep.subr.bf16.mxu0 %v10462_v60  ;;  %2448 = vmatprep.subr.bf16.mxu1 %v10466_v61 }
 0xb85   :  { %2408 = vmatpush1.bf16.msra.mxu0 %v10522_v27  ;;  %2449 = vmatpush1.bf16.msra.mxu1 %v10526_v39 }
 0xb86   :  { %2409 = vmatprep.subr.bf16.mxu0 %v10530_v36  ;;  %2450 = vmatprep.subr.bf16.mxu1 %v10534_v45 }
 0xb89   :  { %2410 = vmatpush1.bf16.msra.mxu0 %v10538_v59  ;;  %2451 = vmatpush1.bf16.msra.mxu1 %v10542_v34 }
 0xb8a   :  { %2411 = vmatprep.subr.bf16.mxu0 %v10546_v55  ;;  %2452 = vmatprep.subr.bf16.mxu1 %v10550_v31 }
 0xb8d   :  { %2412 = vmatpush1.bf16.msra.mxu0 %v10554_v4  ;;  %2453 = vmatpush1.bf16.msra.mxu1 %v10558_v5 }
 0xb8e   :  { %2413 = vmatprep.subr.bf16.mxu0 %v10562_v56  ;;  %2454 = vmatprep.subr.bf16.mxu1 %v10566_v51 }
 0xb91   :  { %2414 = vmatpush1.bf16.msra.mxu0 %v10570_v6  ;;  %2455 = vmatpush1.bf16.msra.mxu1 %v10574_v7 }
 0xb92   :  { %2415 = vmatprep.subr.bf16.mxu0 %v10578_v8  ;;  %2456 = vmatprep.subr.bf16.mxu1 %v10582_v9 }
 0xb95   :  { %2416 = vmatpush1.bf16.msra.mxu0 %v10586_v10  ;;  %2457 = vmatpush1.bf16.msra.mxu1 %v10590_v11 }
 0xb96   :  { %2417 = vmatprep.subr.bf16.mxu0 %v10594_v12  ;;  %2458 = vmatprep.subr.bf16.mxu1 %v10598_v13 }
 0xb99   :  { %2418 = vmatpush1.bf16.msra.mxu0 %v10602_v14  ;;  %2459 = vmatpush1.bf16.msra.mxu1 %v10606_v15 }
 0xb9a   :  { %2517 = vmatprep.subr.bf16.mxu0 %v10492_v1  ;;  %2558 = vmatprep.subr.bf16.mxu1 %v10496_v2 }
 0xc4f   :  { %v2308_v32 = vpop.f32.mrb[44].mxu0  ;;  %v2349_v23 = vpop.f32.mrb[44].mxu1 }
 0xc50   :  { %v2360_v48 = vrot.slane %v2308_v32, 2  ;;  %v2310_v53 = vpop.f32.mrb[45].mxu0  ;;  %v2351_v41 = vpop.f32.mrb[45].mxu1  ;;  %v2362_v44 = vrot.slane %v2349_v23, 2 }
 0xc51   :  { %v2361_v26 = vrot.slane %v2310_v53, 2  ;;  %v2312_v16 = vpop.f32.mrb[46].mxu0  ;;  %v2353_v18 = vpop.f32.mrb[46].mxu1  ;;  %v2363_v40 = vrot.slane %v2351_v41, 2  ;;  %v2392_v53 = vrot.slane %v10616_v3, 6 }
 0xc52   :  { %v2368_v19 = vadd.f32 %v2360_v48, %v10206_v42  ;;  %v2313_v24 = vpop.f32.mrb[47].mxu0  ;;  %v2354_v62 = vpop.f32.mrb[47].mxu1  ;;  %v2370_v33 = vadd.f32 %v2362_v44, %v10208_v43 }
 0xc53   :  { %v2369_v20 = vadd.f32 %v2361_v26, %v10210_v46  ;;  %v2371_v17 = vadd.f32 %v2363_v40, %v10212_v50 }
 0xc54   :  { %v7463_v63 = vmul.f32 -1.442695, %v2368_v19 }
 0xc55   :  { %v7464_v28 = vmul.f32 -1.442695, %v2369_v20  ;;  %v7465_v21 = vmul.f32 -1.442695, %v2371_v17 }
 0xc56   :  { %8524 = vpow2.f32 %v7463_v63 }
 0xc57   :  { %8526 = vpow2.f32 %v7464_v28 }
 0xc58   :  { %8528 = vpow2.f32 %v7465_v21 }
 0xc59   :  { %8530 = vtanh.f32 %v2370_v33 }
 0xc60   :  { %v8525_v22 = vpop.eup %8524 }
 0xc61   :  { %v8527_v30 = vpop.eup %8526  ;;  %v2375_v37 = vadd.f32 1.0, %v8525_v22 }
 0xc62   :  { %v2381_v42 = vadd.f32 1.0, %v8527_v30  ;;  %v8529_v46 = vpop.eup %8528 }
 0xc63   :  { %8532 = vrcp.f32 %v2375_v37  ;;  %v8531_v32 = vpop.eup %8530  ;;  %v2388_v50 = vadd.f32 1.0, %v8529_v46 }
 0xc64   :  { %8534 = vrcp.f32 %v2381_v42  ;;  %v12366_v42 = vld [vmem:[#allocation68_spill] sm:$0xff] }
 0xc65   :  { %8536 = vrcp.f32 %v2388_v50 }
 0xc6d   :  { %v8533_v48 = vpop.eup %8532 }
 0xc6e   :  { %v8535_v41 = vpop.eup %8534  ;;  %v2395_v26 = vmul.f32 %v8533_v48, %v8531_v32  ;;  %v12367_v48 = vld [vmem:[#allocation67_spill] sm:$0xff] }
 0xc6f   :  { %v2394_v23 = vmul.f32 %v8535_v41, %v2392_v53  ;;  %v8537_v43 = vpop.eup %8536 }
 0xc71   :  { %v10664_v16 = vadd.f32 %v2395_v26, %v2394_v23 }
 0xc73   :  { %8538 = vtanh.f32 %v10664_v16 }
 0xc7d   :  { %v8539_v18 = vpop.eup %8538 }
 0xc7e   :  { %v2398_v19 = vmul.f32 %v8539_v18, %v8537_v43 }
 0xc80   :  { %v2399_v24 = vpack.c.bf16 %v2398_v19, %v2398_v19  ;;  %v3406_v62 = vsel %vm528_vm5, %v10623_v25, %v2398_v19 }
 0xc81   :  { %v10670_v20 = vpack.c.bf16 %v3406_v62, %v10387_v35 }
 0xc82   :  { %v2401_v3 = vrot.slane %v2399_v24, 3  ;;  %v2509_v24 = vrot.slane %v10664_v16, 6 }
 0xc84   :  { %2436 = vmatmul.mubr.bf16.vlgmr.msra.gmra.mrb[48].mxu0 %v2401_v3  ;;  %2477 = vmatmul.mubr.bf16.vlgmr.msra.gmra.mrb[48].mxu1 %v2401_v3 }
 0xc85   :  { %2518 = vmatpush1.bf16.msra.mxu0 %v10436_v38  ;;  %2559 = vmatpush1.bf16.msra.mxu1 %v10440_v52 }
 0xc86   :  { %2519 = vmatprep.subr.bf16.mxu0 %v10444_v47  ;;  %2560 = vmatprep.subr.bf16.mxu1 %v10448_v49 }
 0xc87   :  { %2549 = vmatprep.mubr.bf16.mxu0 %v12365_v29  ;;  %2590 = vmatprep.mubr.bf16.mxu1 %v12365_v29 }
 0xc89   :  { %2520 = vmatpush1.bf16.msra.mxu0 %v10454_v54  ;;  %2561 = vmatpush1.bf16.msra.mxu1 %v10458_v57 }
 0xc8a   :  { %2521 = vmatprep.subr.bf16.mxu0 %v10462_v60  ;;  %2562 = vmatprep.subr.bf16.mxu1 %v10466_v61 }
 0xc8d   :  { %2522 = vmatpush1.bf16.msra.mxu0 %v10522_v27  ;;  %2563 = vmatpush1.bf16.msra.mxu1 %v10526_v39 }
 0xc8e   :  { %2523 = vmatprep.subr.bf16.mxu0 %v10530_v36  ;;  %2564 = vmatprep.subr.bf16.mxu1 %v10534_v45 }
 0xc91   :  { %2524 = vmatpush1.bf16.msra.mxu0 %v10538_v59  ;;  %2565 = vmatpush1.bf16.msra.mxu1 %v10542_v34 }
 0xc92   :  { %2525 = vmatprep.subr.bf16.mxu0 %v10546_v55  ;;  %2566 = vmatprep.subr.bf16.mxu1 %v10550_v31 }
 0xc95   :  { %2526 = vmatpush1.bf16.msra.mxu0 %v10554_v4  ;;  %2567 = vmatpush1.bf16.msra.mxu1 %v10558_v5 }
 0xc96   :  { %2527 = vmatprep.subr.bf16.mxu0 %v10562_v56  ;;  %2568 = vmatprep.subr.bf16.mxu1 %v10566_v51 }
 0xc99   :  { %2528 = vmatpush1.bf16.msra.mxu0 %v10570_v6  ;;  %2569 = vmatpush1.bf16.msra.mxu1 %v10574_v7 }
 0xc9a   :  { %2529 = vmatprep.subr.bf16.mxu0 %v10578_v8  ;;  %2570 = vmatprep.subr.bf16.mxu1 %v10582_v9 }
 0xc9d   :  { %2530 = vmatpush1.bf16.msra.mxu0 %v10586_v10  ;;  %2571 = vmatpush1.bf16.msra.mxu1 %v10590_v11 }
 0xc9e   :  { %2531 = vmatprep.subr.bf16.mxu0 %v10594_v12  ;;  %2572 = vmatprep.subr.bf16.mxu1 %v10598_v13 }
 0xca1   :  { %2532 = vmatpush1.bf16.msra.mxu0 %v10602_v14  ;;  %2573 = vmatpush1.bf16.msra.mxu1 %v10606_v15 }
 0xca2   :  { %2646 = vmatprep.subr.bf16.mxu0 %v10492_v1  ;;  %2687 = vmatprep.subr.bf16.mxu1 %v10496_v2 }
 0xd57   :  { %v2437_v35 = vpop.f32.mrb[48].mxu0  ;;  %v2478_v25 = vpop.f32.mrb[48].mxu1 }
 0xd58   :  { %v2485_v63 = vadd.f32 %v2437_v35, %v10214_v58  ;;  %v2439_v28 = vpop.f32.mrb[49].mxu0  ;;  %v2480_v40 = vpop.f32.mrb[49].mxu1  ;;  %v2487_v53 = vadd.f32 %v2478_v25, %v12367_v48 }
 0xd59   :  { %v2486_v17 = vadd.f32 %v2439_v28, %v10218_v0  ;;  %v2441_v44 = vpop.f32.mrb[50].mxu0  ;;  %v2482_v21 = vpop.f32.mrb[50].mxu1  ;;  %v2488_v46 = vadd.f32 %v2480_v40, %v12366_v42 }
 0xd5a   :  { %v7466_v33 = vmul.f32 -1.442695, %v2485_v63  ;;  %v2442_v22 = vpop.f32.mrb[51].mxu0  ;;  %v2483_v30 = vpop.f32.mrb[51].mxu1 }
 0xd5b   :  { %v7467_v37 = vmul.f32 -1.442695, %v2486_v17  ;;  %v7468_v32 = vmul.f32 -1.442695, %v2488_v46 }
 0xd5c   :  { %8540 = vpow2.f32 %v7466_v33 }
 0xd5d   :  { %8542 = vpow2.f32 %v7467_v37 }
 0xd5e   :  { %8544 = vpow2.f32 %v7468_v32 }
 0xd5f   :  { %8546 = vtanh.f32 %v2487_v53 }
 0xd66   :  { %v8541_v41 = vpop.eup %8540 }
 0xd67   :  { %v8543_v26 = vpop.eup %8542  ;;  %v2492_v50 = vadd.f32 1.0, %v8541_v41 }
 0xd68   :  { %v2498_v23 = vadd.f32 1.0, %v8543_v26  ;;  %v8545_v43 = vpop.eup %8544 }
 0xd69   :  { %8548 = vrcp.f32 %v2492_v50  ;;  %v8547_v18 = vpop.eup %8546  ;;  %v2505_v35 = vadd.f32 1.0, %v8545_v43 }
 0xd6a   :  { %8550 = vrcp.f32 %v2498_v23 }
 0xd6b   :  { %8552 = vrcp.f32 %v2505_v35 }
 0xd73   :  { %v8549_v19 = vpop.eup %8548 }
 0xd74   :  { %v8551_v62 = vpop.eup %8550  ;;  %v2512_v3 = vmul.f32 %v8549_v19, %v8547_v18 }
 0xd75   :  { %v2511_v63 = vmul.f32 %v8551_v62, %v2509_v24  ;;  %v8553_v25 = vpop.eup %8552 }
 0xd77   :  { %v10711_v28 = vadd.f32 %v2512_v3, %v2511_v63 }
 0xd79   :  { %8554 = vtanh.f32 %v10711_v28 }
 0xd83   :  { %v8555_v40 = vpop.eup %8554 }
 0xd84   :  { %v10714_v17 = vmul.f32 %v8555_v40, %v8553_v25 }
 0xd86   :  { %v2516_v44 = vpack.c.bf16 %v10714_v17, %v10714_v17 }
 0xd88   :  { %2550 = vmatmul.mubr.bf16.vlgmr.msra.gmra.mrb[52].mxu0 %v2516_v44  ;;  %2591 = vmatmul.mubr.bf16.vlgmr.msra.gmra.mrb[52].mxu1 %v2516_v44 }
 0xd89   :  { %2647 = vmatpush1.bf16.msra.mxu0 %v10436_v38  ;;  %2688 = vmatpush1.bf16.msra.mxu1 %v10440_v52 }
 0xd8a   :  { %2648 = vmatprep.subr.bf16.mxu0 %v10444_v47  ;;  %2689 = vmatprep.subr.bf16.mxu1 %v10448_v49 }
 0xd8b   :  { %2678 = vmatprep.mubr.bf16.mxu0 %v12365_v29  ;;  %2719 = vmatprep.mubr.bf16.mxu1 %v12365_v29 }
 0xd8d   :  { %2649 = vmatpush1.bf16.msra.mxu0 %v10454_v54  ;;  %2690 = vmatpush1.bf16.msra.mxu1 %v10458_v57 }
 0xd8e   :  { %2650 = vmatprep.subr.bf16.mxu0 %v10462_v60  ;;  %2691 = vmatprep.subr.bf16.mxu1 %v10466_v61 }
 0xd91   :  { %2651 = vmatpush1.bf16.msra.mxu0 %v10522_v27  ;;  %2692 = vmatpush1.bf16.msra.mxu1 %v10526_v39 }
 0xd92   :  { %2652 = vmatprep.subr.bf16.mxu0 %v10530_v36  ;;  %2693 = vmatprep.subr.bf16.mxu1 %v10534_v45 }
 0xd95   :  { %2653 = vmatpush1.bf16.msra.mxu0 %v10538_v59  ;;  %2694 = vmatpush1.bf16.msra.mxu1 %v10542_v34 }
 0xd96   :  { %2654 = vmatprep.subr.bf16.mxu0 %v10546_v55  ;;  %2695 = vmatprep.subr.bf16.mxu1 %v10550_v31 }
 0xd99   :  { %2655 = vmatpush1.bf16.msra.mxu0 %v10554_v4  ;;  %2696 = vmatpush1.bf16.msra.mxu1 %v10558_v5 }
 0xd9a   :  { %2656 = vmatprep.subr.bf16.mxu0 %v10562_v56  ;;  %2697 = vmatprep.subr.bf16.mxu1 %v10566_v51 }
 0xd9d   :  { %2657 = vmatpush1.bf16.msra.mxu0 %v10570_v6  ;;  %2698 = vmatpush1.bf16.msra.mxu1 %v10574_v7 }
 0xd9e   :  { %2658 = vmatprep.subr.bf16.mxu0 %v10578_v8  ;;  %2699 = vmatprep.subr.bf16.mxu1 %v10582_v9 }
 0xda1   :  { %2659 = vmatpush1.bf16.msra.mxu0 %v10586_v10  ;;  %2700 = vmatpush1.bf16.msra.mxu1 %v10590_v11 }
 0xda2   :  { %2660 = vmatprep.subr.bf16.mxu0 %v10594_v12  ;;  %2701 = vmatprep.subr.bf16.mxu1 %v10598_v13 }
 0xda5   :  { %2661 = vmatpush1.bf16.msra.mxu0 %v10602_v14  ;;  %2702 = vmatpush1.bf16.msra.mxu1 %v10606_v15 }
 0xda6   :  { %2775 = vmatprep.subr.bf16.mxu0 %v10492_v1  ;;  %2816 = vmatprep.subr.bf16.mxu1 %v10496_v2 }
 0xe5b   :  { %v2551_v16 = vpop.f32.mrb[52].mxu0  ;;  %v2592_v21 = vpop.f32.mrb[52].mxu1 }
 0xe5c   :  { %v2603_v33 = vrot.slane %v2551_v16, 6  ;;  %v2553_v22 = vpop.f32.mrb[53].mxu0  ;;  %v2594_v30 = vpop.f32.mrb[53].mxu1  ;;  %v2605_v24 = vrot.slane %v2592_v21, 6 }
 0xe5d   :  { %v2604_v37 = vrot.slane %v2553_v22, 6  ;;  %v2555_v46 = vpop.f32.mrb[54].mxu0  ;;  %v2596_v32 = vpop.f32.mrb[54].mxu1  ;;  %v2606_v18 = vrot.slane %v2594_v30, 6  ;;  %v2635_v22 = vrot.slane %v10711_v28, 6 }
 0xe5e   :  { %v2611_v53 = vadd.f32 %v2603_v33, %v10214_v58  ;;  %v2556_v41 = vpop.f32.mrb[55].mxu0  ;;  %v2597_v26 = vpop.f32.mrb[55].mxu1  ;;  %v2613_v3 = vadd.f32 %v2605_v24, %v12367_v48 }
 0xe5f   :  { %v2612_v50 = vadd.f32 %v2604_v37, %v10218_v0  ;;  %v2614_v19 = vadd.f32 %v2606_v18, %v12366_v42 }
 0xe60   :  { %v7469_v23 = vmul.f32 -1.442695, %v2611_v53 }
 0xe61   :  { %v7470_v43 = vmul.f32 -1.442695, %v2612_v50  ;;  %v7471_v62 = vmul.f32 -1.442695, %v2614_v19 }
 0xe62   :  { %8556 = vpow2.f32 %v7469_v23 }
 0xe63   :  { %8558 = vpow2.f32 %v7470_v43 }
 0xe64   :  { %8560 = vpow2.f32 %v7471_v62 }
 0xe65   :  { %8562 = vtanh.f32 %v2613_v3 }
 0xe6c   :  { %v8557_v35 = vpop.eup %8556 }
 0xe6d   :  { %v8559_v63 = vpop.eup %8558  ;;  %v2618_v25 = vadd.f32 1.0, %v8557_v35 }
 0xe6e   :  { %v2624_v40 = vadd.f32 1.0, %v8559_v63  ;;  %v8561_v44 = vpop.eup %8560 }
 0xe6f   :  { %8564 = vrcp.f32 %v2618_v25  ;;  %v8563_v16 = vpop.eup %8562  ;;  %v2631_v46 = vadd.f32 1.0, %v8561_v44 }
 0xe70   :  { %8566 = vrcp.f32 %v2624_v40 }
 0xe71   :  { %8568 = vrcp.f32 %v2631_v46 }
 0xe79   :  { %v8565_v33 = vpop.eup %8564 }
 0xe7a   :  { %v8567_v30 = vpop.eup %8566  ;;  %v2638_v37 = vmul.f32 %v8565_v33, %v8563_v16 }
 0xe7b   :  { %v2637_v21 = vmul.f32 %v8567_v30, %v2635_v22  ;;  %v8569_v53 = vpop.eup %8568 }
 0xe7d   :  { %v10757_v32 = vadd.f32 %v2638_v37, %v2637_v21 }
 0xe7f   :  { %8570 = vtanh.f32 %v10757_v32 }
 0xe89   :  { %v8571_v41 = vpop.eup %8570 }
 0xe8a   :  { %v10760_v26 = vmul.f32 %v8571_v41, %v8569_v53 }
 0xe8c   :  { %v2642_v50 = vpack.c.bf16 %v10760_v26, %v10760_v26 }
 0xe8e   :  { %v2644_v23 = vrot.slane %v2642_v50, 1 }
 0xe90   :  { %2679 = vmatmul.mubr.bf16.vlgmr.msra.gmra.mrb[56].mxu0 %v2644_v23  ;;  %2720 = vmatmul.mubr.bf16.vlgmr.msra.gmra.mrb[56].mxu1 %v2644_v23 }
 0xe91   :  { %2776 = vmatpush1.bf16.msra.mxu0 %v10436_v38  ;;  %2817 = vmatpush1.bf16.msra.mxu1 %v10440_v52 }
 0xe92   :  { %2777 = vmatprep.subr.bf16.mxu0 %v10444_v47  ;;  %2818 = vmatprep.subr.bf16.mxu1 %v10448_v49 }
 0xe93   :  { %2807 = vmatprep.mubr.bf16.mxu0 %v12365_v29  ;;  %2848 = vmatprep.mubr.bf16.mxu1 %v12365_v29 }
 0xe95   :  { %2778 = vmatpush1.bf16.msra.mxu0 %v10454_v54  ;;  %2819 = vmatpush1.bf16.msra.mxu1 %v10458_v57 }
 0xe96   :  { %2779 = vmatprep.subr.bf16.mxu0 %v10462_v60  ;;  %2820 = vmatprep.subr.bf16.mxu1 %v10466_v61 }
 0xe99   :  { %2780 = vmatpush1.bf16.msra.mxu0 %v10522_v27  ;;  %2821 = vmatpush1.bf16.msra.mxu1 %v10526_v39 }
 0xe9a   :  { %2781 = vmatprep.subr.bf16.mxu0 %v10530_v36  ;;  %2822 = vmatprep.subr.bf16.mxu1 %v10534_v45 }
 0xe9d   :  { %2782 = vmatpush1.bf16.msra.mxu0 %v10538_v59  ;;  %2823 = vmatpush1.bf16.msra.mxu1 %v10542_v34 }
 0xe9e   :  { %2783 = vmatprep.subr.bf16.mxu0 %v10546_v55  ;;  %2824 = vmatprep.subr.bf16.mxu1 %v10550_v31 }
 0xea1   :  { %2784 = vmatpush1.bf16.msra.mxu0 %v10554_v4  ;;  %2825 = vmatpush1.bf16.msra.mxu1 %v10558_v5 }
 0xea2   :  { %2785 = vmatprep.subr.bf16.mxu0 %v10562_v56  ;;  %2826 = vmatprep.subr.bf16.mxu1 %v10566_v51 }
 0xea5   :  { %2786 = vmatpush1.bf16.msra.mxu0 %v10570_v6  ;;  %2827 = vmatpush1.bf16.msra.mxu1 %v10574_v7 }
 0xea6   :  { %2787 = vmatprep.subr.bf16.mxu0 %v10578_v8  ;;  %2828 = vmatprep.subr.bf16.mxu1 %v10582_v9 }
 0xea9   :  { %2788 = vmatpush1.bf16.msra.mxu0 %v10586_v10  ;;  %2829 = vmatpush1.bf16.msra.mxu1 %v10590_v11 }
 0xeaa   :  { %2789 = vmatprep.subr.bf16.mxu0 %v10594_v12  ;;  %2830 = vmatprep.subr.bf16.mxu1 %v10598_v13 }
 0xead   :  { %2790 = vmatpush1.bf16.msra.mxu0 %v10602_v14  ;;  %2831 = vmatpush1.bf16.msra.mxu1 %v10606_v15 }
 0xeae   :  { %2904 = vmatprep.subr.bf16.mxu0 %v10492_v1  ;;  %2945 = vmatprep.subr.bf16.mxu1 %v10496_v2 }
 0xf63   :  { %v2680_v28 = vpop.f32.mrb[56].mxu0  ;;  %v2721_v43 = vpop.f32.mrb[56].mxu1 }
 0xf64   :  { %v2732_v18 = vrot.slane %v2680_v28, 4  ;;  %v2682_v19 = vpop.f32.mrb[57].mxu0  ;;  %v2723_v24 = vpop.f32.mrb[57].mxu1  ;;  %v2734_v37 = vrot.slane %v2721_v43, 4 }
 0xf65   :  { %v2733_v62 = vrot.slane %v2682_v19, 4  ;;  %v2684_v3 = vpop.f32.mrb[58].mxu0  ;;  %v2725_v35 = vpop.f32.mrb[58].mxu1  ;;  %v2735_v22 = vrot.slane %v2723_v24, 4  ;;  %v2764_v24 = vrot.slane %v10757_v32, 6 }
 0xf66   :  { %v2740_v63 = vadd.f32 %v2732_v18, %v10214_v58  ;;  %v2685_v25 = vpop.f32.mrb[59].mxu0  ;;  %v2726_v40 = vpop.f32.mrb[59].mxu1  ;;  %v2742_v21 = vadd.f32 %v2734_v37, %v12367_v48 }
 0xf67   :  { %v2741_v44 = vadd.f32 %v2733_v62, %v10218_v0  ;;  %v2743_v30 = vadd.f32 %v2735_v22, %v12366_v42 }
 0xf68   :  { %v7472_v16 = vmul.f32 -1.442695, %v2740_v63 }
 0xf69   :  { %v7473_v33 = vmul.f32 -1.442695, %v2741_v44  ;;  %v7474_v46 = vmul.f32 -1.442695, %v2743_v30 }
 0xf6a   :  { %8572 = vpow2.f32 %v7472_v16  ;;  %v3407_v16 = vsel %vm563_vm4, %v10714_v17, %v10760_v26 }
 0xf6b   :  { %8574 = vpow2.f32 %v7473_v33 }
 0xf6c   :  { %8576 = vpow2.f32 %v7474_v46 }
 0xf6d   :  { %8578 = vtanh.f32 %v2742_v21 }
 0xf74   :  { %v8573_v53 = vpop.eup %8572 }
 0xf75   :  { %v8575_v41 = vpop.eup %8574  ;;  %v2747_v50 = vadd.f32 1.0, %v8573_v53 }
 0xf76   :  { %v2753_v23 = vadd.f32 1.0, %v8575_v41  ;;  %v8577_v28 = vpop.eup %8576 }
 0xf77   :  { %8580 = vrcp.f32 %v2747_v50  ;;  %v8579_v18 = vpop.eup %8578  ;;  %v2760_v35 = vadd.f32 1.0, %v8577_v28 }
 0xf78   :  { %8582 = vrcp.f32 %v2753_v23 }
 0xf79   :  { %8584 = vrcp.f32 %v2760_v35 }
 0xf81   :  { %v8581_v19 = vpop.eup %8580 }
 0xf82   :  { %v8583_v62 = vpop.eup %8582  ;;  %v2767_v3 = vmul.f32 %v8581_v19, %v8579_v18 }
 0xf83   :  { %v2766_v43 = vmul.f32 %v8583_v62, %v2764_v24  ;;  %v8585_v25 = vpop.eup %8584 }
 0xf85   :  { %v10803_v63 = vadd.f32 %v2767_v3, %v2766_v43 }
 0xf87   :  { %8586 = vtanh.f32 %v10803_v63  ;;  %v2893_v62 = vrot.slane %v10803_v63, 6 }
 0xf91   :  { %v8587_v40 = vpop.eup %8586 }
 0xf92   :  { %v2770_v44 = vmul.f32 %v8587_v40, %v8585_v25 }
 0xf94   :  { %v2771_v33 = vpack.c.bf16 %v2770_v44, %v2770_v44  ;;  %v10810_v22 = vsel %vm511_vm2, %v3407_v16, %v2770_v44 }
 0xf96   :  { %v2773_v32 = vrot.slane %v2771_v33, 2 }
 0xf98   :  { %2808 = vmatmul.mubr.bf16.vlgmr.msra.gmra.mrb[60].mxu0 %v2773_v32  ;;  %2849 = vmatmul.mubr.bf16.vlgmr.msra.gmra.mrb[60].mxu1 %v2773_v32  ;;  %v10859_v32 = vld [vmem:[%s12353_s23] ss:$16 sps:$4 sm:$0xff]  }
 0xf99   :  { %2905 = vmatpush1.bf16.msra.mxu0 %v10436_v38  ;;  %2946 = vmatpush1.bf16.msra.mxu1 %v10440_v52 }
 0xf9a   :  { %2906 = vmatprep.subr.bf16.mxu0 %v10444_v47  ;;  %2947 = vmatprep.subr.bf16.mxu1 %v10448_v49 }
 0xf9b   :  { %2936 = vmatprep.mubr.bf16.mxu0 %v12365_v29  ;;  %2977 = vmatprep.mubr.bf16.mxu1 %v12365_v29 }
 0xf9d   :  { %2907 = vmatpush1.bf16.msra.mxu0 %v10454_v54  ;;  %2948 = vmatpush1.bf16.msra.mxu1 %v10458_v57 }
 0xf9e   :  { %2908 = vmatprep.subr.bf16.mxu0 %v10462_v60  ;;  %2949 = vmatprep.subr.bf16.mxu1 %v10466_v61 }
 0xfa1   :  { %2909 = vmatpush1.bf16.msra.mxu0 %v10522_v27  ;;  %2950 = vmatpush1.bf16.msra.mxu1 %v10526_v39 }
 0xfa2   :  { %2910 = vmatprep.subr.bf16.mxu0 %v10530_v36  ;;  %2951 = vmatprep.subr.bf16.mxu1 %v10534_v45 }
 0xfa5   :  { %2911 = vmatpush1.bf16.msra.mxu0 %v10538_v59  ;;  %2952 = vmatpush1.bf16.msra.mxu1 %v10542_v34 }
 0xfa6   :  { %2912 = vmatprep.subr.bf16.mxu0 %v10546_v55  ;;  %2953 = vmatprep.subr.bf16.mxu1 %v10550_v31 }
 0xfa9   :  { %2913 = vmatpush1.bf16.msra.mxu0 %v10554_v4  ;;  %2954 = vmatpush1.bf16.msra.mxu1 %v10558_v5 }
 0xfaa   :  { %2914 = vmatprep.subr.bf16.mxu0 %v10562_v56  ;;  %2955 = vmatprep.subr.bf16.mxu1 %v10566_v51 }
 0xfad   :  { %2915 = vmatpush1.bf16.msra.mxu0 %v10570_v6  ;;  %2956 = vmatpush1.bf16.msra.mxu1 %v10574_v7 }
 0xfae   :  { %2916 = vmatprep.subr.bf16.mxu0 %v10578_v8  ;;  %2957 = vmatprep.subr.bf16.mxu1 %v10582_v9 }
 0xfb1   :  { %2917 = vmatpush1.bf16.msra.mxu0 %v10586_v10  ;;  %2958 = vmatpush1.bf16.msra.mxu1 %v10590_v11 }
 0xfb2   :  { %2918 = vmatprep.subr.bf16.mxu0 %v10594_v12  ;;  %2959 = vmatprep.subr.bf16.mxu1 %v10598_v13 }
 0xfb5   :  { %2919 = vmatpush1.bf16.msra.mxu0 %v10602_v14  ;;  %2960 = vmatpush1.bf16.msra.mxu1 %v10606_v15 }
 0xfb6   :  { %3018 = vmatprep.subr.bf16.mxu0 %v10492_v1  ;;  %3059 = vmatprep.subr.bf16.mxu1 %v10496_v2 }
0x106b   :  { %v2809_v38 = vpop.f32.mrb[60].mxu0  ;;  %v2850_v52 = vpop.f32.mrb[60].mxu1 }
0x106c   :  { %v2861_v47 = vrot.slane %v2809_v38, 2  ;;  %v2811_v49 = vpop.f32.mrb[61].mxu0  ;;  %v2852_v54 = vpop.f32.mrb[61].mxu1  ;;  %v2863_v2 = vrot.slane %v2850_v52, 2  ;;  %v10863_v38 = vld [vmem:[%s12353_s23 + $0x8] ss:$16 sps:$4 sm:$0xff]  }
0x106d   :  { %v2862_v57 = vrot.slane %v2811_v49, 2  ;;  %v2813_v60 = vpop.f32.mrb[62].mxu0  ;;  %v2854_v61 = vpop.f32.mrb[62].mxu1  ;;  %v2864_v53 = vrot.slane %v2852_v54, 2  ;;  %v10867_v52 = vld [vmem:[%s12353_s23 + $0x24] ss:$16 sps:$4 sm:$0xff]  }
0x106e   :  { %v2869_v17 = vadd.f32 %v2861_v47, %v10214_v58  ;;  %v2814_v26 = vpop.f32.mrb[63].mxu0  ;;  %v2855_v30 = vpop.f32.mrb[63].mxu1  ;;  %v2871_v50 = vadd.f32 %v2863_v2, %v12367_v48  ;;  %v10877_v47 = vld [vmem:[%s12353_s23 + $0x20] ss:$16 sps:$4 sm:$0xff]   ;;  %v10881_v49 = vld [vmem:[%s12353_s23 + $0x28] ss:$16 sps:$4 sm:$0xff]  }
0x106f   :  { %v2870_v37 = vadd.f32 %v2862_v57, %v10218_v0  ;;  %v2872_v1 = vadd.f32 %v2864_v53, %v12366_v42  ;;  %v10885_v54 = vld [vmem:[%s12353_s23 + $0x44] ss:$16 sps:$4 sm:$0xff]   ;;  %v10889_v57 = vld [vmem:[%s12353_s23 + $0x4c] ss:$16 sps:$4 sm:$0xff]  }
0x1070   :  { %v7475_v46 = vmul.f32 -1.442695, %v2869_v17 }
0x1071   :  { %v7476_v21 = vmul.f32 -1.442695, %v2870_v37  ;;  %v7477_v41 = vmul.f32 -1.442695, %v2872_v1 }
0x1072   :  { %8588 = vpow2.f32 %v7475_v46 }
0x1073   :  { %8590 = vpow2.f32 %v7476_v21 }
0x1074   :  { %8592 = vpow2.f32 %v7477_v41 }
0x1075   :  { %8594 = vtanh.f32 %v2871_v50 }
0x107c   :  { %v8589_v23 = vpop.eup %8588 }
0x107d   :  { %v8591_v28 = vpop.eup %8590  ;;  %v2876_v18 = vadd.f32 1.0, %v8589_v23 }
0x107e   :  { %v2882_v58 = vadd.f32 1.0, %v8591_v28  ;;  %v8593_v0 = vpop.eup %8592 }
0x107f   :  { %8596 = vrcp.f32 %v2876_v18  ;;  %v8595_v19 = vpop.eup %8594  ;;  %v2889_v35 = vadd.f32 1.0, %v8593_v0  ;;  %v10949_v0 = vld [vmem:[%s12353_s23 + $0x48] ss:$16 sps:$4 sm:$0xff]  }
0x1080   :  { %8598 = vrcp.f32 %v2882_v58  ;;  %v10945_v58 = vld [vmem:[%s12353_s23 + $0x40] ss:$16 sps:$4 sm:$0xff]  }
0x1081   :  { %8600 = vrcp.f32 %v2889_v35  ;;  %v10973_v35 = vld [vmem:[%s12353_s23 + $0x8c] ss:$16 sps:$4 sm:$0xff]  }
0x1089   :  { %v8597_v24 = vpop.eup %8596 }
0x108a   :  { %v8599_v3 = vpop.eup %8598  ;;  %v2896_v42 = vmul.f32 %v8597_v24, %v8595_v19  ;;  %v10953_v19 = vld [vmem:[%s12353_s23 + $0x64] ss:$16 sps:$4 sm:$0xff]   ;;  %v10957_v24 = vld [vmem:[%s12353_s23 + $0x6c] ss:$16 sps:$4 sm:$0xff]  }
0x108b   :  { %v2895_v43 = vmul.f32 %v8599_v3, %v2893_v62  ;;  %v8601_v25 = vpop.eup %8600  ;;  %v10961_v62 = vld [vmem:[%s12353_s23 + $0x60] ss:$16 sps:$4 sm:$0xff]   ;;  %v10965_v3 = vld [vmem:[%s12353_s23 + $0x68] ss:$16 sps:$4 sm:$0xff]  }
0x108d   :  { %v10851_v48 = vadd.f32 %v2896_v42, %v2895_v43  ;;  %v10969_v42 = vld [vmem:[%s12353_s23 + $0x84] ss:$16 sps:$4 sm:$0xff]   ;;  %v10977_v43 = vld [vmem:[%s12353_s23 + $0x80] ss:$16 sps:$4 sm:$0xff]  }
0x108f   :  { %8602 = vtanh.f32 %v10851_v48  ;;  %v3010_v46 = vrot.slane %v10851_v48, 6  ;;  %v10981_v48 = vld [vmem:[%s12353_s23 + $0x88] ss:$16 sps:$4 sm:$0xff]  }
0x1099   :  { %v8603_v40 = vpop.eup %8602 }
0x109a   :  { %v2899_v44 = vmul.f32 %v8603_v40, %v8601_v25  ;;  %v10985_v25 = vld [vmem:[%s12353_s23 + $0xa4] ss:$16 sps:$4 sm:$0xff]   ;;  %v10989_v40 = vld [vmem:[%s12353_s23 + $0xac] ss:$16 sps:$4 sm:$0xff]  }
0x109c   :  { %v2900_v16 = vpack.c.bf16 %v2899_v44, %v2899_v44  ;;  %v10856_v63 = vsel %vm528_vm5, %v10810_v22, %v2899_v44  ;;  %v10871_v22 = vld [vmem:[%s12353_s23 + $0x2c] ss:$16 sps:$4 sm:$0xff]   ;;  %v10993_v44 = vld [vmem:[%s12353_s23 + $0xa0] ss:$16 sps:$4 sm:$0xff]  }
0x109e   :  { %v2902_v33 = vrot.slane %v2900_v16, 3  ;;  %v10997_v16 = vld [vmem:[%s12353_s23 + $0xa8] ss:$16 sps:$4 sm:$0xff]  }
0x10a0   :  { %2937 = vmatmul.mubr.bf16.vlgmr.msra.gmra.mrb[64].mxu0 %v2902_v33  ;;  %2978 = vmatmul.mubr.bf16.vlgmr.msra.gmra.mrb[64].mxu1 %v2902_v33  ;;  %v11001_v33 = vld [vmem:[%s12353_s23 + $0xc4] ss:$16 sps:$4 sm:$0xff]  }
0x10a1   :  { %3019 = vmatpush1.bf16.msra.mxu0 %v10859_v32  ;;  %3060 = vmatpush1.bf16.msra.mxu1 %v10863_v38 }
0x10a2   :  { %3020 = vmatprep.subr.bf16.mxu0 %v10867_v52  ;;  %3061 = vmatprep.subr.bf16.mxu1 %v10871_v22 }
0x10a3   :  { %3050 = vmatprep.mubr.bf16.mxu0 %v12365_v29  ;;  %3091 = vmatprep.mubr.bf16.mxu1 %v12365_v29 }
0x10a5   :  { %3021 = vmatpush1.bf16.msra.mxu0 %v10877_v47  ;;  %3062 = vmatpush1.bf16.msra.mxu1 %v10881_v49 }
0x10a6   :  { %3022 = vmatprep.subr.bf16.mxu0 %v10885_v54  ;;  %3063 = vmatprep.subr.bf16.mxu1 %v10889_v57 }
0x10a9   :  { %3023 = vmatpush1.bf16.msra.mxu0 %v10522_v27  ;;  %3064 = vmatpush1.bf16.msra.mxu1 %v10526_v39  ;;  %v10915_v27 = vld [vmem:[%s12353_s23 + $0x4] ss:$16 sps:$4 sm:$0xff]   ;;  %v10919_v39 = vld [vmem:[%s12353_s23 + $0xc] ss:$16 sps:$4 sm:$0xff]  }
0x10aa   :  { %3024 = vmatprep.subr.bf16.mxu0 %v10530_v36  ;;  %3065 = vmatprep.subr.bf16.mxu1 %v10534_v45 }
0x10ad   :  { %3025 = vmatpush1.bf16.msra.mxu0 %v10538_v59  ;;  %3066 = vmatpush1.bf16.msra.mxu1 %v10542_v34  ;;  %v12368_v59 = vld [vmem:[#allocation69_spill] sm:$0xff] }
0x10ae   :  { %3026 = vmatprep.subr.bf16.mxu0 %v10546_v55  ;;  %3067 = vmatprep.subr.bf16.mxu1 %v10550_v31 }
0x10b1   :  { %3027 = vmatpush1.bf16.msra.mxu0 %v10554_v4  ;;  %3068 = vmatpush1.bf16.msra.mxu1 %v10558_v5  ;;  %v12369_v4 = vld [vmem:[#allocation71_spill] sm:$0xff] }
0x10b2   :  { %3028 = vmatprep.subr.bf16.mxu0 %v10562_v56  ;;  %3069 = vmatprep.subr.bf16.mxu1 %v10566_v51 }
0x10b5   :  { %3029 = vmatpush1.bf16.msra.mxu0 %v10570_v6  ;;  %3070 = vmatpush1.bf16.msra.mxu1 %v10574_v7 }
0x10b6   :  { %3030 = vmatprep.subr.bf16.mxu0 %v10578_v8  ;;  %3071 = vmatprep.subr.bf16.mxu1 %v10582_v9 }
0x10b9   :  { %3031 = vmatpush1.bf16.msra.mxu0 %v10586_v10  ;;  %3072 = vmatpush1.bf16.msra.mxu1 %v10590_v11  ;;  %v12370_v10 = vld [vmem:[#allocation72_spill] sm:$0xff] }
0x10ba   :  { %3032 = vmatprep.subr.bf16.mxu0 %v10594_v12  ;;  %3073 = vmatprep.subr.bf16.mxu1 %v10598_v13  ;;  %v12371_v13 = vld [vmem:[#allocation70_spill] sm:$0xff] }
0x10bd   :  { %3033 = vmatpush1.bf16.msra.mxu0 %v10602_v14  ;;  %3074 = vmatpush1.bf16.msra.mxu1 %v10606_v15 }
0x10be   :  { %3147 = vmatprep.subr.bf16.mxu0 %v10915_v27  ;;  %3188 = vmatprep.subr.bf16.mxu1 %v10919_v39 }
0x1173   :  { %v2938_v36 = vpop.f32.mrb[64].mxu0  ;;  %v2979_v45 = vpop.f32.mrb[64].mxu1 }
0x1174   :  { %v2986_v34 = vadd.f32 %v2938_v36, %v12368_v59  ;;  %v2940_v55 = vpop.f32.mrb[65].mxu0  ;;  %v2981_v31 = vpop.f32.mrb[65].mxu1  ;;  %v2988_v14 = vadd.f32 %v2979_v45, %v12371_v13  ;;  %v11005_v36 = vld [vmem:[%s12353_s23 + $0xcc] ss:$16 sps:$4 sm:$0xff]   ;;  %v11009_v45 = vld [vmem:[%s12353_s23 + $0xc0] ss:$16 sps:$4 sm:$0xff]  }
0x1175   :  { %v2987_v5 = vadd.f32 %v2940_v55, %v12369_v4  ;;  %v2942_v56 = vpop.f32.mrb[66].mxu0  ;;  %v2983_v51 = vpop.f32.mrb[66].mxu1  ;;  %v2989_v11 = vadd.f32 %v2981_v31, %v12370_v10  ;;  %v11017_v55 = vld [vmem:[%s12353_s23 + $0xe4] ss:$16 sps:$4 sm:$0xff]   ;;  %v11021_v31 = vld [vmem:[%s12353_s23 + $0xec] ss:$16 sps:$4 sm:$0xff]  }
0x1176   :  { %v7478_v6 = vmul.f32 -1.442695, %v2986_v34  ;;  %v2943_v7 = vpop.f32.mrb[67].mxu0  ;;  %v2984_v8 = vpop.f32.mrb[67].mxu1  ;;  %v11013_v34 = vld [vmem:[%s12353_s23 + $0xc8] ss:$16 sps:$4 sm:$0xff]  }
0x1177   :  { %v7479_v9 = vmul.f32 -1.442695, %v2987_v5  ;;  %v7480_v12 = vmul.f32 -1.442695, %v2989_v11  ;;  %v11025_v5 = vld [vmem:[%s12353_s23 + $0xe0] ss:$16 sps:$4 sm:$0xff]  }
0x1178   :  { %8604 = vpow2.f32 %v7478_v6  ;;  %v11029_v56 = vld [vmem:[%s12353_s23 + $0xe8] ss:$16 sps:$4 sm:$0xff]  }
0x1179   :  { %8606 = vpow2.f32 %v7479_v9 }
0x117a   :  { %8608 = vpow2.f32 %v7480_v12 }
0x117b   :  { %8610 = vtanh.f32 %v2988_v14 }
0x1182   :  { %v8605_v15 = vpop.eup %8604 }
0x1183   :  { %v8607_v60 = vpop.eup %8606  ;;  %v2993_v61 = vadd.f32 1.0, %v8605_v15 }
0x1184   :  { %v2999_v17 = vadd.f32 1.0, %v8607_v60  ;;  %v8609_v26 = vpop.eup %8608 }
0x1185   :  { %8612 = vrcp.f32 %v2993_v61  ;;  %v8611_v30 = vpop.eup %8610  ;;  %v3006_v1 = vadd.f32 1.0, %v8609_v26 }
0x1186   :  { %8614 = vrcp.f32 %v2999_v17 }
0x1187   :  { %8616 = vrcp.f32 %v3006_v1 }
0x118f   :  { %v8613_v37 = vpop.eup %8612 }
0x1190   :  { %v8615_v21 = vpop.eup %8614  ;;  %v3013_v53 = vmul.f32 %v8613_v37, %v8611_v30 }
0x1191   :  { %v3012_v2 = vmul.f32 %v8615_v21, %v3010_v46  ;;  %v8617_v50 = vpop.eup %8616 }
0x1193   :  { %v10927_v41 = vadd.f32 %v3013_v53, %v3012_v2 }
0x1195   :  { %8618 = vtanh.f32 %v10927_v41 }
0x119f   :  { %v8619_v23 = vpop.eup %8618 }
0x11a0   :  { %v10930_v28 = vmul.f32 %v8619_v23, %v8617_v50 }
0x11a2   :  { %v3017_v18 = vpack.c.bf16 %v10930_v28, %v10930_v28 }
0x11a4   :  { %3051 = vmatmul.mubr.bf16.vlgmr.msra.gmra.mrb[68].mxu0 %v3017_v18  ;;  %3092 = vmatmul.mubr.bf16.vlgmr.msra.gmra.mrb[68].mxu1 %v3017_v18 }
0x11a5   :  { %3148 = vmatpush1.bf16.msra.mxu0 %v10859_v32  ;;  %3189 = vmatpush1.bf16.msra.mxu1 %v10863_v38 }
0x11a6   :  { %3149 = vmatprep.subr.bf16.mxu0 %v10867_v52  ;;  %3190 = vmatprep.subr.bf16.mxu1 %v10871_v22 }
0x11a7   :  { %3179 = vmatprep.mubr.bf16.mxu0 %v12365_v29  ;;  %3220 = vmatprep.mubr.bf16.mxu1 %v12365_v29 }
0x11a9   :  { %3150 = vmatpush1.bf16.msra.mxu0 %v10877_v47  ;;  %3191 = vmatpush1.bf16.msra.mxu1 %v10881_v49 }
0x11aa   :  { %3151 = vmatprep.subr.bf16.mxu0 %v10885_v54  ;;  %3192 = vmatprep.subr.bf16.mxu1 %v10889_v57 }
0x11ad   :  { %3152 = vmatpush1.bf16.msra.mxu0 %v10945_v58  ;;  %3193 = vmatpush1.bf16.msra.mxu1 %v10949_v0 }
0x11ae   :  { %3153 = vmatprep.subr.bf16.mxu0 %v10953_v19  ;;  %3194 = vmatprep.subr.bf16.mxu1 %v10957_v24 }
0x11b1   :  { %3154 = vmatpush1.bf16.msra.mxu0 %v10961_v62  ;;  %3195 = vmatpush1.bf16.msra.mxu1 %v10965_v3 }
0x11b2   :  { %3155 = vmatprep.subr.bf16.mxu0 %v10969_v42  ;;  %3196 = vmatprep.subr.bf16.mxu1 %v10973_v35 }
0x11b5   :  { %3156 = vmatpush1.bf16.msra.mxu0 %v10977_v43  ;;  %3197 = vmatpush1.bf16.msra.mxu1 %v10981_v48 }
0x11b6   :  { %3157 = vmatprep.subr.bf16.mxu0 %v10985_v25  ;;  %3198 = vmatprep.subr.bf16.mxu1 %v10989_v40 }
0x11b9   :  { %3158 = vmatpush1.bf16.msra.mxu0 %v10993_v44  ;;  %3199 = vmatpush1.bf16.msra.mxu1 %v10997_v16 }
0x11ba   :  { %3159 = vmatprep.subr.bf16.mxu0 %v11001_v33  ;;  %3200 = vmatprep.subr.bf16.mxu1 %v11005_v36 }
0x11bd   :  { %3160 = vmatpush1.bf16.msra.mxu0 %v11009_v45  ;;  %3201 = vmatpush1.bf16.msra.mxu1 %v11013_v34 }
0x11be   :  { %3161 = vmatprep.subr.bf16.mxu0 %v11017_v55  ;;  %3202 = vmatprep.subr.bf16.mxu1 %v11021_v31 }
0x11c1   :  { %3162 = vmatpush1.bf16.msra.mxu0 %v11025_v5  ;;  %3203 = vmatpush1.bf16.msra.mxu1 %v11029_v56 }
0x11c2   :  { %3276 = vmatprep.subr.bf16.mxu0 %v10915_v27  ;;  %3317 = vmatprep.subr.bf16.mxu1 %v10919_v39 }
0x1277   :  { %v3052_v51 = vpop.f32.mrb[68].mxu0  ;;  %v3093_v6 = vpop.f32.mrb[68].mxu1 }
0x1278   :  { %v3104_v7 = vrot.slane %v3052_v51, 6  ;;  %v3054_v8 = vpop.f32.mrb[69].mxu0  ;;  %v3095_v9 = vpop.f32.mrb[69].mxu1  ;;  %v3106_v39 = vrot.slane %v3093_v6, 6 }
0x1279   :  { %v3105_v11 = vrot.slane %v3054_v8, 6  ;;  %v3056_v12 = vpop.f32.mrb[70].mxu0  ;;  %v3097_v14 = vpop.f32.mrb[70].mxu1  ;;  %v3107_v37 = vrot.slane %v3095_v9, 6 }
0x127a   :  { %v3112_v15 = vadd.f32 %v3104_v7, %v12368_v59  ;;  %v3057_v60 = vpop.f32.mrb[71].mxu0  ;;  %v3098_v61 = vpop.f32.mrb[71].mxu1  ;;  %v3114_v21 = vadd.f32 %v3106_v39, %v12371_v13  ;;  %v3136_v7 = vrot.slane %v10927_v41, 6 }
0x127b   :  { %v3113_v17 = vadd.f32 %v3105_v11, %v12369_v4  ;;  %v3115_v27 = vadd.f32 %v3107_v37, %v12370_v10 }
0x127c   :  { %v7481_v26 = vmul.f32 -1.442695, %v3112_v15 }
0x127d   :  { %v7482_v30 = vmul.f32 -1.442695, %v3113_v17  ;;  %v7483_v46 = vmul.f32 -1.442695, %v3115_v27 }
0x127e   :  { %8620 = vpow2.f32 %v7481_v26 }
0x127f   :  { %8622 = vpow2.f32 %v7482_v30 }
0x1280   :  { %8624 = vpow2.f32 %v7483_v46 }
0x1281   :  { %8626 = vtanh.f32 %v3114_v21 }
0x1288   :  { %v8621_v53 = vpop.eup %8620 }
0x1289   :  { %v8623_v1 = vpop.eup %8622  ;;  %v3119_v2 = vadd.f32 1.0, %v8621_v53 }
0x128a   :  { %v3125_v50 = vadd.f32 1.0, %v8623_v1  ;;  %v8625_v23 = vpop.eup %8624 }
0x128b   :  { %8628 = vrcp.f32 %v3119_v2  ;;  %v8627_v18 = vpop.eup %8626  ;;  %v3132_v11 = vadd.f32 1.0, %v8625_v23  ;;  %v8232_v2 = vld [vmem:[#allocation12] ss:$16 sps:$4 sm:$0xff]  }
0x128c   :  { %8630 = vrcp.f32 %v3125_v50  ;;  %v8235_v50 = vld [vmem:[#allocation12 + $0x8] ss:$16 sps:$4 sm:$0xff]  }
0x128d   :  { %8632 = vrcp.f32 %v3132_v11  ;;  %v8249_v11 = vld [vmem:[#allocation12 + $0x4c] ss:$16 sps:$4 sm:$0xff]  }
0x1295   :  { %v8629_v51 = vpop.eup %8628 }
0x1296   :  { %v8631_v8 = vpop.eup %8630  ;;  %v3139_v9 = vmul.f32 %v8629_v51, %v8627_v18  ;;  %v8240_v18 = vld [vmem:[#allocation12 + $0x24] ss:$16 sps:$4 sm:$0xff]   ;;  %v8243_v51 = vld [vmem:[#allocation12 + $0x2c] ss:$16 sps:$4 sm:$0xff]  }
0x1297   :  { %v3138_v6 = vmul.f32 %v8631_v8, %v3136_v7  ;;  %v8633_v14 = vpop.eup %8632  ;;  %v8238_v7 = vld [vmem:[#allocation12 + $0x20] ss:$16 sps:$4 sm:$0xff]   ;;  %v8241_v8 = vld [vmem:[#allocation12 + $0x28] ss:$16 sps:$4 sm:$0xff]  }
0x1299   :  { %v11039_v12 = vadd.f32 %v3139_v9, %v3138_v6  ;;  %v8246_v9 = vld [vmem:[#allocation12 + $0x44] ss:$16 sps:$4 sm:$0xff]   ;;  %v8247_v6 = vld [vmem:[#allocation12 + $0x48] ss:$16 sps:$4 sm:$0xff]  }
0x129b   :  { %8634 = vtanh.f32 %v11039_v12 }
0x12a5   :  { %v8635_v15 = vpop.eup %8634 }
0x12a6   :  { %v11042_v60 = vmul.f32 %v8635_v15, %v8633_v14  ;;  %v8255_v14 = vld [vmem:[#allocation12 + $0x6c] ss:$16 sps:$4 sm:$0xff]   ;;  %v8250_v15 = vld [vmem:[#allocation12 + $0x60] ss:$16 sps:$4 sm:$0xff]  }
0x12a8   :  { %v3143_v61 = vpack.c.bf16 %v11042_v60, %v11042_v60  ;;  %v3410_v21 = vsel %vm563_vm4, %v10930_v28, %v11042_v60  ;;  %v8244_v28 = vld [vmem:[#allocation12 + $0x40] ss:$16 sps:$4 sm:$0xff]   ;;  %v8253_v60 = vld [vmem:[#allocation12 + $0x68] ss:$16 sps:$4 sm:$0xff]  }
0x12aa   :  { %v3145_v17 = vrot.slane %v3143_v61, 1  ;;  %v8258_v61 = vld [vmem:[#allocation12 + $0x84] ss:$16 sps:$4 sm:$0xff]  }
0x12ac   :  { %3180 = vmatmul.mubr.bf16.vlgmr.msra.gmra.mrb[72].mxu0 %v3145_v17  ;;  %3221 = vmatmul.mubr.bf16.vlgmr.msra.gmra.mrb[72].mxu1 %v3145_v17  ;;  %v8261_v17 = vld [vmem:[#allocation12 + $0x8c] ss:$16 sps:$4 sm:$0xff]  }
0x12ad   :  { %3277 = vmatpush1.bf16.msra.mxu0 %v10859_v32  ;;  %3318 = vmatpush1.bf16.msra.mxu1 %v10863_v38  ;;  %v8234_v32 = vld [vmem:[#allocation12 + $0x4] ss:$16 sps:$4 sm:$0xff]   ;;  %v8237_v38 = vld [vmem:[#allocation12 + $0xc] ss:$16 sps:$4 sm:$0xff]  }
0x12ae   :  { %3278 = vmatprep.subr.bf16.mxu0 %v10867_v52  ;;  %3319 = vmatprep.subr.bf16.mxu1 %v10871_v22 }
0x12af   :  { %3308 = vmatprep.mubr.bf16.mxu0 %v12365_v29  ;;  %3349 = vmatprep.mubr.bf16.mxu1 %v12365_v29 }
0x12b1   :  { %3279 = vmatpush1.bf16.msra.mxu0 %v10877_v47  ;;  %3320 = vmatpush1.bf16.msra.mxu1 %v10881_v49 }
0x12b2   :  { %3280 = vmatprep.subr.bf16.mxu0 %v10885_v54  ;;  %3321 = vmatprep.subr.bf16.mxu1 %v10889_v57 }
0x12b5   :  { %3281 = vmatpush1.bf16.msra.mxu0 %v10945_v58  ;;  %3322 = vmatpush1.bf16.msra.mxu1 %v10949_v0 }
0x12b6   :  { %3282 = vmatprep.subr.bf16.mxu0 %v10953_v19  ;;  %3323 = vmatprep.subr.bf16.mxu1 %v10957_v24 }
0x12b9   :  { %3283 = vmatpush1.bf16.msra.mxu0 %v10961_v62  ;;  %3324 = vmatpush1.bf16.msra.mxu1 %v10965_v3 }
0x12ba   :  { %3284 = vmatprep.subr.bf16.mxu0 %v10969_v42  ;;  %3325 = vmatprep.subr.bf16.mxu1 %v10973_v35 }
0x12bd   :  { %3285 = vmatpush1.bf16.msra.mxu0 %v10977_v43  ;;  %3326 = vmatpush1.bf16.msra.mxu1 %v10981_v48 }
0x12be   :  { %3286 = vmatprep.subr.bf16.mxu0 %v10985_v25  ;;  %3327 = vmatprep.subr.bf16.mxu1 %v10989_v40 }
0x12c1   :  { %3287 = vmatpush1.bf16.msra.mxu0 %v10993_v44  ;;  %3328 = vmatpush1.bf16.msra.mxu1 %v10997_v16 }
0x12c2   :  { %3288 = vmatprep.subr.bf16.mxu0 %v11001_v33  ;;  %3329 = vmatprep.subr.bf16.mxu1 %v11005_v36 }
0x12c5   :  { %3289 = vmatpush1.bf16.msra.mxu0 %v11009_v45  ;;  %3330 = vmatpush1.bf16.msra.mxu1 %v11013_v34 }
0x12c6   :  { %3290 = vmatprep.subr.bf16.mxu0 %v11017_v55  ;;  %3331 = vmatprep.subr.bf16.mxu1 %v11021_v31  ;;  %v3265_v31 = vrot.slane %v11039_v12, 6  ;;  %v8252_v12 = vld [vmem:[#allocation12 + $0x64] ss:$16 sps:$4 sm:$0xff]  }
0x12c9   :  { %3291 = vmatpush1.bf16.msra.mxu0 %v11025_v5  ;;  %3332 = vmatpush1.bf16.msra.mxu1 %v11029_v56 }
0x12ca   :  { %3629 = vmatprep.subr.bf16.mxu0 %v8234_v32  ;;  %3682 = vmatprep.subr.bf16.mxu1 %v8237_v38  ;;  %v8256_v32 = vld [vmem:[#allocation12 + $0x80] ss:$16 sps:$4 sm:$0xff]   ;;  %v8259_v38 = vld [vmem:[#allocation12 + $0x88] ss:$16 sps:$4 sm:$0xff]  }
0x137f   :  { %v3181_v52 = vpop.f32.mrb[72].mxu0  ;;  %v3222_v22 = vpop.f32.mrb[72].mxu1 }
0x1380   :  { %v3233_v47 = vrot.slane %v3181_v52, 4  ;;  %v3183_v49 = vpop.f32.mrb[73].mxu0  ;;  %v3224_v54 = vpop.f32.mrb[73].mxu1  ;;  %v3235_v48 = vrot.slane %v3222_v22, 4  ;;  %v8264_v52 = vld [vmem:[#allocation12 + $0xa4] ss:$16 sps:$4 sm:$0xff]  }
0x1381   :  { %v3234_v57 = vrot.slane %v3183_v49, 4  ;;  %v3185_v41 = vpop.f32.mrb[74].mxu0  ;;  %v3226_v58 = vpop.f32.mrb[74].mxu1  ;;  %v3236_v35 = vrot.slane %v3224_v54, 4  ;;  %v8267_v22 = vld [vmem:[#allocation12 + $0xac] ss:$16 sps:$4 sm:$0xff]  }
0x1382   :  { %v3241_v0 = vadd.f32 %v3233_v47, %v12368_v59  ;;  %v3186_v19 = vpop.f32.mrb[75].mxu0  ;;  %v3227_v24 = vpop.f32.mrb[75].mxu1  ;;  %v3243_v40 = vadd.f32 %v3235_v48, %v12371_v13  ;;  %v8262_v47 = vld [vmem:[#allocation12 + $0xa0] ss:$16 sps:$4 sm:$0xff]   ;;  %v8265_v49 = vld [vmem:[#allocation12 + $0xa8] ss:$16 sps:$4 sm:$0xff]  }
0x1383   :  { %v3242_v62 = vadd.f32 %v3234_v57, %v12369_v4  ;;  %v3244_v43 = vadd.f32 %v3236_v35, %v12370_v10  ;;  %v8270_v54 = vld [vmem:[#allocation12 + $0xc4] ss:$16 sps:$4 sm:$0xff]   ;;  %v8273_v57 = vld [vmem:[#allocation12 + $0xcc] ss:$16 sps:$4 sm:$0xff]   ;;  %v8268_v41 = vld [vmem:[#allocation12 + $0xc0] ss:$16 sps:$4 sm:$0xff]  }
0x1384   :  { %v7484_v3 = vmul.f32 -1.442695, %v3241_v0  ;;  %v8271_v58 = vld [vmem:[#allocation12 + $0xc8] ss:$16 sps:$4 sm:$0xff]   ;;  %v8276_v0 = vld [vmem:[#allocation12 + $0xe4] ss:$16 sps:$4 sm:$0xff]  }
0x1385   :  { %v7485_v42 = vmul.f32 -1.442695, %v3242_v62  ;;  %v7486_v25 = vmul.f32 -1.442695, %v3244_v43  ;;  %v8279_v19 = vld [vmem:[#allocation12 + $0xec] ss:$16 sps:$4 sm:$0xff]  }
0x1386   :  { %8636 = vpow2.f32 %v7484_v3  ;;  %v8274_v24 = vld [vmem:[#allocation12 + $0xe0] ss:$16 sps:$4 sm:$0xff]   ;;  %v8277_v62 = vld [vmem:[#allocation12 + $0xe8] ss:$16 sps:$4 sm:$0xff]   ;;  %v11098_v3 = vld [vmem:[#allocation13 + $0x4] ss:$16 sps:$4 sm:$0xff]  }
0x1387   :  { %8638 = vpow2.f32 %v7485_v42  ;;  %v11100_v42 = vld [vmem:[#allocation13 + $0xc] ss:$16 sps:$4 sm:$0xff]   ;;  %v11102_v35 = vld [vmem:[#allocation13] ss:$16 sps:$4 sm:$0xff]   ;;  %v11104_v43 = vld [vmem:[#allocation13 + $0x8] ss:$16 sps:$4 sm:$0xff]  }
0x1388   :  { %8640 = vpow2.f32 %v7486_v25  ;;  %v11112_v48 = vld [vmem:[#allocation13 + $0x2c] ss:$16 sps:$4 sm:$0xff]   ;;  %v11114_v25 = vld [vmem:[#allocation13 + $0x20] ss:$16 sps:$4 sm:$0xff]  }
0x1389   :  { %8642 = vtanh.f32 %v3243_v40  ;;  %v11116_v40 = vld [vmem:[#allocation13 + $0x28] ss:$16 sps:$4 sm:$0xff]  }
0x1390   :  { %v8637_v44 = vpop.eup %8636 }
0x1391   :  { %v8639_v16 = vpop.eup %8638  ;;  %v3248_v33 = vadd.f32 1.0, %v8637_v44  ;;  %v11118_v44 = vld [vmem:[#allocation13 + $0x44] ss:$16 sps:$4 sm:$0xff]  }
0x1392   :  { %v3254_v36 = vadd.f32 1.0, %v8639_v16  ;;  %v8641_v45 = vpop.eup %8640  ;;  %v11122_v16 = vld [vmem:[#allocation13 + $0x4c] ss:$16 sps:$4 sm:$0xff]  }
0x1393   :  { %8644 = vrcp.f32 %v3248_v33  ;;  %v8643_v34 = vpop.eup %8642  ;;  %v3261_v26 = vadd.f32 1.0, %v8641_v45  ;;  %v11126_v33 = vld [vmem:[#allocation13 + $0x40] ss:$16 sps:$4 sm:$0xff]   ;;  %v11132_v45 = vld [vmem:[#allocation13 + $0x64] ss:$16 sps:$4 sm:$0xff]  }
0x1394   :  { %8646 = vrcp.f32 %v3254_v36  ;;  %v11128_v36 = vld [vmem:[#allocation13 + $0x48] ss:$16 sps:$4 sm:$0xff]  }
0x1395   :  { %8648 = vrcp.f32 %v3261_v26  ;;  %v11150_v26 = vld [vmem:[#allocation13 + $0x80] ss:$16 sps:$4 sm:$0xff]  }
0x139d   :  { %v8645_v55 = vpop.eup %8644 }
0x139e   :  { %v8647_v5 = vpop.eup %8646  ;;  %v3268_v56 = vmul.f32 %v8645_v55, %v8643_v34  ;;  %v11134_v34 = vld [vmem:[#allocation13 + $0x6c] ss:$16 sps:$4 sm:$0xff]   ;;  %v11138_v55 = vld [vmem:[#allocation13 + $0x60] ss:$16 sps:$4 sm:$0xff]  }
0x139f   :  { %v3267_v30 = vmul.f32 %v8647_v5, %v3265_v31  ;;  %v8649_v27 = vpop.eup %8648  ;;  %v11140_v31 = vld [vmem:[#allocation13 + $0x68] ss:$16 sps:$4 sm:$0xff]   ;;  %v11144_v5 = vld [vmem:[#allocation13 + $0x84] ss:$16 sps:$4 sm:$0xff]  }
0x13a1   :  { %v11083_v37 = vadd.f32 %v3268_v56, %v3267_v30  ;;  %v11146_v56 = vld [vmem:[#allocation13 + $0x8c] ss:$16 sps:$4 sm:$0xff]   ;;  %v11152_v30 = vld [vmem:[#allocation13 + $0x88] ss:$16 sps:$4 sm:$0xff]  }
0x13a3   :  { %8650 = vtanh.f32 %v11083_v37 }
0x13ad   :  { %v8651_v39 = vpop.eup %8650 }
0x13ae   :  { %v3271_v46 = vmul.f32 %v8651_v39, %v8649_v27  ;;  %v11156_v27 = vld [vmem:[#allocation13 + $0xa4] ss:$16 sps:$4 sm:$0xff]   ;;  %v11158_v39 = vld [vmem:[#allocation13 + $0xac] ss:$16 sps:$4 sm:$0xff]  }
0x13b0   :  { %v3272_v53 = vpack.c.bf16 %v3271_v46, %v3271_v46  ;;  %v11090_v1 = vsel %vm511_vm2, %v3410_v21, %v3271_v46  ;;  %v11162_v46 = vld [vmem:[#allocation13 + $0xa0] ss:$16 sps:$4 sm:$0xff]   ;;  %v11164_v21 = vld [vmem:[#allocation13 + $0xa8] ss:$16 sps:$4 sm:$0xff]  }
0x13b2   :  { %v3274_v23 = vrot.slane %v3272_v53, 2  ;;  %v11168_v53 = vld [vmem:[#allocation13 + $0xc4] ss:$16 sps:$4 sm:$0xff]  }
0x13b4   :  { %3309 = vmatmul.mubr.bf16.vlgmr.msra.gmra.mrb[76].mxu0 %v3274_v23  ;;  %3350 = vmatmul.mubr.bf16.vlgmr.msra.gmra.mrb[76].mxu1 %v3274_v23  ;;  %v11176_v23 = vld [vmem:[#allocation13 + $0xc8] ss:$16 sps:$4 sm:$0xff]  }
0x13b5   :  { %3630 = vmatpush1.bf16.msra.mxu0 %v8232_v2  ;;  %3683 = vmatpush1.bf16.msra.mxu1 %v8235_v50  ;;  %v11170_v2 = vld [vmem:[#allocation13 + $0xcc] ss:$16 sps:$4 sm:$0xff]   ;;  %v11174_v50 = vld [vmem:[#allocation13 + $0xc0] ss:$16 sps:$4 sm:$0xff]  }
0x13b6   :  { %3631 = vmatprep.subr.bf16.mxu0 %v8240_v18  ;;  %3684 = vmatprep.subr.bf16.mxu1 %v8243_v51  ;;  %v11180_v18 = vld [vmem:[#allocation13 + $0xe4] ss:$16 sps:$4 sm:$0xff]   ;;  %v11182_v51 = vld [vmem:[#allocation13 + $0xec] ss:$16 sps:$4 sm:$0xff]  }
0x13b7   :  { %3661 = vmatprep.mubr.bf16.mxu0 %v12365_v29  ;;  %3714 = vmatprep.mubr.bf16.mxu1 %v12365_v29 }
0x13b9   :  { %3632 = vmatpush1.bf16.msra.mxu0 %v8238_v7  ;;  %3685 = vmatpush1.bf16.msra.mxu1 %v8241_v8  ;;  %v11186_v7 = vld [vmem:[#allocation13 + $0xe0] ss:$16 sps:$4 sm:$0xff]   ;;  %v11188_v8 = vld [vmem:[#allocation13 + $0xe8] ss:$16 sps:$4 sm:$0xff]  }
0x13ba   :  { %3633 = vmatprep.subr.bf16.mxu0 %v8246_v9  ;;  %3686 = vmatprep.subr.bf16.mxu1 %v8249_v11 }
0x13bd   :  { %3634 = vmatpush1.bf16.msra.mxu0 %v8244_v28  ;;  %3687 = vmatpush1.bf16.msra.mxu1 %v8247_v6 }
0x13be   :  { %3635 = vmatprep.subr.bf16.mxu0 %v8252_v12  ;;  %3688 = vmatprep.subr.bf16.mxu1 %v8255_v14 }
0x13c1   :  { %3636 = vmatpush1.bf16.msra.mxu0 %v8250_v15  ;;  %3689 = vmatpush1.bf16.msra.mxu1 %v8253_v60 }
0x13c2   :  { %3637 = vmatprep.subr.bf16.mxu0 %v8258_v61  ;;  %3690 = vmatprep.subr.bf16.mxu1 %v8261_v17 }
0x13c5   :  { %3638 = vmatpush1.bf16.msra.mxu0 %v8256_v32  ;;  %3691 = vmatpush1.bf16.msra.mxu1 %v8259_v38 }
0x13c6   :  { %3639 = vmatprep.subr.bf16.mxu0 %v8264_v52  ;;  %3692 = vmatprep.subr.bf16.mxu1 %v8267_v22 }
0x13c9   :  { %3640 = vmatpush1.bf16.msra.mxu0 %v8262_v47  ;;  %3693 = vmatpush1.bf16.msra.mxu1 %v8265_v49 }
0x13ca   :  { %3641 = vmatprep.subr.bf16.mxu0 %v8270_v54  ;;  %3694 = vmatprep.subr.bf16.mxu1 %v8273_v57 }
0x13cd   :  { %3642 = vmatpush1.bf16.msra.mxu0 %v8268_v41  ;;  %3695 = vmatpush1.bf16.msra.mxu1 %v8271_v58 }
0x13ce   :  { %3643 = vmatprep.subr.bf16.mxu0 %v8276_v0  ;;  %3696 = vmatprep.subr.bf16.mxu1 %v8279_v19 }
0x13d1   :  { %3644 = vmatpush1.bf16.msra.mxu0 %v8274_v24  ;;  %3697 = vmatpush1.bf16.msra.mxu1 %v8277_v62 }
0x13d2   :  { %3927 = vmatprep.subr.bf16.mxu0 %v11098_v3  ;;  %3968 = vmatprep.subr.bf16.mxu1 %v11100_v42 }
0x13d4   :  { %3662 = vmatmul.mubr.bf16.vlgmr.msra.gmra.mrb[80].mxu0 %v10670_v20  ;;  %3715 = vmatmul.mubr.bf16.vlgmr.msra.gmra.mrb[80].mxu1 %v10670_v20  ;;  %v11110_v20 = vld [vmem:[#allocation13 + $0x24] ss:$16 sps:$4 sm:$0xff]  }
0x13d5   :  { %3671 = vmatprep.mubr.bf16.mxu0 %v12365_v29  ;;  %3724 = vmatprep.mubr.bf16.mxu1 %v12365_v29 }
0x13d6   :  { %3928 = vmatpush1.bf16.msra.mxu0 %v11102_v35  ;;  %3969 = vmatpush1.bf16.msra.mxu1 %v11104_v43 }
0x13d7   :  { %3929 = vmatprep.subr.bf16.mxu0 %v11110_v20  ;;  %3970 = vmatprep.subr.bf16.mxu1 %v11112_v48 }
0x13da   :  { %3930 = vmatpush1.bf16.msra.mxu0 %v11114_v25  ;;  %3971 = vmatpush1.bf16.msra.mxu1 %v11116_v40 }
0x13db   :  { %3931 = vmatprep.subr.bf16.mxu0 %v11118_v44  ;;  %3972 = vmatprep.subr.bf16.mxu1 %v11122_v16 }
0x13de   :  { %3932 = vmatpush1.bf16.msra.mxu0 %v11126_v33  ;;  %3973 = vmatpush1.bf16.msra.mxu1 %v11128_v36 }
0x13df   :  { %3933 = vmatprep.subr.bf16.mxu0 %v11132_v45  ;;  %3974 = vmatprep.subr.bf16.mxu1 %v11134_v34 }
0x13e2   :  { %3934 = vmatpush1.bf16.msra.mxu0 %v11138_v55  ;;  %3975 = vmatpush1.bf16.msra.mxu1 %v11140_v31 }
0x13e3   :  { %3935 = vmatprep.subr.bf16.mxu0 %v11144_v5  ;;  %3976 = vmatprep.subr.bf16.mxu1 %v11146_v56 }
0x13e6   :  { %3936 = vmatpush1.bf16.msra.mxu0 %v11150_v26  ;;  %3977 = vmatpush1.bf16.msra.mxu1 %v11152_v30 }
0x13e7   :  { %3937 = vmatprep.subr.bf16.mxu0 %v11156_v27  ;;  %3978 = vmatprep.subr.bf16.mxu1 %v11158_v39 }
0x13ea   :  { %3938 = vmatpush1.bf16.msra.mxu0 %v11162_v46  ;;  %3979 = vmatpush1.bf16.msra.mxu1 %v11164_v21 }
0x13eb   :  { %3939 = vmatprep.subr.bf16.mxu0 %v11168_v53  ;;  %3980 = vmatprep.subr.bf16.mxu1 %v11170_v2 }
0x13ee   :  { %3940 = vmatpush1.bf16.msra.mxu0 %v11174_v50  ;;  %3981 = vmatpush1.bf16.msra.mxu1 %v11176_v23 }
0x13ef   :  { %3941 = vmatprep.subr.bf16.mxu0 %v11180_v18  ;;  %3982 = vmatprep.subr.bf16.mxu1 %v11182_v51 }
0x13f2   :  { %3942 = vmatpush1.bf16.msra.mxu0 %v11186_v7  ;;  %3983 = vmatpush1.bf16.msra.mxu1 %v11188_v8 }
0x13f3   :  { %4038 = vmatprep.subr.bf16.mxu0 %v11098_v3  ;;  %4079 = vmatprep.subr.bf16.mxu1 %v11100_v42 }
0x1487   :  { %v3310_v9 = vpop.f32.mrb[76].mxu0  ;;  %v3351_v11 = vpop.f32.mrb[76].mxu1 }
0x1488   :  { %v3362_v28 = vrot.slane %v3310_v9, 2  ;;  %v3312_v6 = vpop.f32.mrb[77].mxu0  ;;  %v3353_v12 = vpop.f32.mrb[77].mxu1  ;;  %v3364_v54 = vrot.slane %v3351_v11, 2  ;;  %v3394_v9 = vrot.slane %v11083_v37, 6 }
0x1489   :  { %v3363_v14 = vrot.slane %v3312_v6, 2  ;;  %v3314_v15 = vpop.f32.mrb[78].mxu0  ;;  %v3355_v60 = vpop.f32.mrb[78].mxu1  ;;  %v3365_v47 = vrot.slane %v3353_v12, 2 }
0x148a   :  { %v3370_v61 = vadd.f32 %v3362_v28, %v12368_v59  ;;  %v3315_v17 = vpop.f32.mrb[79].mxu0  ;;  %v3356_v32 = vpop.f32.mrb[79].mxu1  ;;  %v3372_v41 = vadd.f32 %v3364_v54, %v12371_v13 }
0x148b   :  { %v3371_v38 = vadd.f32 %v3363_v14, %v12369_v4  ;;  %v3373_v49 = vadd.f32 %v3365_v47, %v12370_v10 }
0x148c   :  { %v7487_v52 = vmul.f32 -1.442695, %v3370_v61 }
0x148d   :  { %v7488_v22 = vmul.f32 -1.442695, %v3371_v38  ;;  %v7489_v57 = vmul.f32 -1.442695, %v3373_v49 }
0x148e   :  { %8652 = vpow2.f32 %v7487_v52 }
0x148f   :  { %8654 = vpow2.f32 %v7488_v22 }
0x1490   :  { %8656 = vpow2.f32 %v7489_v57 }
0x1491   :  { %8658 = vtanh.f32 %v3372_v41 }
0x1498   :  { %v8653_v58 = vpop.eup %8652 }
0x1499   :  { %v8655_v0 = vpop.eup %8654  ;;  %v3377_v19 = vadd.f32 1.0, %v8653_v58 }
0x149a   :  { %v3383_v59 = vadd.f32 1.0, %v8655_v0  ;;  %v8657_v4 = vpop.eup %8656 }
0x149b   :  { %8660 = vrcp.f32 %v3377_v19  ;;  %v8659_v24 = vpop.eup %8658  ;;  %v3390_v10 = vadd.f32 1.0, %v8657_v4  ;;  %v12379_v19 = vld [vmem:[#allocation64_spill] sm:$0xff] }
0x149c   :  { %8662 = vrcp.f32 %v3383_v59 }
0x149d   :  { %8664 = vrcp.f32 %v3390_v10 }
0x14a5   :  { %v8661_v62 = vpop.eup %8660 }
0x14a6   :  { %v8663_v28 = vpop.eup %8662  ;;  %v3397_v6 = vmul.f32 %v8661_v62, %v8659_v24  ;;  %v12382_v62 = vld [vmem:[#allocation66_spill] sm:$0xff] }
0x14a7   :  { %v3396_v11 = vmul.f32 %v8663_v28, %v3394_v9  ;;  %v11201_v12 = vpop.f32.mrb[80].mxu0  ;;  %v11203_v13 = vpop.f32.mrb[80].mxu1 }
0x14a8   :  { %v11205_v14 = vpop.f32.mrb[81].mxu0  ;;  %v11207_v15 = vpop.f32.mrb[81].mxu1 }
0x14a9   :  { %v3398_v60 = vadd.f32 %v3397_v6, %v3396_v11  ;;  %v11209_v61 = vpop.f32.mrb[82].mxu0  ;;  %v11211_v17 = vpop.f32.mrb[82].mxu1 }
0x14aa   :  { %12372 = vst [vmem:[#allocation68_spill] sm:$0xff] %v11211_v17  ;;  %v11213_v32 = vpop.f32.mrb[83].mxu0  ;;  %v11215_v37 = vpop.f32.mrb[83].mxu1 }
0x14ab   :  { %8666 = vtanh.f32 %v3398_v60  ;;  %v8665_v38 = vpop.eup %8664 }
0x14b5   :  { %v8667_v52 = vpop.eup %8666 }
0x14b6   :  { %v3400_v22 = vmul.f32 %v8667_v52, %v8665_v38 }
0x14b8   :  { %v3412_v47 = vsel %vm528_vm5, %v11090_v1, %v3400_v22  ;;  %v12383_v22 = vld [vmem:[#allocation63_spill] sm:$0xff] }
0x14b9   :  { %v3446_v49 = vpack.c.bf16 %v3412_v47, %v10856_v63  ;;  %v3447_v63 = vld [vmem:[#allocation15] sm:$0xf]  ;;  %v12384_v47 = vsub.s32 3, %v12383_v22 }
0x14ba   :  { %v11271_v59 = vrot.slane %v3447_v63, %v12379_v19  ;;  %v11278_v9 = vrot.slane %v3447_v63, %v12382_v62 }
0x14bb   :  { %3672 = vmatmul.mubr.bf16.gmra.mrb[84].mxu0 %v3446_v49  ;;  %3725 = vmatmul.mubr.bf16.gmra.mrb[84].mxu1 %v3446_v49  ;;  %v11291_v49 = vrot.slane %v3447_v63, %v12384_v47 }
0x14bc   :  { %3959 = vmatprep.mubr.bf16.mxu0 %v12365_v29  ;;  %4000 = vmatprep.mubr.bf16.mxu1 %v12365_v29  ;;  %v11282_v28 = vadd.f32 %v11201_v12, %v11271_v59  ;;  %v11286_v6 = vadd.f32 %v11205_v14, %v11278_v9 }
0x14bd   :  { %v11296_v14 = vadd.f32 %v11207_v15, %v11291_v49 }
0x14c3   :  { %3960 = vmatmul.mubr.bf16.vlgmr.msra.gmra.mrb[88].mxu0 %v12365_v29  ;;  %4001 = vmatmul.mubr.bf16.vlgmr.msra.gmra.mrb[88].mxu1 %v12365_v29 }
0x14c4   :  { %4039 = vmatpush1.bf16.msra.mxu0 %v11102_v35  ;;  %4080 = vmatpush1.bf16.msra.mxu1 %v11104_v43 }
0x14c5   :  { %4040 = vmatprep.subr.bf16.mxu0 %v11110_v20  ;;  %4081 = vmatprep.subr.bf16.mxu1 %v11112_v48 }
0x14c6   :  { %4070 = vmatprep.mubr.bf16.mxu0 %v12365_v29  ;;  %4111 = vmatprep.mubr.bf16.mxu1 %v12365_v29 }
0x14c8   :  { %4041 = vmatpush1.bf16.msra.mxu0 %v11114_v25  ;;  %4082 = vmatpush1.bf16.msra.mxu1 %v11116_v40 }
0x14c9   :  { %4042 = vmatprep.subr.bf16.mxu0 %v11118_v44  ;;  %4083 = vmatprep.subr.bf16.mxu1 %v11122_v16 }
0x14cc   :  { %4043 = vmatpush1.bf16.msra.mxu0 %v11126_v33  ;;  %4084 = vmatpush1.bf16.msra.mxu1 %v11128_v36 }
0x14cd   :  { %4044 = vmatprep.subr.bf16.mxu0 %v11132_v45  ;;  %4085 = vmatprep.subr.bf16.mxu1 %v11134_v34 }
0x14d0   :  { %4045 = vmatpush1.bf16.msra.mxu0 %v11138_v55  ;;  %4086 = vmatpush1.bf16.msra.mxu1 %v11140_v31 }
0x14d1   :  { %4046 = vmatprep.subr.bf16.mxu0 %v11144_v5  ;;  %4087 = vmatprep.subr.bf16.mxu1 %v11146_v56 }
0x14d4   :  { %4047 = vmatpush1.bf16.msra.mxu0 %v11150_v26  ;;  %4088 = vmatpush1.bf16.msra.mxu1 %v11152_v30 }
0x14d5   :  { %4048 = vmatprep.subr.bf16.mxu0 %v11156_v27  ;;  %4089 = vmatprep.subr.bf16.mxu1 %v11158_v39 }
0x14d8   :  { %4049 = vmatpush1.bf16.msra.mxu0 %v11162_v46  ;;  %4090 = vmatpush1.bf16.msra.mxu1 %v11164_v21 }
0x14d9   :  { %4050 = vmatprep.subr.bf16.mxu0 %v11168_v53  ;;  %4091 = vmatprep.subr.bf16.mxu1 %v11170_v2 }
0x14dc   :  { %4051 = vmatpush1.bf16.msra.mxu0 %v11174_v50  ;;  %4092 = vmatpush1.bf16.msra.mxu1 %v11176_v23 }
0x14dd   :  { %4052 = vmatprep.subr.bf16.mxu0 %v11180_v18  ;;  %4093 = vmatprep.subr.bf16.mxu1 %v11182_v51 }
0x14e0   :  { %4053 = vmatpush1.bf16.msra.mxu0 %v11186_v7  ;;  %4094 = vmatpush1.bf16.msra.mxu1 %v11188_v8 }
0x14e1   :  { %4167 = vmatprep.subr.bf16.mxu0 %v11098_v3  ;;  %4208 = vmatprep.subr.bf16.mxu1 %v11100_v42 }
0x158e   :  { %v11258_v1 = vpop.f32.mrb[84].mxu0  ;;  %v11260_v54 = vpop.f32.mrb[84].mxu1 }
0x158f   :  { %12373 = vst [vmem:[#allocation67_spill] sm:$0xff] %v11258_v1  ;;  %12374 = vst [vmem:[#allocation69_spill] sm:$0xff] %v11260_v54  ;;  %v11262_v57 = vpop.f32.mrb[85].mxu0  ;;  %v11264_v41 = vpop.f32.mrb[85].mxu1 }
0x1590   :  { %12375 = vst [vmem:[#allocation71_spill] sm:$0xff] %v11262_v57  ;;  %12376 = vst [vmem:[#allocation72_spill] sm:$0xff] %v11264_v41  ;;  %v11266_v58 = vpop.f32.mrb[86].mxu0  ;;  %v11268_v0 = vpop.f32.mrb[86].mxu1 }
0x1591   :  { %12377 = vst [vmem:[#allocation70_spill] sm:$0xff] %v11266_v58  ;;  %12378 = vst [vmem:[#allocation73_spill] sm:$0xff] %v11268_v0  ;;  %v11273_v4 = vpop.f32.mrb[87].mxu0  ;;  %v11275_v24 = vpop.f32.mrb[87].mxu1 }
0x1592   :  { %12380 = vst [vmem:[#allocation74_spill] sm:$0xff] %v11273_v4  ;;  %12381 = vst [vmem:[#allocation75_spill] sm:$0xff] %v11275_v24 }
0x1596   :  { %v3961_v10 = vpop.f32.mrb[88].mxu0  ;;  %v4002_v11 = vpop.f32.mrb[88].mxu1 }
0x1597   :  { %v4009_v60 = vadd.f32 %v3961_v10, %v11282_v28  ;;  %v3963_v38 = vpop.f32.mrb[89].mxu0  ;;  %v4004_v52 = vpop.f32.mrb[89].mxu1  ;;  %v12385_v10 = vld [vmem:[#allocation65_spill] sm:$0xff] }
0x1598   :  { %v4010_v62 = vadd.f32 %v3963_v38, %v11286_v6  ;;  %v3965_v19 = vpop.f32.mrb[90].mxu0  ;;  %v4006_v0 = vpop.f32.mrb[90].mxu1  ;;  %v11299_v54 = vrot.slane %v3447_v63, %v12385_v10  ;;  %v4012_v22 = vadd.f32 %v4004_v52, %v11296_v14 }
0x1599   :  { %v7554_v12 = vmul.f32 -1.442695, %v4009_v60  ;;  %v3966_v24 = vpop.f32.mrb[91].mxu0  ;;  %v4007_v4 = vpop.f32.mrb[91].mxu1 }
0x159a   :  { %v7555_v58 = vmul.f32 -1.442695, %v4010_v62  ;;  %12386 = vst [vmem:[#allocation63_spill] sm:$0xff] %v11299_v54  ;;  %v11304_v38 = vadd.f32 %v11203_v13, %v11299_v54  ;;  %v7556_v0 = vmul.f32 -1.442695, %v4012_v22 }
0x159b   :  { %8668 = vpow2.f32 %v7554_v12 }
0x159c   :  { %8670 = vpow2.f32 %v7555_v58  ;;  %v4011_v19 = vadd.f32 %v4002_v11, %v11304_v38 }
0x159d   :  { %8672 = vpow2.f32 %v7556_v0 }
0x159e   :  { %8674 = vtanh.f32 %v4011_v19 }
0x15a5   :  { %v8669_v4 = vpop.eup %8668 }
0x15a6   :  { %v8671_v24 = vpop.eup %8670  ;;  %v4016_v62 = vadd.f32 1.0, %v8669_v4 }
0x15a7   :  { %v4022_v15 = vadd.f32 1.0, %v8671_v24  ;;  %v8673_v58 = vpop.eup %8672 }
0x15a8   :  { %8676 = vrcp.f32 %v4016_v62  ;;  %v8675_v63 = vpop.eup %8674  ;;  %v4029_v12 = vadd.f32 1.0, %v8673_v58 }
0x15a9   :  { %8678 = vrcp.f32 %v4022_v15 }
0x15aa   :  { %8680 = vrcp.f32 %v4029_v12 }
0x15b2   :  { %v8677_v60 = vpop.eup %8676 }
0x15b3   :  { %v8679_v47 = vpop.eup %8678  ;;  %v4033_v52 = vmul.f32 %v8677_v60, %v8675_v63 }
0x15b4   :  { %v4032_v10 = vmul.f32 0.0, %v8679_v47  ;;  %v8681_v11 = vpop.eup %8680 }
0x15b6   :  { %v11307_v13 = vadd.f32 %v4033_v52, %v4032_v10 }
0x15b8   :  { %8682 = vtanh.f32 %v11307_v13 }
0x15c2   :  { %v8683_v22 = vpop.eup %8682 }
0x15c3   :  { %v11310_v4 = vmul.f32 %v8683_v22, %v8681_v11 }
0x15c5   :  { %v4037_v0 = vpack.c.bf16 %v11310_v4, %v11310_v4 }
0x15c7   :  { %4071 = vmatmul.mubr.bf16.vlgmr.msra.gmra.mrb[92].mxu0 %v4037_v0  ;;  %4112 = vmatmul.mubr.bf16.vlgmr.msra.gmra.mrb[92].mxu1 %v4037_v0 }
0x15c8   :  { %4168 = vmatpush1.bf16.msra.mxu0 %v11102_v35  ;;  %4209 = vmatpush1.bf16.msra.mxu1 %v11104_v43 }
0x15c9   :  { %4169 = vmatprep.subr.bf16.mxu0 %v11110_v20  ;;  %4210 = vmatprep.subr.bf16.mxu1 %v11112_v48 }
0x15ca   :  { %4199 = vmatprep.mubr.bf16.mxu0 %v12365_v29  ;;  %4240 = vmatprep.mubr.bf16.mxu1 %v12365_v29 }
0x15cc   :  { %4170 = vmatpush1.bf16.msra.mxu0 %v11114_v25  ;;  %4211 = vmatpush1.bf16.msra.mxu1 %v11116_v40 }
0x15cd   :  { %4171 = vmatprep.subr.bf16.mxu0 %v11118_v44  ;;  %4212 = vmatprep.subr.bf16.mxu1 %v11122_v16 }
0x15d0   :  { %4172 = vmatpush1.bf16.msra.mxu0 %v11126_v33  ;;  %4213 = vmatpush1.bf16.msra.mxu1 %v11128_v36 }
0x15d1   :  { %4173 = vmatprep.subr.bf16.mxu0 %v11132_v45  ;;  %4214 = vmatprep.subr.bf16.mxu1 %v11134_v34 }
0x15d4   :  { %4174 = vmatpush1.bf16.msra.mxu0 %v11138_v55  ;;  %4215 = vmatpush1.bf16.msra.mxu1 %v11140_v31 }
0x15d5   :  { %4175 = vmatprep.subr.bf16.mxu0 %v11144_v5  ;;  %4216 = vmatprep.subr.bf16.mxu1 %v11146_v56 }
0x15d8   :  { %4176 = vmatpush1.bf16.msra.mxu0 %v11150_v26  ;;  %4217 = vmatpush1.bf16.msra.mxu1 %v11152_v30 }
0x15d9   :  { %4177 = vmatprep.subr.bf16.mxu0 %v11156_v27  ;;  %4218 = vmatprep.subr.bf16.mxu1 %v11158_v39 }
0x15dc   :  { %4178 = vmatpush1.bf16.msra.mxu0 %v11162_v46  ;;  %4219 = vmatpush1.bf16.msra.mxu1 %v11164_v21 }
0x15dd   :  { %4179 = vmatprep.subr.bf16.mxu0 %v11168_v53  ;;  %4220 = vmatprep.subr.bf16.mxu1 %v11170_v2 }
0x15e0   :  { %4180 = vmatpush1.bf16.msra.mxu0 %v11174_v50  ;;  %4221 = vmatpush1.bf16.msra.mxu1 %v11176_v23 }
0x15e1   :  { %4181 = vmatprep.subr.bf16.mxu0 %v11180_v18  ;;  %4222 = vmatprep.subr.bf16.mxu1 %v11182_v51 }
0x15e4   :  { %4182 = vmatpush1.bf16.msra.mxu0 %v11186_v7  ;;  %4223 = vmatpush1.bf16.msra.mxu1 %v11188_v8 }
0x15e5   :  { %4296 = vmatprep.subr.bf16.mxu0 %v11098_v3  ;;  %4337 = vmatprep.subr.bf16.mxu1 %v11100_v42 }
0x169a   :  { %v4072_v10 = vpop.f32.mrb[92].mxu0  ;;  %v4113_v19 = vpop.f32.mrb[92].mxu1 }
0x169b   :  { %v4124_v24 = vrot.slane %v4072_v10, 6  ;;  %v4074_v62 = vpop.f32.mrb[93].mxu0  ;;  %v4115_v15 = vpop.f32.mrb[93].mxu1  ;;  %v4126_v1 = vrot.slane %v4113_v19, 6 }
0x169c   :  { %v4125_v58 = vrot.slane %v4074_v62, 6  ;;  %v4076_v63 = vpop.f32.mrb[94].mxu0  ;;  %v4117_v60 = vpop.f32.mrb[94].mxu1  ;;  %v4127_v41 = vrot.slane %v4115_v15, 6  ;;  %v4156_v15 = vrot.slane %v11307_v13, 6 }
0x169d   :  { %v4132_v47 = vadd.f32 %v4124_v24, %v11282_v28  ;;  %v4077_v52 = vpop.f32.mrb[95].mxu0  ;;  %v4118_v12 = vpop.f32.mrb[95].mxu1  ;;  %v4134_v17 = vadd.f32 %v4126_v1, %v11304_v38 }
0x169e   :  { %v4133_v11 = vadd.f32 %v4125_v58, %v11286_v6  ;;  %v4135_v57 = vadd.f32 %v4127_v41, %v11296_v14 }
0x169f   :  { %v7557_v22 = vmul.f32 -1.442695, %v4132_v47 }
0x16a0   :  { %v7558_v0 = vmul.f32 -1.442695, %v4133_v11  ;;  %v7559_v10 = vmul.f32 -1.442695, %v4135_v57 }
0x16a1   :  { %8684 = vpow2.f32 %v7557_v22 }
0x16a2   :  { %8686 = vpow2.f32 %v7558_v0 }
0x16a3   :  { %8688 = vpow2.f32 %v7559_v10 }
0x16a4   :  { %8690 = vtanh.f32 %v4134_v17 }
0x16ab   :  { %v8685_v62 = vpop.eup %8684 }
0x16ac   :  { %v8687_v63 = vpop.eup %8686  ;;  %v4139_v60 = vadd.f32 1.0, %v8685_v62 }
0x16ad   :  { %v4145_v24 = vadd.f32 1.0, %v8687_v63  ;;  %v8689_v58 = vpop.eup %8688 }
0x16ae   :  { %8692 = vrcp.f32 %v4139_v60  ;;  %v8691_v47 = vpop.eup %8690  ;;  %v4152_v41 = vadd.f32 1.0, %v8689_v58 }
0x16af   :  { %8694 = vrcp.f32 %v4145_v24 }
0x16b0   :  { %8696 = vrcp.f32 %v4152_v41 }
0x16b8   :  { %v8693_v52 = vpop.eup %8692 }
0x16b9   :  { %v8695_v12 = vpop.eup %8694  ;;  %v4159_v11 = vmul.f32 %v8693_v52, %v8691_v47 }
0x16ba   :  { %v4158_v19 = vmul.f32 %v8695_v12, %v4156_v15  ;;  %v8697_v1 = vpop.eup %8696 }
0x16bc   :  { %v11353_v57 = vadd.f32 %v4159_v11, %v4158_v19 }
0x16be   :  { %8698 = vtanh.f32 %v11353_v57 }
0x16c8   :  { %v8699_v22 = vpop.eup %8698 }
0x16c9   :  { %v11356_v17 = vmul.f32 %v8699_v22, %v8697_v1 }
0x16cb   :  { %v4163_v0 = vpack.c.bf16 %v11356_v17, %v11356_v17 }
0x16cd   :  { %v4165_v10 = vrot.slane %v4163_v0, 1 }
0x16cf   :  { %4200 = vmatmul.mubr.bf16.vlgmr.msra.gmra.mrb[96].mxu0 %v4165_v10  ;;  %4241 = vmatmul.mubr.bf16.vlgmr.msra.gmra.mrb[96].mxu1 %v4165_v10 }
0x16d0   :  { %4297 = vmatpush1.bf16.msra.mxu0 %v11102_v35  ;;  %4338 = vmatpush1.bf16.msra.mxu1 %v11104_v43 }
0x16d1   :  { %4298 = vmatprep.subr.bf16.mxu0 %v11110_v20  ;;  %4339 = vmatprep.subr.bf16.mxu1 %v11112_v48 }
0x16d2   :  { %4328 = vmatprep.mubr.bf16.mxu0 %v12365_v29  ;;  %4369 = vmatprep.mubr.bf16.mxu1 %v12365_v29 }
0x16d4   :  { %4299 = vmatpush1.bf16.msra.mxu0 %v11114_v25  ;;  %4340 = vmatpush1.bf16.msra.mxu1 %v11116_v40 }
0x16d5   :  { %4300 = vmatprep.subr.bf16.mxu0 %v11118_v44  ;;  %4341 = vmatprep.subr.bf16.mxu1 %v11122_v16 }
0x16d8   :  { %4301 = vmatpush1.bf16.msra.mxu0 %v11126_v33  ;;  %4342 = vmatpush1.bf16.msra.mxu1 %v11128_v36 }
0x16d9   :  { %4302 = vmatprep.subr.bf16.mxu0 %v11132_v45  ;;  %4343 = vmatprep.subr.bf16.mxu1 %v11134_v34 }
0x16dc   :  { %4303 = vmatpush1.bf16.msra.mxu0 %v11138_v55  ;;  %4344 = vmatpush1.bf16.msra.mxu1 %v11140_v31 }
0x16dd   :  { %4304 = vmatprep.subr.bf16.mxu0 %v11144_v5  ;;  %4345 = vmatprep.subr.bf16.mxu1 %v11146_v56 }
0x16e0   :  { %4305 = vmatpush1.bf16.msra.mxu0 %v11150_v26  ;;  %4346 = vmatpush1.bf16.msra.mxu1 %v11152_v30 }
0x16e1   :  { %4306 = vmatprep.subr.bf16.mxu0 %v11156_v27  ;;  %4347 = vmatprep.subr.bf16.mxu1 %v11158_v39 }
0x16e4   :  { %4307 = vmatpush1.bf16.msra.mxu0 %v11162_v46  ;;  %4348 = vmatpush1.bf16.msra.mxu1 %v11164_v21 }
0x16e5   :  { %4308 = vmatprep.subr.bf16.mxu0 %v11168_v53  ;;  %4349 = vmatprep.subr.bf16.mxu1 %v11170_v2 }
0x16e8   :  { %4309 = vmatpush1.bf16.msra.mxu0 %v11174_v50  ;;  %4350 = vmatpush1.bf16.msra.mxu1 %v11176_v23 }
0x16e9   :  { %4310 = vmatprep.subr.bf16.mxu0 %v11180_v18  ;;  %4351 = vmatprep.subr.bf16.mxu1 %v11182_v51 }
0x16ec   :  { %4311 = vmatpush1.bf16.msra.mxu0 %v11186_v7  ;;  %4352 = vmatpush1.bf16.msra.mxu1 %v11188_v8 }
0x16ed   :  { %4425 = vmatprep.subr.bf16.mxu0 %v11098_v3  ;;  %4466 = vmatprep.subr.bf16.mxu1 %v11100_v42 }
0x17a2   :  { %v4201_v13 = vpop.f32.mrb[96].mxu0  ;;  %v4242_v62 = vpop.f32.mrb[96].mxu1 }
0x17a3   :  { %v4253_v63 = vrot.slane %v4201_v13, 4  ;;  %v4203_v60 = vpop.f32.mrb[97].mxu0  ;;  %v4244_v24 = vpop.f32.mrb[97].mxu1  ;;  %v4255_v10 = vrot.slane %v4242_v62, 4 }
0x17a4   :  { %v4254_v58 = vrot.slane %v4203_v60, 4  ;;  %v4205_v47 = vpop.f32.mrb[98].mxu0  ;;  %v4246_v52 = vpop.f32.mrb[98].mxu1  ;;  %v4256_v22 = vrot.slane %v4244_v24, 4  ;;  %v4285_v24 = vrot.slane %v11353_v57, 6 }
0x17a5   :  { %v4261_v15 = vadd.f32 %v4253_v63, %v11282_v28  ;;  %v4206_v12 = vpop.f32.mrb[99].mxu0  ;;  %v4247_v11 = vpop.f32.mrb[99].mxu1  ;;  %v4263_v54 = vadd.f32 %v4255_v10, %v11304_v38  ;;  %v5924_v10 = vsel %vm563_vm4, %v11310_v4, %v11356_v17 }
0x17a6   :  { %v4262_v41 = vadd.f32 %v4254_v58, %v11286_v6  ;;  %v4264_v0 = vadd.f32 %v4256_v22, %v11296_v14 }
0x17a7   :  { %v7560_v19 = vmul.f32 -1.442695, %v4261_v15 }
0x17a8   :  { %v7561_v1 = vmul.f32 -1.442695, %v4262_v41  ;;  %v7562_v13 = vmul.f32 -1.442695, %v4264_v0 }
0x17a9   :  { %8700 = vpow2.f32 %v7560_v19 }
0x17aa   :  { %8702 = vpow2.f32 %v7561_v1 }
0x17ab   :  { %8704 = vpow2.f32 %v7562_v13 }
0x17ac   :  { %8706 = vtanh.f32 %v4263_v54 }
0x17b3   :  { %v8701_v60 = vpop.eup %8700 }
0x17b4   :  { %v8703_v47 = vpop.eup %8702  ;;  %v4268_v52 = vadd.f32 1.0, %v8701_v60 }
0x17b5   :  { %v4274_v63 = vadd.f32 1.0, %v8703_v47  ;;  %v8705_v58 = vpop.eup %8704 }
0x17b6   :  { %8708 = vrcp.f32 %v4268_v52  ;;  %v8707_v15 = vpop.eup %8706  ;;  %v4281_v19 = vadd.f32 1.0, %v8705_v58 }
0x17b7   :  { %8710 = vrcp.f32 %v4274_v63 }
0x17b8   :  { %8712 = vrcp.f32 %v4281_v19 }
0x17c0   :  { %v8709_v12 = vpop.eup %8708 }
0x17c1   :  { %v8711_v11 = vpop.eup %8710  ;;  %v4288_v41 = vmul.f32 %v8709_v12, %v8707_v15 }
0x17c2   :  { %v4287_v62 = vmul.f32 %v8711_v11, %v4285_v24  ;;  %v8713_v22 = vpop.eup %8712 }
0x17c4   :  { %v11399_v1 = vadd.f32 %v4288_v41, %v4287_v62 }
0x17c6   :  { %8714 = vtanh.f32 %v11399_v1 }
0x17d0   :  { %v8715_v0 = vpop.eup %8714 }
0x17d1   :  { %v4291_v54 = vmul.f32 %v8715_v0, %v8713_v22 }
0x17d3   :  { %v4292_v13 = vpack.c.bf16 %v4291_v54, %v4291_v54  ;;  %v11406_v60 = vsel %vm511_vm2, %v5924_v10, %v4291_v54 }
0x17d5   :  { %v4294_v57 = vrot.slane %v4292_v13, 2 }
0x17d7   :  { %4329 = vmatmul.mubr.bf16.vlgmr.msra.gmra.mrb[100].mxu0 %v4294_v57  ;;  %4370 = vmatmul.mubr.bf16.vlgmr.msra.gmra.mrb[100].mxu1 %v4294_v57 }
0x17d8   :  { %4426 = vmatpush1.bf16.msra.mxu0 %v11102_v35  ;;  %4467 = vmatpush1.bf16.msra.mxu1 %v11104_v43 }
0x17d9   :  { %4427 = vmatprep.subr.bf16.mxu0 %v11110_v20  ;;  %4468 = vmatprep.subr.bf16.mxu1 %v11112_v48 }
0x17da   :  { %4457 = vmatprep.mubr.bf16.mxu0 %v12365_v29  ;;  %4498 = vmatprep.mubr.bf16.mxu1 %v12365_v29 }
0x17dc   :  { %4428 = vmatpush1.bf16.msra.mxu0 %v11114_v25  ;;  %4469 = vmatpush1.bf16.msra.mxu1 %v11116_v40 }
0x17dd   :  { %4429 = vmatprep.subr.bf16.mxu0 %v11118_v44  ;;  %4470 = vmatprep.subr.bf16.mxu1 %v11122_v16 }
0x17e0   :  { %4430 = vmatpush1.bf16.msra.mxu0 %v11126_v33  ;;  %4471 = vmatpush1.bf16.msra.mxu1 %v11128_v36 }
0x17e1   :  { %4431 = vmatprep.subr.bf16.mxu0 %v11132_v45  ;;  %4472 = vmatprep.subr.bf16.mxu1 %v11134_v34 }
0x17e4   :  { %4432 = vmatpush1.bf16.msra.mxu0 %v11138_v55  ;;  %4473 = vmatpush1.bf16.msra.mxu1 %v11140_v31 }
0x17e5   :  { %4433 = vmatprep.subr.bf16.mxu0 %v11144_v5  ;;  %4474 = vmatprep.subr.bf16.mxu1 %v11146_v56 }
0x17e8   :  { %4434 = vmatpush1.bf16.msra.mxu0 %v11150_v26  ;;  %4475 = vmatpush1.bf16.msra.mxu1 %v11152_v30 }
0x17e9   :  { %4435 = vmatprep.subr.bf16.mxu0 %v11156_v27  ;;  %4476 = vmatprep.subr.bf16.mxu1 %v11158_v39 }
0x17ec   :  { %4436 = vmatpush1.bf16.msra.mxu0 %v11162_v46  ;;  %4477 = vmatpush1.bf16.msra.mxu1 %v11164_v21 }
0x17ed   :  { %4437 = vmatprep.subr.bf16.mxu0 %v11168_v53  ;;  %4478 = vmatprep.subr.bf16.mxu1 %v11170_v2 }
0x17f0   :  { %4438 = vmatpush1.bf16.msra.mxu0 %v11174_v50  ;;  %4479 = vmatpush1.bf16.msra.mxu1 %v11176_v23 }
0x17f1   :  { %4439 = vmatprep.subr.bf16.mxu0 %v11180_v18  ;;  %4480 = vmatprep.subr.bf16.mxu1 %v11182_v51 }
0x17f4   :  { %4440 = vmatpush1.bf16.msra.mxu0 %v11186_v7  ;;  %4481 = vmatpush1.bf16.msra.mxu1 %v11188_v8 }
0x17f5   :  { %4539 = vmatprep.subr.bf16.mxu0 %v11098_v3  ;;  %4580 = vmatprep.subr.bf16.mxu1 %v11100_v42 }
0x18aa   :  { %v4330_v4 = vpop.f32.mrb[100].mxu0  ;;  %v4371_v17 = vpop.f32.mrb[100].mxu1 }
0x18ab   :  { %v4382_v47 = vrot.slane %v4330_v4, 2  ;;  %v4332_v52 = vpop.f32.mrb[101].mxu0  ;;  %v4373_v63 = vpop.f32.mrb[101].mxu1  ;;  %v4384_v10 = vrot.slane %v4371_v17, 2 }
0x18ac   :  { %v4383_v58 = vrot.slane %v4332_v52, 2  ;;  %v4334_v15 = vpop.f32.mrb[102].mxu0  ;;  %v4375_v12 = vpop.f32.mrb[102].mxu1  ;;  %v4385_v0 = vrot.slane %v4373_v63, 2  ;;  %v4414_v63 = vrot.slane %v11399_v1, 6 }
0x18ad   :  { %v4390_v24 = vadd.f32 %v4382_v47, %v11282_v28  ;;  %v4335_v11 = vpop.f32.mrb[103].mxu0  ;;  %v4376_v41 = vpop.f32.mrb[103].mxu1  ;;  %v4392_v57 = vadd.f32 %v4384_v10, %v11304_v38  ;;  %v11516_v10 = vld [vmem:[#allocation13] ss:$16 sps:$4 sm:$0xff]  }
0x18ae   :  { %v4391_v19 = vadd.f32 %v4383_v58, %v11286_v6  ;;  %v4393_v54 = vadd.f32 %v4385_v0, %v11296_v14 }
0x18af   :  { %v7563_v62 = vmul.f32 -1.442695, %v4390_v24 }
0x18b0   :  { %v7564_v22 = vmul.f32 -1.442695, %v4391_v19  ;;  %v7565_v13 = vmul.f32 -1.442695, %v4393_v54 }
0x18b1   :  { %8716 = vpow2.f32 %v7563_v62 }
0x18b2   :  { %8718 = vpow2.f32 %v7564_v22 }
0x18b3   :  { %8720 = vpow2.f32 %v7565_v13  ;;  %v11519_v13 = vld [vmem:[#allocation13 + $0x8] ss:$16 sps:$4 sm:$0xff]  }
0x18b4   :  { %8722 = vtanh.f32 %v4392_v57  ;;  %v11522_v57 = vld [vmem:[#allocation13 + $0x24] ss:$16 sps:$4 sm:$0xff]  }
0x18bb   :  { %v8717_v4 = vpop.eup %8716 }
0x18bc   :  { %v8719_v52 = vpop.eup %8718  ;;  %v4397_v15 = vadd.f32 1.0, %v8717_v4  ;;  %v11525_v4 = vld [vmem:[#allocation13 + $0x2c] ss:$16 sps:$4 sm:$0xff]  }
0x18bd   :  { %v4403_v28 = vadd.f32 1.0, %v8719_v52  ;;  %v8721_v6 = vpop.eup %8720  ;;  %v11530_v52 = vld [vmem:[#allocation13 + $0x20] ss:$16 sps:$4 sm:$0xff]  }
0x18be   :  { %8724 = vrcp.f32 %v4397_v15  ;;  %v8723_v47 = vpop.eup %8722  ;;  %v4410_v14 = vadd.f32 1.0, %v8721_v6  ;;  %v11533_v15 = vld [vmem:[#allocation13 + $0x28] ss:$16 sps:$4 sm:$0xff]   ;;  %v11539_v6 = vld [vmem:[#allocation13 + $0x4c] ss:$16 sps:$4 sm:$0xff]  }
0x18bf   :  { %8726 = vrcp.f32 %v4403_v28  ;;  %v11536_v28 = vld [vmem:[#allocation13 + $0x44] ss:$16 sps:$4 sm:$0xff]  }
0x18c0   :  { %8728 = vrcp.f32 %v4410_v14  ;;  %v11557_v14 = vld [vmem:[#allocation13 + $0x68] ss:$16 sps:$4 sm:$0xff]  }
0x18c8   :  { %v8725_v58 = vpop.eup %8724 }
0x18c9   :  { %v8727_v12 = vpop.eup %8726  ;;  %v4417_v24 = vmul.f32 %v8725_v58, %v8723_v47  ;;  %v11542_v47 = vld [vmem:[#allocation13 + $0x40] ss:$16 sps:$4 sm:$0xff]   ;;  %v11545_v58 = vld [vmem:[#allocation13 + $0x48] ss:$16 sps:$4 sm:$0xff]  }
0x18ca   :  { %v4416_v17 = vmul.f32 %v8727_v12, %v4414_v63  ;;  %v8729_v38 = vpop.eup %8728  ;;  %v11548_v63 = vld [vmem:[#allocation13 + $0x64] ss:$16 sps:$4 sm:$0xff]   ;;  %v11551_v12 = vld [vmem:[#allocation13 + $0x6c] ss:$16 sps:$4 sm:$0xff]  }
0x18cc   :  { %v11447_v11 = vadd.f32 %v4417_v24, %v4416_v17  ;;  %v11554_v24 = vld [vmem:[#allocation13 + $0x60] ss:$16 sps:$4 sm:$0xff]   ;;  %v11560_v17 = vld [vmem:[#allocation13 + $0x84] ss:$16 sps:$4 sm:$0xff]  }
0x18ce   :  { %8730 = vtanh.f32 %v11447_v11 }
0x18d8   :  { %v8731_v41 = vpop.eup %8730 }
0x18d9   :  { %v4420_v19 = vmul.f32 %v8731_v41, %v8729_v38  ;;  %v11566_v38 = vld [vmem:[#allocation13 + $0x80] ss:$16 sps:$4 sm:$0xff]   ;;  %v11569_v41 = vld [vmem:[#allocation13 + $0x88] ss:$16 sps:$4 sm:$0xff]  }
0x18db   :  { %v4421_v62 = vpack.c.bf16 %v4420_v19, %v4420_v19  ;;  %v11452_v22 = vsel %vm528_vm5, %v11406_v60, %v4420_v19  ;;  %v11572_v19 = vld [vmem:[#allocation13 + $0xa4] ss:$16 sps:$4 sm:$0xff]  }
0x18dd   :  { %v4423_v0 = vrot.slane %v4421_v62, 3  ;;  %v11575_v62 = vld [vmem:[#allocation13 + $0xac] ss:$16 sps:$4 sm:$0xff]  }
0x18df   :  { %4458 = vmatmul.mubr.bf16.vlgmr.msra.gmra.mrb[104].mxu0 %v4423_v0  ;;  %4499 = vmatmul.mubr.bf16.vlgmr.msra.gmra.mrb[104].mxu1 %v4423_v0  ;;  %v11578_v0 = vld [vmem:[#allocation13 + $0xa0] ss:$16 sps:$4 sm:$0xff]  }
0x18e0   :  { %4540 = vmatpush1.bf16.msra.mxu0 %v11102_v35  ;;  %4581 = vmatpush1.bf16.msra.mxu1 %v11104_v43  ;;  %v11490_v35 = vadd.f32 %v11209_v61, %v11271_v59  ;;  %v11494_v43 = vadd.f32 %v11213_v32, %v11278_v9 }
0x18e1   :  { %4541 = vmatprep.subr.bf16.mxu0 %v11110_v20  ;;  %4582 = vmatprep.subr.bf16.mxu1 %v11112_v48 }
0x18e2   :  { %4571 = vmatprep.mubr.bf16.mxu0 %v12365_v29  ;;  %4612 = vmatprep.mubr.bf16.mxu1 %v12365_v29 }
0x18e4   :  { %4542 = vmatpush1.bf16.msra.mxu0 %v11114_v25  ;;  %4583 = vmatpush1.bf16.msra.mxu1 %v11116_v40 }
0x18e5   :  { %4543 = vmatprep.subr.bf16.mxu0 %v11118_v44  ;;  %4584 = vmatprep.subr.bf16.mxu1 %v11122_v16 }
0x18e8   :  { %4544 = vmatpush1.bf16.msra.mxu0 %v11126_v33  ;;  %4585 = vmatpush1.bf16.msra.mxu1 %v11128_v36 }
0x18e9   :  { %4545 = vmatprep.subr.bf16.mxu0 %v11132_v45  ;;  %4586 = vmatprep.subr.bf16.mxu1 %v11134_v34 }
0x18ec   :  { %4546 = vmatpush1.bf16.msra.mxu0 %v11138_v55  ;;  %4587 = vmatpush1.bf16.msra.mxu1 %v11140_v31  ;;  %v11500_v55 = vadd.f32 %v11215_v37, %v11291_v49 }
0x18ed   :  { %4547 = vmatprep.subr.bf16.mxu0 %v11144_v5  ;;  %4588 = vmatprep.subr.bf16.mxu1 %v11146_v56  ;;  %v12387_v5 = vld [vmem:[#allocation63_spill] sm:$0xff]  ;;  %v12388_v56 = vld [vmem:[#allocation68_spill] sm:$0xff] }
0x18f0   :  { %4548 = vmatpush1.bf16.msra.mxu0 %v11150_v26  ;;  %4589 = vmatpush1.bf16.msra.mxu1 %v11152_v30  ;;  %v11505_v26 = vadd.f32 %v12388_v56, %v12387_v5 }
0x18f1   :  { %4549 = vmatprep.subr.bf16.mxu0 %v11156_v27  ;;  %4590 = vmatprep.subr.bf16.mxu1 %v11158_v39 }
0x18f4   :  { %4550 = vmatpush1.bf16.msra.mxu0 %v11162_v46  ;;  %4591 = vmatpush1.bf16.msra.mxu1 %v11164_v21 }
0x18f5   :  { %4551 = vmatprep.subr.bf16.mxu0 %v11168_v53  ;;  %4592 = vmatprep.subr.bf16.mxu1 %v11170_v2 }
0x18f8   :  { %4552 = vmatpush1.bf16.msra.mxu0 %v11174_v50  ;;  %4593 = vmatpush1.bf16.msra.mxu1 %v11176_v23 }
0x18f9   :  { %4553 = vmatprep.subr.bf16.mxu0 %v11180_v18  ;;  %4594 = vmatprep.subr.bf16.mxu1 %v11182_v51  ;;  %v4531_v18 = vrot.slane %v11447_v11, 6  ;;  %v11563_v11 = vld [vmem:[#allocation13 + $0x8c] ss:$16 sps:$4 sm:$0xff]  }
0x18fc   :  { %4554 = vmatpush1.bf16.msra.mxu0 %v11186_v7  ;;  %4595 = vmatpush1.bf16.msra.mxu1 %v11188_v8 }
0x18fd   :  { %4668 = vmatprep.subr.bf16.mxu0 %v11098_v3  ;;  %4709 = vmatprep.subr.bf16.mxu1 %v11100_v42 }
0x19b2   :  { %v4459_v20 = vpop.f32.mrb[104].mxu0  ;;  %v4500_v48 = vpop.f32.mrb[104].mxu1 }
0x19b3   :  { %v4507_v25 = vadd.f32 %v4459_v20, %v11490_v35  ;;  %v4461_v40 = vpop.f32.mrb[105].mxu0  ;;  %v4502_v44 = vpop.f32.mrb[105].mxu1  ;;  %v4509_v27 = vadd.f32 %v4500_v48, %v11505_v26  ;;  %v11581_v20 = vld [vmem:[#allocation13 + $0xa8] ss:$16 sps:$4 sm:$0xff]   ;;  %v11584_v48 = vld [vmem:[#allocation13 + $0xc4] ss:$16 sps:$4 sm:$0xff]  }
0x19b4   :  { %v4508_v16 = vadd.f32 %v4461_v40, %v11494_v43  ;;  %v4463_v33 = vpop.f32.mrb[106].mxu0  ;;  %v4504_v3 = vpop.f32.mrb[106].mxu1  ;;  %v4510_v31 = vadd.f32 %v4502_v44, %v11500_v55  ;;  %v11590_v40 = vld [vmem:[#allocation13 + $0xc0] ss:$16 sps:$4 sm:$0xff]   ;;  %v11593_v44 = vld [vmem:[#allocation13 + $0xc8] ss:$16 sps:$4 sm:$0xff]  }
0x19b5   :  { %v7566_v36 = vmul.f32 -1.442695, %v4507_v25  ;;  %v4464_v42 = vpop.f32.mrb[107].mxu0  ;;  %v4505_v45 = vpop.f32.mrb[107].mxu1  ;;  %v11587_v25 = vld [vmem:[#allocation13 + $0xcc] ss:$16 sps:$4 sm:$0xff]  }
0x19b6   :  { %v7567_v34 = vmul.f32 -1.442695, %v4508_v16  ;;  %v7568_v30 = vmul.f32 -1.442695, %v4510_v31  ;;  %v11596_v16 = vld [vmem:[#allocation13 + $0xe4] ss:$16 sps:$4 sm:$0xff]  }
0x19b7   :  { %8732 = vpow2.f32 %v7566_v36  ;;  %v11599_v33 = vld [vmem:[#allocation13 + $0xec] ss:$16 sps:$4 sm:$0xff]   ;;  %v11602_v3 = vld [vmem:[#allocation13 + $0xe0] ss:$16 sps:$4 sm:$0xff]   ;;  %v11605_v36 = vld [vmem:[#allocation13 + $0xe8] ss:$16 sps:$4 sm:$0xff]  }
0x19b8   :  { %8734 = vpow2.f32 %v7567_v34  ;;  %v11608_v42 = vld [vmem:[#allocation13 + $0x4] ss:$16 sps:$4 sm:$0xff]   ;;  %v11611_v45 = vld [vmem:[#allocation13 + $0xc] ss:$16 sps:$4 sm:$0xff]  }
0x19b9   :  { %8736 = vpow2.f32 %v7568_v30 }
0x19ba   :  { %8738 = vtanh.f32 %v4509_v27 }
0x19c1   :  { %v8733_v39 = vpop.eup %8732 }
0x19c2   :  { %v8735_v46 = vpop.eup %8734  ;;  %v4514_v21 = vadd.f32 1.0, %v8733_v39 }
0x19c3   :  { %v4520_v53 = vadd.f32 1.0, %v8735_v46  ;;  %v8737_v2 = vpop.eup %8736 }
0x19c4   :  { %8740 = vrcp.f32 %v4514_v21  ;;  %v8739_v50 = vpop.eup %8738  ;;  %v4527_v8 = vadd.f32 1.0, %v8737_v2 }
0x19c5   :  { %8742 = vrcp.f32 %v4520_v53 }
0x19c6   :  { %8744 = vrcp.f32 %v4527_v8 }
0x19ce   :  { %v8741_v23 = vpop.eup %8740 }
0x19cf   :  { %v8743_v51 = vpop.eup %8742  ;;  %v4534_v7 = vmul.f32 %v8741_v23, %v8739_v50 }
0x19d0   :  { %v4533_v61 = vmul.f32 %v8743_v51, %v4531_v18  ;;  %v8745_v37 = vpop.eup %8744 }
0x19d2   :  { %v11509_v32 = vadd.f32 %v4534_v7, %v4533_v61 }
0x19d4   :  { %8746 = vtanh.f32 %v11509_v32 }
0x19de   :  { %v8747_v1 = vpop.eup %8746 }
0x19df   :  { %v11512_v60 = vmul.f32 %v8747_v1, %v8745_v37 }
0x19e1   :  { %v4538_v54 = vpack.c.bf16 %v11512_v60, %v11512_v60 }
0x19e3   :  { %4572 = vmatmul.mubr.bf16.vlgmr.msra.gmra.mrb[108].mxu0 %v4538_v54  ;;  %4613 = vmatmul.mubr.bf16.vlgmr.msra.gmra.mrb[108].mxu1 %v4538_v54 }
0x19e4   :  { %4669 = vmatpush1.bf16.msra.mxu0 %v11516_v10  ;;  %4710 = vmatpush1.bf16.msra.mxu1 %v11519_v13 }
0x19e5   :  { %4670 = vmatprep.subr.bf16.mxu0 %v11522_v57  ;;  %4711 = vmatprep.subr.bf16.mxu1 %v11525_v4 }
0x19e6   :  { %4700 = vmatprep.mubr.bf16.mxu0 %v12365_v29  ;;  %4741 = vmatprep.mubr.bf16.mxu1 %v12365_v29 }
0x19e8   :  { %4671 = vmatpush1.bf16.msra.mxu0 %v11530_v52  ;;  %4712 = vmatpush1.bf16.msra.mxu1 %v11533_v15 }
0x19e9   :  { %4672 = vmatprep.subr.bf16.mxu0 %v11536_v28  ;;  %4713 = vmatprep.subr.bf16.mxu1 %v11539_v6 }
0x19ec   :  { %4673 = vmatpush1.bf16.msra.mxu0 %v11542_v47  ;;  %4714 = vmatpush1.bf16.msra.mxu1 %v11545_v58 }
0x19ed   :  { %4674 = vmatprep.subr.bf16.mxu0 %v11548_v63  ;;  %4715 = vmatprep.subr.bf16.mxu1 %v11551_v12 }
0x19f0   :  { %4675 = vmatpush1.bf16.msra.mxu0 %v11554_v24  ;;  %4716 = vmatpush1.bf16.msra.mxu1 %v11557_v14 }
0x19f1   :  { %4676 = vmatprep.subr.bf16.mxu0 %v11560_v17  ;;  %4717 = vmatprep.subr.bf16.mxu1 %v11563_v11 }
0x19f4   :  { %4677 = vmatpush1.bf16.msra.mxu0 %v11566_v38  ;;  %4718 = vmatpush1.bf16.msra.mxu1 %v11569_v41 }
0x19f5   :  { %4678 = vmatprep.subr.bf16.mxu0 %v11572_v19  ;;  %4719 = vmatprep.subr.bf16.mxu1 %v11575_v62 }
0x19f8   :  { %4679 = vmatpush1.bf16.msra.mxu0 %v11578_v0  ;;  %4720 = vmatpush1.bf16.msra.mxu1 %v11581_v20 }
0x19f9   :  { %4680 = vmatprep.subr.bf16.mxu0 %v11584_v48  ;;  %4721 = vmatprep.subr.bf16.mxu1 %v11587_v25 }
0x19fc   :  { %4681 = vmatpush1.bf16.msra.mxu0 %v11590_v40  ;;  %4722 = vmatpush1.bf16.msra.mxu1 %v11593_v44 }
0x19fd   :  { %4682 = vmatprep.subr.bf16.mxu0 %v11596_v16  ;;  %4723 = vmatprep.subr.bf16.mxu1 %v11599_v33 }
0x1a00   :  { %4683 = vmatpush1.bf16.msra.mxu0 %v11602_v3  ;;  %4724 = vmatpush1.bf16.msra.mxu1 %v11605_v36 }
0x1a01   :  { %4797 = vmatprep.subr.bf16.mxu0 %v11608_v42  ;;  %4838 = vmatprep.subr.bf16.mxu1 %v11611_v45 }
0x1ab6   :  { %v4573_v34 = vpop.f32.mrb[108].mxu0  ;;  %v4614_v31 = vpop.f32.mrb[108].mxu1 }
0x1ab7   :  { %v4625_v56 = vrot.slane %v4573_v34, 6  ;;  %v4575_v30 = vpop.f32.mrb[109].mxu0  ;;  %v4616_v27 = vpop.f32.mrb[109].mxu1  ;;  %v4627_v61 = vrot.slane %v4614_v31, 6 }
0x1ab8   :  { %v4626_v39 = vrot.slane %v4575_v30, 6  ;;  %v4577_v46 = vpop.f32.mrb[110].mxu0  ;;  %v4618_v21 = vpop.f32.mrb[110].mxu1  ;;  %v4628_v7 = vrot.slane %v4616_v27, 6  ;;  %v4657_v27 = vrot.slane %v11509_v32, 6 }
0x1ab9   :  { %v4633_v53 = vadd.f32 %v4625_v56, %v11490_v35  ;;  %v4578_v2 = vpop.f32.mrb[111].mxu0  ;;  %v4619_v50 = vpop.f32.mrb[111].mxu1  ;;  %v4635_v1 = vadd.f32 %v4627_v61, %v11505_v26 }
0x1aba   :  { %v4634_v23 = vadd.f32 %v4626_v39, %v11494_v43  ;;  %v4636_v8 = vadd.f32 %v4628_v7, %v11500_v55 }
0x1abb   :  { %v7569_v18 = vmul.f32 -1.442695, %v4633_v53 }
0x1abc   :  { %v7570_v51 = vmul.f32 -1.442695, %v4634_v23  ;;  %v7571_v37 = vmul.f32 -1.442695, %v4636_v8 }
0x1abd   :  { %8748 = vpow2.f32 %v7569_v18 }
0x1abe   :  { %8750 = vpow2.f32 %v7570_v51 }
0x1abf   :  { %8752 = vpow2.f32 %v7571_v37 }
0x1ac0   :  { %8754 = vtanh.f32 %v4635_v1 }
0x1ac7   :  { %v8749_v54 = vpop.eup %8748 }
0x1ac8   :  { %v8751_v34 = vpop.eup %8750  ;;  %v4640_v30 = vadd.f32 1.0, %v8749_v54 }
0x1ac9   :  { %v4646_v56 = vadd.f32 1.0, %v8751_v34  ;;  %v8753_v39 = vpop.eup %8752 }
0x1aca   :  { %8756 = vrcp.f32 %v4640_v30  ;;  %v8755_v46 = vpop.eup %8754  ;;  %v4653_v50 = vadd.f32 1.0, %v8753_v39 }
0x1acb   :  { %8758 = vrcp.f32 %v4646_v56 }
0x1acc   :  { %8760 = vrcp.f32 %v4653_v50 }
0x1ad4   :  { %v8757_v21 = vpop.eup %8756 }
0x1ad5   :  { %v8759_v53 = vpop.eup %8758  ;;  %v4660_v2 = vmul.f32 %v8757_v21, %v8755_v46 }
0x1ad6   :  { %v4659_v31 = vmul.f32 %v8759_v53, %v4657_v27  ;;  %v8761_v18 = vpop.eup %8760 }
0x1ad8   :  { %v11619_v23 = vadd.f32 %v4660_v2, %v4659_v31 }
0x1ada   :  { %8762 = vtanh.f32 %v11619_v23 }
0x1ae4   :  { %v8763_v51 = vpop.eup %8762 }
0x1ae5   :  { %v11622_v7 = vmul.f32 %v8763_v51, %v8761_v18 }
0x1ae7   :  { %v4664_v8 = vpack.c.bf16 %v11622_v7, %v11622_v7 }
0x1ae9   :  { %v4666_v61 = vrot.slane %v4664_v8, 1 }
0x1aeb   :  { %4701 = vmatmul.mubr.bf16.vlgmr.msra.gmra.mrb[112].mxu0 %v4666_v61  ;;  %4742 = vmatmul.mubr.bf16.vlgmr.msra.gmra.mrb[112].mxu1 %v4666_v61 }
0x1aec   :  { %4798 = vmatpush1.bf16.msra.mxu0 %v11516_v10  ;;  %4839 = vmatpush1.bf16.msra.mxu1 %v11519_v13 }
0x1aed   :  { %4799 = vmatprep.subr.bf16.mxu0 %v11522_v57  ;;  %4840 = vmatprep.subr.bf16.mxu1 %v11525_v4 }
0x1aee   :  { %4829 = vmatprep.mubr.bf16.mxu0 %v12365_v29  ;;  %4870 = vmatprep.mubr.bf16.mxu1 %v12365_v29 }
0x1af0   :  { %4800 = vmatpush1.bf16.msra.mxu0 %v11530_v52  ;;  %4841 = vmatpush1.bf16.msra.mxu1 %v11533_v15 }
0x1af1   :  { %4801 = vmatprep.subr.bf16.mxu0 %v11536_v28  ;;  %4842 = vmatprep.subr.bf16.mxu1 %v11539_v6 }
0x1af4   :  { %4802 = vmatpush1.bf16.msra.mxu0 %v11542_v47  ;;  %4843 = vmatpush1.bf16.msra.mxu1 %v11545_v58 }
0x1af5   :  { %4803 = vmatprep.subr.bf16.mxu0 %v11548_v63  ;;  %4844 = vmatprep.subr.bf16.mxu1 %v11551_v12 }
0x1af8   :  { %4804 = vmatpush1.bf16.msra.mxu0 %v11554_v24  ;;  %4845 = vmatpush1.bf16.msra.mxu1 %v11557_v14 }
0x1af9   :  { %4805 = vmatprep.subr.bf16.mxu0 %v11560_v17  ;;  %4846 = vmatprep.subr.bf16.mxu1 %v11563_v11 }
0x1afc   :  { %4806 = vmatpush1.bf16.msra.mxu0 %v11566_v38  ;;  %4847 = vmatpush1.bf16.msra.mxu1 %v11569_v41 }
0x1afd   :  { %4807 = vmatprep.subr.bf16.mxu0 %v11572_v19  ;;  %4848 = vmatprep.subr.bf16.mxu1 %v11575_v62 }
0x1b00   :  { %4808 = vmatpush1.bf16.msra.mxu0 %v11578_v0  ;;  %4849 = vmatpush1.bf16.msra.mxu1 %v11581_v20 }
0x1b01   :  { %4809 = vmatprep.subr.bf16.mxu0 %v11584_v48  ;;  %4850 = vmatprep.subr.bf16.mxu1 %v11587_v25 }
0x1b04   :  { %4810 = vmatpush1.bf16.msra.mxu0 %v11590_v40  ;;  %4851 = vmatpush1.bf16.msra.mxu1 %v11593_v44 }
0x1b05   :  { %4811 = vmatprep.subr.bf16.mxu0 %v11596_v16  ;;  %4852 = vmatprep.subr.bf16.mxu1 %v11599_v33 }
0x1b08   :  { %4812 = vmatpush1.bf16.msra.mxu0 %v11602_v3  ;;  %4853 = vmatpush1.bf16.msra.mxu1 %v11605_v36 }
0x1b09   :  { %4926 = vmatprep.subr.bf16.mxu0 %v11608_v42  ;;  %4967 = vmatprep.subr.bf16.mxu1 %v11611_v45 }
0x1bbe   :  { %v4702_v32 = vpop.f32.mrb[112].mxu0  ;;  %v4743_v37 = vpop.f32.mrb[112].mxu1 }
0x1bbf   :  { %v4754_v1 = vrot.slane %v4702_v32, 4  ;;  %v4704_v54 = vpop.f32.mrb[113].mxu0  ;;  %v4745_v34 = vpop.f32.mrb[113].mxu1  ;;  %v4756_v51 = vrot.slane %v4743_v37, 4 }
0x1bc0   :  { %v4755_v30 = vrot.slane %v4704_v54, 4  ;;  %v4706_v56 = vpop.f32.mrb[114].mxu0  ;;  %v4747_v39 = vpop.f32.mrb[114].mxu1  ;;  %v4757_v31 = vrot.slane %v4745_v34, 4  ;;  %v4786_v34 = vrot.slane %v11619_v23, 6 }
0x1bc1   :  { %v4762_v46 = vadd.f32 %v4754_v1, %v11490_v35  ;;  %v4707_v21 = vpop.f32.mrb[115].mxu0  ;;  %v4748_v27 = vpop.f32.mrb[115].mxu1  ;;  %v4764_v61 = vadd.f32 %v4756_v51, %v11505_v26  ;;  %v5927_v51 = vsel %vm563_vm4, %v11512_v60, %v11622_v7 }
0x1bc2   :  { %v4763_v53 = vadd.f32 %v4755_v30, %v11494_v43  ;;  %v4765_v18 = vadd.f32 %v4757_v31, %v11500_v55 }
0x1bc3   :  { %v7572_v2 = vmul.f32 -1.442695, %v4762_v46 }
0x1bc4   :  { %v7573_v50 = vmul.f32 -1.442695, %v4763_v53  ;;  %v7574_v8 = vmul.f32 -1.442695, %v4765_v18 }
0x1bc5   :  { %8764 = vpow2.f32 %v7572_v2 }
0x1bc6   :  { %8766 = vpow2.f32 %v7573_v50 }
0x1bc7   :  { %8768 = vpow2.f32 %v7574_v8 }
0x1bc8   :  { %8770 = vtanh.f32 %v4764_v61 }
0x1bcf   :  { %v8765_v32 = vpop.eup %8764 }
0x1bd0   :  { %v8767_v54 = vpop.eup %8766  ;;  %v4769_v56 = vadd.f32 1.0, %v8765_v32 }
0x1bd1   :  { %v4775_v1 = vadd.f32 1.0, %v8767_v54  ;;  %v8769_v30 = vpop.eup %8768 }
0x1bd2   :  { %8772 = vrcp.f32 %v4769_v56  ;;  %v8771_v39 = vpop.eup %8770  ;;  %v4782_v53 = vadd.f32 1.0, %v8769_v30 }
0x1bd3   :  { %8774 = vrcp.f32 %v4775_v1 }
0x1bd4   :  { %8776 = vrcp.f32 %v4782_v53 }
0x1bdc   :  { %v8773_v46 = vpop.eup %8772 }
0x1bdd   :  { %v8775_v21 = vpop.eup %8774  ;;  %v4789_v27 = vmul.f32 %v8773_v46, %v8771_v39 }
0x1bde   :  { %v4788_v37 = vmul.f32 %v8775_v21, %v4786_v34  ;;  %v8777_v50 = vpop.eup %8776 }
0x1be0   :  { %v11665_v2 = vadd.f32 %v4789_v27, %v4788_v37 }
0x1be2   :  { %8778 = vtanh.f32 %v11665_v2 }
0x1bec   :  { %v8779_v31 = vpop.eup %8778 }
0x1bed   :  { %v4792_v18 = vmul.f32 %v8779_v31, %v8777_v50 }
0x1bef   :  { %v4793_v8 = vpack.c.bf16 %v4792_v18, %v4792_v18  ;;  %v11672_v61 = vsel %vm511_vm2, %v5927_v51, %v4792_v18 }
0x1bf1   :  { %v4795_v23 = vrot.slane %v4793_v8, 2 }
0x1bf3   :  { %4830 = vmatmul.mubr.bf16.vlgmr.msra.gmra.mrb[116].mxu0 %v4795_v23  ;;  %4871 = vmatmul.mubr.bf16.vlgmr.msra.gmra.mrb[116].mxu1 %v4795_v23 }
0x1bf4   :  { %4927 = vmatpush1.bf16.msra.mxu0 %v11516_v10  ;;  %4968 = vmatpush1.bf16.msra.mxu1 %v11519_v13 }
0x1bf5   :  { %4928 = vmatprep.subr.bf16.mxu0 %v11522_v57  ;;  %4969 = vmatprep.subr.bf16.mxu1 %v11525_v4 }
0x1bf6   :  { %4958 = vmatprep.mubr.bf16.mxu0 %v12365_v29  ;;  %4999 = vmatprep.mubr.bf16.mxu1 %v12365_v29 }
0x1bf8   :  { %4929 = vmatpush1.bf16.msra.mxu0 %v11530_v52  ;;  %4970 = vmatpush1.bf16.msra.mxu1 %v11533_v15 }
0x1bf9   :  { %4930 = vmatprep.subr.bf16.mxu0 %v11536_v28  ;;  %4971 = vmatprep.subr.bf16.mxu1 %v11539_v6 }
0x1bfc   :  { %4931 = vmatpush1.bf16.msra.mxu0 %v11542_v47  ;;  %4972 = vmatpush1.bf16.msra.mxu1 %v11545_v58 }
0x1bfd   :  { %4932 = vmatprep.subr.bf16.mxu0 %v11548_v63  ;;  %4973 = vmatprep.subr.bf16.mxu1 %v11551_v12 }
0x1c00   :  { %4933 = vmatpush1.bf16.msra.mxu0 %v11554_v24  ;;  %4974 = vmatpush1.bf16.msra.mxu1 %v11557_v14 }
0x1c01   :  { %4934 = vmatprep.subr.bf16.mxu0 %v11560_v17  ;;  %4975 = vmatprep.subr.bf16.mxu1 %v11563_v11 }
0x1c04   :  { %4935 = vmatpush1.bf16.msra.mxu0 %v11566_v38  ;;  %4976 = vmatpush1.bf16.msra.mxu1 %v11569_v41 }
0x1c05   :  { %4936 = vmatprep.subr.bf16.mxu0 %v11572_v19  ;;  %4977 = vmatprep.subr.bf16.mxu1 %v11575_v62 }
0x1c08   :  { %4937 = vmatpush1.bf16.msra.mxu0 %v11578_v0  ;;  %4978 = vmatpush1.bf16.msra.mxu1 %v11581_v20 }
0x1c09   :  { %4938 = vmatprep.subr.bf16.mxu0 %v11584_v48  ;;  %4979 = vmatprep.subr.bf16.mxu1 %v11587_v25 }
0x1c0c   :  { %4939 = vmatpush1.bf16.msra.mxu0 %v11590_v40  ;;  %4980 = vmatpush1.bf16.msra.mxu1 %v11593_v44 }
0x1c0d   :  { %4940 = vmatprep.subr.bf16.mxu0 %v11596_v16  ;;  %4981 = vmatprep.subr.bf16.mxu1 %v11599_v33 }
0x1c10   :  { %4941 = vmatpush1.bf16.msra.mxu0 %v11602_v3  ;;  %4982 = vmatpush1.bf16.msra.mxu1 %v11605_v36 }
0x1c11   :  { %5040 = vmatprep.subr.bf16.mxu0 %v11608_v42  ;;  %5081 = vmatprep.subr.bf16.mxu1 %v11611_v45 }
0x1cc6   :  { %v4831_v60 = vpop.f32.mrb[116].mxu0  ;;  %v4872_v7 = vpop.f32.mrb[116].mxu1 }
0x1cc7   :  { %v4883_v32 = vrot.slane %v4831_v60, 2  ;;  %v4833_v54 = vpop.f32.mrb[117].mxu0  ;;  %v4874_v56 = vpop.f32.mrb[117].mxu1  ;;  %v4885_v18 = vrot.slane %v4872_v7, 2 }
0x1cc8   :  { %v4884_v1 = vrot.slane %v4833_v54, 2  ;;  %v4835_v30 = vpop.f32.mrb[118].mxu0  ;;  %v4876_v39 = vpop.f32.mrb[118].mxu1  ;;  %v4886_v50 = vrot.slane %v4874_v56, 2  ;;  %v4915_v56 = vrot.slane %v11665_v2, 6 }
0x1cc9   :  { %v4891_v46 = vadd.f32 %v4883_v32, %v11490_v35  ;;  %v4836_v34 = vpop.f32.mrb[119].mxu0  ;;  %v4877_v21 = vpop.f32.mrb[119].mxu1  ;;  %v4893_v8 = vadd.f32 %v4885_v18, %v11505_v26 }
0x1cca   :  { %v4892_v27 = vadd.f32 %v4884_v1, %v11494_v43  ;;  %v4894_v31 = vadd.f32 %v4886_v50, %v11500_v55  ;;  %v12390_v50 = vld [vmem:[#allocation71_spill] sm:$0xff] }
0x1ccb   :  { %v7575_v53 = vmul.f32 -1.442695, %v4891_v46 }
0x1ccc   :  { %v7576_v37 = vmul.f32 -1.442695, %v4892_v27  ;;  %v7577_v51 = vmul.f32 -1.442695, %v4894_v31  ;;  %v11761_v31 = vadd.f32 %v12390_v50, %v11278_v9 }
0x1ccd   :  { %8780 = vpow2.f32 %v7575_v53 }
0x1cce   :  { %8782 = vpow2.f32 %v7576_v37 }
0x1ccf   :  { %8784 = vpow2.f32 %v7577_v51 }
0x1cd0   :  { %8786 = vtanh.f32 %v4893_v8 }
0x1cd7   :  { %v8781_v23 = vpop.eup %8780 }
0x1cd8   :  { %v8783_v60 = vpop.eup %8782  ;;  %v4898_v54 = vadd.f32 1.0, %v8781_v23 }
0x1cd9   :  { %v4904_v35 = vadd.f32 1.0, %v8783_v60  ;;  %v8785_v43 = vpop.eup %8784 }
0x1cda   :  { %8788 = vrcp.f32 %v4898_v54  ;;  %v8787_v32 = vpop.eup %8786  ;;  %v4911_v55 = vadd.f32 1.0, %v8785_v43 }
0x1cdb   :  { %8790 = vrcp.f32 %v4904_v35 }
0x1cdc   :  { %8792 = vrcp.f32 %v4911_v55 }
0x1ce4   :  { %v8789_v1 = vpop.eup %8788 }
0x1ce5   :  { %v8791_v30 = vpop.eup %8790  ;;  %v4918_v39 = vmul.f32 %v8789_v1, %v8787_v32 }
0x1ce6   :  { %v4917_v7 = vmul.f32 %v8791_v30, %v4915_v56  ;;  %v8793_v26 = vpop.eup %8792 }
0x1ce8   :  { %v11713_v46 = vadd.f32 %v4918_v39, %v4917_v7  ;;  %v12391_v39 = vld [vmem:[#allocation72_spill] sm:$0xff] }
0x1ce9   :  { %v11767_v55 = vadd.f32 %v12391_v39, %v11291_v49 }
0x1cea   :  { %8794 = vtanh.f32 %v11713_v46 }
0x1cf4   :  { %v8795_v34 = vpop.eup %8794 }
0x1cf5   :  { %v4921_v21 = vmul.f32 %v8795_v34, %v8793_v26  ;;  %v12392_v26 = vld [vmem:[#allocation69_spill] sm:$0xff] }
0x1cf6   :  { %v11772_v34 = vadd.f32 %v12392_v26, %v12387_v5 }
0x1cf7   :  { %v4922_v27 = vpack.c.bf16 %v4921_v21, %v4921_v21  ;;  %v5929_v53 = vsel %vm528_vm5, %v11672_v61, %v4921_v21 }
0x1cf8   :  { %v11719_v37 = vpack.c.bf16 %v5929_v53, %v11452_v22  ;;  %v12389_v22 = vld [vmem:[#allocation67_spill] sm:$0xff] }
0x1cf9   :  { %v4924_v2 = vrot.slane %v4922_v27, 3  ;;  %v11757_v61 = vadd.f32 %v12389_v22, %v11271_v59 }
0x1cfb   :  { %4959 = vmatmul.mubr.bf16.vlgmr.msra.gmra.mrb[120].mxu0 %v4924_v2  ;;  %5000 = vmatmul.mubr.bf16.vlgmr.msra.gmra.mrb[120].mxu1 %v4924_v2 }
0x1cfc   :  { %5041 = vmatpush1.bf16.msra.mxu0 %v11516_v10  ;;  %5082 = vmatpush1.bf16.msra.mxu1 %v11519_v13 }
0x1cfd   :  { %5042 = vmatprep.subr.bf16.mxu0 %v11522_v57  ;;  %5083 = vmatprep.subr.bf16.mxu1 %v11525_v4 }
0x1cfe   :  { %5072 = vmatprep.mubr.bf16.mxu0 %v12365_v29  ;;  %5113 = vmatprep.mubr.bf16.mxu1 %v12365_v29 }
0x1d00   :  { %5043 = vmatpush1.bf16.msra.mxu0 %v11530_v52  ;;  %5084 = vmatpush1.bf16.msra.mxu1 %v11533_v15 }
0x1d01   :  { %5044 = vmatprep.subr.bf16.mxu0 %v11536_v28  ;;  %5085 = vmatprep.subr.bf16.mxu1 %v11539_v6 }
0x1d04   :  { %5045 = vmatpush1.bf16.msra.mxu0 %v11542_v47  ;;  %5086 = vmatpush1.bf16.msra.mxu1 %v11545_v58 }
0x1d05   :  { %5046 = vmatprep.subr.bf16.mxu0 %v11548_v63  ;;  %5087 = vmatprep.subr.bf16.mxu1 %v11551_v12 }
0x1d08   :  { %5047 = vmatpush1.bf16.msra.mxu0 %v11554_v24  ;;  %5088 = vmatpush1.bf16.msra.mxu1 %v11557_v14 }
0x1d09   :  { %5048 = vmatprep.subr.bf16.mxu0 %v11560_v17  ;;  %5089 = vmatprep.subr.bf16.mxu1 %v11563_v11 }
0x1d0c   :  { %5049 = vmatpush1.bf16.msra.mxu0 %v11566_v38  ;;  %5090 = vmatpush1.bf16.msra.mxu1 %v11569_v41 }
0x1d0d   :  { %5050 = vmatprep.subr.bf16.mxu0 %v11572_v19  ;;  %5091 = vmatprep.subr.bf16.mxu1 %v11575_v62 }
0x1d10   :  { %5051 = vmatpush1.bf16.msra.mxu0 %v11578_v0  ;;  %5092 = vmatpush1.bf16.msra.mxu1 %v11581_v20 }
0x1d11   :  { %5052 = vmatprep.subr.bf16.mxu0 %v11584_v48  ;;  %5093 = vmatprep.subr.bf16.mxu1 %v11587_v25 }
0x1d14   :  { %5053 = vmatpush1.bf16.msra.mxu0 %v11590_v40  ;;  %5094 = vmatpush1.bf16.msra.mxu1 %v11593_v44 }
0x1d15   :  { %5054 = vmatprep.subr.bf16.mxu0 %v11596_v16  ;;  %5095 = vmatprep.subr.bf16.mxu1 %v11599_v33 }
0x1d18   :  { %5055 = vmatpush1.bf16.msra.mxu0 %v11602_v3  ;;  %5096 = vmatpush1.bf16.msra.mxu1 %v11605_v36 }
0x1d19   :  { %5169 = vmatprep.subr.bf16.mxu0 %v11608_v42  ;;  %5210 = vmatprep.subr.bf16.mxu1 %v11611_v45 }
0x1dce   :  { %v4960_v18 = vpop.f32.mrb[120].mxu0  ;;  %v5001_v51 = vpop.f32.mrb[120].mxu1 }
0x1dcf   :  { %v5008_v8 = vadd.f32 %v4960_v18, %v11757_v61  ;;  %v4962_v23 = vpop.f32.mrb[121].mxu0  ;;  %v5003_v60 = vpop.f32.mrb[121].mxu1  ;;  %v5010_v27 = vadd.f32 %v5001_v51, %v11772_v34 }
0x1dd0   :  { %v5009_v54 = vadd.f32 %v4962_v23, %v11761_v31  ;;  %v4964_v35 = vpop.f32.mrb[122].mxu0  ;;  %v5005_v43 = vpop.f32.mrb[122].mxu1  ;;  %v5011_v7 = vadd.f32 %v5003_v60, %v11767_v55  ;;  %v5032_v60 = vrot.slane %v11713_v46, 6 }
0x1dd1   :  { %v7578_v32 = vmul.f32 -1.442695, %v5008_v8  ;;  %v4965_v1 = vpop.f32.mrb[123].mxu0  ;;  %v5006_v56 = vpop.f32.mrb[123].mxu1 }
0x1dd2   :  { %v7579_v30 = vmul.f32 -1.442695, %v5009_v54  ;;  %v7580_v21 = vmul.f32 -1.442695, %v5011_v7 }
0x1dd3   :  { %8796 = vpow2.f32 %v7578_v32 }
0x1dd4   :  { %8798 = vpow2.f32 %v7579_v30 }
0x1dd5   :  { %8800 = vpow2.f32 %v7580_v21 }
0x1dd6   :  { %8802 = vtanh.f32 %v5010_v27 }
0x1ddd   :  { %v8797_v53 = vpop.eup %8796 }
0x1dde   :  { %v8799_v2 = vpop.eup %8798  ;;  %v5015_v22 = vadd.f32 1.0, %v8797_v53 }
0x1ddf   :  { %v5021_v50 = vadd.f32 1.0, %v8799_v2  ;;  %v8801_v18 = vpop.eup %8800 }
0x1de0   :  { %8804 = vrcp.f32 %v5015_v22  ;;  %v8803_v8 = vpop.eup %8802  ;;  %v5028_v43 = vadd.f32 1.0, %v8801_v18 }
0x1de1   :  { %8806 = vrcp.f32 %v5021_v50 }
0x1de2   :  { %8808 = vrcp.f32 %v5028_v43 }
0x1dea   :  { %v8805_v23 = vpop.eup %8804 }
0x1deb   :  { %v8807_v54 = vpop.eup %8806  ;;  %v5035_v35 = vmul.f32 %v8805_v23, %v8803_v8 }
0x1dec   :  { %v5034_v32 = vmul.f32 %v8807_v54, %v5032_v60  ;;  %v8809_v51 = vpop.eup %8808 }
0x1dee   :  { %v11776_v1 = vadd.f32 %v5035_v35, %v5034_v32 }
0x1df0   :  { %8810 = vtanh.f32 %v11776_v1 }
0x1dfa   :  { %v8811_v56 = vpop.eup %8810 }
0x1dfb   :  { %v11779_v30 = vmul.f32 %v8811_v56, %v8809_v51 }
0x1dfd   :  { %v5039_v39 = vpack.c.bf16 %v11779_v30, %v11779_v30 }
0x1dff   :  { %5073 = vmatmul.mubr.bf16.vlgmr.msra.gmra.mrb[124].mxu0 %v5039_v39  ;;  %5114 = vmatmul.mubr.bf16.vlgmr.msra.gmra.mrb[124].mxu1 %v5039_v39 }
0x1e00   :  { %5170 = vmatpush1.bf16.msra.mxu0 %v11516_v10  ;;  %5211 = vmatpush1.bf16.msra.mxu1 %v11519_v13 }
0x1e01   :  { %5171 = vmatprep.subr.bf16.mxu0 %v11522_v57  ;;  %5212 = vmatprep.subr.bf16.mxu1 %v11525_v4 }
0x1e02   :  { %5201 = vmatprep.mubr.bf16.mxu0 %v12365_v29  ;;  %5242 = vmatprep.mubr.bf16.mxu1 %v12365_v29 }
0x1e04   :  { %5172 = vmatpush1.bf16.msra.mxu0 %v11530_v52  ;;  %5213 = vmatpush1.bf16.msra.mxu1 %v11533_v15 }
0x1e05   :  { %5173 = vmatprep.subr.bf16.mxu0 %v11536_v28  ;;  %5214 = vmatprep.subr.bf16.mxu1 %v11539_v6 }
0x1e08   :  { %5174 = vmatpush1.bf16.msra.mxu0 %v11542_v47  ;;  %5215 = vmatpush1.bf16.msra.mxu1 %v11545_v58 }
0x1e09   :  { %5175 = vmatprep.subr.bf16.mxu0 %v11548_v63  ;;  %5216 = vmatprep.subr.bf16.mxu1 %v11551_v12 }
0x1e0c   :  { %5176 = vmatpush1.bf16.msra.mxu0 %v11554_v24  ;;  %5217 = vmatpush1.bf16.msra.mxu1 %v11557_v14 }
0x1e0d   :  { %5177 = vmatprep.subr.bf16.mxu0 %v11560_v17  ;;  %5218 = vmatprep.subr.bf16.mxu1 %v11563_v11 }
0x1e10   :  { %5178 = vmatpush1.bf16.msra.mxu0 %v11566_v38  ;;  %5219 = vmatpush1.bf16.msra.mxu1 %v11569_v41 }
0x1e11   :  { %5179 = vmatprep.subr.bf16.mxu0 %v11572_v19  ;;  %5220 = vmatprep.subr.bf16.mxu1 %v11575_v62 }
0x1e14   :  { %5180 = vmatpush1.bf16.msra.mxu0 %v11578_v0  ;;  %5221 = vmatpush1.bf16.msra.mxu1 %v11581_v20 }
0x1e15   :  { %5181 = vmatprep.subr.bf16.mxu0 %v11584_v48  ;;  %5222 = vmatprep.subr.bf16.mxu1 %v11587_v25 }
0x1e18   :  { %5182 = vmatpush1.bf16.msra.mxu0 %v11590_v40  ;;  %5223 = vmatpush1.bf16.msra.mxu1 %v11593_v44 }
0x1e19   :  { %5183 = vmatprep.subr.bf16.mxu0 %v11596_v16  ;;  %5224 = vmatprep.subr.bf16.mxu1 %v11599_v33 }
0x1e1c   :  { %5184 = vmatpush1.bf16.msra.mxu0 %v11602_v3  ;;  %5225 = vmatpush1.bf16.msra.mxu1 %v11605_v36 }
0x1e1d   :  { %5298 = vmatprep.subr.bf16.mxu0 %v11608_v42  ;;  %5339 = vmatprep.subr.bf16.mxu1 %v11611_v45 }
0x1ed2   :  { %v5074_v46 = vpop.f32.mrb[124].mxu0  ;;  %v5115_v7 = vpop.f32.mrb[124].mxu1 }
0x1ed3   :  { %v5126_v26 = vrot.slane %v5074_v46, 6  ;;  %v5076_v21 = vpop.f32.mrb[125].mxu0  ;;  %v5117_v27 = vpop.f32.mrb[125].mxu1  ;;  %v5128_v32 = vrot.slane %v5115_v7, 6 }
0x1ed4   :  { %v5127_v53 = vrot.slane %v5076_v21, 6  ;;  %v5078_v2 = vpop.f32.mrb[126].mxu0  ;;  %v5119_v22 = vpop.f32.mrb[126].mxu1  ;;  %v5129_v35 = vrot.slane %v5117_v27, 6  ;;  %v5158_v27 = vrot.slane %v11776_v1, 6 }
0x1ed5   :  { %v5134_v50 = vadd.f32 %v5126_v26, %v11757_v61  ;;  %v5079_v18 = vpop.f32.mrb[127].mxu0  ;;  %v5120_v8 = vpop.f32.mrb[127].mxu1  ;;  %v5136_v56 = vadd.f32 %v5128_v32, %v11772_v34 }
0x1ed6   :  { %v5135_v23 = vadd.f32 %v5127_v53, %v11761_v31  ;;  %v5137_v43 = vadd.f32 %v5129_v35, %v11767_v55 }
0x1ed7   :  { %v7581_v60 = vmul.f32 -1.442695, %v5134_v50 }
0x1ed8   :  { %v7582_v54 = vmul.f32 -1.442695, %v5135_v23  ;;  %v7583_v51 = vmul.f32 -1.442695, %v5137_v43 }
0x1ed9   :  { %8812 = vpow2.f32 %v7581_v60 }
0x1eda   :  { %8814 = vpow2.f32 %v7582_v54 }
0x1edb   :  { %8816 = vpow2.f32 %v7583_v51 }
0x1edc   :  { %8818 = vtanh.f32 %v5136_v56 }
0x1ee3   :  { %v8813_v39 = vpop.eup %8812 }
0x1ee4   :  { %v8815_v46 = vpop.eup %8814  ;;  %v5141_v21 = vadd.f32 1.0, %v8813_v39 }
0x1ee5   :  { %v5147_v26 = vadd.f32 1.0, %v8815_v46  ;;  %v8817_v53 = vpop.eup %8816 }
0x1ee6   :  { %8820 = vrcp.f32 %v5141_v21  ;;  %v8819_v2 = vpop.eup %8818  ;;  %v5154_v8 = vadd.f32 1.0, %v8817_v53 }
0x1ee7   :  { %8822 = vrcp.f32 %v5147_v26 }
0x1ee8   :  { %8824 = vrcp.f32 %v5154_v8 }
0x1ef0   :  { %v8821_v22 = vpop.eup %8820 }
0x1ef1   :  { %v8823_v50 = vpop.eup %8822  ;;  %v5161_v18 = vmul.f32 %v8821_v22, %v8819_v2 }
0x1ef2   :  { %v5160_v7 = vmul.f32 %v8823_v50, %v5158_v27  ;;  %v8825_v60 = vpop.eup %8824 }
0x1ef4   :  { %v11822_v23 = vadd.f32 %v5161_v18, %v5160_v7 }
0x1ef6   :  { %8826 = vtanh.f32 %v11822_v23 }
0x1f00   :  { %v8827_v54 = vpop.eup %8826 }
0x1f01   :  { %v11825_v35 = vmul.f32 %v8827_v54, %v8825_v60 }
0x1f03   :  { %v5165_v43 = vpack.c.bf16 %v11825_v35, %v11825_v35 }
0x1f05   :  { %v5167_v32 = vrot.slane %v5165_v43, 1 }
0x1f07   :  { %5202 = vmatmul.mubr.bf16.vlgmr.msra.gmra.mrb[128].mxu0 %v5167_v32  ;;  %5243 = vmatmul.mubr.bf16.vlgmr.msra.gmra.mrb[128].mxu1 %v5167_v32 }
0x1f08   :  { %5299 = vmatpush1.bf16.msra.mxu0 %v11516_v10  ;;  %5340 = vmatpush1.bf16.msra.mxu1 %v11519_v13 }
0x1f09   :  { %5300 = vmatprep.subr.bf16.mxu0 %v11522_v57  ;;  %5341 = vmatprep.subr.bf16.mxu1 %v11525_v4 }
0x1f0a   :  { %5330 = vmatprep.mubr.bf16.mxu0 %v12365_v29  ;;  %5371 = vmatprep.mubr.bf16.mxu1 %v12365_v29 }
0x1f0c   :  { %5301 = vmatpush1.bf16.msra.mxu0 %v11530_v52  ;;  %5342 = vmatpush1.bf16.msra.mxu1 %v11533_v15 }
0x1f0d   :  { %5302 = vmatprep.subr.bf16.mxu0 %v11536_v28  ;;  %5343 = vmatprep.subr.bf16.mxu1 %v11539_v6 }
0x1f10   :  { %5303 = vmatpush1.bf16.msra.mxu0 %v11542_v47  ;;  %5344 = vmatpush1.bf16.msra.mxu1 %v11545_v58 }
0x1f11   :  { %5304 = vmatprep.subr.bf16.mxu0 %v11548_v63  ;;  %5345 = vmatprep.subr.bf16.mxu1 %v11551_v12 }
0x1f14   :  { %5305 = vmatpush1.bf16.msra.mxu0 %v11554_v24  ;;  %5346 = vmatpush1.bf16.msra.mxu1 %v11557_v14 }
0x1f15   :  { %5306 = vmatprep.subr.bf16.mxu0 %v11560_v17  ;;  %5347 = vmatprep.subr.bf16.mxu1 %v11563_v11 }
0x1f18   :  { %5307 = vmatpush1.bf16.msra.mxu0 %v11566_v38  ;;  %5348 = vmatpush1.bf16.msra.mxu1 %v11569_v41 }
0x1f19   :  { %5308 = vmatprep.subr.bf16.mxu0 %v11572_v19  ;;  %5349 = vmatprep.subr.bf16.mxu1 %v11575_v62 }
0x1f1c   :  { %5309 = vmatpush1.bf16.msra.mxu0 %v11578_v0  ;;  %5350 = vmatpush1.bf16.msra.mxu1 %v11581_v20 }
0x1f1d   :  { %5310 = vmatprep.subr.bf16.mxu0 %v11584_v48  ;;  %5351 = vmatprep.subr.bf16.mxu1 %v11587_v25 }
0x1f20   :  { %5311 = vmatpush1.bf16.msra.mxu0 %v11590_v40  ;;  %5352 = vmatpush1.bf16.msra.mxu1 %v11593_v44 }
0x1f21   :  { %5312 = vmatprep.subr.bf16.mxu0 %v11596_v16  ;;  %5353 = vmatprep.subr.bf16.mxu1 %v11599_v33 }
0x1f24   :  { %5313 = vmatpush1.bf16.msra.mxu0 %v11602_v3  ;;  %5354 = vmatpush1.bf16.msra.mxu1 %v11605_v36 }
0x1f25   :  { %5427 = vmatprep.subr.bf16.mxu0 %v11608_v42  ;;  %5468 = vmatprep.subr.bf16.mxu1 %v11611_v45 }
0x1fda   :  { %v5203_v1 = vpop.f32.mrb[128].mxu0  ;;  %v5244_v51 = vpop.f32.mrb[128].mxu1 }
0x1fdb   :  { %v5255_v56 = vrot.slane %v5203_v1, 4  ;;  %v5205_v39 = vpop.f32.mrb[129].mxu0  ;;  %v5246_v46 = vpop.f32.mrb[129].mxu1  ;;  %v5257_v54 = vrot.slane %v5244_v51, 4 }
0x1fdc   :  { %v5256_v21 = vrot.slane %v5205_v39, 4  ;;  %v5207_v26 = vpop.f32.mrb[130].mxu0  ;;  %v5248_v53 = vpop.f32.mrb[130].mxu1  ;;  %v5258_v7 = vrot.slane %v5246_v46, 4  ;;  %v5287_v46 = vrot.slane %v11822_v23, 6 }
0x1fdd   :  { %v5263_v2 = vadd.f32 %v5255_v56, %v11757_v61  ;;  %v5208_v22 = vpop.f32.mrb[131].mxu0  ;;  %v5249_v27 = vpop.f32.mrb[131].mxu1  ;;  %v5265_v32 = vadd.f32 %v5257_v54, %v11772_v34  ;;  %v5930_v54 = vsel %vm563_vm4, %v11779_v30, %v11825_v35 }
0x1fde   :  { %v5264_v50 = vadd.f32 %v5256_v21, %v11761_v31  ;;  %v5266_v60 = vadd.f32 %v5258_v7, %v11767_v55 }
0x1fdf   :  { %v7584_v18 = vmul.f32 -1.442695, %v5263_v2 }
0x1fe0   :  { %v7585_v8 = vmul.f32 -1.442695, %v5264_v50  ;;  %v7586_v43 = vmul.f32 -1.442695, %v5266_v60 }
0x1fe1   :  { %8828 = vpow2.f32 %v7584_v18 }
0x1fe2   :  { %8830 = vpow2.f32 %v7585_v8 }
0x1fe3   :  { %8832 = vpow2.f32 %v7586_v43 }
0x1fe4   :  { %8834 = vtanh.f32 %v5265_v32 }
0x1feb   :  { %v8829_v1 = vpop.eup %8828 }
0x1fec   :  { %v8831_v39 = vpop.eup %8830  ;;  %v5270_v26 = vadd.f32 1.0, %v8829_v1  ;;  %v11923_v1 = vld [vmem:[#allocation13] ss:$16 sps:$4 sm:$0xff]  }
0x1fed   :  { %v5276_v56 = vadd.f32 1.0, %v8831_v39  ;;  %v8833_v21 = vpop.eup %8832  ;;  %v11926_v39 = vld [vmem:[#allocation13 + $0x8] ss:$16 sps:$4 sm:$0xff]  }
0x1fee   :  { %8836 = vrcp.f32 %v5270_v26  ;;  %v8835_v53 = vpop.eup %8834  ;;  %v5283_v50 = vadd.f32 1.0, %v8833_v21  ;;  %v11929_v26 = vld [vmem:[#allocation13 + $0x24] ss:$16 sps:$4 sm:$0xff]   ;;  %v11937_v21 = vld [vmem:[#allocation13 + $0x20] ss:$16 sps:$4 sm:$0xff]  }
0x1fef   :  { %8838 = vrcp.f32 %v5276_v56  ;;  %v11932_v56 = vld [vmem:[#allocation13 + $0x2c] ss:$16 sps:$4 sm:$0xff]  }
0x1ff0   :  { %8840 = vrcp.f32 %v5283_v50  ;;  %v11955_v50 = vld [vmem:[#allocation13 + $0x64] ss:$16 sps:$4 sm:$0xff]  }
0x1ff8   :  { %v8837_v2 = vpop.eup %8836 }
0x1ff9   :  { %v8839_v22 = vpop.eup %8838  ;;  %v5290_v27 = vmul.f32 %v8837_v2, %v8835_v53  ;;  %v11940_v53 = vld [vmem:[#allocation13 + $0x28] ss:$16 sps:$4 sm:$0xff]   ;;  %v11943_v2 = vld [vmem:[#allocation13 + $0x44] ss:$16 sps:$4 sm:$0xff]  }
0x1ffa   :  { %v5289_v51 = vmul.f32 %v8839_v22, %v5287_v46  ;;  %v8841_v8 = vpop.eup %8840  ;;  %v11946_v46 = vld [vmem:[#allocation13 + $0x4c] ss:$16 sps:$4 sm:$0xff]   ;;  %v11949_v22 = vld [vmem:[#allocation13 + $0x40] ss:$16 sps:$4 sm:$0xff]  }
0x1ffc   :  { %v11868_v18 = vadd.f32 %v5290_v27, %v5289_v51  ;;  %v11952_v27 = vld [vmem:[#allocation13 + $0x48] ss:$16 sps:$4 sm:$0xff]   ;;  %v11958_v51 = vld [vmem:[#allocation13 + $0x6c] ss:$16 sps:$4 sm:$0xff]  }
0x1ffe   :  { %8842 = vtanh.f32 %v11868_v18 }
0x2008   :  { %v8843_v7 = vpop.eup %8842 }
0x2009   :  { %v5293_v60 = vmul.f32 %v8843_v7, %v8841_v8  ;;  %v11964_v8 = vld [vmem:[#allocation13 + $0x68] ss:$16 sps:$4 sm:$0xff]   ;;  %v11967_v7 = vld [vmem:[#allocation13 + $0x84] ss:$16 sps:$4 sm:$0xff]  }
0x200b   :  { %v5294_v43 = vpack.c.bf16 %v5293_v60, %v5293_v60  ;;  %v11875_v32 = vsel %vm511_vm2, %v5930_v54, %v5293_v60  ;;  %v11970_v60 = vld [vmem:[#allocation13 + $0x8c] ss:$16 sps:$4 sm:$0xff]   ;;  %v11973_v54 = vld [vmem:[#allocation13 + $0x80] ss:$16 sps:$4 sm:$0xff]  }
0x200d   :  { %v5296_v23 = vrot.slane %v5294_v43, 2  ;;  %v11976_v43 = vld [vmem:[#allocation13 + $0x88] ss:$16 sps:$4 sm:$0xff]  }
0x200f   :  { %5331 = vmatmul.mubr.bf16.vlgmr.msra.gmra.mrb[132].mxu0 %v5296_v23  ;;  %5372 = vmatmul.mubr.bf16.vlgmr.msra.gmra.mrb[132].mxu1 %v5296_v23  ;;  %v11982_v23 = vld [vmem:[#allocation13 + $0xac] ss:$16 sps:$4 sm:$0xff]  }
0x2010   :  { %5428 = vmatpush1.bf16.msra.mxu0 %v11516_v10  ;;  %5469 = vmatpush1.bf16.msra.mxu1 %v11519_v13 }
0x2011   :  { %5429 = vmatprep.subr.bf16.mxu0 %v11522_v57  ;;  %5470 = vmatprep.subr.bf16.mxu1 %v11525_v4 }
0x2012   :  { %5459 = vmatprep.mubr.bf16.mxu0 %v12365_v29  ;;  %5500 = vmatprep.mubr.bf16.mxu1 %v12365_v29 }
0x2014   :  { %5430 = vmatpush1.bf16.msra.mxu0 %v11530_v52  ;;  %5471 = vmatpush1.bf16.msra.mxu1 %v11533_v15 }
0x2015   :  { %5431 = vmatprep.subr.bf16.mxu0 %v11536_v28  ;;  %5472 = vmatprep.subr.bf16.mxu1 %v11539_v6 }
0x2018   :  { %5432 = vmatpush1.bf16.msra.mxu0 %v11542_v47  ;;  %5473 = vmatpush1.bf16.msra.mxu1 %v11545_v58 }
0x2019   :  { %5433 = vmatprep.subr.bf16.mxu0 %v11548_v63  ;;  %5474 = vmatprep.subr.bf16.mxu1 %v11551_v12 }
0x201c   :  { %5434 = vmatpush1.bf16.msra.mxu0 %v11554_v24  ;;  %5475 = vmatpush1.bf16.msra.mxu1 %v11557_v14 }
0x201d   :  { %5435 = vmatprep.subr.bf16.mxu0 %v11560_v17  ;;  %5476 = vmatprep.subr.bf16.mxu1 %v11563_v11 }
0x2020   :  { %5436 = vmatpush1.bf16.msra.mxu0 %v11566_v38  ;;  %5477 = vmatpush1.bf16.msra.mxu1 %v11569_v41 }
0x2021   :  { %5437 = vmatprep.subr.bf16.mxu0 %v11572_v19  ;;  %5478 = vmatprep.subr.bf16.mxu1 %v11575_v62 }
0x2024   :  { %5438 = vmatpush1.bf16.msra.mxu0 %v11578_v0  ;;  %5479 = vmatpush1.bf16.msra.mxu1 %v11581_v20 }
0x2025   :  { %5439 = vmatprep.subr.bf16.mxu0 %v11584_v48  ;;  %5480 = vmatprep.subr.bf16.mxu1 %v11587_v25 }
0x2028   :  { %5440 = vmatpush1.bf16.msra.mxu0 %v11590_v40  ;;  %5481 = vmatpush1.bf16.msra.mxu1 %v11593_v44 }
0x2029   :  { %5441 = vmatprep.subr.bf16.mxu0 %v11596_v16  ;;  %5482 = vmatprep.subr.bf16.mxu1 %v11599_v33  ;;  %v5416_v16 = vrot.slane %v11868_v18, 6  ;;  %v11961_v18 = vld [vmem:[#allocation13 + $0x60] ss:$16 sps:$4 sm:$0xff]  }
0x202c   :  { %5442 = vmatpush1.bf16.msra.mxu0 %v11602_v3  ;;  %5483 = vmatpush1.bf16.msra.mxu1 %v11605_v36 }
0x202d   :  { %5541 = vmatprep.subr.bf16.mxu0 %v11608_v42  ;;  %5582 = vmatprep.subr.bf16.mxu1 %v11611_v45 }
0x20e2   :  { %v5332_v10 = vpop.f32.mrb[132].mxu0  ;;  %v5373_v13 = vpop.f32.mrb[132].mxu1 }
0x20e3   :  { %v5384_v57 = vrot.slane %v5332_v10, 2  ;;  %v5334_v4 = vpop.f32.mrb[133].mxu0  ;;  %v5375_v52 = vpop.f32.mrb[133].mxu1  ;;  %v5386_v38 = vrot.slane %v5373_v13, 2  ;;  %v11985_v10 = vld [vmem:[#allocation13 + $0xa0] ss:$16 sps:$4 sm:$0xff]  }
0x20e4   :  { %v5385_v15 = vrot.slane %v5334_v4, 2  ;;  %v5336_v28 = vpop.f32.mrb[134].mxu0  ;;  %v5377_v6 = vpop.f32.mrb[134].mxu1  ;;  %v5387_v17 = vrot.slane %v5375_v52, 2  ;;  %v11988_v13 = vld [vmem:[#allocation13 + $0xa8] ss:$16 sps:$4 sm:$0xff]  }
0x20e5   :  { %v5392_v47 = vadd.f32 %v5384_v57, %v11757_v61  ;;  %v5337_v58 = vpop.f32.mrb[135].mxu0  ;;  %v5378_v63 = vpop.f32.mrb[135].mxu1  ;;  %v5394_v19 = vadd.f32 %v5386_v38, %v11772_v34  ;;  %v11991_v57 = vld [vmem:[#allocation13 + $0xc4] ss:$16 sps:$4 sm:$0xff]   ;;  %v11994_v4 = vld [vmem:[#allocation13 + $0xcc] ss:$16 sps:$4 sm:$0xff]  }
0x20e6   :  { %v5393_v12 = vadd.f32 %v5385_v15, %v11761_v31  ;;  %v5395_v11 = vadd.f32 %v5387_v17, %v11767_v55  ;;  %v11997_v52 = vld [vmem:[#allocation13 + $0xc0] ss:$16 sps:$4 sm:$0xff]   ;;  %v12000_v15 = vld [vmem:[#allocation13 + $0xc8] ss:$16 sps:$4 sm:$0xff]   ;;  %v12003_v28 = vld [vmem:[#allocation13 + $0xe4] ss:$16 sps:$4 sm:$0xff]  }
0x20e7   :  { %v7587_v24 = vmul.f32 -1.442695, %v5392_v47  ;;  %v12006_v6 = vld [vmem:[#allocation13 + $0xec] ss:$16 sps:$4 sm:$0xff]   ;;  %v12009_v47 = vld [vmem:[#allocation13 + $0xe0] ss:$16 sps:$4 sm:$0xff]  }
0x20e8   :  { %v7588_v14 = vmul.f32 -1.442695, %v5393_v12  ;;  %v7589_v41 = vmul.f32 -1.442695, %v5395_v11  ;;  %v12012_v58 = vld [vmem:[#allocation13 + $0xe8] ss:$16 sps:$4 sm:$0xff]  }
0x20e9   :  { %8844 = vpow2.f32 %v7587_v24  ;;  %v12015_v63 = vld [vmem:[#allocation13 + $0x4] ss:$16 sps:$4 sm:$0xff]   ;;  %v12018_v12 = vld [vmem:[#allocation13 + $0xc] ss:$16 sps:$4 sm:$0xff]  }
0x20ea   :  { %8846 = vpow2.f32 %v7588_v14  ;;  %v12393_v24 = vld [vmem:[#allocation70_spill] sm:$0xff] }
0x20eb   :  { %8848 = vpow2.f32 %v7589_v41  ;;  %v12023_v14 = vadd.f32 %v12393_v24, %v11271_v59  ;;  %v12394_v17 = vld [vmem:[#allocation74_spill] sm:$0xff]  ;;  %v12395_v59 = vld [vmem:[#allocation75_spill] sm:$0xff] }
0x20ec   :  { %8850 = vtanh.f32 %v5394_v19  ;;  %v12027_v11 = vadd.f32 %v12394_v17, %v11278_v9 }
0x20f3   :  { %v8845_v62 = vpop.eup %8844 }
0x20f4   :  { %v8847_v0 = vpop.eup %8846  ;;  %v5399_v20 = vadd.f32 1.0, %v8845_v62 }
0x20f5   :  { %v5405_v48 = vadd.f32 1.0, %v8847_v0  ;;  %v8849_v25 = vpop.eup %8848 }
0x20f6   :  { %8852 = vrcp.f32 %v5399_v20  ;;  %v8851_v40 = vpop.eup %8850  ;;  %v5412_v36 = vadd.f32 1.0, %v8849_v25 }
0x20f7   :  { %8854 = vrcp.f32 %v5405_v48 }
0x20f8   :  { %8856 = vrcp.f32 %v5412_v36  ;;  %v12396_v36 = vld [vmem:[#allocation73_spill] sm:$0xff] }
0x2100   :  { %v8853_v44 = vpop.eup %8852 }
0x2101   :  { %v8855_v33 = vpop.eup %8854  ;;  %v5419_v3 = vmul.f32 %v8853_v44, %v8851_v40 }
0x2102   :  { %v5418_v42 = vmul.f32 %v8855_v33, %v5416_v16  ;;  %v8857_v61 = vpop.eup %8856 }
0x2104   :  { %v11916_v45 = vadd.f32 %v5419_v3, %v5418_v42  ;;  %v12033_v3 = vadd.f32 %v12395_v59, %v11291_v49  ;;  %v12038_v42 = vadd.f32 %v12396_v36, %v12387_v5 }
0x2106   :  { %8858 = vtanh.f32 %v11916_v45 }
0x2110   :  { %v8859_v31 = vpop.eup %8858 }
0x2111   :  { %v5422_v55 = vmul.f32 %v8859_v31, %v8857_v61 }
0x2113   :  { %v5423_v34 = vpack.c.bf16 %v5422_v55, %v5422_v55  ;;  %v11921_v30 = vsel %vm528_vm5, %v11875_v32, %v5422_v55  ;;  %v11979_v32 = vld [vmem:[#allocation13 + $0xa4] ss:$16 sps:$4 sm:$0xff]  }
0x2115   :  { %v5425_v35 = vrot.slane %v5423_v34, 3 }
0x2117   :  { %5460 = vmatmul.mubr.bf16.vlgmr.msra.gmra.mrb[136].mxu0 %v5425_v35  ;;  %5501 = vmatmul.mubr.bf16.vlgmr.msra.gmra.mrb[136].mxu1 %v5425_v35 }
0x2118   :  { %5542 = vmatpush1.bf16.msra.mxu0 %v11923_v1  ;;  %5583 = vmatpush1.bf16.msra.mxu1 %v11926_v39 }
0x2119   :  { %5543 = vmatprep.subr.bf16.mxu0 %v11929_v26  ;;  %5584 = vmatprep.subr.bf16.mxu1 %v11932_v56 }
0x211a   :  { %5573 = vmatprep.mubr.bf16.mxu0 %v12365_v29  ;;  %5614 = vmatprep.mubr.bf16.mxu1 %v12365_v29 }
0x211c   :  { %5544 = vmatpush1.bf16.msra.mxu0 %v11937_v21  ;;  %5585 = vmatpush1.bf16.msra.mxu1 %v11940_v53 }
0x211d   :  { %5545 = vmatprep.subr.bf16.mxu0 %v11943_v2  ;;  %5586 = vmatprep.subr.bf16.mxu1 %v11946_v46 }
0x2120   :  { %5546 = vmatpush1.bf16.msra.mxu0 %v11949_v22  ;;  %5587 = vmatpush1.bf16.msra.mxu1 %v11952_v27 }
0x2121   :  { %5547 = vmatprep.subr.bf16.mxu0 %v11955_v50  ;;  %5588 = vmatprep.subr.bf16.mxu1 %v11958_v51 }
0x2124   :  { %5548 = vmatpush1.bf16.msra.mxu0 %v11961_v18  ;;  %5589 = vmatpush1.bf16.msra.mxu1 %v11964_v8 }
0x2125   :  { %5549 = vmatprep.subr.bf16.mxu0 %v11967_v7  ;;  %5590 = vmatprep.subr.bf16.mxu1 %v11970_v60 }
0x2128   :  { %5550 = vmatpush1.bf16.msra.mxu0 %v11973_v54  ;;  %5591 = vmatpush1.bf16.msra.mxu1 %v11976_v43 }
0x2129   :  { %5551 = vmatprep.subr.bf16.mxu0 %v11979_v32  ;;  %5592 = vmatprep.subr.bf16.mxu1 %v11982_v23 }
0x212c   :  { %5552 = vmatpush1.bf16.msra.mxu0 %v11985_v10  ;;  %5593 = vmatpush1.bf16.msra.mxu1 %v11988_v13 }
0x212d   :  { %5553 = vmatprep.subr.bf16.mxu0 %v11991_v57  ;;  %5594 = vmatprep.subr.bf16.mxu1 %v11994_v4 }
0x2130   :  { %5554 = vmatpush1.bf16.msra.mxu0 %v11997_v52  ;;  %5595 = vmatpush1.bf16.msra.mxu1 %v12000_v15 }
0x2131   :  { %5555 = vmatprep.subr.bf16.mxu0 %v12003_v28  ;;  %5596 = vmatprep.subr.bf16.mxu1 %v12006_v6 }
0x2134   :  { %5556 = vmatpush1.bf16.msra.mxu0 %v12009_v47  ;;  %5597 = vmatpush1.bf16.msra.mxu1 %v12012_v58 }
0x2135   :  { %5670 = vmatprep.subr.bf16.mxu0 %v12015_v63  ;;  %5711 = vmatprep.subr.bf16.mxu1 %v12018_v12 }
0x21ea   :  { %v5461_v38 = vpop.f32.mrb[136].mxu0  ;;  %v5502_v41 = vpop.f32.mrb[136].mxu1 }
0x21eb   :  { %v5509_v19 = vadd.f32 %v5461_v38, %v12023_v14  ;;  %v5463_v62 = vpop.f32.mrb[137].mxu0  ;;  %v5504_v0 = vpop.f32.mrb[137].mxu1  ;;  %v5511_v31 = vadd.f32 %v5502_v41, %v12038_v42 }
0x21ec   :  { %v5510_v20 = vadd.f32 %v5463_v62, %v12027_v11  ;;  %v5465_v48 = vpop.f32.mrb[138].mxu0  ;;  %v5506_v25 = vpop.f32.mrb[138].mxu1  ;;  %v5512_v9 = vadd.f32 %v5504_v0, %v12033_v3 }
0x21ed   :  { %v7590_v40 = vmul.f32 -1.442695, %v5509_v19  ;;  %v5466_v44 = vpop.f32.mrb[139].mxu0  ;;  %v5507_v16 = vpop.f32.mrb[139].mxu1  ;;  %v5533_v19 = vrot.slane %v11916_v45, 6 }
0x21ee   :  { %v7591_v33 = vmul.f32 -1.442695, %v5510_v20  ;;  %v7592_v61 = vmul.f32 -1.442695, %v5512_v9 }
0x21ef   :  { %8860 = vpow2.f32 %v7590_v40 }
0x21f0   :  { %8862 = vpow2.f32 %v7591_v33 }
0x21f1   :  { %8864 = vpow2.f32 %v7592_v61 }
0x21f2   :  { %8866 = vtanh.f32 %v5511_v31 }
0x21f9   :  { %v8861_v55 = vpop.eup %8860 }
0x21fa   :  { %v8863_v34 = vpop.eup %8862  ;;  %v5516_v35 = vadd.f32 1.0, %v8861_v55 }
0x21fb   :  { %v5522_v24 = vadd.f32 1.0, %v8863_v34  ;;  %v8865_v49 = vpop.eup %8864 }
0x21fc   :  { %8868 = vrcp.f32 %v5516_v35  ;;  %v8867_v17 = vpop.eup %8866  ;;  %v5529_v5 = vadd.f32 1.0, %v8865_v49 }
0x21fd   :  { %8870 = vrcp.f32 %v5522_v24 }
0x21fe   :  { %8872 = vrcp.f32 %v5529_v5 }
0x2206   :  { %v8869_v38 = vpop.eup %8868 }
0x2207   :  { %v8871_v62 = vpop.eup %8870  ;;  %v5536_v0 = vmul.f32 %v8869_v38, %v8867_v17 }
0x2208   :  { %v5535_v20 = vmul.f32 %v8871_v62, %v5533_v19  ;;  %v8873_v41 = vpop.eup %8872 }
0x220a   :  { %v12042_v48 = vadd.f32 %v5536_v0, %v5535_v20 }
0x220c   :  { %8874 = vtanh.f32 %v12042_v48 }
0x2216   :  { %v8875_v25 = vpop.eup %8874 }
0x2217   :  { %v12045_v40 = vmul.f32 %v8875_v25, %v8873_v41 }
0x2219   :  { %v5540_v44 = vpack.c.bf16 %v12045_v40, %v12045_v40 }
0x221b   :  { %5574 = vmatmul.mubr.bf16.vlgmr.msra.gmra.mrb[140].mxu0 %v5540_v44  ;;  %5615 = vmatmul.mubr.bf16.vlgmr.msra.gmra.mrb[140].mxu1 %v5540_v44 }
0x221c   :  { %5671 = vmatpush1.bf16.msra.mxu0 %v11923_v1  ;;  %5712 = vmatpush1.bf16.msra.mxu1 %v11926_v39 }
0x221d   :  { %5672 = vmatprep.subr.bf16.mxu0 %v11929_v26  ;;  %5713 = vmatprep.subr.bf16.mxu1 %v11932_v56 }
0x221e   :  { %5702 = vmatprep.mubr.bf16.mxu0 %v12365_v29  ;;  %5743 = vmatprep.mubr.bf16.mxu1 %v12365_v29 }
0x2220   :  { %5673 = vmatpush1.bf16.msra.mxu0 %v11937_v21  ;;  %5714 = vmatpush1.bf16.msra.mxu1 %v11940_v53 }
0x2221   :  { %5674 = vmatprep.subr.bf16.mxu0 %v11943_v2  ;;  %5715 = vmatprep.subr.bf16.mxu1 %v11946_v46 }
0x2224   :  { %5675 = vmatpush1.bf16.msra.mxu0 %v11949_v22  ;;  %5716 = vmatpush1.bf16.msra.mxu1 %v11952_v27 }
0x2225   :  { %5676 = vmatprep.subr.bf16.mxu0 %v11955_v50  ;;  %5717 = vmatprep.subr.bf16.mxu1 %v11958_v51 }
0x2228   :  { %5677 = vmatpush1.bf16.msra.mxu0 %v11961_v18  ;;  %5718 = vmatpush1.bf16.msra.mxu1 %v11964_v8 }
0x2229   :  { %5678 = vmatprep.subr.bf16.mxu0 %v11967_v7  ;;  %5719 = vmatprep.subr.bf16.mxu1 %v11970_v60 }
0x222c   :  { %5679 = vmatpush1.bf16.msra.mxu0 %v11973_v54  ;;  %5720 = vmatpush1.bf16.msra.mxu1 %v11976_v43 }
0x222d   :  { %5680 = vmatprep.subr.bf16.mxu0 %v11979_v32  ;;  %5721 = vmatprep.subr.bf16.mxu1 %v11982_v23 }
0x2230   :  { %5681 = vmatpush1.bf16.msra.mxu0 %v11985_v10  ;;  %5722 = vmatpush1.bf16.msra.mxu1 %v11988_v13 }
0x2231   :  { %5682 = vmatprep.subr.bf16.mxu0 %v11991_v57  ;;  %5723 = vmatprep.subr.bf16.mxu1 %v11994_v4 }
0x2234   :  { %5683 = vmatpush1.bf16.msra.mxu0 %v11997_v52  ;;  %5724 = vmatpush1.bf16.msra.mxu1 %v12000_v15 }
0x2235   :  { %5684 = vmatprep.subr.bf16.mxu0 %v12003_v28  ;;  %5725 = vmatprep.subr.bf16.mxu1 %v12006_v6 }
0x2238   :  { %5685 = vmatpush1.bf16.msra.mxu0 %v12009_v47  ;;  %5726 = vmatpush1.bf16.msra.mxu1 %v12012_v58 }
0x2239   :  { %5799 = vmatprep.subr.bf16.mxu0 %v12015_v63  ;;  %5840 = vmatprep.subr.bf16.mxu1 %v12018_v12 }
0x22ee   :  { %v5575_v45 = vpop.f32.mrb[140].mxu0  ;;  %v5616_v16 = vpop.f32.mrb[140].mxu1 }
0x22ef   :  { %v5627_v33 = vrot.slane %v5575_v45, 6  ;;  %v5577_v59 = vpop.f32.mrb[141].mxu0  ;;  %v5618_v9 = vpop.f32.mrb[141].mxu1  ;;  %v5629_v12 = vrot.slane %v5616_v16, 6 }
0x22f0   :  { %v5628_v36 = vrot.slane %v5577_v59, 6  ;;  %v5579_v61 = vpop.f32.mrb[142].mxu0  ;;  %v5620_v31 = vpop.f32.mrb[142].mxu1  ;;  %v5630_v38 = vrot.slane %v5618_v9, 6 }
0x22f1   :  { %v5635_v55 = vadd.f32 %v5627_v33, %v12023_v14  ;;  %v5580_v34 = vpop.f32.mrb[143].mxu0  ;;  %v5621_v35 = vpop.f32.mrb[143].mxu1  ;;  %v5637_v62 = vadd.f32 %v5629_v12, %v12038_v42  ;;  %v5659_v33 = vrot.slane %v12042_v48, 6 }
0x22f2   :  { %v5636_v24 = vadd.f32 %v5628_v36, %v12027_v11  ;;  %v5638_v63 = vadd.f32 %v5630_v38, %v12033_v3 }
0x22f3   :  { %v7593_v49 = vmul.f32 -1.442695, %v5635_v55 }
0x22f4   :  { %v7594_v17 = vmul.f32 -1.442695, %v5636_v24  ;;  %v7595_v19 = vmul.f32 -1.442695, %v5638_v63 }
0x22f5   :  { %8876 = vpow2.f32 %v7593_v49 }
0x22f6   :  { %8878 = vpow2.f32 %v7594_v17 }
0x22f7   :  { %8880 = vpow2.f32 %v7595_v19 }
0x22f8   :  { %8882 = vtanh.f32 %v5637_v62 }
0x22ff   :  { %v8877_v0 = vpop.eup %8876 }
0x2300   :  { %v8879_v5 = vpop.eup %8878  ;;  %v5642_v20 = vadd.f32 1.0, %v8877_v0 }
0x2301   :  { %v5648_v41 = vadd.f32 1.0, %v8879_v5  ;;  %v8881_v25 = vpop.eup %8880  ;;  %v8328_v5 = vld [vmem:[#allocation16] ss:$12 sps:$4 sm:$0xff]  }
0x2302   :  { %8884 = vrcp.f32 %v5642_v20  ;;  %v8883_v44 = vpop.eup %8882  ;;  %v5655_v36 = vadd.f32 1.0, %v8881_v25  ;;  %v8331_v25 = vld [vmem:[#allocation16 + $0x18] ss:$12 sps:$4 sm:$0xff]  }
0x2303   :  { %8886 = vrcp.f32 %v5648_v41  ;;  %v8333_v41 = vld [vmem:[#allocation16 + $0x1c] ss:$12 sps:$4 sm:$0xff]  }
0x2304   :  { %8888 = vrcp.f32 %v5655_v36  ;;  %v8345_v36 = vld [vmem:[#allocation16 + $0x7c] ss:$12 sps:$4 sm:$0xff]  }
0x230c   :  { %v8885_v45 = vpop.eup %8884 }
0x230d   :  { %v8887_v59 = vpop.eup %8886  ;;  %v5662_v9 = vmul.f32 %v8885_v45, %v8883_v44  ;;  %v8336_v44 = vld [vmem:[#allocation16 + $0x34] ss:$12 sps:$4 sm:$0xff]   ;;  %v8334_v45 = vld [vmem:[#allocation16 + $0x30] ss:$12 sps:$4 sm:$0xff]  }
0x230e   :  { %v5661_v16 = vmul.f32 %v8887_v59, %v5659_v33  ;;  %v8889_v31 = vpop.eup %8888  ;;  %v8337_v33 = vld [vmem:[#allocation16 + $0x48] ss:$12 sps:$4 sm:$0xff]   ;;  %v8342_v59 = vld [vmem:[#allocation16 + $0x64] ss:$12 sps:$4 sm:$0xff]  }
0x2310   :  { %v12088_v61 = vadd.f32 %v5662_v9, %v5661_v16  ;;  %v8340_v9 = vld [vmem:[#allocation16 + $0x60] ss:$12 sps:$4 sm:$0xff]   ;;  %v8343_v16 = vld [vmem:[#allocation16 + $0x78] ss:$12 sps:$4 sm:$0xff]  }
0x2312   :  { %8890 = vtanh.f32 %v12088_v61 }
0x231c   :  { %v8891_v55 = vpop.eup %8890 }
0x231d   :  { %v12091_v34 = vmul.f32 %v8891_v55, %v8889_v31  ;;  %v8346_v31 = vld [vmem:[#allocation16 + $0x90] ss:$12 sps:$4 sm:$0xff]   ;;  %v8351_v55 = vld [vmem:[#allocation16 + $0xac] ss:$12 sps:$4 sm:$0xff]  }
0x231f   :  { %v5666_v35 = vpack.c.bf16 %v12091_v34, %v12091_v34  ;;  %v5933_v19 = vsel %vm563_vm4, %v12045_v40, %v12091_v34  ;;  %v8339_v40 = vld [vmem:[#allocation16 + $0x4c] ss:$12 sps:$4 sm:$0xff]   ;;  %v8349_v34 = vld [vmem:[#allocation16 + $0xa8] ss:$12 sps:$4 sm:$0xff]  }
0x2321   :  { %v5668_v24 = vrot.slane %v5666_v35, 1  ;;  %v8352_v35 = vld [vmem:[#allocation16 + $0x8] ss:$12 sps:$4 sm:$0xff]  }
0x2323   :  { %5703 = vmatmul.mubr.bf16.vlgmr.msra.gmra.mrb[144].mxu0 %v5668_v24  ;;  %5744 = vmatmul.mubr.bf16.vlgmr.msra.gmra.mrb[144].mxu1 %v5668_v24  ;;  %v8353_v24 = vld [vmem:[#allocation16 + $0x20] ss:$12 sps:$4 sm:$0xff]  }
0x2324   :  { %5800 = vmatpush1.bf16.msra.mxu0 %v11923_v1  ;;  %5841 = vmatpush1.bf16.msra.mxu1 %v11926_v39  ;;  %v8330_v1 = vld [vmem:[#allocation16 + $0x4] ss:$12 sps:$4 sm:$0xff]  }
0x2325   :  { %5801 = vmatprep.subr.bf16.mxu0 %v11929_v26  ;;  %5842 = vmatprep.subr.bf16.mxu1 %v11932_v56 }
0x2326   :  { %5831 = vmatprep.mubr.bf16.mxu0 %v12365_v29  ;;  %5872 = vmatprep.mubr.bf16.mxu1 %v12365_v29 }
0x2328   :  { %5802 = vmatpush1.bf16.msra.mxu0 %v11937_v21  ;;  %5843 = vmatpush1.bf16.msra.mxu1 %v11940_v53 }
0x2329   :  { %5803 = vmatprep.subr.bf16.mxu0 %v11943_v2  ;;  %5844 = vmatprep.subr.bf16.mxu1 %v11946_v46 }
0x232c   :  { %5804 = vmatpush1.bf16.msra.mxu0 %v11949_v22  ;;  %5845 = vmatpush1.bf16.msra.mxu1 %v11952_v27 }
0x232d   :  { %5805 = vmatprep.subr.bf16.mxu0 %v11955_v50  ;;  %5846 = vmatprep.subr.bf16.mxu1 %v11958_v51 }
0x2330   :  { %5806 = vmatpush1.bf16.msra.mxu0 %v11961_v18  ;;  %5847 = vmatpush1.bf16.msra.mxu1 %v11964_v8 }
0x2331   :  { %5807 = vmatprep.subr.bf16.mxu0 %v11967_v7  ;;  %5848 = vmatprep.subr.bf16.mxu1 %v11970_v60 }
0x2334   :  { %5808 = vmatpush1.bf16.msra.mxu0 %v11973_v54  ;;  %5849 = vmatpush1.bf16.msra.mxu1 %v11976_v43 }
0x2335   :  { %5809 = vmatprep.subr.bf16.mxu0 %v11979_v32  ;;  %5850 = vmatprep.subr.bf16.mxu1 %v11982_v23 }
0x2338   :  { %5810 = vmatpush1.bf16.msra.mxu0 %v11985_v10  ;;  %5851 = vmatpush1.bf16.msra.mxu1 %v11988_v13 }
0x2339   :  { %5811 = vmatprep.subr.bf16.mxu0 %v11991_v57  ;;  %5852 = vmatprep.subr.bf16.mxu1 %v11994_v4 }
0x233c   :  { %5812 = vmatpush1.bf16.msra.mxu0 %v11997_v52  ;;  %5853 = vmatpush1.bf16.msra.mxu1 %v12000_v15 }
0x233d   :  { %5813 = vmatprep.subr.bf16.mxu0 %v12003_v28  ;;  %5854 = vmatprep.subr.bf16.mxu1 %v12006_v6  ;;  %v5788_v6 = vrot.slane %v12088_v61, 6  ;;  %v8348_v61 = vld [vmem:[#allocation16 + $0x94] ss:$12 sps:$4 sm:$0xff]  }
0x2340   :  { %5814 = vmatpush1.bf16.msra.mxu0 %v12009_v47  ;;  %5855 = vmatpush1.bf16.msra.mxu1 %v12012_v58 }
0x2341   :  { %6115 = vmatprep.subr.bf16.mxu0 %v8330_v1  ;;  %7832 = vmatprep.subr.bf16.mxu1 %v8352_v35  ;;  %v8354_v1 = vld [vmem:[#allocation16 + $0x38] ss:$12 sps:$4 sm:$0xff]  }
0x23f6   :  { %v5704_v39 = vpop.f32.mrb[144].mxu0  ;;  %v5745_v26 = vpop.f32.mrb[144].mxu1 }
0x23f7   :  { %v5756_v56 = vrot.slane %v5704_v39, 4  ;;  %v5706_v21 = vpop.f32.mrb[145].mxu0  ;;  %v5747_v53 = vpop.f32.mrb[145].mxu1  ;;  %v5758_v43 = vrot.slane %v5745_v26, 4  ;;  %v8355_v39 = vld [vmem:[#allocation16 + $0x50] ss:$12 sps:$4 sm:$0xff]  }
0x23f8   :  { %v5757_v2 = vrot.slane %v5706_v21, 4  ;;  %v5708_v46 = vpop.f32.mrb[146].mxu0  ;;  %v5749_v22 = vpop.f32.mrb[146].mxu1  ;;  %v5759_v60 = vrot.slane %v5747_v53, 4  ;;  %v8356_v26 = vld [vmem:[#allocation16 + $0x68] ss:$12 sps:$4 sm:$0xff]  }
0x23f9   :  { %v5764_v27 = vadd.f32 %v5756_v56, %v12023_v14  ;;  %v5709_v50 = vpop.f32.mrb[147].mxu0  ;;  %v5750_v51 = vpop.f32.mrb[147].mxu1  ;;  %v5766_v23 = vadd.f32 %v5758_v43, %v12038_v42  ;;  %v8359_v56 = vld [vmem:[#allocation16 + $0xb0] ss:$12 sps:$4 sm:$0xff]   ;;  %v8360_v21 = vld [vmem:[%s12397_s13] sm:$0xff]   ;;  %v8363_v46 = vld [vmem:[%s12397_s13 + $0x18] sm:$0xff]  }
0x23fa   :  { %v5765_v18 = vadd.f32 %v5757_v2, %v12027_v11  ;;  %v5767_v54 = vadd.f32 %v5759_v60, %v12033_v3  ;;  %v8361_v53 = vld [vmem:[%s12397_s13 + $0x8] sm:$0xff]   ;;  %v8362_v2 = vld [vmem:[%s12397_s13 + $0x10] sm:$0xff]  }
0x23fb   :  { %v7596_v8 = vmul.f32 -1.442695, %v5764_v27 }
0x23fc   :  { %v7597_v7 = vmul.f32 -1.442695, %v5765_v18  ;;  %v7598_v32 = vmul.f32 -1.442695, %v5767_v54 }
0x23fd   :  { %8892 = vpow2.f32 %v7596_v8 }
0x23fe   :  { %8894 = vpow2.f32 %v7597_v7 }
0x23ff   :  { %8896 = vpow2.f32 %v7598_v32 }
0x2400   :  { %8898 = vtanh.f32 %v5766_v23 }
0x2407   :  { %v8893_v10 = vpop.eup %8892 }
0x2408   :  { %v8895_v13 = vpop.eup %8894  ;;  %v5771_v57 = vadd.f32 1.0, %v8893_v10 }
0x2409   :  { %v5777_v4 = vadd.f32 1.0, %v8895_v13  ;;  %v8897_v52 = vpop.eup %8896 }
0x240a   :  { %8900 = vrcp.f32 %v5771_v57  ;;  %v8899_v15 = vpop.eup %8898  ;;  %v5784_v48 = vadd.f32 1.0, %v8897_v52 }
0x240b   :  { %8902 = vrcp.f32 %v5777_v4 }
0x240c   :  { %8904 = vrcp.f32 %v5784_v48 }
0x2414   :  { %v8901_v28 = vpop.eup %8900 }
0x2415   :  { %v8903_v47 = vpop.eup %8902  ;;  %v5791_v58 = vmul.f32 %v8901_v28, %v8899_v15 }
0x2416   :  { %v5790_v49 = vmul.f32 %v8903_v47, %v5788_v6  ;;  %v8905_v38 = vpop.eup %8904 }
0x2418   :  { %v12132_v17 = vadd.f32 %v5791_v58, %v5790_v49 }
0x241a   :  { %8906 = vtanh.f32 %v12132_v17 }
0x2424   :  { %v8907_v63 = vpop.eup %8906 }
0x2425   :  { %v5794_v12 = vmul.f32 %v8907_v63, %v8905_v38  ;;  %v5917_v38 = vrot.slane %v12132_v17, 6 }
0x2427   :  { %v5795_v62 = vpack.c.bf16 %v5794_v12, %v5794_v12  ;;  %v12139_v0 = vsel %vm511_vm2, %v5933_v19, %v5794_v12 }
0x2429   :  { %v5797_v20 = vrot.slane %v5795_v62, 2 }
0x242b   :  { %5832 = vmatmul.mubr.bf16.vlgmr.msra.gmra.mrb[148].mxu0 %v5797_v20  ;;  %5873 = vmatmul.mubr.bf16.vlgmr.msra.gmra.mrb[148].mxu1 %v5797_v20 }
0x242c   :  { %6116 = vmatpush1.bf16.msra.mxu0 %v8328_v5  ;;  %7848 = vmatprep.mubr.bf16.mxu1 %v11719_v37 }
0x242d   :  { %6117 = vmatprep.subr.bf16.mxu0 %v8333_v41  ;;  %6147 = vmatprep.mubr.bf16.mxu0 %v12365_v29 }
0x242e   :  { %7833 = vmatpush3.bf16.msra.mxu1 %v8352_v35 }
0x242f   :  { %7834 = vmatprep.subr.bf16.mxu1 %v8353_v24 }
0x2430   :  { %6118 = vmatpush1.bf16.msra.mxu0 %v8331_v25 }
0x2431   :  { %6119 = vmatprep.subr.bf16.mxu0 %v8336_v44 }
0x2432   :  { %7835 = vmatpush3.bf16.msra.mxu1 %v8353_v24 }
0x2433   :  { %7836 = vmatprep.subr.bf16.mxu1 %v8354_v1 }
0x2434   :  { %6120 = vmatpush1.bf16.msra.mxu0 %v8334_v45 }
0x2435   :  { %6121 = vmatprep.subr.bf16.mxu0 %v8339_v40 }
0x2436   :  { %7837 = vmatpush3.bf16.msra.mxu1 %v8354_v1 }
0x2437   :  { %7838 = vmatprep.subr.bf16.mxu1 %v8355_v39 }
0x2438   :  { %6122 = vmatpush1.bf16.msra.mxu0 %v8337_v33  ;;  %v8364_v33 = vld [vmem:[%s12397_s13 + $0x20] sm:$0xff]  }
0x2439   :  { %6123 = vmatprep.subr.bf16.mxu0 %v8342_v59  ;;  %v8365_v59 = vld [vmem:[%s12397_s13 + $0x28] sm:$0xff]  }
0x243a   :  { %7839 = vmatpush3.bf16.msra.mxu1 %v8355_v39 }
0x243b   :  { %7840 = vmatprep.subr.bf16.mxu1 %v8356_v26 }
0x243c   :  { %6124 = vmatpush1.bf16.msra.mxu0 %v8340_v9  ;;  %v8366_v9 = vld [vmem:[%s12397_s13 + $0x30] sm:$0xff]  }
0x243d   :  { %6125 = vmatprep.subr.bf16.mxu0 %v8345_v36  ;;  %v8367_v36 = vld [vmem:[%s12397_s13 + $0x38] sm:$0xff]  }
0x243e   :  { %7841 = vmatpush3.bf16.msra.mxu1 %v8356_v26 }
0x2440   :  { %6126 = vmatpush1.bf16.msra.mxu0 %v8343_v16  ;;  %v12161_v16 = vld [vmem:[#allocation18] sm:$0x7] }
0x2441   :  { %6127 = vmatprep.subr.bf16.mxu0 %v8348_v61  ;;  %v12398_v61 = vld [vmem:[#allocation64_spill] sm:$0xff] }
0x2444   :  { %6128 = vmatpush1.bf16.msra.mxu0 %v8346_v31 }
0x2445   :  { %6129 = vmatprep.subr.bf16.mxu0 %v8351_v55 }
0x2448   :  { %6130 = vmatpush1.bf16.msra.mxu0 %v8349_v34 }
0x2449   :  { %7852 = vmatprep.subr.bf16.mxu0 %v8360_v21 }
0x244b   :  { %6148 = vmatmul.mubr.bf16.vlgmr.msra.gmra.mrb[152].mxu0 %v11719_v37  ;;  %v8357_v37 = vld [vmem:[#allocation16 + $0x80] ss:$12 sps:$4 sm:$0xff]  }
0x244c   :  { %6155 = vmatprep.mubr.bf16.mxu0 %v12365_v29  ;;  %7842 = vmatprep.subr.bf16.mxu1 %v8357_v37  ;;  %v8358_v29 = vld [vmem:[#allocation16 + $0x98] ss:$12 sps:$4 sm:$0xff]  }
0x244d   :  { %7843 = vmatpush3.bf16.msra.mxu1 %v8357_v37  ;;  %7853 = vmatpush3.bf16.msra.mxu0 %v8360_v21  ;;  %v12399_v37 = vld [vmem:[#allocation66_spill] sm:$0xff] }
0x244e   :  { %7844 = vmatprep.subr.bf16.mxu1 %v8358_v29  ;;  %7854 = vmatprep.subr.bf16.mxu0 %v8361_v53 }
0x2451   :  { %7845 = vmatpush3.bf16.msra.mxu1 %v8358_v29  ;;  %7855 = vmatpush3.bf16.msra.mxu0 %v8361_v53  ;;  %v5979_v29 = vrot.slane %v12161_v16, %v12399_v37 }
0x2452   :  { %7846 = vmatprep.subr.bf16.mxu1 %v8359_v56  ;;  %7856 = vmatprep.subr.bf16.mxu0 %v8362_v2 }
0x2455   :  { %7847 = vmatpush3.bf16.msra.mxu1 %v8359_v56  ;;  %7857 = vmatpush3.bf16.msra.mxu0 %v8362_v2 }
0x2456   :  { %7858 = vmatprep.subr.bf16.mxu0 %v8363_v46 }
0x2459   :  { %7859 = vmatpush3.bf16.msra.mxu0 %v8363_v46 }
0x245a   :  { %7860 = vmatprep.subr.bf16.mxu0 %v8364_v33 }
0x245d   :  { %7861 = vmatpush3.bf16.msra.mxu0 %v8364_v33 }
0x245e   :  { %7862 = vmatprep.subr.bf16.mxu0 %v8365_v59 }
0x2461   :  { %7863 = vmatpush3.bf16.msra.mxu0 %v8365_v59 }
0x2462   :  { %7864 = vmatprep.subr.bf16.mxu0 %v8366_v9 }
0x2465   :  { %7865 = vmatpush3.bf16.msra.mxu0 %v8366_v9 }
0x2466   :  { %7866 = vmatprep.subr.bf16.mxu0 %v8367_v36 }
0x2469   :  { %7867 = vmatpush3.bf16.msra.mxu0 %v8367_v36 }
0x24fe   :  { %v5833_v22 = vpop.f32.mrb[148].mxu0  ;;  %v5874_v27 = vpop.f32.mrb[148].mxu1 }
0x24ff   :  { %v5885_v50 = vrot.slane %v5833_v22, 2  ;;  %v5835_v51 = vpop.f32.mrb[149].mxu0  ;;  %v5876_v18 = vpop.f32.mrb[149].mxu1  ;;  %v5887_v52 = vrot.slane %v5874_v27, 2 }
0x2500   :  { %v5886_v8 = vrot.slane %v5835_v51, 2  ;;  %v5837_v7 = vpop.f32.mrb[150].mxu0  ;;  %v5878_v60 = vpop.f32.mrb[150].mxu1  ;;  %v5888_v57 = vrot.slane %v5876_v18, 2 }
0x2501   :  { %v5893_v54 = vadd.f32 %v5885_v50, %v12023_v14  ;;  %v5838_v43 = vpop.f32.mrb[151].mxu0  ;;  %v5879_v32 = vpop.f32.mrb[151].mxu1  ;;  %v5895_v28 = vadd.f32 %v5887_v52, %v12038_v42 }
0x2502   :  { %v5894_v23 = vadd.f32 %v5886_v8, %v12027_v11  ;;  %v5896_v4 = vadd.f32 %v5888_v57, %v12033_v3 }
0x2503   :  { %v7599_v10 = vmul.f32 -1.442695, %v5893_v54 }
0x2504   :  { %v7600_v13 = vmul.f32 -1.442695, %v5894_v23  ;;  %v7601_v15 = vmul.f32 -1.442695, %v5896_v4 }
0x2505   :  { %8908 = vpow2.f32 %v7599_v10  ;;  %v9633_v10 = vmov 0.0|0.0  }
0x2506   :  { %8910 = vpow2.f32 %v7600_v13  ;;  %8012 = vmatprep.subr.bf16.mxu0 %v9633_v10  ;;  %v9635_v13 = vmov 0.0  }
0x2507   :  { %8912 = vpow2.f32 %v7601_v15 }
0x2508   :  { %8914 = vtanh.f32 %v5895_v28 }
0x250f   :  { %v8909_v6 = vpop.eup %8908 }
0x2510   :  { %v8911_v47 = vpop.eup %8910  ;;  %v5900_v58 = vadd.f32 1.0, %v8909_v6 }
0x2511   :  { %v5906_v14 = vadd.f32 1.0, %v8911_v47  ;;  %v8913_v11 = vpop.eup %8912 }
0x2512   :  { %8916 = vrcp.f32 %v5900_v58  ;;  %v8915_v48 = vpop.eup %8914  ;;  %v5913_v3 = vadd.f32 1.0, %v8913_v11 }
0x2513   :  { %8918 = vrcp.f32 %v5906_v14 }
0x2514   :  { %8920 = vrcp.f32 %v5913_v3 }
0x251c   :  { %v8917_v49 = vpop.eup %8916 }
0x251d   :  { %v8919_v63 = vpop.eup %8918  ;;  %v5920_v12 = vmul.f32 %v8917_v49, %v8915_v48 }
0x251e   :  { %v5919_v19 = vmul.f32 %v8919_v63, %v5917_v38  ;;  %v6149_v62 = vpop.f32.mrb[152].mxu0  ;;  %v8921_v25 = vpop.eup %8920 }
0x251f   :  { %v6150_v42 = vpop.f32.mrb[153].mxu0 }
0x2520   :  { %v5921_v5 = vadd.f32 %v5920_v12, %v5919_v19  ;;  %v6152_v20 = vpop.f32.mrb[154].mxu0  ;;  %v6151_v46 = vadd.f32 %v6150_v42, %v5979_v29 }
0x2521   :  { %v6153_v41 = vpop.f32.mrb[155].mxu0 }
0x2522   :  { %8922 = vtanh.f32 %v5921_v5  ;;  %v6154_v27 = vadd.f32 %v6153_v41, %v5979_v29 }
0x252c   :  { %v8923_v44 = vpop.eup %8922 }
0x252d   :  { %v5923_v45 = vmul.f32 %v8923_v44, %v8921_v25 }
0x252f   :  { %v5935_v17 = vsel %vm528_vm5, %v12139_v0, %v5923_v45  ;;  %v5975_v0 = vrot.slane %v12161_v16, %v12398_v61  ;;  %v6370_v61 = vld [vmem:[%s12400_s19] sm:$0x3] }
0x2530   :  { %v5969_v40 = vpack.c.bf16 %v5935_v17, %v11921_v30 }
0x2532   :  { %6156 = vmatmul.mubr.bf16.gmra.mrb[156].mxu0 %v5969_v40  ;;  %7849 = vmatmul.mubr.bf16.vlgmr.msra.gmra.mrb[152].mxu1 %v5969_v40 }
0x2605   :  { %v6157_v30 = vpop.f32.mrb[156].mxu0  ;;  %v12165_v31 = vpop.f32.mrb[152].mxu1 }
0x2606   :  { %v6158_v55 = vpop.f32.mrb[157].mxu0  ;;  %v12167_v34 = vpop.f32.mrb[153].mxu1 }
0x2607   :  { %v6160_v35 = vpop.f32.mrb[158].mxu0  ;;  %v12169_v24 = vpop.f32.mrb[154].mxu1  ;;  %v6159_v50 = vadd.f32 %v6158_v55, %v5979_v29 }
0x2608   :  { %v6161_v1 = vadd.f32 %v6160_v35, %v5975_v0  ;;  %v6162_v39 = vpop.f32.mrb[159].mxu0  ;;  %v12171_v26 = vpop.f32.mrb[155].mxu1  ;;  %v6461_v0 = vld [vmem:[#allocation19] sm:$0xf] }
0x2609   :  { %v6163_v51 = vadd.f32 %v6162_v39, %v5979_v29  ;;  %8025 = vmatprep.subr.msk.bf16.mxu1 %vm511_vm2, %v6461_v0  ;;  %v6471_v30 = vsel %vm511_vm2, %v6461_v0, 0 }
0x260a   :  { %v6214_v56 = vmul.f32 0.25, %v6161_v1  ;;  %7884 = vmatpush3.bf16.msra.mxu1 %v6471_v30 }
0x260b   :  { %8018 = vmatprep.subr.bf16.mxu1 %v9633_v10 }
0x260c   :  { %v6216_v21 = vrot.slane %v6214_v56, 6  ;;  %v6218_v53 = vrot.slane %v6214_v56, 4  ;;  %v6220_v2 = vrot.slane %v6214_v56, 2 }
0x260e   :  { %v6222_v22 = vsel %vm563_vm4, %v6216_v21, %v6218_v53 }
0x260f   :  { %v6223_v18 = vsel %vm511_vm2, %v6222_v22, %v6220_v2 }
0x2610   :  { %v6224_v8 = vsel %vm528_vm5, %v6223_v18, %v6214_v56  ;;  %v12401_v18 = vld [vmem:[#allocation65_spill] sm:$0xff] }
0x2611   :  { %v6227_v7 = vmul.f32 %v6224_v8, %v6159_v50  ;;  %v6228_v60 = vmul.f32 %v6224_v8, %v6163_v51  ;;  %v6225_v54 = vmul.f32 %v6224_v8, %v6151_v46  ;;  %v6226_v43 = vmul.f32 %v6224_v8, %v6154_v27 }
0x2612   :  { %v5983_v8 = vrot.slane %v12161_v16, %v12401_v18  ;;  %v8368_v16 = vld [vmem:[#allocation21] sm:$0xff]   ;;  %v8401_v18 = vld [vmem:[%s12403_s21 + $0x8] sm:$0xff]  }
0x2613   :  { %v6246_v32 = vpack.c.bf16 %v6228_v60, %v6227_v7  ;;  %v6245_v23 = vpack.c.bf16 %v6226_v43, %v6225_v54 }
0x2614   :  { %v6208_v7 = vadd.f32 %v12165_v31, %v5983_v8  ;;  %v6200_v60 = vadd.f32 %v12167_v34, %v5983_v8  ;;  %v6211_v43 = vadd.f32 %v12169_v24, %v5983_v8  ;;  %v8369_v31 = vld [vmem:[#allocation21 + $0x8] sm:$0xff]   ;;  %v8370_v34 = vld [vmem:[#allocation21 + $0x10] sm:$0xff]   ;;  %v8371_v24 = vld [vmem:[#allocation21 + $0x18] sm:$0xff]  }
0x2615   :  { %7868 = vmatprep.mubr.bf16.mxu0 %v6245_v23 }
0x2616   :  { %7869 = vmatmul.mubr.bf16.vlgmr.msra.gmra.mrb[160].mxu0 %v6246_v32 }
0x2617   :  { %7880 = vmatprep.mubr.msk.f32.mxu0 %vm9634_vm6, %v9635_v13 }
0x26e9   :  { %v7870_v57 = vpop.f32.mrb[160].mxu0 }
0x26ea   :  { %v6329_v4 = vpop.f32.mrb[161].mxu0  ;;  %v6347_v15 = vsel %vm6344_vm7, %v7870_v57, -inf }
0x26eb   :  { %v7871_v52 = vpop.f32.mrb[162].mxu0  ;;  %v6345_v47 = vsel %vm6344_vm7, %v6329_v4, -inf }
0x26ec   :  { %v6348_v28 = vsel %vm6344_vm7, %v7871_v52, -inf  ;;  %v6332_v6 = vpop.f32.mrb[163].mxu0 }
0x26ed   :  { %v6350_v58 = vmax.f32 %v6347_v15, %v6348_v28  ;;  %v6346_v14 = vsel %vm6344_vm7, %v6332_v6, -inf }
0x26ee   :  { %v6349_v11 = vmax.f32 %v6345_v47, %v6346_v14  ;;  %v8374_v14 = vld [vmem:[#allocation21 + $0x30] sm:$0xff]  }
0x26f0   :  { %v6351_v48 = vmax.f32 %v6349_v11, %v6350_v58  ;;  %v8375_v11 = vld [vmem:[#allocation21 + $0x38] sm:$0xff]  }
0x26f2   :  { %v6352_v49 = vrot.slane %v6351_v48, 4 }
0x26f4   :  { %v6353_v38 = vmax.f32 %v6351_v48, %v6352_v49  ;;  %v8376_v48 = vld [vmem:[#allocation24] sm:$0xff]   ;;  %v8377_v49 = vld [vmem:[#allocation24 + $0x8] sm:$0xff]  }
0x26f6   :  { %v6354_v63 = vrot.slane %v6353_v38, 2 }
0x26f8   :  { %v6355_v12 = vmax.f32 %v6353_v38, %v6354_v63  ;;  %v8378_v38 = vld [vmem:[#allocation24 + $0x10] sm:$0xff]   ;;  %v8379_v63 = vld [vmem:[#allocation24 + $0x18] sm:$0xff]  }
0x26fa   :  { %v6356_v3 = vrot.slane %v6355_v12, 1 }
0x26fc   :  { %v6357_v19 = vmax.f32 %v6355_v12, %v6356_v3  ;;  %v8380_v12 = vld [vmem:[#allocation24 + $0x20] sm:$0xff]   ;;  %v8381_v3 = vld [vmem:[#allocation24 + $0x28] sm:$0xff]  }
0x26fe   :  { %v6358_v62 = vsub.f32 %v6329_v4, %v6357_v19  ;;  %v6359_v42 = vsub.f32 %v6332_v6, %v6357_v19  ;;  %v6360_v5 = vsub.f32 %v7870_v57, %v6357_v19  ;;  %v6361_v20 = vsub.f32 %v7871_v52, %v6357_v19  ;;  %v8382_v19 = vld [vmem:[#allocation24 + $0x30] sm:$0xff]  }
0x26ff   :  { %v6203_v57 = vadd.f32 %v12171_v26, %v5983_v8  ;;  %v8372_v26 = vld [vmem:[#allocation21 + $0x20] sm:$0xff]   ;;  %v8402_v8 = vld [vmem:[%s12403_s21 + $0x10] sm:$0xff]  }
0x2700   :  { %v6362_v41 = vmul.f32 1.442695, %v6358_v62  ;;  %v6364_v25 = vmul.f32 1.442695, %v6359_v42  ;;  %v6366_v44 = vmul.f32 1.442695, %v6360_v5 }
0x2701   :  { %v6368_v45 = vmul.f32 1.442695, %v6361_v20  ;;  %v8383_v20 = vld [vmem:[#allocation24 + $0x38] sm:$0xff]  }
0x2702   :  { %8924 = vpow2.f32 %v6364_v25 }
0x2703   :  { %8926 = vpow2.f32 %v6362_v41  ;;  %v7638_v41 = vld [vmem:[#allocation22] ss:$0 sm:$0xff] }
0x2704   :  { %8928 = vpow2.f32 %v6366_v44 }
0x2705   :  { %8930 = vpow2.f32 %v6368_v45 }
0x270c   :  { %v8925_v17 = vpop.eup %8924 }
0x270d   :  { %v8927_v40 = vpop.eup %8926 }
0x270e   :  { %v8929_v33 = vpop.eup %8928  ;;  %v8013_v59 = vpack.c.bf16 %v8925_v17, %v8927_v40 }
0x270f   :  { %v8931_v9 = vpop.eup %8930 }
0x2710   :  { %8014 = vmatpush3.bf16.msra.mxu0 %v8013_v59  ;;  %v8016_v36 = vpack.c.bf16 %v8931_v9, %v8929_v33  ;;  %v7647_v59 = vld [vmem:[#allocation25] ss:$0 sm:$0xff] }
0x2711   :  { %8015 = vmatprep.subr.bf16.mxu0 %v9633_v10 }
0x2714   :  { %8017 = vmatpush3.bf16.msra.mxu0 %v8016_v36 }
0x2715   :  { %7920 = vmatprep.subr.bf16.mxu0 %v9635_v13 }
0x2717   :  { %7881 = vmatmul.mubr.msk.f32.vlgmr.msra.gmra.mrb[164].mxu0 %vm6371_vm8, %v6370_v61 }
0x2718   :  { %7936 = vmatprep.mubr.msk.bf16.mxu0 %vm9634_vm6, %v9635_v13  ;;  %7921 = vmatpush3.bf16.msra.mxu0 %v8376_v48  ;;  %v8406_v48 = vld [vmem:[%s12403_s21 + $0x30] sm:$0xff]  }
0x2719   :  { %7922 = vmatprep.subr.bf16.mxu0 %v9635_v13 }
0x271c   :  { %7923 = vmatpush3.bf16.msra.mxu0 %v8377_v49  ;;  %v8407_v49 = vld [vmem:[%s12403_s21 + $0x38] sm:$0xff]  }
0x271d   :  { %7924 = vmatprep.subr.bf16.mxu0 %v9635_v13 }
0x2720   :  { %7925 = vmatpush3.bf16.msra.mxu0 %v8378_v38  ;;  %v7658_v38 = vld [vmem:[#allocation30] ss:$0 sm:$0xff] }
0x2721   :  { %7926 = vmatprep.subr.bf16.mxu0 %v9635_v13 }
0x2724   :  { %7927 = vmatpush3.bf16.msra.mxu0 %v8379_v63 }
0x2725   :  { %7928 = vmatprep.subr.bf16.mxu0 %v9635_v13 }
0x2728   :  { %7929 = vmatpush3.bf16.msra.mxu0 %v8380_v12 }
0x2729   :  { %7930 = vmatprep.subr.bf16.mxu0 %v9635_v13 }
0x272c   :  { %7931 = vmatpush3.bf16.msra.mxu0 %v8381_v3 }
0x272d   :  { %7932 = vmatprep.subr.bf16.mxu0 %v9635_v13 }
0x2730   :  { %7933 = vmatpush3.bf16.msra.mxu0 %v8382_v19 }
0x2731   :  { %7934 = vmatprep.subr.bf16.mxu0 %v9635_v13 }
0x2734   :  { %7935 = vmatpush3.bf16.msra.mxu0 %v8383_v20 }
0x2735   :  { %7960 = vmatprep.subr.bf16.mxu0 %v9635_v13 }
0x27ea   :  { %v6441_v55 = vpop.f32.mrb[164].mxu0 }
0x27eb   :  { %8932 = vrcp.f32 %v6441_v55  ;;  %v7882_v35 = vpop.f32.mrb[165].mxu0 }
0x27ec   :  { %v8384_v35 = vld [vmem:[%s12402_s28] sm:$0xff]  }
0x27f5   :  { %v8933_v1 = vpop.eup %8932 }
0x27f6   :  { %v6448_v39 = vrot.slane %v8933_v1, 6  ;;  %v6450_v37 = vrot.slane %v8933_v1, 4  ;;  %v6452_v29 = vrot.slane %v8933_v1, 2 }
0x27f8   :  { %v6454_v56 = vsel %vm563_vm4, %v8933_v1, %v6448_v39  ;;  %v8385_v1 = vld [vmem:[%s12402_s28 + $0x8] sm:$0xff]  }
0x27f9   :  { %v6455_v21 = vsel %vm511_vm2, %v6454_v56, %v6450_v37 }
0x27fa   :  { %v6456_v53 = vsel %vm528_vm5, %v6455_v21, %v6452_v29 }
0x27fb   :  { %v6457_v2 = vmul.f32 %v8927_v40, %v6456_v53  ;;  %v6458_v46 = vmul.f32 %v8925_v17, %v6456_v53  ;;  %v6459_v22 = vmul.f32 %v8929_v33, %v6456_v53  ;;  %v6460_v27 = vmul.f32 %v8931_v9, %v6456_v53  ;;  %v8386_v53 = vld [vmem:[%s12402_s28 + $0x10] sm:$0xff]  }
0x27fd   :  { %v6462_v50 = vpack.c.bf16 %v6458_v46, %v6457_v2  ;;  %v6463_v51 = vpack.c.bf16 %v6460_v27, %v6459_v22  ;;  %v8387_v2 = vld [vmem:[%s12402_s28 + $0x18] sm:$0xff]   ;;  %v8388_v46 = vld [vmem:[%s12402_s28 + $0x20] sm:$0xff]   ;;  %v8389_v22 = vld [vmem:[%s12402_s28 + $0x28] sm:$0xff]  }
0x27fe   :  { %v8390_v27 = vld [vmem:[%s12402_s28 + $0x30] sm:$0xff]  }
0x27ff   :  { %7885 = vmatprep.mubr.msk.bf16.mxu1 %vm6344_vm7, %v6462_v50  ;;  %v8391_v50 = vld [vmem:[%s12402_s28 + $0x38] sm:$0xff]  }
0x2800   :  { %7886 = vmatmul.mubr.msk.bf16.vlgmr.msra.gmra.mrb[156].mxu1 %vm6344_vm7, %v6463_v51  ;;  %v8400_v51 = vld [vmem:[%s12403_s21] sm:$0xff]  }
0x2801   :  { %7897 = vmatprep.mubr.msk.f32.mxu1 %vm9634_vm6, %v9635_v13 }
0x28d3   :  { %v7887_v54 = vpop.f32.mrb[156].mxu1 }
0x28d4   :  { %v6524_v32 = vmul.f32 %v7887_v54, %v6208_v7  ;;  %v6507_v23 = vpop.f32.mrb[157].mxu1  ;;  %v8403_v7 = vld [vmem:[%s12403_s21 + $0x18] sm:$0xff]   ;;  %v8405_v54 = vld [vmem:[%s12403_s21 + $0x28] sm:$0xff]  }
0x28d5   :  { %v6522_v4 = vmul.f32 %v6507_v23, %v6200_v60  ;;  %v7888_v52 = vpop.f32.mrb[158].mxu1  ;;  %v8404_v60 = vld [vmem:[%s12403_s21 + $0x20] sm:$0xff]  }
0x28d6   :  { %v6525_v15 = vmul.f32 %v7888_v52, %v6211_v43  ;;  %v6510_v28 = vpop.f32.mrb[159].mxu1 }
0x28d7   :  { %v6523_v6 = vmul.f32 %v6510_v28, %v6203_v57 }
0x28d8   :  { %v8022_v47 = vpack.c.bf16 %v6525_v15, %v6524_v32  ;;  %v7657_v15 = vld [vmem:[#allocation28] ss:$0 sm:$0xff] }
0x28d9   :  { %v8019_v58 = vpack.c.bf16 %v6523_v6, %v6522_v4  ;;  %v7656_v4 = vld [vmem:[#allocation27] ss:$0 sm:$0xff] }
0x28db   :  { %8020 = vmatpush3.bf16.msra.mxu1 %v8019_v58  ;;  %v8392_v58 = vld [vmem:[%s12404_s1] sm:$0xff]  }
0x28dc   :  { %8021 = vmatprep.subr.bf16.mxu1 %v9633_v10  ;;  %v8373_v10 = vld [vmem:[#allocation21 + $0x28] sm:$0xff]  }
0x28df   :  { %8023 = vmatpush3.bf16.msra.mxu1 %v8022_v47 }
0x28e0   :  { %7900 = vmatprep.subr.bf16.mxu1 %v9635_v13 }
0x28e2   :  { %7898 = vmatmul.mubr.msk.f32.vlgmr.msra.gmra.mrb[160].mxu1 %vm6371_vm8, %v6370_v61 }
0x28e3   :  { %7901 = vmatpush3.bf16.msra.mxu1 %v8368_v16  ;;  %7916 = vmatprep.mubr.msk.bf16.mxu1 %vm9634_vm6, %v9635_v13 }
0x28e4   :  { %7902 = vmatprep.subr.bf16.mxu1 %v9635_v13 }
0x28e7   :  { %7903 = vmatpush3.bf16.msra.mxu1 %v8369_v31  ;;  %v8393_v31 = vld [vmem:[%s12404_s1 + $0x8] sm:$0xff]  }
0x28e8   :  { %7904 = vmatprep.subr.bf16.mxu1 %v9635_v13 }
0x28eb   :  { %7905 = vmatpush3.bf16.msra.mxu1 %v8370_v34  ;;  %v8394_v34 = vld [vmem:[%s12404_s1 + $0x10] sm:$0xff]  }
0x28ec   :  { %7906 = vmatprep.subr.bf16.mxu1 %v9635_v13 }
0x28ef   :  { %7907 = vmatpush3.bf16.msra.mxu1 %v8371_v24  ;;  %v8395_v24 = vld [vmem:[%s12404_s1 + $0x18] sm:$0xff]  }
0x28f0   :  { %7908 = vmatprep.subr.bf16.mxu1 %v9635_v13 }
0x28f3   :  { %7909 = vmatpush3.bf16.msra.mxu1 %v8372_v26  ;;  %v8396_v26 = vld [vmem:[%s12404_s1 + $0x20] sm:$0xff]  }
0x28f4   :  { %7910 = vmatprep.subr.bf16.mxu1 %v9635_v13 }
0x28f7   :  { %7911 = vmatpush3.bf16.msra.mxu1 %v8373_v10  ;;  %v8397_v10 = vld [vmem:[%s12404_s1 + $0x28] sm:$0xff]  }
0x28f8   :  { %7912 = vmatprep.subr.bf16.mxu1 %v9635_v13 }
0x28fb   :  { %7913 = vmatpush3.bf16.msra.mxu1 %v8374_v14  ;;  %v8398_v14 = vld [vmem:[%s12404_s1 + $0x30] sm:$0xff]  }
0x28fc   :  { %7914 = vmatprep.subr.bf16.mxu1 %v9635_v13 }
0x28ff   :  { %7915 = vmatpush3.bf16.msra.mxu1 %v8375_v11  ;;  %v8399_v11 = vld [vmem:[%s12404_s1 + $0x38] sm:$0xff]  }
0x2900   :  { %7940 = vmatprep.subr.bf16.mxu1 %v9635_v13 }
0x29b5   :  { %v6592_v62 = vpop.f32.mrb[160].mxu1 }
0x29b6   :  { %v6612_v42 = vpack.c.bf16 %v6592_v62, %v6592_v62  ;;  %v7899_v5 = vpop.f32.mrb[161].mxu1 }
0x29b7   :  { %v8408_v5 = vld [vmem:[%s9796_s8] sm:$0xff]  }
0x29b8   :  { %7917 = vmatmul.mubr.bf16.vlgmr.msra.gmra.mrb[164].mxu1 %v6612_v42 }
0x29b9   :  { %7956 = vmatprep.mubr.msk.bf16.mxu1 %vm9634_vm6, %v9635_v13  ;;  %7941 = vmatpush3.bf16.msra.mxu1 %v8384_v35 }
0x29ba   :  { %7942 = vmatprep.subr.bf16.mxu1 %v9635_v13 }
0x29bd   :  { %7943 = vmatpush3.bf16.msra.mxu1 %v8385_v1 }
0x29be   :  { %7944 = vmatprep.subr.bf16.mxu1 %v9635_v13 }
0x29c1   :  { %7945 = vmatpush3.bf16.msra.mxu1 %v8386_v53 }
0x29c2   :  { %7946 = vmatprep.subr.bf16.mxu1 %v9635_v13 }
0x29c5   :  { %7947 = vmatpush3.bf16.msra.mxu1 %v8387_v2 }
0x29c6   :  { %7948 = vmatprep.subr.bf16.mxu1 %v9635_v13 }
0x29c9   :  { %7949 = vmatpush3.bf16.msra.mxu1 %v8388_v46 }
0x29ca   :  { %7950 = vmatprep.subr.bf16.mxu1 %v9635_v13 }
0x29cd   :  { %7951 = vmatpush3.bf16.msra.mxu1 %v8389_v22 }
0x29ce   :  { %7952 = vmatprep.subr.bf16.mxu1 %v9635_v13 }
0x29d1   :  { %7953 = vmatpush3.bf16.msra.mxu1 %v8390_v27 }
0x29d2   :  { %7954 = vmatprep.subr.bf16.mxu1 %v9635_v13 }
0x29d5   :  { %7955 = vmatpush3.bf16.msra.mxu1 %v8391_v50 }
0x29d6   :  { %7980 = vmatprep.subr.bf16.mxu1 %v9635_v13 }
0x2a8b   :  { %v6702_v25 = vpop.f32.mrb[164].mxu1 }
0x2a8c   :  { %v6703_v44 = vadd.f32 %v7638_v41, %v6702_v25  ;;  %v7918_v45 = vpop.f32.mrb[165].mxu1  ;;  %v8409_v41 = vld [vmem:[%s9796_s8 + $0x8] sm:$0xff]   ;;  %v8410_v25 = vld [vmem:[%s9796_s8 + $0x10] sm:$0xff]  }
0x2a8d   :  { %v6705_v17 = vpop.f32.mrb[166].mxu1  ;;  %v7676_v45 = vld [vmem:[#allocation33] ss:$0 sm:$0xff] }
0x2a8e   :  { %v12230_v40 = vpack.c.bf16 %v6703_v44, %v6703_v44  ;;  %v7919_v33 = vpop.f32.mrb[167].mxu1  ;;  %v8411_v44 = vld [vmem:[%s9796_s8 + $0x18] sm:$0xff]   ;;  %s9637_s8 = smov 10  }
0x2a90   :  { %7937 = vmatmul.mubr.bf16.vlgmr.msra.gmra.mrb[168].mxu0 %v12230_v40 }
0x2a91   :  { %7976 = vmatprep.mubr.msk.bf16.mxu0 %vm9634_vm6, %v9635_v13  ;;  %7961 = vmatpush3.bf16.msra.mxu0 %v8400_v51  ;;  %v7685_v51 = vld [vmem:[#allocation34] ss:$0 sm:$0xff] }
0x2a92   :  { %7962 = vmatprep.subr.bf16.mxu0 %v9635_v13 }
0x2a95   :  { %7963 = vmatpush3.bf16.msra.mxu0 %v8401_v18 }
0x2a96   :  { %7964 = vmatprep.subr.bf16.mxu0 %v9635_v13 }
0x2a99   :  { %7965 = vmatpush3.bf16.msra.mxu0 %v8402_v8 }
0x2a9a   :  { %7966 = vmatprep.subr.bf16.mxu0 %v9635_v13 }
0x2a9d   :  { %7967 = vmatpush3.bf16.msra.mxu0 %v8403_v7 }
0x2a9e   :  { %7968 = vmatprep.subr.bf16.mxu0 %v9635_v13 }
0x2aa1   :  { %7969 = vmatpush3.bf16.msra.mxu0 %v8404_v60 }
0x2aa2   :  { %7970 = vmatprep.subr.bf16.mxu0 %v9635_v13 }
0x2aa5   :  { %7971 = vmatpush3.bf16.msra.mxu0 %v8405_v54 }
0x2aa6   :  { %7972 = vmatprep.subr.bf16.mxu0 %v9635_v13 }
0x2aa9   :  { %7973 = vmatpush3.bf16.msra.mxu0 %v8406_v48 }
0x2aaa   :  { %7974 = vmatprep.subr.bf16.mxu0 %v9635_v13 }
0x2aad   :  { %7975 = vmatpush3.bf16.msra.mxu0 %v8407_v49 }
0x2aae   :  { %8000 = vmatprep.subr.bf16.mxu0 %v9635_v13 }
0x2b63   :  { %v6814_v9 = vpop.f32.mrb[168].mxu0 }
0x2b64   :  { %v6815_v36 = vadd.f32 %v7647_v59, %v6814_v9  ;;  %v7938_v61 = vpop.f32.mrb[169].mxu0 }
0x2b65   :  { %v6817_v0 = vpop.f32.mrb[170].mxu0 }
0x2b66   :  { %v7939_v30 = vpop.f32.mrb[171].mxu0  ;;  %v6820_v55 = vsel %vm563_vm4, %v6815_v36, 0.0  ;;  %v7667_v0 = vld [vmem:[#allocation31] ss:$0 sm:$0xff] }
0x2b67   :  { %6821 = vadd.xlane.f32.xlu0 %v6820_v55 }
0x2bf4   :  { %v6822_v39 = vpop.xlane.xlu0 %6821 }
0x2bf5   :  { %v6824_v37 = vmul.f32 0.0078125, %v6822_v39 }
0x2bf7   :  { %v6825_v29 = vsub.f32 %v6815_v36, %v6824_v37 }
0x2bf9   :  { %v6826_v56 = vmul.f32 %v6825_v29, %v6825_v29 }
0x2bfb   :  { %v6827_v21 = vsel %vm563_vm4, %v6826_v56, 0.0 }
0x2bfc   :  { %6828 = vadd.xlane.f32.xlu1 %v6827_v21 }
0x2c89   :  { %v6829_v43 = vpop.xlane.xlu1 %6828 }
0x2c8a   :  { %v6830_v32 = vmul.f32 0.0078125, %v6829_v43 }
0x2c8c   :  { %v6831_v23 = vadd.f32 1e-05, %v6830_v32 }
0x2c8e   :  { %8934 = vrsqrt.f32 %v6831_v23 }
0x2c98   :  { %v8935_v57 = vpop.eup %8934 }
0x2c99   :  { %v6833_v52 = vmul.f32 %v8935_v57, %v6825_v29 }
0x2c9b   :  { %v6841_v28 = vmul.f32 %v7656_v4, %v6833_v52 }
0x2c9d   :  { %v6849_v6 = vadd.f32 %v7657_v15, %v6841_v28 }
0x2c9f   :  { %v6850_v47 = vmax.f32 %v6849_v6, 0.0 }
0x2ca1   :  { %v6867_v16 = vpack.c.bf16 %v6850_v47, %v6850_v47 }
0x2ca3   :  { %7957 = vmatmul.mubr.bf16.vlgmr.msra.gmra.mrb[168].mxu1 %v6867_v16 }
0x2ca4   :  { %7981 = vmatpush3.bf16.msra.mxu1 %v8392_v58  ;;  %7996 = vmatprep.mubr.msk.bf16.mxu1 %vm9634_vm6, %v9635_v13 }
0x2ca5   :  { %7982 = vmatprep.subr.bf16.mxu1 %v9635_v13 }
0x2ca8   :  { %7983 = vmatpush3.bf16.msra.mxu1 %v8393_v31 }
0x2ca9   :  { %7984 = vmatprep.subr.bf16.mxu1 %v9635_v13 }
0x2cac   :  { %7985 = vmatpush3.bf16.msra.mxu1 %v8394_v34 }
0x2cad   :  { %7986 = vmatprep.subr.bf16.mxu1 %v9635_v13 }
0x2cb0   :  { %7987 = vmatpush3.bf16.msra.mxu1 %v8395_v24 }
0x2cb1   :  { %7988 = vmatprep.subr.bf16.mxu1 %v9635_v13 }
0x2cb4   :  { %7989 = vmatpush3.bf16.msra.mxu1 %v8396_v26 }
0x2cb5   :  { %7990 = vmatprep.subr.bf16.mxu1 %v9635_v13 }
0x2cb8   :  { %7991 = vmatpush3.bf16.msra.mxu1 %v8397_v10 }
0x2cb9   :  { %7992 = vmatprep.subr.bf16.mxu1 %v9635_v13 }
0x2cbc   :  { %7993 = vmatpush3.bf16.msra.mxu1 %v8398_v14 }
0x2cbd   :  { %7994 = vmatprep.subr.bf16.mxu1 %v9635_v13 }
0x2cc0   :  { %7995 = vmatpush3.bf16.msra.mxu1 %v8399_v11 }
0x2cc3   :  { %7997 = vmatmul.mubr.bf16.vlgmr.msra.gmra.mrb[172].mxu1 %v12230_v40 }
0x2d76   :  { %v6957_v63 = vpop.f32.mrb[168].mxu1 }
0x2d77   :  { %v6958_v12 = vadd.f32 %v7658_v38, %v6957_v63  ;;  %v7958_v3 = vpop.f32.mrb[169].mxu1 }
0x2d78   :  { %v6960_v19 = vpop.f32.mrb[170].mxu1 }
0x2d79   :  { %v6963_v62 = vmax.f32 %v6958_v12, 0.0  ;;  %v7959_v42 = vpop.f32.mrb[171].mxu1 }
0x2d7b   :  { %v6980_v20 = vpack.c.bf16 %v6963_v62, %v6963_v62 }
0x2d7d   :  { %7977 = vmatmul.mubr.bf16.vlgmr.msra.gmra.mrb[172].mxu0 %v6980_v20 }
0x2d7e   :  { %8001 = vmatpush3.bf16.msra.mxu0 %v8408_v5  ;;  %8008 = vmatprep.mubr.msk.bf16.mxu0 %vm9634_vm6, %v9635_v13 }
0x2d7f   :  { %8002 = vmatprep.subr.bf16.mxu0 %v9635_v13 }
0x2d82   :  { %8003 = vmatpush3.bf16.msra.mxu0 %v8409_v41 }
0x2d83   :  { %8004 = vmatprep.subr.bf16.mxu0 %v9635_v13 }
0x2d86   :  { %8005 = vmatpush3.bf16.msra.mxu0 %v8410_v25 }
0x2d87   :  { %8006 = vmatprep.subr.bf16.mxu0 %v9635_v13 }
0x2d8a   :  { %8007 = vmatpush3.bf16.msra.mxu0 %v8411_v44 }
0x2d96   :  { %v7197_v17 = vpop.f32.mrb[172].mxu1 }
0x2d97   :  { %v7198_v40 = vadd.f32 %v7676_v45, %v7197_v17  ;;  %v7998_v33 = vpop.f32.mrb[173].mxu1 }
0x2d98   :  { %v7200_v59 = vpop.f32.mrb[174].mxu1 }
0x2d99   :  { %v7203_v9 = vmax.f32 %v7198_v40, 0.0  ;;  %v7999_v36 = vpop.f32.mrb[175].mxu1 }
0x2d9b   :  { %v7212_v61 = vpack.c.bf16 %v7203_v9, %v7203_v9 }
0x2d9d   :  { %8009 = vmatmul.mubr.msk.bf16.vlgmr.msra.gmra.mrb[176].mxu0 %vm585_vm3, %v7212_v61 }
0x2e50   :  { %v7070_v30 = vpop.f32.mrb[172].mxu0 }
0x2e51   :  { %v7071_v55 = vadd.f32 %v7667_v0, %v7070_v30  ;;  %v7978_v35 = vpop.f32.mrb[173].mxu0 }
0x2e52   :  { %v7073_v1 = vpop.f32.mrb[174].mxu0 }
0x2e53   :  { %7082 = vrot.lane.b32.xlu0 %v7071_v55, %s9636_s14  ;;  %v7979_v39 = vpop.f32.mrb[175].mxu0 }
0x2e70   :  { %v7281_v13 = vpop.f32.mrb[176].mxu0 }
0x2e71   :  { %v8010_v37 = vpop.f32.mrb[177].mxu0  ;;  %v7282_v18 = vadd.f32 %v7685_v51, %v7281_v13 }
0x2e72   :  { %v7284_v29 = vpop.f32.mrb[178].mxu0 }
0x2e73   :  { %v8011_v56 = vpop.f32.mrb[179].mxu0 }
0x2ec5   :  { %v7083_v21 = vpop.permute.xlu0 %7082 }
0x2ec6   :  { %v7086_v53 = vsel %vm7085_vm9, %v7083_v21, 0.0 }
0x2ec7   :  { %7087 = vadd.xlane.f32.xlu1 %v7086_v53 }
0x2ed8   :  { %7078 = vperm.xlu1 %8112, %v7071_v55  }
0x2f54   :  { %v7088_v2 = vpop.xlane.xlu1 %7087 }
0x2f55   :  { %v7090_v22 = vmul.f32 0.1, %v7088_v2 }
0x2f58   :  { %v7079_v46 = vpop.permute.xlu1 %7078 }
0x2f59   :  { %v7081_v27 = vadd.f32 %v7079_v46, %v7071_v55 }
0x2f5b   :  { %v7091_v50 = vsub.f32 %v7081_v27, %v7090_v22 }
0x2f5d   :  { %7288 = vrot.lane.b32.xlu0 %v7091_v50, %s9636_s14 }
0x2f61   :  { %7292 = vrot.lane.b32.xlu0 %v7282_v18, %s9637_s8 }
0x2fcf   :  { %v7289_v8 = vpop.permute.xlu0 %7288 }
0x2fd3   :  { %v7293_v7 = vpop.permute.xlu0 %7292 }
0x2fd4   :  { %v7296_v60 = vsel %vm7295_vm10, %v7289_v8, %v7293_v7 }
0x2fd5   :  { %v7298_v54 = vsel %vm7297_vm11, %v7296_v60, 0.0 }
0x2fd6   :  { %7299 = vst [vmem:[%s9806_s27] sm:$0x3] %v7298_v54 }
0x2fd7   :  { %7304 = vsyncpa [#allocation3], 1 }
0x2fd8   :  { %7305 = vsyncpa [#allocation5], 1 }
0x2fd9   :  { %7306 = vsyncpa [#allocation8], 1 }
0x2fda   :  { %7307 = vsyncpa [#allocation11], 1 }
0x2fdb   :  { %7308 = vsyncpa [#allocation14], 1 }
0x2fdc   :  { %7309 = vsyncpa [#allocation17], 1 }
0x2fdd   :  { %7310 = vsyncpa [#allocation20], 1 }
0x2fde   :  { %7311 = vsyncpa [#allocation23], 1 }
0x2fdf   :  { %7312 = vsyncpa [#allocation26], 1 }
0x2fe0   :  { %7313 = vsyncpa [#allocation29], 1 }
0x2fe1   :  { %7314 = vsyncpa [#allocation32], 1 }
0x2fe2   :  { %7315 = vsyncpa [#allocation35], 1 }

</bundles_post_ra>
